<compile_context>
chip_gen: v6e
topology: v6e:2x2x1
jax: 0.10.0
libtpu: 0.0.40
codegen_flags: <defaults>
</compile_context>

<pallas_src>
import functools

import jax
import jax.numpy as jnp
from jax.experimental import pallas as pl
from jax.experimental.pallas import tpu as pltpu


def _round_up(n, m):
    return ((n + m - 1) // m) * m


# ----------------------------------------------------------------------------
# Kernel
# ----------------------------------------------------------------------------
def _lstm_kernel(T, B,
                 x_ref,                       # (T*B, F)   time-major, flattened
                 wih1_ref, whh1_ref, b1_ref,  # (F,4Hp), (Hp,4Hp), (1,4Hp)
                 w2f_ref, b2_ref,             # (2Hp,4Hp), (1,4Hp)  fused layer-2
                 wlin_ref, blin_ref,          # (Hp,OUTP), (1,OUTP)
                 out_ref,                     # (B, OUTP)
                 xproj_ref):                  # VMEM scratch (T*B, 4Hp)
    Hp = whh1_ref.shape[0]        # padded hidden width (multiple of 128)

    # --- Preamble: hoisted layer-1 input projection over all timesteps.
    # One (T*B, F) @ (F, 4Hp) matmul (bias b1 folded in) instead of T tiny ones.
    xproj_ref[...] = (
        jnp.dot(x_ref[...], wih1_ref[...], preferred_element_type=jnp.float32)
        + b1_ref[...])

    def activate(gates, c):
        # Gate g occupies lanes [g*Hp, (g+1)*Hp) -> full-vreg, lane-aligned
        # slices; whole-vreg transcendentals (no sub-vreg relayouts).
        i_g = jax.nn.sigmoid(gates[:, 0 * Hp:1 * Hp])
        f_g = jax.nn.sigmoid(gates[:, 1 * Hp:2 * Hp])
        g_g = jnp.tanh(gates[:, 2 * Hp:3 * Hp])
        o_g = jax.nn.sigmoid(gates[:, 3 * Hp:4 * Hp])
        c_new = f_g * c + i_g * g_g
        h_new = o_g * jnp.tanh(c_new)
        return h_new, c_new

    def step(t, carry):
        h1, c1, h2, c2 = carry
        row = pl.multiple_of(t * B, B)
        x_t = xproj_ref[pl.ds(row, B), :]                      # (B, 4Hp)
        # Layer 1: only the recurrent matmul remains on the serial path.
        g1 = x_t + jnp.dot(h1, whh1_ref[...],
                           preferred_element_type=jnp.float32)
        h1, c1 = activate(g1, c1)
        # Layer 2: single fused MXU launch  [h1, h2] @ [W_ih2; W_hh2].
        cat = jnp.concatenate([h1, h2], axis=-1)               # (B, 2Hp)
        g2 = (jnp.dot(cat, w2f_ref[...],
                      preferred_element_type=jnp.float32) + b2_ref[...])
        h2, c2 = activate(g2, c2)
        return h1, c1, h2, c2

    z = jnp.zeros((B, Hp), jnp.float32)
    _, _, h2, _ = jax.lax.fori_loop(0, T, step, (z, z, z, z), unroll=True)

    # Final Linear on the last hidden state; output kept lane-dense (OUTP=128).
    out_ref[...] = (jnp.dot(h2, wlin_ref[...],
                            preferred_element_type=jnp.float32)
                    + blin_ref[...])


# ----------------------------------------------------------------------------
# Parameter packing: pad each gate's H columns to its own 128-lane block and
# pre-fuse layer-2's [W_ih; W_hh].  Padded rows/columns are zero, so padded
# lanes of h/c stay exactly 0 throughout the recurrence.
# ----------------------------------------------------------------------------
def _pad_gate_cols(w, H, Hp):
    """(K, 4H) -> (K, 4Hp): gate g's H columns land at lane offset g*Hp."""
    K = w.shape[0]
    out = jnp.zeros((K, 4 * Hp), jnp.float32)
    for g in range(4):
        out = out.at[:, g * Hp:g * Hp + H].set(w[:, g * H:(g + 1) * H])
    return out


def _pack_params(p, H, Hp, OUT, OUTP):
    wih1 = _pad_gate_cols(p["w_ih1"], H, Hp)                           # (F,4Hp)
    whh1 = jnp.zeros((Hp, 4 * Hp), jnp.float32).at[:H, :].set(
        _pad_gate_cols(p["w_hh1"], H, Hp))                             # (Hp,4Hp)
    b1 = _pad_gate_cols(p["b1"], H, Hp)                                # (1,4Hp)
    w2f = jnp.zeros((2 * Hp, 4 * Hp), jnp.float32)
    w2f = w2f.at[:H, :].set(_pad_gate_cols(p["w_ih2"], H, Hp))         # rows: h1
    w2f = w2f.at[Hp:Hp + H, :].set(_pad_gate_cols(p["w_hh2"], H, Hp))  # rows: h2
    b2 = _pad_gate_cols(p["b2"], H, Hp)
    wlin = jnp.zeros((Hp, OUTP), jnp.float32).at[:H, :OUT].set(p["w_lin"])
    blin = jnp.zeros((1, OUTP), jnp.float32).at[:, :OUT].set(p["b_lin"])
    return wih1, whh1, b1, w2f, b2, wlin, blin


# ----------------------------------------------------------------------------
# Wrapper (takes batch-major (B, T, F) like the PyTorch module)
# ----------------------------------------------------------------------------
@functools.partial(jax.jit, static_argnames=())
def my_lstm_forward(x_btf, params):
    """x_btf: (B, T, F) float32.  Returns (B, OUT) float32."""
    B, T, F = x_btf.shape
    H = params["w_hh1"].shape[0]        # w_hh1 stored transposed: (H, 4H)
    OUT = params["w_lin"].shape[1]
    Hp = _round_up(H, 128)              # lane-pad hidden width
    OUTP = _round_up(OUT, 128)          # lane-dense output width

    packed = _pack_params(params, H, Hp, OUT, OUTP)
    # Time-major, flattened so rows [t*B, (t+1)*B) are timestep t.
    x_flat = jnp.transpose(x_btf, (1, 0, 2)).reshape(T * B, F)

    vmem = lambda: pl.BlockSpec(memory_space=pltpu.MemorySpace.VMEM)
    out_pad = pl.pallas_call(
        functools.partial(_lstm_kernel, T, B),
        out_shape=jax.ShapeDtypeStruct((B, OUTP), jnp.float32),
        in_specs=[vmem() for _ in range(8)],
        out_specs=vmem(),
        scratch_shapes=[pltpu.VMEM((T * B, 4 * Hp), jnp.float32)],
        compiler_params=pltpu.CompilerParams(vmem_limit_bytes=64 << 20),
    )(x_flat, *packed)
    # NOTE: for very long T, block e.g. 64-128 timesteps per grid step instead
    # of keeping the whole sequence resident; unnecessary at these sizes.
    return out_pad[:, :OUT]


# ----------------------------------------------------------------------------
# Pure-JAX reference matching the PyTorch forward (for verification)
# ----------------------------------------------------------------------------
def _reference(x_btf, params):
    B, T, F = x_btf.shape
    H = params["w_hh1"].shape[0]
    hi = jax.lax.Precision.HIGHEST

    def cell(x_in, h, c, wih, whh, b):
        gates = (jnp.dot(x_in, wih, precision=hi)
                 + jnp.dot(h, whh, precision=hi) + b)
        i_g = jax.nn.sigmoid(gates[:, 0 * H:1 * H])
        f_g = jax.nn.sigmoid(gates[:, 1 * H:2 * H])
        g_g = jnp.tanh(gates[:, 2 * H:3 * H])
        o_g = jax.nn.sigmoid(gates[:, 3 * H:4 * H])
        c_new = f_g * c + i_g * g_g
        return o_g * jnp.tanh(c_new), c_new

    h1 = c1 = h2 = c2 = jnp.zeros((B, H), jnp.float32)
    for t in range(T):
        h1, c1 = cell(x_btf[:, t, :], h1, c1,
                      params["w_ih1"], params["w_hh1"], params["b1"])
        h2, c2 = cell(h1, h2, c2,
                      params["w_ih2"], params["w_hh2"], params["b2"])
    return jnp.dot(h2, params["w_lin"], precision=hi) + params["b_lin"]


def init_params(key, feature_size, hidden_size, output_size=1):
    """Synthetic parameters (shapes from MyLSTM.__init__).  Weights are stored
    pre-transposed for right-multiplication; the two LSTMCell biases
    (b_ih + b_hh) are pre-summed.  Gate order: i, f, g, o."""
    ks = jax.random.split(key, 8)
    H, F, O = hidden_size, feature_size, output_size
    s = 0.1
    return {
        "w_ih1": s * jax.random.normal(ks[0], (F, 4 * H), jnp.float32),
        "w_hh1": s * jax.random.normal(ks[1], (H, 4 * H), jnp.float32),
        "b1":    s * jax.random.normal(ks[2], (1, 4 * H), jnp.float32),
        "w_ih2": s * jax.random.normal(ks[3], (H, 4 * H), jnp.float32),
        "w_hh2": s * jax.random.normal(ks[4], (H, 4 * H), jnp.float32),
        "b2":    s * jax.random.normal(ks[5], (1, 4 * H), jnp.float32),
        "w_lin": s * jax.random.normal(ks[6], (H, O), jnp.float32),
        "b_lin": s * jax.random.normal(ks[7], (1, O), jnp.float32),
    }


if __name__ == "__main__":
    B, T, F, H = 8, 8, 16, 32   # batch, seq, feature_size, hidden_size
    key = jax.random.PRNGKey(0)
    k_x, k_p = jax.random.split(key)

    # PyTorch forward takes (batch, seq, feature).
    x_btf = jax.random.normal(k_x, (B, T, F), jnp.float32)
    params = init_params(k_p, F, H, output_size=1)

    out = jax.block_until_ready(my_lstm_forward(x_btf, params))
    ref = _reference(x_btf, params)

    assert out.shape == (B, 1), out.shape
    max_diff = float(jnp.max(jnp.abs(out - ref)))
    assert jnp.allclose(out, ref, atol=5e-3, rtol=5e-3), f"max|diff|={max_diff}"

    print("KERNEL_OK")
</pallas_src>

<mosaic_0001>
module attributes {stable_mosaic.version = 11 : i64} {
  func.func @_lstm_kernel(%arg0: memref<64x16xf32, #tpu.memory_space<vmem>>, %arg1: memref<16x512xf32, #tpu.memory_space<vmem>>, %arg2: memref<128x512xf32, #tpu.memory_space<vmem>>, %arg3: memref<1x512xf32, #tpu.memory_space<vmem>>, %arg4: memref<256x512xf32, #tpu.memory_space<vmem>>, %arg5: memref<1x512xf32, #tpu.memory_space<vmem>>, %arg6: memref<128x128xf32, #tpu.memory_space<vmem>>, %arg7: memref<1x128xf32, #tpu.memory_space<vmem>>, %arg8: memref<8x128xf32, #tpu.memory_space<vmem>>, %arg9: memref<64x512xf32, #tpu.memory_space<vmem>>) attributes {dimension_semantics = [], scalar_prefetch = 0 : i64, scratch_operands = 1 : i64, tpu.core_type = #tpu.core_type<tc>} {
    %c0 = arith.constant 0 : index
    %c0_0 = arith.constant 0 : index
    %0 = vector.load %arg0[%c0, %c0_0] : memref<64x16xf32, #tpu.memory_space<vmem>>, vector<64x16xf32>
    %c0_1 = arith.constant 0 : index
    %c0_2 = arith.constant 0 : index
    %1 = vector.load %arg1[%c0_1, %c0_2] : memref<16x512xf32, #tpu.memory_space<vmem>>, vector<16x512xf32>
    %cst = arith.constant dense<0.000000e+00> : vector<64x512xf32>
    %2 = tpu.matmul %0, %1, %cst {dimension_numbers = #tpu.dot_dimension_numbers<[1], [0], [0], [1], [0, 0, 1, 1], [], []>} : vector<64x16xf32>, vector<16x512xf32>, vector<64x512xf32> -> vector<64x512xf32>
    %c0_3 = arith.constant 0 : index
    %c0_4 = arith.constant 0 : index
    %3 = vector.load %arg3[%c0_3, %c0_4] : memref<1x512xf32, #tpu.memory_space<vmem>>, vector<1x512xf32>
    %4 = vector.broadcast %3 : vector<1x512xf32> to vector<64x512xf32>
    %5 = arith.addf %2, %4 : vector<64x512xf32>
    %c0_5 = arith.constant 0 : index
    %c0_6 = arith.constant 0 : index
    %6 = vector.load %arg9[%c0_5, %c0_6] : memref<64x512xf32, #tpu.memory_space<vmem>>, vector<64x512xf32>
    tpu.vector_store %arg9[%c0_5, %c0_6], %5 {strides = array<i32>} : memref<64x512xf32, #tpu.memory_space<vmem>>, vector<64x512xf32>,
    %cst_7 = arith.constant 0.000000e+00 : f32
    %7 = vector.broadcast %cst_7 : f32 to vector<8x128xf32>
    %c0_i32 = arith.constant 0 : i32
    %c8_i32 = arith.constant 8 : i32
    %8 = arith.muli %c0_i32, %c8_i32 : i32
    %9 = tpu.assume_multiple %8, 8 : i32
    %10 = arith.index_cast %9 : i32 to index
    %c0_8 = arith.constant 0 : index
    %11 = vector.load %arg9[%10, %c0_8] : memref<64x512xf32, #tpu.memory_space<vmem>>, vector<8x512xf32>
    %c0_9 = arith.constant 0 : index
    %c0_10 = arith.constant 0 : index
    %12 = vector.load %arg2[%c0_9, %c0_10] : memref<128x512xf32, #tpu.memory_space<vmem>>, vector<128x512xf32>
    %cst_11 = arith.constant dense<0.000000e+00> : vector<8x512xf32>
    %13 = tpu.matmul %7, %12, %cst_11 {dimension_numbers = #tpu.dot_dimension_numbers<[1], [0], [0], [1], [0, 0, 1, 1], [], []>} : vector<8x128xf32>, vector<128x512xf32>, vector<8x512xf32> -> vector<8x512xf32>
    %14 = arith.addf %11, %13 : vector<8x512xf32>
    %15 = vector.extract_strided_slice %14 {offsets = [0, 0], sizes = [8, 128], strides = [1, 1]} : vector<8x512xf32> to vector<8x128xf32>
    %16 = arith.negf %15 : vector<8x128xf32>
    %17 = math.exp %16 : vector<8x128xf32>
    %cst_12 = arith.constant 1.000000e+00 : f32
    %18 = vector.broadcast %cst_12 : f32 to vector<8x128xf32>
    %19 = arith.addf %18, %17 : vector<8x128xf32>
    %20 = arith.divf %18, %19 : vector<8x128xf32>
    %21 = vector.extract_strided_slice %14 {offsets = [0, 128], sizes = [8, 128], strides = [1, 1]} : vector<8x512xf32> to vector<8x128xf32>
    %22 = arith.negf %21 : vector<8x128xf32>
    %23 = math.exp %22 : vector<8x128xf32>
    %cst_13 = arith.constant 1.000000e+00 : f32
    %24 = vector.broadcast %cst_13 : f32 to vector<8x128xf32>
    %25 = arith.addf %24, %23 : vector<8x128xf32>
    %26 = arith.divf %24, %25 : vector<8x128xf32>
    %27 = vector.extract_strided_slice %14 {offsets = [0, 256], sizes = [8, 128], strides = [1, 1]} : vector<8x512xf32> to vector<8x128xf32>
    %28 = math.tanh %27 : vector<8x128xf32>
    %29 = vector.extract_strided_slice %14 {offsets = [0, 384], sizes = [8, 128], strides = [1, 1]} : vector<8x512xf32> to vector<8x128xf32>
    %30 = arith.negf %29 : vector<8x128xf32>
    %31 = math.exp %30 : vector<8x128xf32>
    %cst_14 = arith.constant 1.000000e+00 : f32
    %32 = vector.broadcast %cst_14 : f32 to vector<8x128xf32>
    %33 = arith.addf %32, %31 : vector<8x128xf32>
    %34 = arith.divf %32, %33 : vector<8x128xf32>
    %35 = arith.mulf %26, %7 : vector<8x128xf32>
    %36 = arith.mulf %20, %28 : vector<8x128xf32>
    %37 = arith.addf %35, %36 : vector<8x128xf32>
    %38 = math.tanh %37 : vector<8x128xf32>
    %39 = arith.mulf %34, %38 : vector<8x128xf32>
    %40 = tpu.concatenate %39, %7 in 1 : vector<8x128xf32>, vector<8x128xf32> -> vector<8x256xf32>
    %c0_15 = arith.constant 0 : index
    %c0_16 = arith.constant 0 : index
    %41 = vector.load %arg4[%c0_15, %c0_16] : memref<256x512xf32, #tpu.memory_space<vmem>>, vector<256x512xf32>
    %cst_17 = arith.constant dense<0.000000e+00> : vector<8x512xf32>
    %42 = tpu.matmul %40, %41, %cst_17 {dimension_numbers = #tpu.dot_dimension_numbers<[1], [0], [0], [1], [0, 0, 1, 1], [], []>} : vector<8x256xf32>, vector<256x512xf32>, vector<8x512xf32> -> vector<8x512xf32>
    %c0_18 = arith.constant 0 : index
    %c0_19 = arith.constant 0 : index
    %43 = vector.load %arg5[%c0_18, %c0_19] : memref<1x512xf32, #tpu.memory_space<vmem>>, vector<1x512xf32>
    %44 = vector.broadcast %43 : vector<1x512xf32> to vector<8x512xf32>
    %45 = arith.addf %42, %44 : vector<8x512xf32>
    %46 = vector.extract_strided_slice %45 {offsets = [0, 0], sizes = [8, 128], strides = [1, 1]} : vector<8x512xf32> to vector<8x128xf32>
    %47 = arith.negf %46 : vector<8x128xf32>
    %48 = math.exp %47 : vector<8x128xf32>
    %cst_20 = arith.constant 1.000000e+00 : f32
    %49 = vector.broadcast %cst_20 : f32 to vector<8x128xf32>
    %50 = arith.addf %49, %48 : vector<8x128xf32>
    %51 = arith.divf %49, %50 : vector<8x128xf32>
    %52 = vector.extract_strided_slice %45 {offsets = [0, 128], sizes = [8, 128], strides = [1, 1]} : vector<8x512xf32> to vector<8x128xf32>
    %53 = arith.negf %52 : vector<8x128xf32>
    %54 = math.exp %53 : vector<8x128xf32>
    %cst_21 = arith.constant 1.000000e+00 : f32
    %55 = vector.broadcast %cst_21 : f32 to vector<8x128xf32>
    %56 = arith.addf %55, %54 : vector<8x128xf32>
    %57 = arith.divf %55, %56 : vector<8x128xf32>
    %58 = vector.extract_strided_slice %45 {offsets = [0, 256], sizes = [8, 128], strides = [1, 1]} : vector<8x512xf32> to vector<8x128xf32>
    %59 = math.tanh %58 : vector<8x128xf32>
    %60 = vector.extract_strided_slice %45 {offsets = [0, 384], sizes = [8, 128], strides = [1, 1]} : vector<8x512xf32> to vector<8x128xf32>
    %61 = arith.negf %60 : vector<8x128xf32>
    %62 = math.exp %61 : vector<8x128xf32>
    %cst_22 = arith.constant 1.000000e+00 : f32
    %63 = vector.broadcast %cst_22 : f32 to vector<8x128xf32>
    %64 = arith.addf %63, %62 : vector<8x128xf32>
    %65 = arith.divf %63, %64 : vector<8x128xf32>
    %66 = arith.mulf %57, %7 : vector<8x128xf32>
    %67 = arith.mulf %51, %59 : vector<8x128xf32>
    %68 = arith.addf %66, %67 : vector<8x128xf32>
    %69 = math.tanh %68 : vector<8x128xf32>
    %70 = arith.mulf %65, %69 : vector<8x128xf32>
    %c1_i32 = arith.constant 1 : i32
    %c8_i32_23 = arith.constant 8 : i32
    %71 = arith.muli %c1_i32, %c8_i32_23 : i32
    %72 = tpu.assume_multiple %71, 8 : i32
    %73 = arith.index_cast %72 : i32 to index
    %c0_24 = arith.constant 0 : index
    %74 = vector.load %arg9[%73, %c0_24] : memref<64x512xf32, #tpu.memory_space<vmem>>, vector<8x512xf32>
    %c0_25 = arith.constant 0 : index
    %c0_26 = arith.constant 0 : index
    %75 = vector.load %arg2[%c0_25, %c0_26] : memref<128x512xf32, #tpu.memory_space<vmem>>, vector<128x512xf32>
    %cst_27 = arith.constant dense<0.000000e+00> : vector<8x512xf32>
    %76 = tpu.matmul %39, %75, %cst_27 {dimension_numbers = #tpu.dot_dimension_numbers<[1], [0], [0], [1], [0, 0, 1, 1], [], []>} : vector<8x128xf32>, vector<128x512xf32>, vector<8x512xf32> -> vector<8x512xf32>
    %77 = arith.addf %74, %76 : vector<8x512xf32>
    %78 = vector.extract_strided_slice %77 {offsets = [0, 0], sizes = [8, 128], strides = [1, 1]} : vector<8x512xf32> to vector<8x128xf32>
    %79 = arith.negf %78 : vector<8x128xf32>
    %80 = math.exp %79 : vector<8x128xf32>
    %cst_28 = arith.constant 1.000000e+00 : f32
    %81 = vector.broadcast %cst_28 : f32 to vector<8x128xf32>
    %82 = arith.addf %81, %80 : vector<8x128xf32>
    %83 = arith.divf %81, %82 : vector<8x128xf32>
    %84 = vector.extract_strided_slice %77 {offsets = [0, 128], sizes = [8, 128], strides = [1, 1]} : vector<8x512xf32> to vector<8x128xf32>
    %85 = arith.negf %84 : vector<8x128xf32>
    %86 = math.exp %85 : vector<8x128xf32>
    %cst_29 = arith.constant 1.000000e+00 : f32
    %87 = vector.broadcast %cst_29 : f32 to vector<8x128xf32>
    %88 = arith.addf %87, %86 : vector<8x128xf32>
    %89 = arith.divf %87, %88 : vector<8x128xf32>
    %90 = vector.extract_strided_slice %77 {offsets = [0, 256], sizes = [8, 128], strides = [1, 1]} : vector<8x512xf32> to vector<8x128xf32>
    %91 = math.tanh %90 : vector<8x128xf32>
    %92 = vector.extract_strided_slice %77 {offsets = [0, 384], sizes = [8, 128], strides = [1, 1]} : vector<8x512xf32> to vector<8x128xf32>
    %93 = arith.negf %92 : vector<8x128xf32>
    %94 = math.exp %93 : vector<8x128xf32>
    %cst_30 = arith.constant 1.000000e+00 : f32
    %95 = vector.broadcast %cst_30 : f32 to vector<8x128xf32>
    %96 = arith.addf %95, %94 : vector<8x128xf32>
    %97 = arith.divf %95, %96 : vector<8x128xf32>
    %98 = arith.mulf %89, %37 : vector<8x128xf32>
    %99 = arith.mulf %83, %91 : vector<8x128xf32>
    %100 = arith.addf %98, %99 : vector<8x128xf32>
    %101 = math.tanh %100 : vector<8x128xf32>
    %102 = arith.mulf %97, %101 : vector<8x128xf32>
    %103 = tpu.concatenate %102, %70 in 1 : vector<8x128xf32>, vector<8x128xf32> -> vector<8x256xf32>
    %c0_31 = arith.constant 0 : index
    %c0_32 = arith.constant 0 : index
    %104 = vector.load %arg4[%c0_31, %c0_32] : memref<256x512xf32, #tpu.memory_space<vmem>>, vector<256x512xf32>
    %cst_33 = arith.constant dense<0.000000e+00> : vector<8x512xf32>
    %105 = tpu.matmul %103, %104, %cst_33 {dimension_numbers = #tpu.dot_dimension_numbers<[1], [0], [0], [1], [0, 0, 1, 1], [], []>} : vector<8x256xf32>, vector<256x512xf32>, vector<8x512xf32> -> vector<8x512xf32>
    %c0_34 = arith.constant 0 : index
    %c0_35 = arith.constant 0 : index
    %106 = vector.load %arg5[%c0_34, %c0_35] : memref<1x512xf32, #tpu.memory_space<vmem>>, vector<1x512xf32>
    %107 = vector.broadcast %106 : vector<1x512xf32> to vector<8x512xf32>
    %108 = arith.addf %105, %107 : vector<8x512xf32>
    %109 = vector.extract_strided_slice %108 {offsets = [0, 0], sizes = [8, 128], strides = [1, 1]} : vector<8x512xf32> to vector<8x128xf32>
    %110 = arith.negf %109 : vector<8x128xf32>
    %111 = math.exp %110 : vector<8x128xf32>
    %cst_36 = arith.constant 1.000000e+00 : f32
    %112 = vector.broadcast %cst_36 : f32 to vector<8x128xf32>
    %113 = arith.addf %112, %111 : vector<8x128xf32>
    %114 = arith.divf %112, %113 : vector<8x128xf32>
    %115 = vector.extract_strided_slice %108 {offsets = [0, 128], sizes = [8, 128], strides = [1, 1]} : vector<8x512xf32> to vector<8x128xf32>
    %116 = arith.negf %115 : vector<8x128xf32>
    %117 = math.exp %116 : vector<8x128xf32>
    %cst_37 = arith.constant 1.000000e+00 : f32
    %118 = vector.broadcast %cst_37 : f32 to vector<8x128xf32>
    %119 = arith.addf %118, %117 : vector<8x128xf32>
    %120 = arith.divf %118, %119 : vector<8x128xf32>
    %121 = vector.extract_strided_slice %108 {offsets = [0, 256], sizes = [8, 128], strides = [1, 1]} : vector<8x512xf32> to vector<8x128xf32>
    %122 = math.tanh %121 : vector<8x128xf32>
    %123 = vector.extract_strided_slice %108 {offsets = [0, 384], sizes = [8, 128], strides = [1, 1]} : vector<8x512xf32> to vector<8x128xf32>
    %124 = arith.negf %123 : vector<8x128xf32>
    %125 = math.exp %124 : vector<8x128xf32>
    %cst_38 = arith.constant 1.000000e+00 : f32
    %126 = vector.broadcast %cst_38 : f32 to vector<8x128xf32>
    %127 = arith.addf %126, %125 : vector<8x128xf32>
    %128 = arith.divf %126, %127 : vector<8x128xf32>
    %129 = arith.mulf %120, %68 : vector<8x128xf32>
    %130 = arith.mulf %114, %122 : vector<8x128xf32>
    %131 = arith.addf %129, %130 : vector<8x128xf32>
    %132 = math.tanh %131 : vector<8x128xf32>
    %133 = arith.mulf %128, %132 : vector<8x128xf32>
    %c2_i32 = arith.constant 2 : i32
    %c8_i32_39 = arith.constant 8 : i32
    %134 = arith.muli %c2_i32, %c8_i32_39 : i32
    %135 = tpu.assume_multiple %134, 8 : i32
    %136 = arith.index_cast %135 : i32 to index
    %c0_40 = arith.constant 0 : index
    %137 = vector.load %arg9[%136, %c0_40] : memref<64x512xf32, #tpu.memory_space<vmem>>, vector<8x512xf32>
    %c0_41 = arith.constant 0 : index
    %c0_42 = arith.constant 0 : index
    %138 = vector.load %arg2[%c0_41, %c0_42] : memref<128x512xf32, #tpu.memory_space<vmem>>, vector<128x512xf32>
    %cst_43 = arith.constant dense<0.000000e+00> : vector<8x512xf32>
    %139 = tpu.matmul %102, %138, %cst_43 {dimension_numbers = #tpu.dot_dimension_numbers<[1], [0], [0], [1], [0, 0, 1, 1], [], []>} : vector<8x128xf32>, vector<128x512xf32>, vector<8x512xf32> -> vector<8x512xf32>
    %140 = arith.addf %137, %139 : vector<8x512xf32>
    %141 = vector.extract_strided_slice %140 {offsets = [0, 0], sizes = [8, 128], strides = [1, 1]} : vector<8x512xf32> to vector<8x128xf32>
    %142 = arith.negf %141 : vector<8x128xf32>
    %143 = math.exp %142 : vector<8x128xf32>
    %cst_44 = arith.constant 1.000000e+00 : f32
    %144 = vector.broadcast %cst_44 : f32 to vector<8x128xf32>
    %145 = arith.addf %144, %143 : vector<8x128xf32>
    %146 = arith.divf %144, %145 : vector<8x128xf32>
    %147 = vector.extract_strided_slice %140 {offsets = [0, 128], sizes = [8, 128], strides = [1, 1]} : vector<8x512xf32> to vector<8x128xf32>
    %148 = arith.negf %147 : vector<8x128xf32>
    %149 = math.exp %148 : vector<8x128xf32>
    %cst_45 = arith.constant 1.000000e+00 : f32
    %150 = vector.broadcast %cst_45 : f32 to vector<8x128xf32>
    %151 = arith.addf %150, %149 : vector<8x128xf32>
    %152 = arith.divf %150, %151 : vector<8x128xf32>
    %153 = vector.extract_strided_slice %140 {offsets = [0, 256], sizes = [8, 128], strides = [1, 1]} : vector<8x512xf32> to vector<8x128xf32>
    %154 = math.tanh %153 : vector<8x128xf32>
    %155 = vector.extract_strided_slice %140 {offsets = [0, 384], sizes = [8, 128], strides = [1, 1]} : vector<8x512xf32> to vector<8x128xf32>
    %156 = arith.negf %155 : vector<8x128xf32>
    %157 = math.exp %156 : vector<8x128xf32>
    %cst_46 = arith.constant 1.000000e+00 : f32
    %158 = vector.broadcast %cst_46 : f32 to vector<8x128xf32>
    %159 = arith.addf %158, %157 : vector<8x128xf32>
    %160 = arith.divf %158, %159 : vector<8x128xf32>
    %161 = arith.mulf %152, %100 : vector<8x128xf32>
    %162 = arith.mulf %146, %154 : vector<8x128xf32>
    %163 = arith.addf %161, %162 : vector<8x128xf32>
    %164 = math.tanh %163 : vector<8x128xf32>
    %165 = arith.mulf %160, %164 : vector<8x128xf32>
    %166 = tpu.concatenate %165, %133 in 1 : vector<8x128xf32>, vector<8x128xf32> -> vector<8x256xf32>
    %c0_47 = arith.constant 0 : index
    %c0_48 = arith.constant 0 : index
    %167 = vector.load %arg4[%c0_47, %c0_48] : memref<256x512xf32, #tpu.memory_space<vmem>>, vector<256x512xf32>
    %cst_49 = arith.constant dense<0.000000e+00> : vector<8x512xf32>
    %168 = tpu.matmul %166, %167, %cst_49 {dimension_numbers = #tpu.dot_dimension_numbers<[1], [0], [0], [1], [0, 0, 1, 1], [], []>} : vector<8x256xf32>, vector<256x512xf32>, vector<8x512xf32> -> vector<8x512xf32>
    %c0_50 = arith.constant 0 : index
    %c0_51 = arith.constant 0 : index
    %169 = vector.load %arg5[%c0_50, %c0_51] : memref<1x512xf32, #tpu.memory_space<vmem>>, vector<1x512xf32>
    %170 = vector.broadcast %169 : vector<1x512xf32> to vector<8x512xf32>
    %171 = arith.addf %168, %170 : vector<8x512xf32>
    %172 = vector.extract_strided_slice %171 {offsets = [0, 0], sizes = [8, 128], strides = [1, 1]} : vector<8x512xf32> to vector<8x128xf32>
    %173 = arith.negf %172 : vector<8x128xf32>
    %174 = math.exp %173 : vector<8x128xf32>
    %cst_52 = arith.constant 1.000000e+00 : f32
    %175 = vector.broadcast %cst_52 : f32 to vector<8x128xf32>
    %176 = arith.addf %175, %174 : vector<8x128xf32>
    %177 = arith.divf %175, %176 : vector<8x128xf32>
    %178 = vector.extract_strided_slice %171 {offsets = [0, 128], sizes = [8, 128], strides = [1, 1]} : vector<8x512xf32> to vector<8x128xf32>
    %179 = arith.negf %178 : vector<8x128xf32>
    %180 = math.exp %179 : vector<8x128xf32>
    %cst_53 = arith.constant 1.000000e+00 : f32
    %181 = vector.broadcast %cst_53 : f32 to vector<8x128xf32>
    %182 = arith.addf %181, %180 : vector<8x128xf32>
    %183 = arith.divf %181, %182 : vector<8x128xf32>
    %184 = vector.extract_strided_slice %171 {offsets = [0, 256], sizes = [8, 128], strides = [1, 1]} : vector<8x512xf32> to vector<8x128xf32>
    %185 = math.tanh %184 : vector<8x128xf32>
    %186 = vector.extract_strided_slice %171 {offsets = [0, 384], sizes = [8, 128], strides = [1, 1]} : vector<8x512xf32> to vector<8x128xf32>
    %187 = arith.negf %186 : vector<8x128xf32>
    %188 = math.exp %187 : vector<8x128xf32>
    %cst_54 = arith.constant 1.000000e+00 : f32
    %189 = vector.broadcast %cst_54 : f32 to vector<8x128xf32>
    %190 = arith.addf %189, %188 : vector<8x128xf32>
    %191 = arith.divf %189, %190 : vector<8x128xf32>
    %192 = arith.mulf %183, %131 : vector<8x128xf32>
    %193 = arith.mulf %177, %185 : vector<8x128xf32>
    %194 = arith.addf %192, %193 : vector<8x128xf32>
    %195 = math.tanh %194 : vector<8x128xf32>
    %196 = arith.mulf %191, %195 : vector<8x128xf32>
    %c3_i32 = arith.constant 3 : i32
    %c8_i32_55 = arith.constant 8 : i32
    %197 = arith.muli %c3_i32, %c8_i32_55 : i32
    %198 = tpu.assume_multiple %197, 8 : i32
    %199 = arith.index_cast %198 : i32 to index
    %c0_56 = arith.constant 0 : index
    %200 = vector.load %arg9[%199, %c0_56] : memref<64x512xf32, #tpu.memory_space<vmem>>, vector<8x512xf32>
    %c0_57 = arith.constant 0 : index
    %c0_58 = arith.constant 0 : index
    %201 = vector.load %arg2[%c0_57, %c0_58] : memref<128x512xf32, #tpu.memory_space<vmem>>, vector<128x512xf32>
    %cst_59 = arith.constant dense<0.000000e+00> : vector<8x512xf32>
    %202 = tpu.matmul %165, %201, %cst_59 {dimension_numbers = #tpu.dot_dimension_numbers<[1], [0], [0], [1], [0, 0, 1, 1], [], []>} : vector<8x128xf32>, vector<128x512xf32>, vector<8x512xf32> -> vector<8x512xf32>
    %203 = arith.addf %200, %202 : vector<8x512xf32>
    %204 = vector.extract_strided_slice %203 {offsets = [0, 0], sizes = [8, 128], strides = [1, 1]} : vector<8x512xf32> to vector<8x128xf32>
    %205 = arith.negf %204 : vector<8x128xf32>
    %206 = math.exp %205 : vector<8x128xf32>
    %cst_60 = arith.constant 1.000000e+00 : f32
    %207 = vector.broadcast %cst_60 : f32 to vector<8x128xf32>
    %208 = arith.addf %207, %206 : vector<8x128xf32>
    %209 = arith.divf %207, %208 : vector<8x128xf32>
    %210 = vector.extract_strided_slice %203 {offsets = [0, 128], sizes = [8, 128], strides = [1, 1]} : vector<8x512xf32> to vector<8x128xf32>
    %211 = arith.negf %210 : vector<8x128xf32>
    %212 = math.exp %211 : vector<8x128xf32>
    %cst_61 = arith.constant 1.000000e+00 : f32
    %213 = vector.broadcast %cst_61 : f32 to vector<8x128xf32>
    %214 = arith.addf %213, %212 : vector<8x128xf32>
    %215 = arith.divf %213, %214 : vector<8x128xf32>
    %216 = vector.extract_strided_slice %203 {offsets = [0, 256], sizes = [8, 128], strides = [1, 1]} : vector<8x512xf32> to vector<8x128xf32>
    %217 = math.tanh %216 : vector<8x128xf32>
    %218 = vector.extract_strided_slice %203 {offsets = [0, 384], sizes = [8, 128], strides = [1, 1]} : vector<8x512xf32> to vector<8x128xf32>
    %219 = arith.negf %218 : vector<8x128xf32>
    %220 = math.exp %219 : vector<8x128xf32>
    %cst_62 = arith.constant 1.000000e+00 : f32
    %221 = vector.broadcast %cst_62 : f32 to vector<8x128xf32>
    %222 = arith.addf %221, %220 : vector<8x128xf32>
    %223 = arith.divf %221, %222 : vector<8x128xf32>
    %224 = arith.mulf %215, %163 : vector<8x128xf32>
    %225 = arith.mulf %209, %217 : vector<8x128xf32>
    %226 = arith.addf %224, %225 : vector<8x128xf32>
    %227 = math.tanh %226 : vector<8x128xf32>
    %228 = arith.mulf %223, %227 : vector<8x128xf32>
    %229 = tpu.concatenate %228, %196 in 1 : vector<8x128xf32>, vector<8x128xf32> -> vector<8x256xf32>
    %c0_63 = arith.constant 0 : index
    %c0_64 = arith.constant 0 : index
    %230 = vector.load %arg4[%c0_63, %c0_64] : memref<256x512xf32, #tpu.memory_space<vmem>>, vector<256x512xf32>
    %cst_65 = arith.constant dense<0.000000e+00> : vector<8x512xf32>
    %231 = tpu.matmul %229, %230, %cst_65 {dimension_numbers = #tpu.dot_dimension_numbers<[1], [0], [0], [1], [0, 0, 1, 1], [], []>} : vector<8x256xf32>, vector<256x512xf32>, vector<8x512xf32> -> vector<8x512xf32>
    %c0_66 = arith.constant 0 : index
    %c0_67 = arith.constant 0 : index
    %232 = vector.load %arg5[%c0_66, %c0_67] : memref<1x512xf32, #tpu.memory_space<vmem>>, vector<1x512xf32>
    %233 = vector.broadcast %232 : vector<1x512xf32> to vector<8x512xf32>
    %234 = arith.addf %231, %233 : vector<8x512xf32>
    %235 = vector.extract_strided_slice %234 {offsets = [0, 0], sizes = [8, 128], strides = [1, 1]} : vector<8x512xf32> to vector<8x128xf32>
    %236 = arith.negf %235 : vector<8x128xf32>
    %237 = math.exp %236 : vector<8x128xf32>
    %cst_68 = arith.constant 1.000000e+00 : f32
    %238 = vector.broadcast %cst_68 : f32 to vector<8x128xf32>
    %239 = arith.addf %238, %237 : vector<8x128xf32>
    %240 = arith.divf %238, %239 : vector<8x128xf32>
    %241 = vector.extract_strided_slice %234 {offsets = [0, 128], sizes = [8, 128], strides = [1, 1]} : vector<8x512xf32> to vector<8x128xf32>
    %242 = arith.negf %241 : vector<8x128xf32>
    %243 = math.exp %242 : vector<8x128xf32>
    %cst_69 = arith.constant 1.000000e+00 : f32
    %244 = vector.broadcast %cst_69 : f32 to vector<8x128xf32>
    %245 = arith.addf %244, %243 : vector<8x128xf32>
    %246 = arith.divf %244, %245 : vector<8x128xf32>
    %247 = vector.extract_strided_slice %234 {offsets = [0, 256], sizes = [8, 128], strides = [1, 1]} : vector<8x512xf32> to vector<8x128xf32>
    %248 = math.tanh %247 : vector<8x128xf32>
    %249 = vector.extract_strided_slice %234 {offsets = [0, 384], sizes = [8, 128], strides = [1, 1]} : vector<8x512xf32> to vector<8x128xf32>
    %250 = arith.negf %249 : vector<8x128xf32>
    %251 = math.exp %250 : vector<8x128xf32>
    %cst_70 = arith.constant 1.000000e+00 : f32
    %252 = vector.broadcast %cst_70 : f32 to vector<8x128xf32>
    %253 = arith.addf %252, %251 : vector<8x128xf32>
    %254 = arith.divf %252, %253 : vector<8x128xf32>
    %255 = arith.mulf %246, %194 : vector<8x128xf32>
    %256 = arith.mulf %240, %248 : vector<8x128xf32>
    %257 = arith.addf %255, %256 : vector<8x128xf32>
    %258 = math.tanh %257 : vector<8x128xf32>
    %259 = arith.mulf %254, %258 : vector<8x128xf32>
    %c4_i32 = arith.constant 4 : i32
    %c8_i32_71 = arith.constant 8 : i32
    %260 = arith.muli %c4_i32, %c8_i32_71 : i32
    %261 = tpu.assume_multiple %260, 8 : i32
    %262 = arith.index_cast %261 : i32 to index
    %c0_72 = arith.constant 0 : index
    %263 = vector.load %arg9[%262, %c0_72] : memref<64x512xf32, #tpu.memory_space<vmem>>, vector<8x512xf32>
    %c0_73 = arith.constant 0 : index
    %c0_74 = arith.constant 0 : index
    %264 = vector.load %arg2[%c0_73, %c0_74] : memref<128x512xf32, #tpu.memory_space<vmem>>, vector<128x512xf32>
    %cst_75 = arith.constant dense<0.000000e+00> : vector<8x512xf32>
    %265 = tpu.matmul %228, %264, %cst_75 {dimension_numbers = #tpu.dot_dimension_numbers<[1], [0], [0], [1], [0, 0, 1, 1], [], []>} : vector<8x128xf32>, vector<128x512xf32>, vector<8x512xf32> -> vector<8x512xf32>
    %266 = arith.addf %263, %265 : vector<8x512xf32>
    %267 = vector.extract_strided_slice %266 {offsets = [0, 0], sizes = [8, 128], strides = [1, 1]} : vector<8x512xf32> to vector<8x128xf32>
    %268 = arith.negf %267 : vector<8x128xf32>
    %269 = math.exp %268 : vector<8x128xf32>
    %cst_76 = arith.constant 1.000000e+00 : f32
    %270 = vector.broadcast %cst_76 : f32 to vector<8x128xf32>
    %271 = arith.addf %270, %269 : vector<8x128xf32>
    %272 = arith.divf %270, %271 : vector<8x128xf32>
    %273 = vector.extract_strided_slice %266 {offsets = [0, 128], sizes = [8, 128], strides = [1, 1]} : vector<8x512xf32> to vector<8x128xf32>
    %274 = arith.negf %273 : vector<8x128xf32>
    %275 = math.exp %274 : vector<8x128xf32>
    %cst_77 = arith.constant 1.000000e+00 : f32
    %276 = vector.broadcast %cst_77 : f32 to vector<8x128xf32>
    %277 = arith.addf %276, %275 : vector<8x128xf32>
    %278 = arith.divf %276, %277 : vector<8x128xf32>
    %279 = vector.extract_strided_slice %266 {offsets = [0, 256], sizes = [8, 128], strides = [1, 1]} : vector<8x512xf32> to vector<8x128xf32>
    %280 = math.tanh %279 : vector<8x128xf32>
    %281 = vector.extract_strided_slice %266 {offsets = [0, 384], sizes = [8, 128], strides = [1, 1]} : vector<8x512xf32> to vector<8x128xf32>
    %282 = arith.negf %281 : vector<8x128xf32>
    %283 = math.exp %282 : vector<8x128xf32>
    %cst_78 = arith.constant 1.000000e+00 : f32
    %284 = vector.broadcast %cst_78 : f32 to vector<8x128xf32>
    %285 = arith.addf %284, %283 : vector<8x128xf32>
    %286 = arith.divf %284, %285 : vector<8x128xf32>
    %287 = arith.mulf %278, %226 : vector<8x128xf32>
    %288 = arith.mulf %272, %280 : vector<8x128xf32>
    %289 = arith.addf %287, %288 : vector<8x128xf32>
    %290 = math.tanh %289 : vector<8x128xf32>
    %291 = arith.mulf %286, %290 : vector<8x128xf32>
    %292 = tpu.concatenate %291, %259 in 1 : vector<8x128xf32>, vector<8x128xf32> -> vector<8x256xf32>
    %c0_79 = arith.constant 0 : index
    %c0_80 = arith.constant 0 : index
    %293 = vector.load %arg4[%c0_79, %c0_80] : memref<256x512xf32, #tpu.memory_space<vmem>>, vector<256x512xf32>
    %cst_81 = arith.constant dense<0.000000e+00> : vector<8x512xf32>
    %294 = tpu.matmul %292, %293, %cst_81 {dimension_numbers = #tpu.dot_dimension_numbers<[1], [0], [0], [1], [0, 0, 1, 1], [], []>} : vector<8x256xf32>, vector<256x512xf32>, vector<8x512xf32> -> vector<8x512xf32>
    %c0_82 = arith.constant 0 : index
    %c0_83 = arith.constant 0 : index
    %295 = vector.load %arg5[%c0_82, %c0_83] : memref<1x512xf32, #tpu.memory_space<vmem>>, vector<1x512xf32>
    %296 = vector.broadcast %295 : vector<1x512xf32> to vector<8x512xf32>
    %297 = arith.addf %294, %296 : vector<8x512xf32>
    %298 = vector.extract_strided_slice %297 {offsets = [0, 0], sizes = [8, 128], strides = [1, 1]} : vector<8x512xf32> to vector<8x128xf32>
    %299 = arith.negf %298 : vector<8x128xf32>
    %300 = math.exp %299 : vector<8x128xf32>
    %cst_84 = arith.constant 1.000000e+00 : f32
    %301 = vector.broadcast %cst_84 : f32 to vector<8x128xf32>
    %302 = arith.addf %301, %300 : vector<8x128xf32>
    %303 = arith.divf %301, %302 : vector<8x128xf32>
    %304 = vector.extract_strided_slice %297 {offsets = [0, 128], sizes = [8, 128], strides = [1, 1]} : vector<8x512xf32> to vector<8x128xf32>
    %305 = arith.negf %304 : vector<8x128xf32>
    %306 = math.exp %305 : vector<8x128xf32>
    %cst_85 = arith.constant 1.000000e+00 : f32
    %307 = vector.broadcast %cst_85 : f32 to vector<8x128xf32>
    %308 = arith.addf %307, %306 : vector<8x128xf32>
    %309 = arith.divf %307, %308 : vector<8x128xf32>
    %310 = vector.extract_strided_slice %297 {offsets = [0, 256], sizes = [8, 128], strides = [1, 1]} : vector<8x512xf32> to vector<8x128xf32>
    %311 = math.tanh %310 : vector<8x128xf32>
    %312 = vector.extract_strided_slice %297 {offsets = [0, 384], sizes = [8, 128], strides = [1, 1]} : vector<8x512xf32> to vector<8x128xf32>
    %313 = arith.negf %312 : vector<8x128xf32>
    %314 = math.exp %313 : vector<8x128xf32>
    %cst_86 = arith.constant 1.000000e+00 : f32
    %315 = vector.broadcast %cst_86 : f32 to vector<8x128xf32>
    %316 = arith.addf %315, %314 : vector<8x128xf32>
    %317 = arith.divf %315, %316 : vector<8x128xf32>
    %318 = arith.mulf %309, %257 : vector<8x128xf32>
    %319 = arith.mulf %303, %311 : vector<8x128xf32>
    %320 = arith.addf %318, %319 : vector<8x128xf32>
    %321 = math.tanh %320 : vector<8x128xf32>
    %322 = arith.mulf %317, %321 : vector<8x128xf32>
    %c5_i32 = arith.constant 5 : i32
    %c8_i32_87 = arith.constant 8 : i32
    %323 = arith.muli %c5_i32, %c8_i32_87 : i32
    %324 = tpu.assume_multiple %323, 8 : i32
    %325 = arith.index_cast %324 : i32 to index
    %c0_88 = arith.constant 0 : index
    %326 = vector.load %arg9[%325, %c0_88] : memref<64x512xf32, #tpu.memory_space<vmem>>, vector<8x512xf32>
    %c0_89 = arith.constant 0 : index
    %c0_90 = arith.constant 0 : index
    %327 = vector.load %arg2[%c0_89, %c0_90] : memref<128x512xf32, #tpu.memory_space<vmem>>, vector<128x512xf32>
    %cst_91 = arith.constant dense<0.000000e+00> : vector<8x512xf32>
    %328 = tpu.matmul %291, %327, %cst_91 {dimension_numbers = #tpu.dot_dimension_numbers<[1], [0], [0], [1], [0, 0, 1, 1], [], []>} : vector<8x128xf32>, vector<128x512xf32>, vector<8x512xf32> -> vector<8x512xf32>
    %329 = arith.addf %326, %328 : vector<8x512xf32>
    %330 = vector.extract_strided_slice %329 {offsets = [0, 0], sizes = [8, 128], strides = [1, 1]} : vector<8x512xf32> to vector<8x128xf32>
    %331 = arith.negf %330 : vector<8x128xf32>
    %332 = math.exp %331 : vector<8x128xf32>
    %cst_92 = arith.constant 1.000000e+00 : f32
    %333 = vector.broadcast %cst_92 : f32 to vector<8x128xf32>
    %334 = arith.addf %333, %332 : vector<8x128xf32>
    %335 = arith.divf %333, %334 : vector<8x128xf32>
    %336 = vector.extract_strided_slice %329 {offsets = [0, 128], sizes = [8, 128], strides = [1, 1]} : vector<8x512xf32> to vector<8x128xf32>
    %337 = arith.negf %336 : vector<8x128xf32>
    %338 = math.exp %337 : vector<8x128xf32>
    %cst_93 = arith.constant 1.000000e+00 : f32
    %339 = vector.broadcast %cst_93 : f32 to vector<8x128xf32>
    %340 = arith.addf %339, %338 : vector<8x128xf32>
    %341 = arith.divf %339, %340 : vector<8x128xf32>
    %342 = vector.extract_strided_slice %329 {offsets = [0, 256], sizes = [8, 128], strides = [1, 1]} : vector<8x512xf32> to vector<8x128xf32>
    %343 = math.tanh %342 : vector<8x128xf32>
    %344 = vector.extract_strided_slice %329 {offsets = [0, 384], sizes = [8, 128], strides = [1, 1]} : vector<8x512xf32> to vector<8x128xf32>
    %345 = arith.negf %344 : vector<8x128xf32>
    %346 = math.exp %345 : vector<8x128xf32>
    %cst_94 = arith.constant 1.000000e+00 : f32
    %347 = vector.broadcast %cst_94 : f32 to vector<8x128xf32>
    %348 = arith.addf %347, %346 : vector<8x128xf32>
    %349 = arith.divf %347, %348 : vector<8x128xf32>
    %350 = arith.mulf %341, %289 : vector<8x128xf32>
    %351 = arith.mulf %335, %343 : vector<8x128xf32>
    %352 = arith.addf %350, %351 : vector<8x128xf32>
    %353 = math.tanh %352 : vector<8x128xf32>
    %354 = arith.mulf %349, %353 : vector<8x128xf32>
    %355 = tpu.concatenate %354, %322 in 1 : vector<8x128xf32>, vector<8x128xf32> -> vector<8x256xf32>
    %c0_95 = arith.constant 0 : index
    %c0_96 = arith.constant 0 : index
    %356 = vector.load %arg4[%c0_95, %c0_96] : memref<256x512xf32, #tpu.memory_space<vmem>>, vector<256x512xf32>
    %cst_97 = arith.constant dense<0.000000e+00> : vector<8x512xf32>
    %357 = tpu.matmul %355, %356, %cst_97 {dimension_numbers = #tpu.dot_dimension_numbers<[1], [0], [0], [1], [0, 0, 1, 1], [], []>} : vector<8x256xf32>, vector<256x512xf32>, vector<8x512xf32> -> vector<8x512xf32>
    %c0_98 = arith.constant 0 : index
    %c0_99 = arith.constant 0 : index
    %358 = vector.load %arg5[%c0_98, %c0_99] : memref<1x512xf32, #tpu.memory_space<vmem>>, vector<1x512xf32>
    %359 = vector.broadcast %358 : vector<1x512xf32> to vector<8x512xf32>
    %360 = arith.addf %357, %359 : vector<8x512xf32>
    %361 = vector.extract_strided_slice %360 {offsets = [0, 0], sizes = [8, 128], strides = [1, 1]} : vector<8x512xf32> to vector<8x128xf32>
    %362 = arith.negf %361 : vector<8x128xf32>
    %363 = math.exp %362 : vector<8x128xf32>
    %cst_100 = arith.constant 1.000000e+00 : f32
    %364 = vector.broadcast %cst_100 : f32 to vector<8x128xf32>
    %365 = arith.addf %364, %363 : vector<8x128xf32>
    %366 = arith.divf %364, %365 : vector<8x128xf32>
    %367 = vector.extract_strided_slice %360 {offsets = [0, 128], sizes = [8, 128], strides = [1, 1]} : vector<8x512xf32> to vector<8x128xf32>
    %368 = arith.negf %367 : vector<8x128xf32>
    %369 = math.exp %368 : vector<8x128xf32>
    %cst_101 = arith.constant 1.000000e+00 : f32
    %370 = vector.broadcast %cst_101 : f32 to vector<8x128xf32>
    %371 = arith.addf %370, %369 : vector<8x128xf32>
    %372 = arith.divf %370, %371 : vector<8x128xf32>
    %373 = vector.extract_strided_slice %360 {offsets = [0, 256], sizes = [8, 128], strides = [1, 1]} : vector<8x512xf32> to vector<8x128xf32>
    %374 = math.tanh %373 : vector<8x128xf32>
    %375 = vector.extract_strided_slice %360 {offsets = [0, 384], sizes = [8, 128], strides = [1, 1]} : vector<8x512xf32> to vector<8x128xf32>
    %376 = arith.negf %375 : vector<8x128xf32>
    %377 = math.exp %376 : vector<8x128xf32>
    %cst_102 = arith.constant 1.000000e+00 : f32
    %378 = vector.broadcast %cst_102 : f32 to vector<8x128xf32>
    %379 = arith.addf %378, %377 : vector<8x128xf32>
    %380 = arith.divf %378, %379 : vector<8x128xf32>
    %381 = arith.mulf %372, %320 : vector<8x128xf32>
    %382 = arith.mulf %366, %374 : vector<8x128xf32>
    %383 = arith.addf %381, %382 : vector<8x128xf32>
    %384 = math.tanh %383 : vector<8x128xf32>
    %385 = arith.mulf %380, %384 : vector<8x128xf32>
    %c6_i32 = arith.constant 6 : i32
    %c8_i32_103 = arith.constant 8 : i32
    %386 = arith.muli %c6_i32, %c8_i32_103 : i32
    %387 = tpu.assume_multiple %386, 8 : i32
    %388 = arith.index_cast %387 : i32 to index
    %c0_104 = arith.constant 0 : index
    %389 = vector.load %arg9[%388, %c0_104] : memref<64x512xf32, #tpu.memory_space<vmem>>, vector<8x512xf32>
    %c0_105 = arith.constant 0 : index
    %c0_106 = arith.constant 0 : index
    %390 = vector.load %arg2[%c0_105, %c0_106] : memref<128x512xf32, #tpu.memory_space<vmem>>, vector<128x512xf32>
    %cst_107 = arith.constant dense<0.000000e+00> : vector<8x512xf32>
    %391 = tpu.matmul %354, %390, %cst_107 {dimension_numbers = #tpu.dot_dimension_numbers<[1], [0], [0], [1], [0, 0, 1, 1], [], []>} : vector<8x128xf32>, vector<128x512xf32>, vector<8x512xf32> -> vector<8x512xf32>
    %392 = arith.addf %389, %391 : vector<8x512xf32>
    %393 = vector.extract_strided_slice %392 {offsets = [0, 0], sizes = [8, 128], strides = [1, 1]} : vector<8x512xf32> to vector<8x128xf32>
    %394 = arith.negf %393 : vector<8x128xf32>
    %395 = math.exp %394 : vector<8x128xf32>
    %cst_108 = arith.constant 1.000000e+00 : f32
    %396 = vector.broadcast %cst_108 : f32 to vector<8x128xf32>
    %397 = arith.addf %396, %395 : vector<8x128xf32>
    %398 = arith.divf %396, %397 : vector<8x128xf32>
    %399 = vector.extract_strided_slice %392 {offsets = [0, 128], sizes = [8, 128], strides = [1, 1]} : vector<8x512xf32> to vector<8x128xf32>
    %400 = arith.negf %399 : vector<8x128xf32>
    %401 = math.exp %400 : vector<8x128xf32>
    %cst_109 = arith.constant 1.000000e+00 : f32
    %402 = vector.broadcast %cst_109 : f32 to vector<8x128xf32>
    %403 = arith.addf %402, %401 : vector<8x128xf32>
    %404 = arith.divf %402, %403 : vector<8x128xf32>
    %405 = vector.extract_strided_slice %392 {offsets = [0, 256], sizes = [8, 128], strides = [1, 1]} : vector<8x512xf32> to vector<8x128xf32>
    %406 = math.tanh %405 : vector<8x128xf32>
    %407 = vector.extract_strided_slice %392 {offsets = [0, 384], sizes = [8, 128], strides = [1, 1]} : vector<8x512xf32> to vector<8x128xf32>
    %408 = arith.negf %407 : vector<8x128xf32>
    %409 = math.exp %408 : vector<8x128xf32>
    %cst_110 = arith.constant 1.000000e+00 : f32
    %410 = vector.broadcast %cst_110 : f32 to vector<8x128xf32>
    %411 = arith.addf %410, %409 : vector<8x128xf32>
    %412 = arith.divf %410, %411 : vector<8x128xf32>
    %413 = arith.mulf %404, %352 : vector<8x128xf32>
    %414 = arith.mulf %398, %406 : vector<8x128xf32>
    %415 = arith.addf %413, %414 : vector<8x128xf32>
    %416 = math.tanh %415 : vector<8x128xf32>
    %417 = arith.mulf %412, %416 : vector<8x128xf32>
    %418 = tpu.concatenate %417, %385 in 1 : vector<8x128xf32>, vector<8x128xf32> -> vector<8x256xf32>
    %c0_111 = arith.constant 0 : index
    %c0_112 = arith.constant 0 : index
    %419 = vector.load %arg4[%c0_111, %c0_112] : memref<256x512xf32, #tpu.memory_space<vmem>>, vector<256x512xf32>
    %cst_113 = arith.constant dense<0.000000e+00> : vector<8x512xf32>
    %420 = tpu.matmul %418, %419, %cst_113 {dimension_numbers = #tpu.dot_dimension_numbers<[1], [0], [0], [1], [0, 0, 1, 1], [], []>} : vector<8x256xf32>, vector<256x512xf32>, vector<8x512xf32> -> vector<8x512xf32>
    %c0_114 = arith.constant 0 : index
    %c0_115 = arith.constant 0 : index
    %421 = vector.load %arg5[%c0_114, %c0_115] : memref<1x512xf32, #tpu.memory_space<vmem>>, vector<1x512xf32>
    %422 = vector.broadcast %421 : vector<1x512xf32> to vector<8x512xf32>
    %423 = arith.addf %420, %422 : vector<8x512xf32>
    %424 = vector.extract_strided_slice %423 {offsets = [0, 0], sizes = [8, 128], strides = [1, 1]} : vector<8x512xf32> to vector<8x128xf32>
    %425 = arith.negf %424 : vector<8x128xf32>
    %426 = math.exp %425 : vector<8x128xf32>
    %cst_116 = arith.constant 1.000000e+00 : f32
    %427 = vector.broadcast %cst_116 : f32 to vector<8x128xf32>
    %428 = arith.addf %427, %426 : vector<8x128xf32>
    %429 = arith.divf %427, %428 : vector<8x128xf32>
    %430 = vector.extract_strided_slice %423 {offsets = [0, 128], sizes = [8, 128], strides = [1, 1]} : vector<8x512xf32> to vector<8x128xf32>
    %431 = arith.negf %430 : vector<8x128xf32>
    %432 = math.exp %431 : vector<8x128xf32>
    %cst_117 = arith.constant 1.000000e+00 : f32
    %433 = vector.broadcast %cst_117 : f32 to vector<8x128xf32>
    %434 = arith.addf %433, %432 : vector<8x128xf32>
    %435 = arith.divf %433, %434 : vector<8x128xf32>
    %436 = vector.extract_strided_slice %423 {offsets = [0, 256], sizes = [8, 128], strides = [1, 1]} : vector<8x512xf32> to vector<8x128xf32>
    %437 = math.tanh %436 : vector<8x128xf32>
    %438 = vector.extract_strided_slice %423 {offsets = [0, 384], sizes = [8, 128], strides = [1, 1]} : vector<8x512xf32> to vector<8x128xf32>
    %439 = arith.negf %438 : vector<8x128xf32>
    %440 = math.exp %439 : vector<8x128xf32>
    %cst_118 = arith.constant 1.000000e+00 : f32
    %441 = vector.broadcast %cst_118 : f32 to vector<8x128xf32>
    %442 = arith.addf %441, %440 : vector<8x128xf32>
    %443 = arith.divf %441, %442 : vector<8x128xf32>
    %444 = arith.mulf %435, %383 : vector<8x128xf32>
    %445 = arith.mulf %429, %437 : vector<8x128xf32>
    %446 = arith.addf %444, %445 : vector<8x128xf32>
    %447 = math.tanh %446 : vector<8x128xf32>
    %448 = arith.mulf %443, %447 : vector<8x128xf32>
    %c7_i32 = arith.constant 7 : i32
    %c8_i32_119 = arith.constant 8 : i32
    %449 = arith.muli %c7_i32, %c8_i32_119 : i32
    %450 = tpu.assume_multiple %449, 8 : i32
    %451 = arith.index_cast %450 : i32 to index
    %c0_120 = arith.constant 0 : index
    %452 = vector.load %arg9[%451, %c0_120] : memref<64x512xf32, #tpu.memory_space<vmem>>, vector<8x512xf32>
    %c0_121 = arith.constant 0 : index
    %c0_122 = arith.constant 0 : index
    %453 = vector.load %arg2[%c0_121, %c0_122] : memref<128x512xf32, #tpu.memory_space<vmem>>, vector<128x512xf32>
    %cst_123 = arith.constant dense<0.000000e+00> : vector<8x512xf32>
    %454 = tpu.matmul %417, %453, %cst_123 {dimension_numbers = #tpu.dot_dimension_numbers<[1], [0], [0], [1], [0, 0, 1, 1], [], []>} : vector<8x128xf32>, vector<128x512xf32>, vector<8x512xf32> -> vector<8x512xf32>
    %455 = arith.addf %452, %454 : vector<8x512xf32>
    %456 = vector.extract_strided_slice %455 {offsets = [0, 0], sizes = [8, 128], strides = [1, 1]} : vector<8x512xf32> to vector<8x128xf32>
    %457 = arith.negf %456 : vector<8x128xf32>
    %458 = math.exp %457 : vector<8x128xf32>
    %cst_124 = arith.constant 1.000000e+00 : f32
    %459 = vector.broadcast %cst_124 : f32 to vector<8x128xf32>
    %460 = arith.addf %459, %458 : vector<8x128xf32>
    %461 = arith.divf %459, %460 : vector<8x128xf32>
    %462 = vector.extract_strided_slice %455 {offsets = [0, 128], sizes = [8, 128], strides = [1, 1]} : vector<8x512xf32> to vector<8x128xf32>
    %463 = arith.negf %462 : vector<8x128xf32>
    %464 = math.exp %463 : vector<8x128xf32>
    %cst_125 = arith.constant 1.000000e+00 : f32
    %465 = vector.broadcast %cst_125 : f32 to vector<8x128xf32>
    %466 = arith.addf %465, %464 : vector<8x128xf32>
    %467 = arith.divf %465, %466 : vector<8x128xf32>
    %468 = vector.extract_strided_slice %455 {offsets = [0, 256], sizes = [8, 128], strides = [1, 1]} : vector<8x512xf32> to vector<8x128xf32>
    %469 = math.tanh %468 : vector<8x128xf32>
    %470 = vector.extract_strided_slice %455 {offsets = [0, 384], sizes = [8, 128], strides = [1, 1]} : vector<8x512xf32> to vector<8x128xf32>
    %471 = arith.negf %470 : vector<8x128xf32>
    %472 = math.exp %471 : vector<8x128xf32>
    %cst_126 = arith.constant 1.000000e+00 : f32
    %473 = vector.broadcast %cst_126 : f32 to vector<8x128xf32>
    %474 = arith.addf %473, %472 : vector<8x128xf32>
    %475 = arith.divf %473, %474 : vector<8x128xf32>
    %476 = arith.mulf %467, %415 : vector<8x128xf32>
    %477 = arith.mulf %461, %469 : vector<8x128xf32>
    %478 = arith.addf %476, %477 : vector<8x128xf32>
    %479 = math.tanh %478 : vector<8x128xf32>
    %480 = arith.mulf %475, %479 : vector<8x128xf32>
    %481 = tpu.concatenate %480, %448 in 1 : vector<8x128xf32>, vector<8x128xf32> -> vector<8x256xf32>
    %c0_127 = arith.constant 0 : index
    %c0_128 = arith.constant 0 : index
    %482 = vector.load %arg4[%c0_127, %c0_128] : memref<256x512xf32, #tpu.memory_space<vmem>>, vector<256x512xf32>
    %cst_129 = arith.constant dense<0.000000e+00> : vector<8x512xf32>
    %483 = tpu.matmul %481, %482, %cst_129 {dimension_numbers = #tpu.dot_dimension_numbers<[1], [0], [0], [1], [0, 0, 1, 1], [], []>} : vector<8x256xf32>, vector<256x512xf32>, vector<8x512xf32> -> vector<8x512xf32>
    %c0_130 = arith.constant 0 : index
    %c0_131 = arith.constant 0 : index
    %484 = vector.load %arg5[%c0_130, %c0_131] : memref<1x512xf32, #tpu.memory_space<vmem>>, vector<1x512xf32>
    %485 = vector.broadcast %484 : vector<1x512xf32> to vector<8x512xf32>
    %486 = arith.addf %483, %485 : vector<8x512xf32>
    %487 = vector.extract_strided_slice %486 {offsets = [0, 0], sizes = [8, 128], strides = [1, 1]} : vector<8x512xf32> to vector<8x128xf32>
    %488 = arith.negf %487 : vector<8x128xf32>
    %489 = math.exp %488 : vector<8x128xf32>
    %cst_132 = arith.constant 1.000000e+00 : f32
    %490 = vector.broadcast %cst_132 : f32 to vector<8x128xf32>
    %491 = arith.addf %490, %489 : vector<8x128xf32>
    %492 = arith.divf %490, %491 : vector<8x128xf32>
    %493 = vector.extract_strided_slice %486 {offsets = [0, 128], sizes = [8, 128], strides = [1, 1]} : vector<8x512xf32> to vector<8x128xf32>
    %494 = arith.negf %493 : vector<8x128xf32>
    %495 = math.exp %494 : vector<8x128xf32>
    %cst_133 = arith.constant 1.000000e+00 : f32
    %496 = vector.broadcast %cst_133 : f32 to vector<8x128xf32>
    %497 = arith.addf %496, %495 : vector<8x128xf32>
    %498 = arith.divf %496, %497 : vector<8x128xf32>
    %499 = vector.extract_strided_slice %486 {offsets = [0, 256], sizes = [8, 128], strides = [1, 1]} : vector<8x512xf32> to vector<8x128xf32>
    %500 = math.tanh %499 : vector<8x128xf32>
    %501 = vector.extract_strided_slice %486 {offsets = [0, 384], sizes = [8, 128], strides = [1, 1]} : vector<8x512xf32> to vector<8x128xf32>
    %502 = arith.negf %501 : vector<8x128xf32>
    %503 = math.exp %502 : vector<8x128xf32>
    %cst_134 = arith.constant 1.000000e+00 : f32
    %504 = vector.broadcast %cst_134 : f32 to vector<8x128xf32>
    %505 = arith.addf %504, %503 : vector<8x128xf32>
    %506 = arith.divf %504, %505 : vector<8x128xf32>
    %507 = arith.mulf %498, %446 : vector<8x128xf32>
    %508 = arith.mulf %492, %500 : vector<8x128xf32>
    %509 = arith.addf %507, %508 : vector<8x128xf32>
    %510 = math.tanh %509 : vector<8x128xf32>
    %511 = arith.mulf %506, %510 : vector<8x128xf32>
    %c8_i32_135 = arith.constant 8 : i32
    %c0_136 = arith.constant 0 : index
    %c0_137 = arith.constant 0 : index
    %512 = vector.load %arg6[%c0_136, %c0_137] : memref<128x128xf32, #tpu.memory_space<vmem>>, vector<128x128xf32>
    %cst_138 = arith.constant dense<0.000000e+00> : vector<8x128xf32>
    %513 = tpu.matmul %511, %512, %cst_138 {dimension_numbers = #tpu.dot_dimension_numbers<[1], [0], [0], [1], [0, 0, 1, 1], [], []>} : vector<8x128xf32>, vector<128x128xf32>, vector<8x128xf32> -> vector<8x128xf32>
    %c0_139 = arith.constant 0 : index
    %c0_140 = arith.constant 0 : index
    %514 = vector.load %arg7[%c0_139, %c0_140] : memref<1x128xf32, #tpu.memory_space<vmem>>, vector<1x128xf32>
    %515 = vector.broadcast %514 : vector<1x128xf32> to vector<8x128xf32>
    %516 = arith.addf %513, %515 : vector<8x128xf32>
    %c0_141 = arith.constant 0 : index
    %c0_142 = arith.constant 0 : index
    %517 = vector.load %arg8[%c0_141, %c0_142] : memref<8x128xf32, #tpu.memory_space<vmem>>, vector<8x128xf32>
    tpu.vector_store %arg8[%c0_141, %c0_142], %516 {strides = array<i32>} : memref<8x128xf32, #tpu.memory_space<vmem>>, vector<8x128xf32>,
    return
  }
}

</mosaic_0001>

<bundles_post_ra>
// kernel: my_lstm_forward.1
= control target key start
LH: loop header
LB: loop body
LE: loop exit
PB: predicated region body
PF: predicated region fallthrough
CT: control target
= control target key end

     0   :  { %v10249_v3 = vmov 0.0   ;;  %vm67_vm0 = vcmask 130048   ;;  %vm4385_vm1 = vmmov 0   ;;  %s10240_s1 = inlined_call_operand.vmem [shape: f32[16,512], index: 1, kind: input, shape index: {}]   ;;  %s10241_s0 = inlined_call_operand.vmem [shape: f32[64,16], index: 0, kind: input, shape index: {}]   ;;  %s10242_s2 = inlined_call_operand.vmem [shape: f32[128,512], index: 2, kind: input, shape index: {}]   ;;  %s10243_s4 = inlined_call_operand.vmem [shape: f32[256,512], index: 4, kind: input, shape index: {}]   ;;  %s10244_s3 = inlined_call_operand.vmem [shape: f32[1,512], index: 3, kind: input, shape index: {}]   ;;  %s10245_s5 = inlined_call_operand.vmem [shape: f32[1,512], index: 5, kind: input, shape index: {}]   ;;  %s10246_s6 = inlined_call_operand.vmem [shape: f32[128,128], index: 6, kind: input, shape index: {}]   ;;  %s10247_s7 = inlined_call_operand.vmem [shape: f32[1,128], index: 7, kind: input, shape index: {}]   ;;  %s10248_s8 = inlined_call_operand.vmem [shape: f32[8,128], index: 8, kind: output, shape index: {}]  }
   0x1   :  { %v42_v0 = vld [vmem:[%s10240_s1 + $0x28] sm:$0xff]  ;;  %v44_v1 = vld [vmem:[%s10240_s1 + $0x38] sm:$0xff]  ;;  %v41_v2 = vld [vmem:[%s10240_s1 + $0x20] sm:$0xff]  ;;  %156 = vmatprep.mubr.f32.mxu0 %v10249_v3  ;;  %269 = vmatprep.mubr.f32.mxu1 %v10249_v3 }
   0x2   :  { %120 = vmatprep.subr.mxu0 %v42_v0  ;;  %233 = vmatprep.subr.mxu1 %v44_v1  ;;  %v43_v4 = vld [vmem:[%s10240_s1 + $0x30] sm:$0xff]  ;;  %v38_v5 = vld [vmem:[%s10240_s1 + $0x8] sm:$0xff]  ;;  %v40_v6 = vld [vmem:[%s10240_s1 + $0x18] sm:$0xff] }
   0x3   :  { %121 = vmatpush1.msra.mxu0 %v41_v2  ;;  %234 = vmatpush1.msra.mxu1 %v43_v4  ;;  %v37_v7 = vld [vmem:[%s10240_s1] sm:$0xff]  ;;  %v39_v8 = vld [vmem:[%s10240_s1 + $0x10] sm:$0xff]  ;;  %v4463_v10 = vld [vmem:[%s10242_s2 + $0x1e8] sm:$0xff] }
   0x4   :  { %v29_v9 = vld [vmem:[%s10241_s0] sm:$0xff]  ;;  %122 = vmatprep.subr.mxu0 %v38_v5  ;;  %235 = vmatprep.subr.mxu1 %v40_v6  ;;  %v4468_v11 = vld [vmem:[%s10242_s2 + $0x1f8] sm:$0xff]  ;;  %v419_v13 = vld [vmem:[%s10242_s2 + $0x1f0] sm:$0xff] }
   0x5   :  { %123 = vmatpush1.msra.mxu0 %v37_v7  ;;  %236 = vmatpush1.msra.mxu1 %v39_v8  ;;  %v417_v12 = vld [vmem:[%s10242_s2 + $0x1e0] sm:$0xff]  ;;  %v414_v14 = vld [vmem:[%s10242_s2 + $0x1c8] sm:$0xff]  ;;  %v416_v15 = vld [vmem:[%s10242_s2 + $0x1d8] sm:$0xff] }
   0x6   :  { %3413 = vmatmul.mubr.msk.f32.vlgmr.msra.gmra.mxu0 %vm67_vm0, %v29_v9  ;;  %3421 = vmatmul.mubr.msk.f32.vlgmr.msra.gmra.mxu1 %vm67_vm0, %v29_v9  ;;  %v413_v16 = vld [vmem:[%s10242_s2 + $0x1c0] sm:$0xff]  ;;  %v415_v17 = vld [vmem:[%s10242_s2 + $0x1d0] sm:$0xff]  ;;  %v30_v18 = vld [vmem:[%s10241_s0 + $0x8] sm:$0xff] }
   0x7   :  { %421 = vmatprep.subr.mxu0 %v4463_v10  ;;  %492 = vmatprep.subr.mxu1 %v4468_v11  ;;  %v410_v19 = vld [vmem:[%s10242_s2 + $0x1a8] sm:$0xff]  ;;  %v412_v20 = vld [vmem:[%s10242_s2 + $0x1b8] sm:$0xff]  ;;  %v409_v21 = vld [vmem:[%s10242_s2 + $0x1a0] sm:$0xff] }
   0x8   :  { %422 = vmatpush1.msra.mxu0 %v417_v12  ;;  %493 = vmatpush1.msra.mxu1 %v419_v13  ;;  %v411_v22 = vld [vmem:[%s10242_s2 + $0x1b0] sm:$0xff]  ;;  %v406_v23 = vld [vmem:[%s10242_s2 + $0x188] sm:$0xff]  ;;  %v408_v24 = vld [vmem:[%s10242_s2 + $0x198] sm:$0xff] }
   0x9   :  { %423 = vmatprep.subr.mxu0 %v414_v14  ;;  %494 = vmatprep.subr.mxu1 %v416_v15  ;;  %v405_v25 = vld [vmem:[%s10242_s2 + $0x180] sm:$0xff]  ;;  %v407_v26 = vld [vmem:[%s10242_s2 + $0x190] sm:$0xff]  ;;  %v402_v28 = vld [vmem:[%s10242_s2 + $0x168] sm:$0xff] }
   0xa   :  { %162 = vmatprep.mubr.f32.mxu0 %v10249_v3  ;;  %275 = vmatprep.mubr.f32.mxu1 %v10249_v3  ;;  %v31_v27 = vld [vmem:[%s10241_s0 + $0x10] sm:$0xff]  ;;  %v404_v29 = vld [vmem:[%s10242_s2 + $0x178] sm:$0xff]  ;;  %v401_v30 = vld [vmem:[%s10242_s2 + $0x160] sm:$0xff] }
   0xb   :  { %424 = vmatpush1.msra.mxu0 %v413_v16  ;;  %495 = vmatpush1.msra.mxu1 %v415_v17  ;;  %v403_v31 = vld [vmem:[%s10242_s2 + $0x170] sm:$0xff]  ;;  %v398_v32 = vld [vmem:[%s10242_s2 + $0x148] sm:$0xff]  ;;  %v400_v33 = vld [vmem:[%s10242_s2 + $0x158] sm:$0xff] }
   0xc   :  { %3414 = vmatmul.mubr.msk.f32.gmra.mxu0 %vm67_vm0, %v30_v18  ;;  %3422 = vmatmul.mubr.msk.f32.gmra.mxu1 %vm67_vm0, %v30_v18  ;;  %v4551_v34 = vld [vmem:[%s10242_s2 + $0x140] sm:$0xff]  ;;  %v4556_v35 = vld [vmem:[%s10242_s2 + $0x150] sm:$0xff]  ;;  %v32_v36 = vld [vmem:[%s10241_s0 + $0x18] sm:$0xff] }
   0xd   :  { %425 = vmatprep.subr.mxu0 %v410_v19  ;;  %496 = vmatprep.subr.mxu1 %v412_v20  ;;  %v4566_v37 = vld [vmem:[%s10242_s2 + $0x128] sm:$0xff]  ;;  %v4571_v38 = vld [vmem:[%s10242_s2 + $0x138] sm:$0xff]  ;;  %v4578_v39 = vld [vmem:[%s10242_s2 + $0x120] sm:$0xff] }
   0xe   :  { %426 = vmatpush1.msra.mxu0 %v409_v21  ;;  %497 = vmatpush1.msra.mxu1 %v411_v22  ;;  %v4583_v40 = vld [vmem:[%s10242_s2 + $0x130] sm:$0xff]  ;;  %v4590_v41 = vld [vmem:[%s10242_s2 + $0x108] sm:$0xff]  ;;  %v4595_v42 = vld [vmem:[%s10242_s2 + $0x118] sm:$0xff] }
   0xf   :  { %427 = vmatprep.subr.mxu0 %v406_v23  ;;  %498 = vmatprep.subr.mxu1 %v408_v24  ;;  %v4604_v43 = vld [vmem:[%s10242_s2 + $0x100] sm:$0xff]  ;;  %v4609_v44 = vld [vmem:[%s10242_s2 + $0x110] sm:$0xff]  ;;  %v4621_v46 = vld [vmem:[%s10242_s2 + $0xe8] sm:$0xff] }
  0x10   :  { %168 = vmatprep.mubr.f32.mxu0 %v10249_v3  ;;  %281 = vmatprep.mubr.f32.mxu1 %v10249_v3  ;;  %v33_v45 = vld [vmem:[%s10241_s0 + $0x20] sm:$0xff]  ;;  %v4626_v47 = vld [vmem:[%s10242_s2 + $0xf8] sm:$0xff]  ;;  %v4638_v49 = vld [vmem:[%s10242_s2 + $0xf0] sm:$0xff] }
  0x11   :  { %428 = vmatpush1.msra.mxu0 %v405_v25  ;;  %499 = vmatpush1.msra.mxu1 %v407_v26  ;;  %v4633_v48 = vld [vmem:[%s10242_s2 + $0xe0] sm:$0xff]  ;;  %v4645_v50 = vld [vmem:[%s10242_s2 + $0xc8] sm:$0xff]  ;;  %v4650_v51 = vld [vmem:[%s10242_s2 + $0xd8] sm:$0xff] }
  0x12   :  { %3415 = vmatmul.mubr.msk.f32.gmra.mxu0 %vm67_vm0, %v31_v27  ;;  %3423 = vmatmul.mubr.msk.f32.gmra.mxu1 %vm67_vm0, %v31_v27  ;;  %v4659_v52 = vld [vmem:[%s10242_s2 + $0xc0] sm:$0xff]  ;;  %v4664_v53 = vld [vmem:[%s10242_s2 + $0xd0] sm:$0xff]  ;;  %v34_v54 = vld [vmem:[%s10241_s0 + $0x28] sm:$0xff] }
  0x13   :  { %429 = vmatprep.subr.mxu0 %v402_v28  ;;  %500 = vmatprep.subr.mxu1 %v404_v29  ;;  %v4676_v55 = vld [vmem:[%s10242_s2 + $0xa8] sm:$0xff]  ;;  %v4681_v56 = vld [vmem:[%s10242_s2 + $0xb8] sm:$0xff]  ;;  %v4688_v57 = vld [vmem:[%s10242_s2 + $0xa0] sm:$0xff] }
  0x14   :  { %430 = vmatpush1.msra.mxu0 %v401_v30  ;;  %501 = vmatpush1.msra.mxu1 %v403_v31  ;;  %v4693_v58 = vld [vmem:[%s10242_s2 + $0xb0] sm:$0xff]  ;;  %v4700_v59 = vld [vmem:[%s10242_s2 + $0x88] sm:$0xff]  ;;  %v4705_v60 = vld [vmem:[%s10242_s2 + $0x98] sm:$0xff] }
  0x15   :  { %431 = vmatprep.subr.mxu0 %v398_v32  ;;  %502 = vmatprep.subr.mxu1 %v400_v33  ;;  %v4714_v61 = vld [vmem:[%s10242_s2 + $0x80] sm:$0xff]  ;;  %v4719_v62 = vld [vmem:[%s10242_s2 + $0x90] sm:$0xff]  ;;  %v4731_v0 = vld [vmem:[%s10242_s2 + $0x68] sm:$0xff] }
  0x16   :  { %174 = vmatprep.mubr.f32.mxu0 %v10249_v3  ;;  %287 = vmatprep.mubr.f32.mxu1 %v10249_v3  ;;  %v35_v63 = vld [vmem:[%s10241_s0 + $0x30] sm:$0xff]  ;;  %v4736_v1 = vld [vmem:[%s10242_s2 + $0x78] sm:$0xff]  ;;  %v4743_v2 = vld [vmem:[%s10242_s2 + $0x60] sm:$0xff] }
  0x17   :  { %432 = vmatpush1.msra.mxu0 %v4551_v34  ;;  %503 = vmatpush1.msra.mxu1 %v4556_v35  ;;  %v4748_v4 = vld [vmem:[%s10242_s2 + $0x70] sm:$0xff]  ;;  %v4755_v5 = vld [vmem:[%s10242_s2 + $0x48] sm:$0xff]  ;;  %v4760_v6 = vld [vmem:[%s10242_s2 + $0x58] sm:$0xff] }
  0x18   :  { %3416 = vmatmul.mubr.msk.f32.gmra.mxu0 %vm67_vm0, %v32_v36  ;;  %3424 = vmatmul.mubr.msk.f32.gmra.mxu1 %vm67_vm0, %v32_v36  ;;  %v4769_v7 = vld [vmem:[%s10242_s2 + $0x40] sm:$0xff]  ;;  %v4774_v8 = vld [vmem:[%s10242_s2 + $0x50] sm:$0xff]  ;;  %v36_v9 = vld [vmem:[%s10241_s0 + $0x38] sm:$0xff] }
  0x19   :  { %433 = vmatprep.subr.mxu0 %v4566_v37  ;;  %504 = vmatprep.subr.mxu1 %v4571_v38  ;;  %v4786_v12 = vld [vmem:[%s10242_s2 + $0x28] sm:$0xff]  ;;  %v4791_v13 = vld [vmem:[%s10242_s2 + $0x38] sm:$0xff]  ;;  %v4798_v14 = vld [vmem:[%s10242_s2 + $0x20] sm:$0xff] }
  0x1a   :  { %434 = vmatpush1.msra.mxu0 %v4578_v39  ;;  %505 = vmatpush1.msra.mxu1 %v4583_v40  ;;  %v4803_v15 = vld [vmem:[%s10242_s2 + $0x30] sm:$0xff]  ;;  %v4810_v16 = vld [vmem:[%s10242_s2 + $0x8] sm:$0xff]  ;;  %v4815_v17 = vld [vmem:[%s10242_s2 + $0x18] sm:$0xff] }
  0x1b   :  { %435 = vmatprep.subr.mxu0 %v4590_v41  ;;  %506 = vmatprep.subr.mxu1 %v4595_v42  ;;  %v4822_v18 = vld [vmem:[%s10242_s2] sm:$0xff]  ;;  %v4829_v19 = vld [vmem:[%s10242_s2 + $0x10] sm:$0xff]  ;;  %v4844_v20 = vld [vmem:[%s10243_s4 + $0x1e8] sm:$0xff] }
  0x1c   :  { %180 = vmatprep.mubr.f32.mxu0 %v10249_v3  ;;  %293 = vmatprep.mubr.f32.mxu1 %v10249_v3  ;;  %10789 = vst [vmem:[#allocation3_spill] sm:$0xff] %v4829_v19  ;;  %10790 = vst [vmem:[#allocation4_spill] sm:$0xff] %v4844_v20  ;;  %v4849_v21 = vld [vmem:[%s10243_s4 + $0x1f8] sm:$0xff]  ;;  %v4854_v22 = vld [vmem:[%s10243_s4 + $0x1e0] sm:$0xff] }
  0x1d   :  { %436 = vmatpush1.msra.mxu0 %v4604_v43  ;;  %507 = vmatpush1.msra.mxu1 %v4609_v44  ;;  %10791 = vst [vmem:[#allocation5_spill] sm:$0xff] %v4849_v21  ;;  %10792 = vst [vmem:[#allocation6_spill] sm:$0xff] %v4854_v22  ;;  %v4861_v23 = vld [vmem:[%s10243_s4 + $0x1f0] sm:$0xff]  ;;  %v4866_v24 = vld [vmem:[%s10243_s4 + $0x1c8] sm:$0xff] }
  0x1e   :  { %3417 = vmatmul.mubr.msk.f32.gmra.mxu0 %vm67_vm0, %v33_v45  ;;  %3425 = vmatmul.mubr.msk.f32.gmra.mxu1 %vm67_vm0, %v33_v45  ;;  %10793 = vst [vmem:[#allocation7_spill] sm:$0xff] %v4861_v23  ;;  %10794 = vst [vmem:[#allocation8_spill] sm:$0xff] %v4866_v24  ;;  %v4871_v25 = vld [vmem:[%s10243_s4 + $0x1d8] sm:$0xff]  ;;  %v4878_v26 = vld [vmem:[%s10243_s4 + $0x1c0] sm:$0xff] }
  0x1f   :  { %437 = vmatprep.subr.mxu0 %v4621_v46  ;;  %508 = vmatprep.subr.mxu1 %v4626_v47  ;;  %10795 = vst [vmem:[#allocation9_spill] sm:$0xff] %v4871_v25  ;;  %10796 = vst [vmem:[#allocation10_spill] sm:$0xff] %v4878_v26  ;;  %v4883_v27 = vld [vmem:[%s10243_s4 + $0x1d0] sm:$0xff]  ;;  %v4892_v28 = vld [vmem:[%s10243_s4 + $0x1a8] sm:$0xff] }
  0x20   :  { %438 = vmatpush1.msra.mxu0 %v4633_v48  ;;  %509 = vmatpush1.msra.mxu1 %v4638_v49  ;;  %10797 = vst [vmem:[#allocation11_spill] sm:$0xff] %v4883_v27  ;;  %10798 = vst [vmem:[#allocation12_spill] sm:$0xff] %v4892_v28  ;;  %v4897_v29 = vld [vmem:[%s10243_s4 + $0x1b8] sm:$0xff]  ;;  %v4902_v30 = vld [vmem:[%s10243_s4 + $0x1a0] sm:$0xff] }
  0x21   :  { %439 = vmatprep.subr.mxu0 %v4645_v50  ;;  %510 = vmatprep.subr.mxu1 %v4650_v51  ;;  %10799 = vst [vmem:[#allocation13_spill] sm:$0xff] %v4897_v29  ;;  %10800 = vst [vmem:[#allocation14_spill] sm:$0xff] %v4902_v30  ;;  %v4909_v31 = vld [vmem:[%s10243_s4 + $0x1b0] sm:$0xff]  ;;  %v4916_v32 = vld [vmem:[%s10243_s4 + $0x188] sm:$0xff] }
  0x22   :  { %186 = vmatprep.mubr.f32.mxu0 %v10249_v3  ;;  %299 = vmatprep.mubr.f32.mxu1 %v10249_v3  ;;  %10801 = vst [vmem:[#allocation15_spill] sm:$0xff] %v4909_v31  ;;  %10802 = vst [vmem:[#allocation16_spill] sm:$0xff] %v4916_v32  ;;  %v4921_v33 = vld [vmem:[%s10243_s4 + $0x198] sm:$0xff]  ;;  %v4926_v36 = vld [vmem:[%s10243_s4 + $0x180] sm:$0xff] }
  0x23   :  { %440 = vmatpush1.msra.mxu0 %v4659_v52  ;;  %511 = vmatpush1.msra.mxu1 %v4664_v53  ;;  %10803 = vst [vmem:[#allocation17_spill] sm:$0xff] %v4921_v33  ;;  %10804 = vst [vmem:[#allocation18_spill] sm:$0xff] %v4926_v36  ;;  %v4933_v45 = vld [vmem:[%s10243_s4 + $0x190] sm:$0xff] }
  0x24   :  { %3418 = vmatmul.mubr.msk.f32.gmra.mxu0 %vm67_vm0, %v34_v54  ;;  %3426 = vmatmul.mubr.msk.f32.gmra.mxu1 %vm67_vm0, %v34_v54  ;;  %10805 = vst [vmem:[#allocation19_spill] sm:$0xff] %v4933_v45  ;;  %v4940_v54 = vld [vmem:[%s10243_s4 + $0x168] sm:$0xff] }
  0x25   :  { %441 = vmatprep.subr.mxu0 %v4676_v55  ;;  %512 = vmatprep.subr.mxu1 %v4681_v56  ;;  %10806 = vst [vmem:[#allocation20_spill] sm:$0xff] %v4940_v54 }
  0x26   :  { %442 = vmatpush1.msra.mxu0 %v4688_v57  ;;  %513 = vmatpush1.msra.mxu1 %v4693_v58 }
  0x27   :  { %443 = vmatprep.subr.mxu0 %v4700_v59  ;;  %514 = vmatprep.subr.mxu1 %v4705_v60 }
  0x28   :  { %192 = vmatprep.mubr.f32.mxu0 %v10249_v3  ;;  %305 = vmatprep.mubr.f32.mxu1 %v10249_v3 }
  0x29   :  { %444 = vmatpush1.msra.mxu0 %v4714_v61  ;;  %515 = vmatpush1.msra.mxu1 %v4719_v62 }
  0x2a   :  { %3419 = vmatmul.mubr.msk.f32.gmra.mxu0 %vm67_vm0, %v35_v63  ;;  %3427 = vmatmul.mubr.msk.f32.gmra.mxu1 %vm67_vm0, %v35_v63  ;;  %v4945_v63 = vld [vmem:[%s10243_s4 + $0x178] sm:$0xff] }
  0x2b   :  { %445 = vmatprep.subr.mxu0 %v4731_v0  ;;  %516 = vmatprep.subr.mxu1 %v4736_v1  ;;  %10807 = vst [vmem:[#allocation21_spill] sm:$0xff] %v4945_v63 }
  0x2c   :  { %446 = vmatpush1.msra.mxu0 %v4743_v2  ;;  %517 = vmatpush1.msra.mxu1 %v4748_v4 }
  0x2d   :  { %447 = vmatprep.subr.mxu0 %v4755_v5  ;;  %518 = vmatprep.subr.mxu1 %v4760_v6 }
  0x2e   :  { %198 = vmatprep.mubr.f32.mxu0 %v10249_v3  ;;  %311 = vmatprep.mubr.f32.mxu1 %v10249_v3 }
  0x2f   :  { %448 = vmatpush1.msra.mxu0 %v4769_v7  ;;  %519 = vmatpush1.msra.mxu1 %v4774_v8 }
  0x30   :  { %3420 = vmatmul.mubr.msk.f32.gmra.mxu0 %vm67_vm0, %v36_v9  ;;  %3428 = vmatmul.mubr.msk.f32.gmra.mxu1 %vm67_vm0, %v36_v9  ;;  %v4952_v9 = vld [vmem:[%s10243_s4 + $0x160] sm:$0xff] }
  0x31   :  { %449 = vmatprep.subr.mxu0 %v4786_v12  ;;  %520 = vmatprep.subr.mxu1 %v4791_v13  ;;  %10808 = vst [vmem:[#allocation22_spill] sm:$0xff] %v4952_v9 }
  0x32   :  { %450 = vmatpush1.msra.mxu0 %v4798_v14  ;;  %521 = vmatpush1.msra.mxu1 %v4803_v15 }
  0x33   :  { %451 = vmatprep.subr.mxu0 %v4810_v16  ;;  %522 = vmatprep.subr.mxu1 %v4815_v17 }
  0x34   :  { %452 = vmatpush1.msra.mxu0 %v4822_v18  ;;  %485 = vmatprep.mubr.f32.mxu0 %v10249_v3 }
  0x35   :  { %523 = vmatpush1.msra.mxu1 %v4829_v19  ;;  %556 = vmatprep.mubr.f32.mxu1 %v10249_v3 }
  0x36   :  { %486 = vmatmul.mubr.f32.vlgmr.msra.gmra.mxu0 %v10249_v3  ;;  %557 = vmatmul.mubr.f32.vlgmr.msra.gmra.mxu1 %v10249_v3 }
  0x37   :  { %805 = vmatprep.mubr.f32.mxu0 %v10249_v3  ;;  %876 = vmatprep.mubr.f32.mxu1 %v10249_v3  ;;  %v4957_v3 = vld [vmem:[%s10243_s4 + $0x170] sm:$0xff] }
  0x38   :  { %741 = vmatprep.subr.mxu0 %v4844_v20  ;;  %812 = vmatprep.subr.mxu1 %v4849_v21  ;;  %10809 = vst [vmem:[#allocation23_spill] sm:$0xff] %v4957_v3 }
  0x39   :  { %742 = vmatpush1.msra.mxu0 %v4854_v22  ;;  %813 = vmatpush1.msra.mxu1 %v4861_v23 }
  0x3a   :  { %743 = vmatprep.subr.mxu0 %v4866_v24  ;;  %814 = vmatprep.subr.mxu1 %v4871_v25 }
  0x3b   :  { %744 = vmatpush1.msra.mxu0 %v4878_v26  ;;  %815 = vmatpush1.msra.mxu1 %v4883_v27 }
  0x3c   :  { %745 = vmatprep.subr.mxu0 %v4892_v28  ;;  %816 = vmatprep.subr.mxu1 %v4897_v29 }
  0x3d   :  { %746 = vmatpush1.msra.mxu0 %v4902_v30  ;;  %817 = vmatpush1.msra.mxu1 %v4909_v31 }
  0x3e   :  { %747 = vmatprep.subr.mxu0 %v4916_v32  ;;  %818 = vmatprep.subr.mxu1 %v4921_v33  ;;  %v5476_v33 = vld [vmem:[%s10243_s4 + $0x2a0] sm:$0xff]  ;;  %v5493_v32 = vld [vmem:[%s10243_s4 + $0x298] sm:$0xff] }
  0x3f   :  { %748 = vmatpush1.msra.mxu0 %v4926_v36  ;;  %819 = vmatpush1.msra.mxu1 %v4933_v45  ;;  %v5442_v45 = vld [vmem:[%s10243_s4 + $0x2c8] sm:$0xff]  ;;  %v5459_v36 = vld [vmem:[%s10243_s4 + $0x2d0] sm:$0xff]  ;;  %10896 = vst [vmem:[#allocation110_spill] sm:$0xff] %v5476_v33  ;;  %10899 = vst [vmem:[#allocation113_spill] sm:$0xff] %v5493_v32 }
  0x40   :  { %749 = vmatprep.subr.mxu0 %v4940_v54  ;;  %820 = vmatprep.subr.mxu1 %v4945_v63  ;;  %v4964_v54 = vld [vmem:[%s10243_s4 + $0x148] sm:$0xff]  ;;  %v4969_v63 = vld [vmem:[%s10243_s4 + $0x158] sm:$0xff]  ;;  %10890 = vst [vmem:[#allocation104_spill] sm:$0xff] %v5442_v45  ;;  %10893 = vst [vmem:[#allocation107_spill] sm:$0xff] %v5459_v36 }
  0x41   :  { %750 = vmatpush1.msra.mxu0 %v4952_v9  ;;  %821 = vmatpush1.msra.mxu1 %v4957_v3  ;;  %10810 = vst [vmem:[#allocation24_spill] sm:$0xff] %v4964_v54  ;;  %10811 = vst [vmem:[#allocation25_spill] sm:$0xff] %v4969_v63  ;;  %v4976_v9 = vld [vmem:[%s10243_s4 + $0x140] sm:$0xff]  ;;  %v4981_v3 = vld [vmem:[%s10243_s4 + $0x150] sm:$0xff] }
  0x42   :  { %751 = vmatprep.subr.mxu0 %v4964_v54  ;;  %822 = vmatprep.subr.mxu1 %v4969_v63  ;;  %10812 = vst [vmem:[#allocation26_spill] sm:$0xff] %v4976_v9  ;;  %10813 = vst [vmem:[#allocation27_spill] sm:$0xff] %v4981_v3  ;;  %v4988_v54 = vld [vmem:[%s10243_s4 + $0x128] sm:$0xff]  ;;  %v4993_v63 = vld [vmem:[%s10243_s4 + $0x138] sm:$0xff] }
  0x43   :  { %752 = vmatpush1.msra.mxu0 %v4976_v9  ;;  %823 = vmatpush1.msra.mxu1 %v4981_v3  ;;  %10814 = vst [vmem:[#allocation28_spill] sm:$0xff] %v4988_v54  ;;  %10815 = vst [vmem:[#allocation29_spill] sm:$0xff] %v4993_v63  ;;  %v5000_v9 = vld [vmem:[%s10243_s4 + $0x120] sm:$0xff]  ;;  %v5005_v3 = vld [vmem:[%s10243_s4 + $0x130] sm:$0xff] }
  0x44   :  { %753 = vmatprep.subr.mxu0 %v4988_v54  ;;  %824 = vmatprep.subr.mxu1 %v4993_v63  ;;  %10816 = vst [vmem:[#allocation30_spill] sm:$0xff] %v5000_v9  ;;  %10817 = vst [vmem:[#allocation31_spill] sm:$0xff] %v5005_v3  ;;  %v5012_v54 = vld [vmem:[%s10243_s4 + $0x108] sm:$0xff]  ;;  %v5017_v63 = vld [vmem:[%s10243_s4 + $0x118] sm:$0xff] }
  0x45   :  { %754 = vmatpush1.msra.mxu0 %v5000_v9  ;;  %825 = vmatpush1.msra.mxu1 %v5005_v3  ;;  %10818 = vst [vmem:[#allocation32_spill] sm:$0xff] %v5012_v54  ;;  %10819 = vst [vmem:[#allocation33_spill] sm:$0xff] %v5017_v63  ;;  %v5024_v9 = vld [vmem:[%s10243_s4 + $0x100] sm:$0xff]  ;;  %v5029_v3 = vld [vmem:[%s10243_s4 + $0x110] sm:$0xff] }
  0x46   :  { %755 = vmatprep.subr.mxu0 %v5012_v54  ;;  %826 = vmatprep.subr.mxu1 %v5017_v63  ;;  %10820 = vst [vmem:[#allocation34_spill] sm:$0xff] %v5024_v9  ;;  %10821 = vst [vmem:[#allocation35_spill] sm:$0xff] %v5029_v3  ;;  %v5036_v54 = vld [vmem:[%s10243_s4 + $0xe8] sm:$0xff]  ;;  %v5041_v63 = vld [vmem:[%s10243_s4 + $0xf8] sm:$0xff] }
  0x47   :  { %756 = vmatpush1.msra.mxu0 %v5024_v9  ;;  %827 = vmatpush1.msra.mxu1 %v5029_v3  ;;  %10822 = vst [vmem:[#allocation36_spill] sm:$0xff] %v5036_v54  ;;  %10823 = vst [vmem:[#allocation37_spill] sm:$0xff] %v5041_v63  ;;  %v5048_v9 = vld [vmem:[%s10243_s4 + $0xe0] sm:$0xff]  ;;  %v5053_v3 = vld [vmem:[%s10243_s4 + $0xf0] sm:$0xff] }
  0x48   :  { %757 = vmatprep.subr.mxu0 %v5036_v54  ;;  %828 = vmatprep.subr.mxu1 %v5041_v63  ;;  %10824 = vst [vmem:[#allocation38_spill] sm:$0xff] %v5048_v9  ;;  %10825 = vst [vmem:[#allocation39_spill] sm:$0xff] %v5053_v3  ;;  %v5060_v54 = vld [vmem:[%s10243_s4 + $0xc8] sm:$0xff]  ;;  %v5065_v63 = vld [vmem:[%s10243_s4 + $0xd8] sm:$0xff] }
  0x49   :  { %758 = vmatpush1.msra.mxu0 %v5048_v9  ;;  %829 = vmatpush1.msra.mxu1 %v5053_v3  ;;  %10826 = vst [vmem:[#allocation40_spill] sm:$0xff] %v5060_v54  ;;  %10827 = vst [vmem:[#allocation41_spill] sm:$0xff] %v5065_v63  ;;  %v5072_v9 = vld [vmem:[%s10243_s4 + $0xc0] sm:$0xff]  ;;  %v5077_v3 = vld [vmem:[%s10243_s4 + $0xd0] sm:$0xff] }
  0x4a   :  { %759 = vmatprep.subr.mxu0 %v5060_v54  ;;  %830 = vmatprep.subr.mxu1 %v5065_v63  ;;  %10828 = vst [vmem:[#allocation42_spill] sm:$0xff] %v5072_v9  ;;  %10829 = vst [vmem:[#allocation43_spill] sm:$0xff] %v5077_v3  ;;  %v5084_v54 = vld [vmem:[%s10243_s4 + $0xa8] sm:$0xff]  ;;  %v5089_v63 = vld [vmem:[%s10243_s4 + $0xb8] sm:$0xff] }
  0x4b   :  { %760 = vmatpush1.msra.mxu0 %v5072_v9  ;;  %831 = vmatpush1.msra.mxu1 %v5077_v3  ;;  %10830 = vst [vmem:[#allocation44_spill] sm:$0xff] %v5084_v54  ;;  %10831 = vst [vmem:[#allocation45_spill] sm:$0xff] %v5089_v63  ;;  %v5096_v9 = vld [vmem:[%s10243_s4 + $0xa0] sm:$0xff]  ;;  %v5101_v3 = vld [vmem:[%s10243_s4 + $0xb0] sm:$0xff] }
  0x4c   :  { %761 = vmatprep.subr.mxu0 %v5084_v54  ;;  %832 = vmatprep.subr.mxu1 %v5089_v63  ;;  %10832 = vst [vmem:[#allocation46_spill] sm:$0xff] %v5096_v9  ;;  %10833 = vst [vmem:[#allocation47_spill] sm:$0xff] %v5101_v3  ;;  %v5108_v54 = vld [vmem:[%s10243_s4 + $0x88] sm:$0xff]  ;;  %v5113_v63 = vld [vmem:[%s10243_s4 + $0x98] sm:$0xff] }
  0x4d   :  { %762 = vmatpush1.msra.mxu0 %v5096_v9  ;;  %833 = vmatpush1.msra.mxu1 %v5101_v3  ;;  %10834 = vst [vmem:[#allocation48_spill] sm:$0xff] %v5108_v54  ;;  %10835 = vst [vmem:[#allocation49_spill] sm:$0xff] %v5113_v63  ;;  %v5120_v9 = vld [vmem:[%s10243_s4 + $0x80] sm:$0xff]  ;;  %v5125_v3 = vld [vmem:[%s10243_s4 + $0x90] sm:$0xff] }
  0x4e   :  { %763 = vmatprep.subr.mxu0 %v5108_v54  ;;  %834 = vmatprep.subr.mxu1 %v5113_v63  ;;  %10836 = vst [vmem:[#allocation50_spill] sm:$0xff] %v5120_v9  ;;  %10837 = vst [vmem:[#allocation51_spill] sm:$0xff] %v5125_v3  ;;  %v5132_v54 = vld [vmem:[%s10243_s4 + $0x68] sm:$0xff]  ;;  %v5137_v63 = vld [vmem:[%s10243_s4 + $0x78] sm:$0xff] }
  0x4f   :  { %764 = vmatpush1.msra.mxu0 %v5120_v9  ;;  %835 = vmatpush1.msra.mxu1 %v5125_v3  ;;  %10838 = vst [vmem:[#allocation52_spill] sm:$0xff] %v5132_v54  ;;  %10839 = vst [vmem:[#allocation53_spill] sm:$0xff] %v5137_v63  ;;  %v5144_v9 = vld [vmem:[%s10243_s4 + $0x60] sm:$0xff]  ;;  %v5149_v3 = vld [vmem:[%s10243_s4 + $0x70] sm:$0xff] }
  0x50   :  { %765 = vmatprep.subr.mxu0 %v5132_v54  ;;  %836 = vmatprep.subr.mxu1 %v5137_v63  ;;  %10840 = vst [vmem:[#allocation54_spill] sm:$0xff] %v5144_v9  ;;  %10841 = vst [vmem:[#allocation55_spill] sm:$0xff] %v5149_v3  ;;  %v5156_v54 = vld [vmem:[%s10243_s4 + $0x48] sm:$0xff]  ;;  %v5161_v63 = vld [vmem:[%s10243_s4 + $0x58] sm:$0xff] }
  0x51   :  { %766 = vmatpush1.msra.mxu0 %v5144_v9  ;;  %837 = vmatpush1.msra.mxu1 %v5149_v3  ;;  %10842 = vst [vmem:[#allocation56_spill] sm:$0xff] %v5156_v54  ;;  %10843 = vst [vmem:[#allocation57_spill] sm:$0xff] %v5161_v63  ;;  %v5168_v9 = vld [vmem:[%s10243_s4 + $0x40] sm:$0xff]  ;;  %v5173_v3 = vld [vmem:[%s10243_s4 + $0x50] sm:$0xff] }
  0x52   :  { %767 = vmatprep.subr.mxu0 %v5156_v54  ;;  %838 = vmatprep.subr.mxu1 %v5161_v63  ;;  %10844 = vst [vmem:[#allocation58_spill] sm:$0xff] %v5168_v9  ;;  %10845 = vst [vmem:[#allocation59_spill] sm:$0xff] %v5173_v3  ;;  %v5180_v54 = vld [vmem:[%s10243_s4 + $0x28] sm:$0xff]  ;;  %v5185_v63 = vld [vmem:[%s10243_s4 + $0x38] sm:$0xff] }
  0x53   :  { %768 = vmatpush1.msra.mxu0 %v5168_v9  ;;  %839 = vmatpush1.msra.mxu1 %v5173_v3  ;;  %10846 = vst [vmem:[#allocation60_spill] sm:$0xff] %v5180_v54  ;;  %10847 = vst [vmem:[#allocation61_spill] sm:$0xff] %v5185_v63  ;;  %v5192_v9 = vld [vmem:[%s10243_s4 + $0x20] sm:$0xff]  ;;  %v5197_v3 = vld [vmem:[%s10243_s4 + $0x30] sm:$0xff] }
  0x54   :  { %769 = vmatprep.subr.mxu0 %v5180_v54  ;;  %840 = vmatprep.subr.mxu1 %v5185_v63  ;;  %10848 = vst [vmem:[#allocation62_spill] sm:$0xff] %v5192_v9  ;;  %10849 = vst [vmem:[#allocation63_spill] sm:$0xff] %v5197_v3  ;;  %v5204_v54 = vld [vmem:[%s10243_s4 + $0x8] sm:$0xff]  ;;  %v5209_v63 = vld [vmem:[%s10243_s4 + $0x18] sm:$0xff] }
  0x55   :  { %770 = vmatpush1.msra.mxu0 %v5192_v9  ;;  %841 = vmatpush1.msra.mxu1 %v5197_v3  ;;  %10850 = vst [vmem:[#allocation64_spill] sm:$0xff] %v5204_v54  ;;  %10851 = vst [vmem:[#allocation65_spill] sm:$0xff] %v5209_v63  ;;  %v5216_v9 = vld [vmem:[%s10243_s4] sm:$0xff]  ;;  %v5221_v3 = vld [vmem:[%s10243_s4 + $0x10] sm:$0xff] }
  0x56   :  { %771 = vmatprep.subr.mxu0 %v5204_v54  ;;  %842 = vmatprep.subr.mxu1 %v5209_v63  ;;  %10852 = vst [vmem:[#allocation66_spill] sm:$0xff] %v5216_v9  ;;  %10853 = vst [vmem:[#allocation67_spill] sm:$0xff] %v5221_v3  ;;  %v5228_v54 = vld [vmem:[%s10243_s4 + $0x3e8] sm:$0xff]  ;;  %v5233_v63 = vld [vmem:[%s10243_s4 + $0x3f8] sm:$0xff] }
  0x57   :  { %772 = vmatpush1.msra.mxu0 %v5216_v9  ;;  %843 = vmatpush1.msra.mxu1 %v5221_v3  ;;  %10854 = vst [vmem:[#allocation68_spill] sm:$0xff] %v5228_v54  ;;  %10855 = vst [vmem:[#allocation69_spill] sm:$0xff] %v5233_v63  ;;  %v5240_v9 = vld [vmem:[%s10243_s4 + $0x3e0] sm:$0xff]  ;;  %v5245_v3 = vld [vmem:[%s10243_s4 + $0x3f0] sm:$0xff] }
  0x58   :  { %773 = vmatprep.subr.mxu0 %v5228_v54  ;;  %844 = vmatprep.subr.mxu1 %v5233_v63  ;;  %10856 = vst [vmem:[#allocation70_spill] sm:$0xff] %v5240_v9  ;;  %10857 = vst [vmem:[#allocation71_spill] sm:$0xff] %v5245_v3  ;;  %v5252_v54 = vld [vmem:[%s10243_s4 + $0x3c8] sm:$0xff]  ;;  %v5257_v63 = vld [vmem:[%s10243_s4 + $0x3d8] sm:$0xff] }
  0x59   :  { %774 = vmatpush2.msra.mxu0 %v5240_v9  ;;  %845 = vmatpush2.msra.mxu1 %v5245_v3  ;;  %10858 = vst [vmem:[#allocation72_spill] sm:$0xff] %v5252_v54  ;;  %10859 = vst [vmem:[#allocation73_spill] sm:$0xff] %v5257_v63  ;;  %v5264_v9 = vld [vmem:[%s10243_s4 + $0x3c0] sm:$0xff]  ;;  %v5269_v3 = vld [vmem:[%s10243_s4 + $0x3d0] sm:$0xff] }
  0x5a   :  { %775 = vmatprep.subr.mxu0 %v5252_v54  ;;  %846 = vmatprep.subr.mxu1 %v5257_v63  ;;  %10860 = vst [vmem:[#allocation74_spill] sm:$0xff] %v5264_v9  ;;  %10861 = vst [vmem:[#allocation75_spill] sm:$0xff] %v5269_v3  ;;  %v5276_v54 = vld [vmem:[%s10243_s4 + $0x3a8] sm:$0xff]  ;;  %v5281_v63 = vld [vmem:[%s10243_s4 + $0x3b8] sm:$0xff] }
  0x5b   :  { %776 = vmatpush2.msra.mxu0 %v5264_v9  ;;  %847 = vmatpush2.msra.mxu1 %v5269_v3  ;;  %10862 = vst [vmem:[#allocation76_spill] sm:$0xff] %v5276_v54  ;;  %10863 = vst [vmem:[#allocation77_spill] sm:$0xff] %v5281_v63  ;;  %v5288_v9 = vld [vmem:[%s10243_s4 + $0x3a0] sm:$0xff]  ;;  %v5293_v3 = vld [vmem:[%s10243_s4 + $0x3b0] sm:$0xff] }
  0x5c   :  { %777 = vmatprep.subr.mxu0 %v5276_v54  ;;  %848 = vmatprep.subr.mxu1 %v5281_v63  ;;  %10864 = vst [vmem:[#allocation78_spill] sm:$0xff] %v5288_v9  ;;  %10865 = vst [vmem:[#allocation79_spill] sm:$0xff] %v5293_v3  ;;  %v5300_v54 = vld [vmem:[%s10243_s4 + $0x388] sm:$0xff]  ;;  %v5305_v63 = vld [vmem:[%s10243_s4 + $0x398] sm:$0xff] }
  0x5d   :  { %778 = vmatpush2.msra.mxu0 %v5288_v9  ;;  %849 = vmatpush2.msra.mxu1 %v5293_v3  ;;  %10866 = vst [vmem:[#allocation80_spill] sm:$0xff] %v5300_v54  ;;  %10867 = vst [vmem:[#allocation81_spill] sm:$0xff] %v5305_v63  ;;  %v5312_v9 = vld [vmem:[%s10243_s4 + $0x380] sm:$0xff]  ;;  %v5317_v3 = vld [vmem:[%s10243_s4 + $0x390] sm:$0xff] }
  0x5e   :  { %779 = vmatprep.subr.mxu0 %v5300_v54  ;;  %850 = vmatprep.subr.mxu1 %v5305_v63  ;;  %10868 = vst [vmem:[#allocation82_spill] sm:$0xff] %v5312_v9  ;;  %10869 = vst [vmem:[#allocation83_spill] sm:$0xff] %v5317_v3  ;;  %v5324_v54 = vld [vmem:[%s10243_s4 + $0x368] sm:$0xff]  ;;  %v5329_v63 = vld [vmem:[%s10243_s4 + $0x378] sm:$0xff] }
  0x5f   :  { %780 = vmatpush2.msra.mxu0 %v5312_v9  ;;  %851 = vmatpush2.msra.mxu1 %v5317_v3  ;;  %10870 = vst [vmem:[#allocation84_spill] sm:$0xff] %v5324_v54  ;;  %10871 = vst [vmem:[#allocation85_spill] sm:$0xff] %v5329_v63  ;;  %v5336_v9 = vld [vmem:[%s10243_s4 + $0x360] sm:$0xff]  ;;  %v5341_v3 = vld [vmem:[%s10243_s4 + $0x370] sm:$0xff] }
  0x60   :  { %781 = vmatprep.subr.mxu0 %v5324_v54  ;;  %852 = vmatprep.subr.mxu1 %v5329_v63  ;;  %10872 = vst [vmem:[#allocation86_spill] sm:$0xff] %v5336_v9  ;;  %10873 = vst [vmem:[#allocation87_spill] sm:$0xff] %v5341_v3  ;;  %v5348_v54 = vld [vmem:[%s10243_s4 + $0x348] sm:$0xff]  ;;  %v5353_v63 = vld [vmem:[%s10243_s4 + $0x358] sm:$0xff] }
  0x61   :  { %782 = vmatpush2.msra.mxu0 %v5336_v9  ;;  %853 = vmatpush2.msra.mxu1 %v5341_v3  ;;  %10874 = vst [vmem:[#allocation88_spill] sm:$0xff] %v5348_v54  ;;  %10875 = vst [vmem:[#allocation89_spill] sm:$0xff] %v5353_v63  ;;  %v5360_v9 = vld [vmem:[%s10243_s4 + $0x340] sm:$0xff]  ;;  %v5365_v3 = vld [vmem:[%s10243_s4 + $0x350] sm:$0xff] }
  0x62   :  { %783 = vmatprep.subr.mxu0 %v5348_v54  ;;  %854 = vmatprep.subr.mxu1 %v5353_v63  ;;  %10876 = vst [vmem:[#allocation90_spill] sm:$0xff] %v5360_v9  ;;  %10877 = vst [vmem:[#allocation91_spill] sm:$0xff] %v5365_v3  ;;  %v5372_v54 = vld [vmem:[%s10243_s4 + $0x328] sm:$0xff]  ;;  %v5377_v63 = vld [vmem:[%s10243_s4 + $0x338] sm:$0xff] }
  0x63   :  { %784 = vmatpush2.msra.mxu0 %v5360_v9  ;;  %855 = vmatpush2.msra.mxu1 %v5365_v3  ;;  %10878 = vst [vmem:[#allocation92_spill] sm:$0xff] %v5372_v54  ;;  %10879 = vst [vmem:[#allocation93_spill] sm:$0xff] %v5377_v63  ;;  %v5384_v9 = vld [vmem:[%s10243_s4 + $0x320] sm:$0xff]  ;;  %v5389_v3 = vld [vmem:[%s10243_s4 + $0x330] sm:$0xff] }
  0x64   :  { %785 = vmatprep.subr.mxu0 %v5372_v54  ;;  %856 = vmatprep.subr.mxu1 %v5377_v63  ;;  %10880 = vst [vmem:[#allocation94_spill] sm:$0xff] %v5384_v9  ;;  %10881 = vst [vmem:[#allocation95_spill] sm:$0xff] %v5389_v3  ;;  %v5396_v54 = vld [vmem:[%s10243_s4 + $0x308] sm:$0xff]  ;;  %v5401_v63 = vld [vmem:[%s10243_s4 + $0x318] sm:$0xff] }
  0x65   :  { %786 = vmatpush2.msra.mxu0 %v5384_v9  ;;  %857 = vmatpush2.msra.mxu1 %v5389_v3  ;;  %10882 = vst [vmem:[#allocation96_spill] sm:$0xff] %v5396_v54  ;;  %10883 = vst [vmem:[#allocation97_spill] sm:$0xff] %v5401_v63  ;;  %v5408_v9 = vld [vmem:[%s10243_s4 + $0x300] sm:$0xff]  ;;  %v5413_v3 = vld [vmem:[%s10243_s4 + $0x310] sm:$0xff] }
  0x66   :  { %787 = vmatprep.subr.mxu0 %v5396_v54  ;;  %858 = vmatprep.subr.mxu1 %v5401_v63  ;;  %10884 = vst [vmem:[#allocation98_spill] sm:$0xff] %v5408_v9  ;;  %10885 = vst [vmem:[#allocation99_spill] sm:$0xff] %v5413_v3  ;;  %v5420_v54 = vld [vmem:[%s10243_s4 + $0x2e8] sm:$0xff]  ;;  %v5425_v63 = vld [vmem:[%s10243_s4 + $0x2f8] sm:$0xff] }
  0x67   :  { %788 = vmatpush2.msra.mxu0 %v5408_v9  ;;  %859 = vmatpush2.msra.mxu1 %v5413_v3  ;;  %10886 = vst [vmem:[#allocation100_spill] sm:$0xff] %v5420_v54  ;;  %10887 = vst [vmem:[#allocation101_spill] sm:$0xff] %v5425_v63  ;;  %v5432_v9 = vld [vmem:[%s10243_s4 + $0x2e0] sm:$0xff]  ;;  %v5437_v3 = vld [vmem:[%s10243_s4 + $0x2f0] sm:$0xff] }
  0x68   :  { %789 = vmatprep.subr.mxu0 %v5420_v54  ;;  %860 = vmatprep.subr.mxu1 %v5425_v63  ;;  %10888 = vst [vmem:[#allocation102_spill] sm:$0xff] %v5432_v9  ;;  %10889 = vst [vmem:[#allocation103_spill] sm:$0xff] %v5437_v3  ;;  %v5449_v63 = vld [vmem:[%s10243_s4 + $0x2d8] sm:$0xff]  ;;  %v5454_v54 = vld [vmem:[%s10243_s4 + $0x2c0] sm:$0xff] }
  0x69   :  { %790 = vmatpush2.msra.mxu0 %v5432_v9  ;;  %861 = vmatpush2.msra.mxu1 %v5437_v3  ;;  %10891 = vst [vmem:[#allocation105_spill] sm:$0xff] %v5449_v63  ;;  %10892 = vst [vmem:[#allocation106_spill] sm:$0xff] %v5454_v54  ;;  %v5466_v3 = vld [vmem:[%s10243_s4 + $0x2a8] sm:$0xff]  ;;  %v5471_v9 = vld [vmem:[%s10243_s4 + $0x2b8] sm:$0xff] }
  0x6a   :  { %791 = vmatprep.subr.mxu0 %v5442_v45  ;;  %862 = vmatprep.subr.mxu1 %v5449_v63  ;;  %10894 = vst [vmem:[#allocation108_spill] sm:$0xff] %v5466_v3  ;;  %10895 = vst [vmem:[#allocation109_spill] sm:$0xff] %v5471_v9  ;;  %v5483_v63 = vld [vmem:[%s10243_s4 + $0x2b0] sm:$0xff]  ;;  %v5488_v45 = vld [vmem:[%s10243_s4 + $0x288] sm:$0xff] }
  0x6b   :  { %792 = vmatpush2.msra.mxu0 %v5454_v54  ;;  %863 = vmatpush2.msra.mxu1 %v5459_v36  ;;  %10897 = vst [vmem:[#allocation111_spill] sm:$0xff] %v5483_v63  ;;  %10898 = vst [vmem:[#allocation112_spill] sm:$0xff] %v5488_v45  ;;  %v5500_v36 = vld [vmem:[%s10243_s4 + $0x280] sm:$0xff]  ;;  %v5505_v54 = vld [vmem:[%s10243_s4 + $0x290] sm:$0xff] }
  0x6c   :  { %793 = vmatprep.subr.mxu0 %v5466_v3  ;;  %864 = vmatprep.subr.mxu1 %v5471_v9  ;;  %10900 = vst [vmem:[#allocation114_spill] sm:$0xff] %v5500_v36  ;;  %10901 = vst [vmem:[#allocation115_spill] sm:$0xff] %v5505_v54  ;;  %v5512_v3 = vld [vmem:[%s10243_s4 + $0x268] sm:$0xff]  ;;  %v5517_v9 = vld [vmem:[%s10243_s4 + $0x278] sm:$0xff] }
  0x6d   :  { %794 = vmatpush2.msra.mxu0 %v5476_v33  ;;  %865 = vmatpush2.msra.mxu1 %v5483_v63  ;;  %10902 = vst [vmem:[#allocation116_spill] sm:$0xff] %v5512_v3  ;;  %10903 = vst [vmem:[#allocation117_spill] sm:$0xff] %v5517_v9  ;;  %v5524_v33 = vld [vmem:[%s10243_s4 + $0x260] sm:$0xff]  ;;  %v5529_v63 = vld [vmem:[%s10243_s4 + $0x270] sm:$0xff] }
  0x6e   :  { %795 = vmatprep.subr.mxu0 %v5488_v45  ;;  %866 = vmatprep.subr.mxu1 %v5493_v32  ;;  %10904 = vst [vmem:[#allocation118_spill] sm:$0xff] %v5524_v33  ;;  %10905 = vst [vmem:[#allocation119_spill] sm:$0xff] %v5529_v63  ;;  %v5536_v45 = vld [vmem:[%s10243_s4 + $0x248] sm:$0xff]  ;;  %v5541_v32 = vld [vmem:[%s10243_s4 + $0x258] sm:$0xff] }
  0x6f   :  { %796 = vmatpush2.msra.mxu0 %v5500_v36  ;;  %867 = vmatpush2.msra.mxu1 %v5505_v54  ;;  %10906 = vst [vmem:[#allocation120_spill] sm:$0xff] %v5536_v45  ;;  %10907 = vst [vmem:[#allocation121_spill] sm:$0xff] %v5541_v32  ;;  %v5548_v36 = vld [vmem:[%s10243_s4 + $0x240] sm:$0xff]  ;;  %v5553_v54 = vld [vmem:[%s10243_s4 + $0x250] sm:$0xff] }
  0x70   :  { %797 = vmatprep.subr.mxu0 %v5512_v3  ;;  %868 = vmatprep.subr.mxu1 %v5517_v9  ;;  %10908 = vst [vmem:[#allocation122_spill] sm:$0xff] %v5548_v36  ;;  %10909 = vst [vmem:[#allocation123_spill] sm:$0xff] %v5553_v54  ;;  %v5560_v3 = vld [vmem:[%s10243_s4 + $0x228] sm:$0xff]  ;;  %v5565_v9 = vld [vmem:[%s10243_s4 + $0x238] sm:$0xff] }
  0x71   :  { %798 = vmatpush2.msra.mxu0 %v5524_v33  ;;  %869 = vmatpush2.msra.mxu1 %v5529_v63  ;;  %10910 = vst [vmem:[#allocation124_spill] sm:$0xff] %v5560_v3  ;;  %10911 = vst [vmem:[#allocation125_spill] sm:$0xff] %v5565_v9  ;;  %v5572_v33 = vld [vmem:[%s10243_s4 + $0x220] sm:$0xff]  ;;  %v5577_v63 = vld [vmem:[%s10243_s4 + $0x230] sm:$0xff] }
  0x72   :  { %799 = vmatprep.subr.mxu0 %v5536_v45  ;;  %870 = vmatprep.subr.mxu1 %v5541_v32  ;;  %10912 = vst [vmem:[#allocation126_spill] sm:$0xff] %v5572_v33  ;;  %10913 = vst [vmem:[#allocation127_spill] sm:$0xff] %v5577_v63  ;;  %v5584_v45 = vld [vmem:[%s10243_s4 + $0x208] sm:$0xff]  ;;  %v5589_v32 = vld [vmem:[%s10243_s4 + $0x218] sm:$0xff] }
  0x73   :  { %800 = vmatpush2.msra.mxu0 %v5548_v36  ;;  %871 = vmatpush2.msra.mxu1 %v5553_v54  ;;  %10914 = vst [vmem:[#allocation128_spill] sm:$0xff] %v5584_v45  ;;  %10915 = vst [vmem:[#allocation129_spill] sm:$0xff] %v5589_v32  ;;  %v5596_v36 = vld [vmem:[%s10243_s4 + $0x200] sm:$0xff]  ;;  %v5601_v54 = vld [vmem:[%s10243_s4 + $0x210] sm:$0xff] }
  0x74   :  { %801 = vmatprep.subr.mxu0 %v5560_v3  ;;  %872 = vmatprep.subr.mxu1 %v5565_v9  ;;  %10916 = vst [vmem:[#allocation130_spill] sm:$0xff] %v5596_v36  ;;  %10917 = vst [vmem:[#allocation131_spill] sm:$0xff] %v5601_v54  ;;  %v47_v9 = vlaneseq }
  0x75   :  { %802 = vmatpush2.msra.mxu0 %v5572_v33  ;;  %873 = vmatpush2.msra.mxu1 %v5577_v63 }
  0x76   :  { %803 = vmatprep.subr.mxu0 %v5584_v45  ;;  %874 = vmatprep.subr.mxu1 %v5589_v32  ;;  %v5611_v3 = vshrl.u32 %v47_v9, 7 }
  0x77   :  { %804 = vmatpush2.msra.mxu0 %v5596_v36  ;;  %875 = vmatpush2.msra.mxu1 %v5601_v54  ;;  %v45_v36 = vld [vmem:[%s10244_s3] sm:$0xf] }
  0x78   :  { %914 = vmatprep.subr.mxu0 %v4463_v10  ;;  %985 = vmatprep.subr.mxu1 %v4468_v11  ;;  %v10376_v63 = vsub.s32 0, %v5611_v3  ;;  %v10378_v45 = vsub.s32 2, %v5611_v3  ;;  %v10382_v11 = vsub.s32 1, %v5611_v3  ;;  %v10383_v9 = vsub.s32 3, %v5611_v3 }
  0x7a   :  { %v50_v32 = vrot.slane %v45_v36, %v10376_v63  ;;  %v5632_v30 = vrot.slane %v45_v36, %v10378_v45  ;;  %v54_v27 = vrot.slane %v45_v36, %v10382_v11  ;;  %v5638_v26 = vrot.slane %v45_v36, %v10383_v9 }
  0xc6   :  { %v5613_v31 = vpop.f32.mrf.mxu0  ;;  %v5615_v33 = vpop.f32.mrf.mxu1 }
  0xc8   :  { %v5622_v54 = vpop.f32.mrf.mxu0  ;;  %v5624_v10 = vpop.f32.mrf.mxu1 }
  0xcc   :  { %v164_v29 = vpop.f32.mrf.mxu0  ;;  %v277_v28 = vpop.f32.mrf.mxu1 }
  0xcd   :  { %v5640_v25 = vadd.f32 %v164_v29, %v50_v32  ;;  %v5643_v24 = vadd.f32 %v277_v28, %v5632_v30 }
  0xce   :  { %v166_v23 = vpop.f32.mrf.mxu0  ;;  %v279_v63 = vpop.f32.mrf.mxu1 }
  0xcf   :  { %10918 = vst [vmem:[#allocation132_spill] sm:$0xff] %v5640_v25  ;;  %10919 = vst [vmem:[#allocation133_spill] sm:$0xff] %v5643_v24  ;;  %v5645_v22 = vadd.f32 %v166_v23, %v54_v27  ;;  %v5648_v45 = vadd.f32 %v279_v63, %v5638_v26 }
  0xd1   :  { %10920 = vst [vmem:[#allocation134_spill] sm:$0xff] %v5645_v22  ;;  %10921 = vst [vmem:[#allocation135_spill] sm:$0xff] %v5648_v45 }
  0xd2   :  { %v170_v21 = vpop.f32.mrf.mxu0  ;;  %v283_v20 = vpop.f32.mrf.mxu1 }
  0xd3   :  { %v5650_v19 = vadd.f32 %v170_v21, %v50_v32  ;;  %v5653_v11 = vadd.f32 %v283_v20, %v5632_v30 }
  0xd4   :  { %v172_v36 = vpop.f32.mrf.mxu0  ;;  %v285_v29 = vpop.f32.mrf.mxu1 }
  0xd5   :  { %10922 = vst [vmem:[#allocation136_spill] sm:$0xff] %v5650_v19  ;;  %10923 = vst [vmem:[#allocation137_spill] sm:$0xff] %v5653_v11  ;;  %v5655_v9 = vadd.f32 %v172_v36, %v54_v27  ;;  %v5658_v28 = vadd.f32 %v285_v29, %v5638_v26 }
  0xd7   :  { %10924 = vst [vmem:[#allocation138_spill] sm:$0xff] %v5655_v9  ;;  %10925 = vst [vmem:[#allocation139_spill] sm:$0xff] %v5658_v28 }
  0xd8   :  { %v176_v24 = vpop.f32.mrf.mxu0  ;;  %v289_v23 = vpop.f32.mrf.mxu1 }
  0xd9   :  { %v5660_v22 = vadd.f32 %v176_v24, %v50_v32  ;;  %v5663_v63 = vadd.f32 %v289_v23, %v5632_v30 }
  0xda   :  { %v178_v45 = vpop.f32.mrf.mxu0  ;;  %v291_v21 = vpop.f32.mrf.mxu1 }
  0xdb   :  { %10926 = vst [vmem:[#allocation140_spill] sm:$0xff] %v5660_v22  ;;  %10927 = vst [vmem:[#allocation141_spill] sm:$0xff] %v5663_v63  ;;  %v5665_v19 = vadd.f32 %v178_v45, %v54_v27  ;;  %v5668_v20 = vadd.f32 %v291_v21, %v5638_v26 }
  0xdd   :  { %10928 = vst [vmem:[#allocation142_spill] sm:$0xff] %v5665_v19  ;;  %10929 = vst [vmem:[#allocation143_spill] sm:$0xff] %v5668_v20 }
  0xde   :  { %v182_v11 = vpop.f32.mrf.mxu0  ;;  %v295_v36 = vpop.f32.mrf.mxu1 }
  0xdf   :  { %v5670_v9 = vadd.f32 %v182_v11, %v50_v32  ;;  %v5673_v29 = vadd.f32 %v295_v36, %v5632_v30 }
  0xe0   :  { %v184_v28 = vpop.f32.mrf.mxu0  ;;  %v297_v24 = vpop.f32.mrf.mxu1 }
  0xe1   :  { %10930 = vst [vmem:[#allocation144_spill] sm:$0xff] %v5670_v9  ;;  %10931 = vst [vmem:[#allocation145_spill] sm:$0xff] %v5673_v29  ;;  %v5675_v22 = vadd.f32 %v184_v28, %v54_v27  ;;  %v5678_v23 = vadd.f32 %v297_v24, %v5638_v26 }
  0xe3   :  { %10932 = vst [vmem:[#allocation146_spill] sm:$0xff] %v5675_v22  ;;  %10933 = vst [vmem:[#allocation147_spill] sm:$0xff] %v5678_v23 }
  0xe4   :  { %v188_v63 = vpop.f32.mrf.mxu0  ;;  %v301_v45 = vpop.f32.mrf.mxu1 }
  0xe5   :  { %v5680_v19 = vadd.f32 %v188_v63, %v50_v32  ;;  %v5683_v21 = vadd.f32 %v301_v45, %v5632_v30 }
  0xe6   :  { %v190_v20 = vpop.f32.mrf.mxu0  ;;  %v303_v11 = vpop.f32.mrf.mxu1 }
  0xe7   :  { %10934 = vst [vmem:[#allocation148_spill] sm:$0xff] %v5680_v19  ;;  %10935 = vst [vmem:[#allocation149_spill] sm:$0xff] %v5683_v21  ;;  %v5685_v9 = vadd.f32 %v190_v20, %v54_v27  ;;  %v5688_v36 = vadd.f32 %v303_v11, %v5638_v26 }
  0xe9   :  { %10936 = vst [vmem:[#allocation150_spill] sm:$0xff] %v5685_v9  ;;  %10937 = vst [vmem:[#allocation151_spill] sm:$0xff] %v5688_v36 }
  0xea   :  { %v194_v29 = vpop.f32.mrf.mxu0  ;;  %v307_v28 = vpop.f32.mrf.mxu1 }
  0xeb   :  { %v5690_v22 = vadd.f32 %v194_v29, %v50_v32  ;;  %v5693_v24 = vadd.f32 %v307_v28, %v5632_v30 }
  0xec   :  { %v196_v23 = vpop.f32.mrf.mxu0  ;;  %v309_v63 = vpop.f32.mrf.mxu1 }
  0xed   :  { %10938 = vst [vmem:[#allocation152_spill] sm:$0xff] %v5690_v22  ;;  %10939 = vst [vmem:[#allocation153_spill] sm:$0xff] %v5693_v24  ;;  %v5695_v19 = vadd.f32 %v196_v23, %v54_v27  ;;  %v5698_v45 = vadd.f32 %v309_v63, %v5638_v26  ;;  %v159_v23 = vadd.f32 %v5613_v31, %v50_v32 }
  0xee   :  { %v161_v63 = vadd.f32 %v5622_v54, %v54_v27 }
  0xef   :  { %10940 = vst [vmem:[#allocation154_spill] sm:$0xff] %v5695_v19  ;;  %10941 = vst [vmem:[#allocation155_spill] sm:$0xff] %v5698_v45 }
  0xf0   :  { %v200_v21 = vpop.f32.mrf.mxu0  ;;  %v313_v20 = vpop.f32.mrf.mxu1 }
  0xf1   :  { %v5700_v9 = vadd.f32 %v200_v21, %v50_v32  ;;  %v5703_v11 = vadd.f32 %v313_v20, %v5632_v30 }
  0xf2   :  { %v202_v36 = vpop.f32.mrf.mxu0  ;;  %v315_v29 = vpop.f32.mrf.mxu1 }
  0xf3   :  { %10942 = vst [vmem:[#allocation156_spill] sm:$0xff] %v5700_v9  ;;  %10943 = vst [vmem:[#allocation157_spill] sm:$0xff] %v5703_v11  ;;  %v5705_v22 = vadd.f32 %v202_v36, %v54_v27  ;;  %v5708_v28 = vadd.f32 %v315_v29, %v5638_v26  ;;  %v274_v36 = vadd.f32 %v5624_v10, %v5638_v26 }
  0xf4   :  { %v272_v29 = vadd.f32 %v5615_v33, %v5632_v30 }
  0xf5   :  { %10944 = vst [vmem:[#allocation158_spill] sm:$0xff] %v5705_v22  ;;  %10945 = vst [vmem:[#allocation159_spill] sm:$0xff] %v5708_v28 }
  0xf6   :  { %v487_v24 = vpop.f32.mrf.mxu0  ;;  %v558_v9 = vpop.f32.mrf.mxu1 }
  0xf7   :  { %v563_v45 = vadd.f32 %v487_v24, %v159_v23  ;;  %v565_v28 = vadd.f32 %v558_v9, %v272_v29  ;;  %v5726_v9 = vld [vmem:[%s10242_s2 + $0x1e0] sm:$0xff]  ;;  %v5756_v29 = vld [vmem:[%s10242_s2 + $0x1d0] sm:$0xff] }
  0xf8   :  { %v489_v19 = vpop.f32.mrf.mxu0  ;;  %v560_v11 = vpop.f32.mrf.mxu1 }
  0xf9   :  { %v3429_v25 = vmul.f32 -1.442695, %v563_v45  ;;  %v564_v21 = vadd.f32 %v489_v19, %v161_v63  ;;  %v566_v22 = vadd.f32 %v560_v11, %v274_v36  ;;  %v5750_v36 = vld [vmem:[%s10242_s2 + $0x1c0] sm:$0xff] }
  0xfb   :  { %3532 = vpow2.f32 %v3429_v25  ;;  %v3430_v20 = vmul.f32 -1.442695, %v564_v21  ;;  %v3431_v31 = vmul.f32 -1.442695, %v566_v22  ;;  %v5738_v21 = vld [vmem:[%s10242_s2 + $0x1c8] sm:$0xff] }
  0xfd   :  { %3534 = vpow2.f32 %v3430_v20  ;;  %v5744_v20 = vld [vmem:[%s10242_s2 + $0x1d8] sm:$0xff] }
  0xfe   :  { %3536 = vpow2.f32 %v3431_v31  ;;  %v5762_v31 = vld [vmem:[%s10242_s2 + $0x1a8] sm:$0xff] }
 0x108   :  { %v3533_v32 = vpop.eup %3532 }
 0x109   :  { %v570_v27 = vadd.f32 1.0, %v3533_v32  ;;  %v5768_v32 = vld [vmem:[%s10242_s2 + $0x1b8] sm:$0xff] }
 0x10a   :  { %v3535_v54 = vpop.eup %3534 }
 0x10b   :  { %3538 = vrcp.f32 %v570_v27  ;;  %v576_v19 = vadd.f32 1.0, %v3535_v54  ;;  %v3537_v25 = vpop.eup %3536  ;;  %v5774_v27 = vld [vmem:[%s10242_s2 + $0x1a0] sm:$0xff]  ;;  %v5780_v54 = vld [vmem:[%s10242_s2 + $0x1b0] sm:$0xff] }
 0x10c   :  { %3540 = vtanh.f32 %v565_v28  ;;  %v583_v63 = vadd.f32 1.0, %v3537_v25  ;;  %v5732_v28 = vld [vmem:[%s10242_s2 + $0x1f0] sm:$0xff]  ;;  %v5792_v25 = vld [vmem:[%s10242_s2 + $0x198] sm:$0xff] }
 0x10d   :  { %3542 = vrcp.f32 %v576_v19  ;;  %v5786_v19 = vld [vmem:[%s10242_s2 + $0x188] sm:$0xff] }
 0x10e   :  { %3544 = vrcp.f32 %v583_v63  ;;  %v5816_v63 = vld [vmem:[%s10242_s2 + $0x178] sm:$0xff] }
 0x118   :  { %v3539_v24 = vpop.eup %3538 }
 0x119   :  { %v3541_v45 = vpop.eup %3540 }
 0x11a   :  { %v3543_v23 = vpop.eup %3542  ;;  %v587_v10 = vmul.f32 %v3541_v45, %v3539_v24  ;;  %v5798_v24 = vld [vmem:[%s10242_s2 + $0x180] sm:$0xff]  ;;  %v5804_v45 = vld [vmem:[%s10242_s2 + $0x190] sm:$0xff] }
 0x11b   :  { %v586_v26 = vmul.f32 0.0, %v3543_v23  ;;  %v3545_v22 = vpop.eup %3544  ;;  %v5810_v23 = vld [vmem:[%s10242_s2 + $0x168] sm:$0xff] }
 0x11d   :  { %v5716_v11 = vadd.f32 %v587_v10, %v586_v26  ;;  %v5822_v26 = vld [vmem:[%s10242_s2 + $0x160] sm:$0xff]  ;;  %v5828_v10 = vld [vmem:[%s10242_s2 + $0x170] sm:$0xff] }
 0x11f   :  { %3546 = vtanh.f32 %v5716_v11 }
 0x12c   :  { %v3547_v30 = vpop.eup %3546 }
 0x12d   :  { %v5719_v33 = vmul.f32 %v3547_v30, %v3545_v22  ;;  %v5834_v22 = vld [vmem:[%s10242_s2 + $0x148] sm:$0xff]  ;;  %v5840_v30 = vld [vmem:[%s10242_s2 + $0x158] sm:$0xff] }
 0x12f   :  { %806 = vmatmul.mubr.f32.vlgmr.msra.gmra.mxu0 %v5719_v33  ;;  %877 = vmatmul.mubr.f32.vlgmr.msra.gmra.mxu1 %v5719_v33 }
 0x130   :  { %915 = vmatpush1.msra.mxu0 %v5726_v9  ;;  %986 = vmatpush1.msra.mxu1 %v5732_v28 }
 0x131   :  { %916 = vmatprep.subr.mxu0 %v5738_v21  ;;  %987 = vmatprep.subr.mxu1 %v5744_v20 }
 0x132   :  { %917 = vmatpush1.msra.mxu0 %v5750_v36  ;;  %988 = vmatpush1.msra.mxu1 %v5756_v29 }
 0x133   :  { %918 = vmatprep.subr.mxu0 %v5762_v31  ;;  %989 = vmatprep.subr.mxu1 %v5768_v32 }
 0x134   :  { %919 = vmatpush1.msra.mxu0 %v5774_v27  ;;  %990 = vmatpush1.msra.mxu1 %v5780_v54 }
 0x135   :  { %920 = vmatprep.subr.mxu0 %v5786_v19  ;;  %991 = vmatprep.subr.mxu1 %v5792_v25 }
 0x136   :  { %921 = vmatpush1.msra.mxu0 %v5798_v24  ;;  %992 = vmatpush1.msra.mxu1 %v5804_v45 }
 0x137   :  { %922 = vmatprep.subr.mxu0 %v5810_v23  ;;  %993 = vmatprep.subr.mxu1 %v5816_v63 }
 0x138   :  { %923 = vmatpush1.msra.mxu0 %v5822_v26  ;;  %994 = vmatpush1.msra.mxu1 %v5828_v10 }
 0x139   :  { %924 = vmatprep.subr.mxu0 %v5834_v22  ;;  %995 = vmatprep.subr.mxu1 %v5840_v30 }
 0x13a   :  { %925 = vmatpush1.msra.mxu0 %v4551_v34  ;;  %996 = vmatpush1.msra.mxu1 %v4556_v35  ;;  %v10946_v34 = vmov 0.0   ;;  %v10947_v35 = vld [vmem:[#allocation3_spill] sm:$0xff] }
 0x13b   :  { %926 = vmatprep.subr.mxu0 %v4566_v37  ;;  %997 = vmatprep.subr.mxu1 %v4571_v38  ;;  %v10948_v37 = vld [vmem:[#allocation4_spill] sm:$0xff]  ;;  %v10949_v38 = vld [vmem:[#allocation5_spill] sm:$0xff] }
 0x13c   :  { %927 = vmatpush1.msra.mxu0 %v4578_v39  ;;  %998 = vmatpush1.msra.mxu1 %v4583_v40  ;;  %v10950_v39 = vld [vmem:[#allocation6_spill] sm:$0xff]  ;;  %v10951_v40 = vld [vmem:[#allocation7_spill] sm:$0xff] }
 0x13d   :  { %928 = vmatprep.subr.mxu0 %v4590_v41  ;;  %999 = vmatprep.subr.mxu1 %v4595_v42  ;;  %v10952_v41 = vld [vmem:[#allocation8_spill] sm:$0xff]  ;;  %v10953_v42 = vld [vmem:[#allocation9_spill] sm:$0xff] }
 0x13e   :  { %929 = vmatpush1.msra.mxu0 %v4604_v43  ;;  %1000 = vmatpush1.msra.mxu1 %v4609_v44  ;;  %v10954_v43 = vld [vmem:[#allocation10_spill] sm:$0xff]  ;;  %v10955_v44 = vld [vmem:[#allocation11_spill] sm:$0xff] }
 0x13f   :  { %930 = vmatprep.subr.mxu0 %v4621_v46  ;;  %1001 = vmatprep.subr.mxu1 %v4626_v47  ;;  %v10956_v46 = vld [vmem:[#allocation12_spill] sm:$0xff]  ;;  %v10957_v47 = vld [vmem:[#allocation13_spill] sm:$0xff] }
 0x140   :  { %931 = vmatpush1.msra.mxu0 %v4633_v48  ;;  %1002 = vmatpush1.msra.mxu1 %v4638_v49  ;;  %v10958_v48 = vld [vmem:[#allocation14_spill] sm:$0xff]  ;;  %v10959_v49 = vld [vmem:[#allocation15_spill] sm:$0xff] }
 0x141   :  { %932 = vmatprep.subr.mxu0 %v4645_v50  ;;  %1003 = vmatprep.subr.mxu1 %v4650_v51  ;;  %v10960_v50 = vld [vmem:[#allocation16_spill] sm:$0xff]  ;;  %v10961_v51 = vld [vmem:[#allocation17_spill] sm:$0xff] }
 0x142   :  { %933 = vmatpush1.msra.mxu0 %v4659_v52  ;;  %1004 = vmatpush1.msra.mxu1 %v4664_v53  ;;  %v10962_v52 = vld [vmem:[#allocation18_spill] sm:$0xff]  ;;  %v10963_v53 = vld [vmem:[#allocation19_spill] sm:$0xff] }
 0x143   :  { %934 = vmatprep.subr.mxu0 %v4676_v55  ;;  %1005 = vmatprep.subr.mxu1 %v4681_v56  ;;  %v10964_v55 = vld [vmem:[#allocation20_spill] sm:$0xff]  ;;  %v10965_v56 = vld [vmem:[#allocation21_spill] sm:$0xff] }
 0x144   :  { %935 = vmatpush1.msra.mxu0 %v4688_v57  ;;  %1006 = vmatpush1.msra.mxu1 %v4693_v58  ;;  %v10966_v57 = vld [vmem:[#allocation22_spill] sm:$0xff]  ;;  %v10967_v58 = vld [vmem:[#allocation23_spill] sm:$0xff] }
 0x145   :  { %936 = vmatprep.subr.mxu0 %v4700_v59  ;;  %1007 = vmatprep.subr.mxu1 %v4705_v60  ;;  %v10968_v59 = vld [vmem:[#allocation24_spill] sm:$0xff]  ;;  %v10969_v60 = vld [vmem:[#allocation25_spill] sm:$0xff] }
 0x146   :  { %937 = vmatpush1.msra.mxu0 %v4714_v61  ;;  %1008 = vmatpush1.msra.mxu1 %v4719_v62  ;;  %v10970_v61 = vld [vmem:[#allocation26_spill] sm:$0xff]  ;;  %v10971_v62 = vld [vmem:[#allocation27_spill] sm:$0xff] }
 0x147   :  { %938 = vmatprep.subr.mxu0 %v4731_v0  ;;  %1009 = vmatprep.subr.mxu1 %v4736_v1  ;;  %v10972_v0 = vld [vmem:[#allocation28_spill] sm:$0xff]  ;;  %v10973_v1 = vld [vmem:[#allocation29_spill] sm:$0xff] }
 0x148   :  { %939 = vmatpush1.msra.mxu0 %v4743_v2  ;;  %1010 = vmatpush1.msra.mxu1 %v4748_v4  ;;  %v10974_v2 = vld [vmem:[#allocation30_spill] sm:$0xff]  ;;  %v10975_v4 = vld [vmem:[#allocation31_spill] sm:$0xff] }
 0x149   :  { %940 = vmatprep.subr.mxu0 %v4755_v5  ;;  %1011 = vmatprep.subr.mxu1 %v4760_v6  ;;  %v10976_v5 = vld [vmem:[#allocation32_spill] sm:$0xff]  ;;  %v10977_v6 = vld [vmem:[#allocation33_spill] sm:$0xff] }
 0x14a   :  { %941 = vmatpush1.msra.mxu0 %v4769_v7  ;;  %1012 = vmatpush1.msra.mxu1 %v4774_v8  ;;  %v10978_v7 = vld [vmem:[#allocation34_spill] sm:$0xff]  ;;  %v10979_v8 = vld [vmem:[#allocation35_spill] sm:$0xff] }
 0x14b   :  { %942 = vmatprep.subr.mxu0 %v4786_v12  ;;  %1013 = vmatprep.subr.mxu1 %v4791_v13  ;;  %v10980_v12 = vld [vmem:[#allocation36_spill] sm:$0xff]  ;;  %v10981_v13 = vld [vmem:[#allocation37_spill] sm:$0xff] }
 0x14c   :  { %943 = vmatpush1.msra.mxu0 %v4798_v14  ;;  %1014 = vmatpush1.msra.mxu1 %v4803_v15  ;;  %v10982_v14 = vld [vmem:[#allocation38_spill] sm:$0xff]  ;;  %v10983_v15 = vld [vmem:[#allocation39_spill] sm:$0xff] }
 0x14d   :  { %944 = vmatprep.subr.mxu0 %v4810_v16  ;;  %1015 = vmatprep.subr.mxu1 %v4815_v17  ;;  %v10984_v16 = vld [vmem:[#allocation40_spill] sm:$0xff]  ;;  %v10985_v17 = vld [vmem:[#allocation41_spill] sm:$0xff] }
 0x14e   :  { %945 = vmatpush1.msra.mxu0 %v4822_v18  ;;  %978 = vmatprep.mubr.f32.mxu0 %v10946_v34  ;;  %v10986_v18 = vld [vmem:[#allocation42_spill] sm:$0xff] }
 0x14f   :  { %1016 = vmatpush1.msra.mxu1 %v10947_v35  ;;  %1049 = vmatprep.mubr.f32.mxu1 %v10946_v34  ;;  %v10988_v35 = vld [vmem:[#allocation44_spill] sm:$0xff] }
 0x150   :  { %979 = vmatmul.mubr.f32.vlgmr.msra.gmra.mxu0 %v5719_v33  ;;  %1050 = vmatmul.mubr.f32.vlgmr.msra.gmra.mxu1 %v5719_v33  ;;  %v10987_v33 = vld [vmem:[#allocation43_spill] sm:$0xff] }
 0x151   :  { %1084 = vmatprep.subr.mxu0 %v10948_v37  ;;  %1155 = vmatprep.subr.mxu1 %v10949_v38  ;;  %v10989_v37 = vld [vmem:[#allocation45_spill] sm:$0xff]  ;;  %v10990_v38 = vld [vmem:[#allocation46_spill] sm:$0xff] }
 0x152   :  { %1085 = vmatpush1.msra.mxu0 %v10950_v39  ;;  %1156 = vmatpush1.msra.mxu1 %v10951_v40  ;;  %v10991_v39 = vld [vmem:[#allocation47_spill] sm:$0xff]  ;;  %v10992_v40 = vld [vmem:[#allocation48_spill] sm:$0xff] }
 0x153   :  { %1086 = vmatprep.subr.mxu0 %v10952_v41  ;;  %1157 = vmatprep.subr.mxu1 %v10953_v42  ;;  %v10993_v41 = vld [vmem:[#allocation49_spill] sm:$0xff]  ;;  %v10994_v42 = vld [vmem:[#allocation50_spill] sm:$0xff] }
 0x154   :  { %1087 = vmatpush1.msra.mxu0 %v10954_v43  ;;  %1158 = vmatpush1.msra.mxu1 %v10955_v44  ;;  %v10995_v43 = vld [vmem:[#allocation51_spill] sm:$0xff]  ;;  %v10996_v44 = vld [vmem:[#allocation52_spill] sm:$0xff] }
 0x155   :  { %1088 = vmatprep.subr.mxu0 %v10956_v46  ;;  %1159 = vmatprep.subr.mxu1 %v10957_v47  ;;  %v10997_v46 = vld [vmem:[#allocation53_spill] sm:$0xff]  ;;  %v10998_v47 = vld [vmem:[#allocation54_spill] sm:$0xff] }
 0x156   :  { %1089 = vmatpush1.msra.mxu0 %v10958_v48  ;;  %1160 = vmatpush1.msra.mxu1 %v10959_v49  ;;  %v10999_v48 = vld [vmem:[#allocation55_spill] sm:$0xff]  ;;  %v11000_v49 = vld [vmem:[#allocation56_spill] sm:$0xff] }
 0x157   :  { %1090 = vmatprep.subr.mxu0 %v10960_v50  ;;  %1161 = vmatprep.subr.mxu1 %v10961_v51  ;;  %v11001_v50 = vld [vmem:[#allocation57_spill] sm:$0xff]  ;;  %v11002_v51 = vld [vmem:[#allocation58_spill] sm:$0xff] }
 0x158   :  { %1091 = vmatpush1.msra.mxu0 %v10962_v52  ;;  %1162 = vmatpush1.msra.mxu1 %v10963_v53  ;;  %v11003_v52 = vld [vmem:[#allocation59_spill] sm:$0xff]  ;;  %v11004_v53 = vld [vmem:[#allocation60_spill] sm:$0xff] }
 0x159   :  { %1092 = vmatprep.subr.mxu0 %v10964_v55  ;;  %1163 = vmatprep.subr.mxu1 %v10965_v56  ;;  %v11005_v55 = vld [vmem:[#allocation61_spill] sm:$0xff]  ;;  %v11006_v56 = vld [vmem:[#allocation62_spill] sm:$0xff] }
 0x15a   :  { %1093 = vmatpush1.msra.mxu0 %v10966_v57  ;;  %1164 = vmatpush1.msra.mxu1 %v10967_v58  ;;  %v11007_v57 = vld [vmem:[#allocation63_spill] sm:$0xff]  ;;  %v11008_v58 = vld [vmem:[#allocation64_spill] sm:$0xff] }
 0x15b   :  { %1094 = vmatprep.subr.mxu0 %v10968_v59  ;;  %1165 = vmatprep.subr.mxu1 %v10969_v60  ;;  %v11009_v59 = vld [vmem:[#allocation65_spill] sm:$0xff]  ;;  %v11010_v60 = vld [vmem:[#allocation66_spill] sm:$0xff] }
 0x15c   :  { %1095 = vmatpush1.msra.mxu0 %v10970_v61  ;;  %1166 = vmatpush1.msra.mxu1 %v10971_v62  ;;  %v11011_v61 = vld [vmem:[#allocation67_spill] sm:$0xff]  ;;  %v11012_v62 = vld [vmem:[#allocation68_spill] sm:$0xff] }
 0x15d   :  { %1096 = vmatprep.subr.mxu0 %v10972_v0  ;;  %1167 = vmatprep.subr.mxu1 %v10973_v1  ;;  %v11013_v0 = vld [vmem:[#allocation69_spill] sm:$0xff]  ;;  %v11014_v1 = vld [vmem:[#allocation70_spill] sm:$0xff] }
 0x15e   :  { %1097 = vmatpush1.msra.mxu0 %v10974_v2  ;;  %1168 = vmatpush1.msra.mxu1 %v10975_v4  ;;  %v11015_v2 = vld [vmem:[#allocation71_spill] sm:$0xff]  ;;  %v11016_v4 = vld [vmem:[#allocation72_spill] sm:$0xff] }
 0x15f   :  { %1098 = vmatprep.subr.mxu0 %v10976_v5  ;;  %1169 = vmatprep.subr.mxu1 %v10977_v6  ;;  %v11017_v5 = vld [vmem:[#allocation73_spill] sm:$0xff]  ;;  %v11018_v6 = vld [vmem:[#allocation74_spill] sm:$0xff] }
 0x160   :  { %1099 = vmatpush1.msra.mxu0 %v10978_v7  ;;  %1170 = vmatpush1.msra.mxu1 %v10979_v8  ;;  %v11019_v7 = vld [vmem:[#allocation75_spill] sm:$0xff]  ;;  %v11020_v8 = vld [vmem:[#allocation76_spill] sm:$0xff] }
 0x161   :  { %1100 = vmatprep.subr.mxu0 %v10980_v12  ;;  %1171 = vmatprep.subr.mxu1 %v10981_v13  ;;  %v11021_v12 = vld [vmem:[#allocation77_spill] sm:$0xff]  ;;  %v11022_v13 = vld [vmem:[#allocation78_spill] sm:$0xff] }
 0x162   :  { %1101 = vmatpush1.msra.mxu0 %v10982_v14  ;;  %1172 = vmatpush1.msra.mxu1 %v10983_v15  ;;  %v11023_v14 = vld [vmem:[#allocation79_spill] sm:$0xff]  ;;  %v11024_v15 = vld [vmem:[#allocation80_spill] sm:$0xff] }
 0x163   :  { %1102 = vmatprep.subr.mxu0 %v10984_v16  ;;  %1173 = vmatprep.subr.mxu1 %v10985_v17  ;;  %v11025_v16 = vld [vmem:[#allocation81_spill] sm:$0xff]  ;;  %v11026_v17 = vld [vmem:[#allocation82_spill] sm:$0xff] }
 0x164   :  { %1103 = vmatpush1.msra.mxu0 %v10986_v18  ;;  %1174 = vmatpush1.msra.mxu1 %v10987_v33  ;;  %v11027_v18 = vld [vmem:[#allocation83_spill] sm:$0xff]  ;;  %v11028_v33 = vld [vmem:[#allocation84_spill] sm:$0xff] }
 0x165   :  { %1104 = vmatprep.subr.mxu0 %v10988_v35  ;;  %1175 = vmatprep.subr.mxu1 %v10989_v37  ;;  %v11029_v35 = vld [vmem:[#allocation85_spill] sm:$0xff]  ;;  %v11030_v37 = vld [vmem:[#allocation86_spill] sm:$0xff] }
 0x166   :  { %1105 = vmatpush1.msra.mxu0 %v10990_v38  ;;  %1176 = vmatpush1.msra.mxu1 %v10991_v39  ;;  %v11031_v38 = vld [vmem:[#allocation87_spill] sm:$0xff]  ;;  %v11032_v39 = vld [vmem:[#allocation88_spill] sm:$0xff] }
 0x167   :  { %1106 = vmatprep.subr.mxu0 %v10992_v40  ;;  %1177 = vmatprep.subr.mxu1 %v10993_v41  ;;  %v11033_v40 = vld [vmem:[#allocation89_spill] sm:$0xff]  ;;  %v11034_v41 = vld [vmem:[#allocation90_spill] sm:$0xff] }
 0x168   :  { %1107 = vmatpush1.msra.mxu0 %v10994_v42  ;;  %1178 = vmatpush1.msra.mxu1 %v10995_v43  ;;  %v11035_v42 = vld [vmem:[#allocation91_spill] sm:$0xff]  ;;  %v11036_v43 = vld [vmem:[#allocation92_spill] sm:$0xff] }
 0x169   :  { %1108 = vmatprep.subr.mxu0 %v10996_v44  ;;  %1179 = vmatprep.subr.mxu1 %v10997_v46  ;;  %v11037_v44 = vld [vmem:[#allocation93_spill] sm:$0xff]  ;;  %v11038_v46 = vld [vmem:[#allocation94_spill] sm:$0xff] }
 0x16a   :  { %1109 = vmatpush1.msra.mxu0 %v10998_v47  ;;  %1180 = vmatpush1.msra.mxu1 %v10999_v48  ;;  %v11039_v47 = vld [vmem:[#allocation95_spill] sm:$0xff]  ;;  %v11040_v48 = vld [vmem:[#allocation96_spill] sm:$0xff] }
 0x16b   :  { %1110 = vmatprep.subr.mxu0 %v11000_v49  ;;  %1181 = vmatprep.subr.mxu1 %v11001_v50  ;;  %v11041_v49 = vld [vmem:[#allocation97_spill] sm:$0xff]  ;;  %v11042_v50 = vld [vmem:[#allocation98_spill] sm:$0xff] }
 0x16c   :  { %1111 = vmatpush1.msra.mxu0 %v11002_v51  ;;  %1182 = vmatpush1.msra.mxu1 %v11003_v52  ;;  %v11043_v51 = vld [vmem:[#allocation99_spill] sm:$0xff]  ;;  %v11044_v52 = vld [vmem:[#allocation100_spill] sm:$0xff] }
 0x16d   :  { %1112 = vmatprep.subr.mxu0 %v11004_v53  ;;  %1183 = vmatprep.subr.mxu1 %v11005_v55  ;;  %v11045_v53 = vld [vmem:[#allocation101_spill] sm:$0xff]  ;;  %v11046_v55 = vld [vmem:[#allocation102_spill] sm:$0xff] }
 0x16e   :  { %1113 = vmatpush1.msra.mxu0 %v11006_v56  ;;  %1184 = vmatpush1.msra.mxu1 %v11007_v57  ;;  %v11047_v56 = vld [vmem:[#allocation103_spill] sm:$0xff]  ;;  %v11048_v57 = vld [vmem:[#allocation104_spill] sm:$0xff] }
 0x16f   :  { %1114 = vmatprep.subr.mxu0 %v11008_v58  ;;  %1185 = vmatprep.subr.mxu1 %v11009_v59  ;;  %v11049_v58 = vld [vmem:[#allocation105_spill] sm:$0xff]  ;;  %v11050_v59 = vld [vmem:[#allocation106_spill] sm:$0xff] }
 0x170   :  { %1115 = vmatpush1.msra.mxu0 %v11010_v60  ;;  %1186 = vmatpush1.msra.mxu1 %v11011_v61  ;;  %v11051_v60 = vld [vmem:[#allocation107_spill] sm:$0xff]  ;;  %v11052_v61 = vld [vmem:[#allocation108_spill] sm:$0xff] }
 0x171   :  { %1116 = vmatprep.subr.mxu0 %v11012_v62  ;;  %1187 = vmatprep.subr.mxu1 %v11013_v0  ;;  %v11053_v62 = vld [vmem:[#allocation109_spill] sm:$0xff]  ;;  %v11054_v0 = vld [vmem:[#allocation110_spill] sm:$0xff] }
 0x172   :  { %1117 = vmatpush2.msra.mxu0 %v11014_v1  ;;  %1188 = vmatpush2.msra.mxu1 %v11015_v2  ;;  %v11055_v1 = vld [vmem:[#allocation111_spill] sm:$0xff]  ;;  %v11056_v2 = vld [vmem:[#allocation112_spill] sm:$0xff] }
 0x173   :  { %1118 = vmatprep.subr.mxu0 %v11016_v4  ;;  %1189 = vmatprep.subr.mxu1 %v11017_v5  ;;  %v11057_v4 = vld [vmem:[#allocation113_spill] sm:$0xff]  ;;  %v11058_v5 = vld [vmem:[#allocation114_spill] sm:$0xff] }
 0x174   :  { %1119 = vmatpush2.msra.mxu0 %v11018_v6  ;;  %1190 = vmatpush2.msra.mxu1 %v11019_v7  ;;  %v11059_v6 = vld [vmem:[#allocation115_spill] sm:$0xff]  ;;  %v11060_v7 = vld [vmem:[#allocation116_spill] sm:$0xff] }
 0x175   :  { %1120 = vmatprep.subr.mxu0 %v11020_v8  ;;  %1191 = vmatprep.subr.mxu1 %v11021_v12  ;;  %v11061_v8 = vld [vmem:[#allocation117_spill] sm:$0xff]  ;;  %v11062_v12 = vld [vmem:[#allocation118_spill] sm:$0xff] }
 0x176   :  { %1121 = vmatpush2.msra.mxu0 %v11022_v13  ;;  %1192 = vmatpush2.msra.mxu1 %v11023_v14  ;;  %v11063_v13 = vld [vmem:[#allocation119_spill] sm:$0xff]  ;;  %v11064_v14 = vld [vmem:[#allocation120_spill] sm:$0xff] }
 0x177   :  { %1122 = vmatprep.subr.mxu0 %v11024_v15  ;;  %1193 = vmatprep.subr.mxu1 %v11025_v16  ;;  %v11065_v15 = vld [vmem:[#allocation121_spill] sm:$0xff]  ;;  %v11066_v16 = vld [vmem:[#allocation122_spill] sm:$0xff] }
 0x178   :  { %1123 = vmatpush2.msra.mxu0 %v11026_v17  ;;  %1194 = vmatpush2.msra.mxu1 %v11027_v18  ;;  %v11067_v17 = vld [vmem:[#allocation123_spill] sm:$0xff]  ;;  %v11068_v18 = vld [vmem:[#allocation124_spill] sm:$0xff] }
 0x179   :  { %1124 = vmatprep.subr.mxu0 %v11028_v33  ;;  %1195 = vmatprep.subr.mxu1 %v11029_v35  ;;  %v11069_v33 = vld [vmem:[#allocation125_spill] sm:$0xff]  ;;  %v11070_v35 = vld [vmem:[#allocation126_spill] sm:$0xff] }
 0x17a   :  { %1125 = vmatpush2.msra.mxu0 %v11030_v37  ;;  %1196 = vmatpush2.msra.mxu1 %v11031_v38  ;;  %v11071_v37 = vld [vmem:[#allocation127_spill] sm:$0xff]  ;;  %v11072_v38 = vld [vmem:[#allocation128_spill] sm:$0xff] }
 0x17b   :  { %1126 = vmatprep.subr.mxu0 %v11032_v39  ;;  %1197 = vmatprep.subr.mxu1 %v11033_v40  ;;  %v11073_v39 = vld [vmem:[#allocation129_spill] sm:$0xff]  ;;  %v11074_v40 = vld [vmem:[#allocation130_spill] sm:$0xff] }
 0x17c   :  { %1127 = vmatpush2.msra.mxu0 %v11034_v41  ;;  %1198 = vmatpush2.msra.mxu1 %v11035_v42  ;;  %v11075_v41 = vld [vmem:[#allocation131_spill] sm:$0xff]  ;;  %v6020_v42 = vld [vmem:[%s10242_s2 + $0x1e8] sm:$0xff] }
 0x17d   :  { %1128 = vmatprep.subr.mxu0 %v11036_v43  ;;  %1199 = vmatprep.subr.mxu1 %v11037_v44  ;;  %v6026_v43 = vld [vmem:[%s10242_s2 + $0x1f8] sm:$0xff]  ;;  %v719_v44 = vld [vmem:[%s10245_s5] sm:$0xf] }
 0x17e   :  { %1129 = vmatpush2.msra.mxu0 %v11038_v46  ;;  %1200 = vmatpush2.msra.mxu1 %v11039_v47  ;;  %v11076_v46 = vsub.s32 0, %v5611_v3 }
 0x17f   :  { %1130 = vmatprep.subr.mxu0 %v11040_v48  ;;  %1201 = vmatprep.subr.mxu1 %v11041_v49  ;;  %v11078_v48 = vsub.s32 1, %v5611_v3 }
 0x180   :  { %1131 = vmatpush2.msra.mxu0 %v11042_v50  ;;  %1202 = vmatpush2.msra.mxu1 %v11043_v51  ;;  %v6034_v47 = vrot.slane %v719_v44, %v11076_v46 }
 0x181   :  { %1132 = vmatprep.subr.mxu0 %v11044_v52  ;;  %1203 = vmatprep.subr.mxu1 %v11045_v53  ;;  %v6038_v49 = vrot.slane %v719_v44, %v11078_v48  ;;  %v11086_v48 = vld [vmem:[#allocation135_spill] sm:$0xff] }
 0x182   :  { %1133 = vmatpush2.msra.mxu0 %v11046_v55  ;;  %1204 = vmatpush2.msra.mxu1 %v11047_v56  ;;  %11077 = vst [vmem:[#allocation3_spill] sm:$0xff] %v6034_v47 }
 0x183   :  { %1134 = vmatprep.subr.mxu0 %v11048_v57  ;;  %1205 = vmatprep.subr.mxu1 %v11049_v58  ;;  %11079 = vst [vmem:[#allocation4_spill] sm:$0xff] %v6038_v49  ;;  %v11080_v58 = vsub.s32 3, %v5611_v3 }
 0x184   :  { %1135 = vmatpush2.msra.mxu0 %v11050_v59  ;;  %1206 = vmatpush2.msra.mxu1 %v11051_v60 }
 0x185   :  { %1136 = vmatprep.subr.mxu0 %v11052_v61  ;;  %1207 = vmatprep.subr.mxu1 %v11053_v62  ;;  %v6044_v59 = vrot.slane %v719_v44, %v11080_v58  ;;  %v11082_v62 = vsub.s32 2, %v5611_v3 }
 0x186   :  { %1137 = vmatpush2.msra.mxu0 %v11054_v0  ;;  %1208 = vmatpush2.msra.mxu1 %v11055_v1 }
 0x187   :  { %1138 = vmatprep.subr.mxu0 %v11056_v2  ;;  %1209 = vmatprep.subr.mxu1 %v11057_v4  ;;  %11081 = vst [vmem:[#allocation5_spill] sm:$0xff] %v6044_v59  ;;  %v6049_v0 = vrot.slane %v719_v44, %v11082_v62 }
 0x188   :  { %1139 = vmatpush2.msra.mxu0 %v11058_v5  ;;  %1210 = vmatpush2.msra.mxu1 %v11059_v6 }
 0x189   :  { %1140 = vmatprep.subr.mxu0 %v11060_v7  ;;  %1211 = vmatprep.subr.mxu1 %v11061_v8  ;;  %11083 = vst [vmem:[#allocation6_spill] sm:$0xff] %v6049_v0 }
 0x18a   :  { %1141 = vmatpush2.msra.mxu0 %v11062_v12  ;;  %1212 = vmatpush2.msra.mxu1 %v11063_v13 }
 0x18b   :  { %1142 = vmatprep.subr.mxu0 %v11064_v14  ;;  %1213 = vmatprep.subr.mxu1 %v11065_v15  ;;  %v11084_v14 = vld [vmem:[#allocation132_spill] sm:$0xff] }
 0x18c   :  { %1143 = vmatpush2.msra.mxu0 %v11066_v16  ;;  %1214 = vmatpush2.msra.mxu1 %v11067_v17 }
 0x18d   :  { %1144 = vmatprep.subr.mxu0 %v11068_v18  ;;  %1215 = vmatprep.subr.mxu1 %v11069_v33 }
 0x18e   :  { %1145 = vmatpush2.msra.mxu0 %v11070_v35  ;;  %1216 = vmatpush2.msra.mxu1 %v11071_v37  ;;  %v11085_v35 = vld [vmem:[#allocation134_spill] sm:$0xff] }
 0x18f   :  { %1146 = vmatprep.subr.mxu0 %v11072_v38  ;;  %1217 = vmatprep.subr.mxu1 %v11073_v39 }
 0x190   :  { %1147 = vmatpush2.msra.mxu0 %v11074_v40  ;;  %1218 = vmatpush2.msra.mxu1 %v11075_v41 }
 0x191   :  { %1257 = vmatprep.subr.mxu0 %v6020_v42  ;;  %1328 = vmatprep.subr.mxu1 %v6026_v43 }
 0x1ef   :  { %v807_v50 = vpop.f32.mrf.mxu0  ;;  %v878_v56 = vpop.f32.mrf.mxu1 }
 0x1f0   :  { %v808_v51 = vadd.f32 %v807_v50, %v6034_v47  ;;  %v879_v4 = vadd.f32 %v878_v56, %v6049_v0 }
 0x1f1   :  { %v809_v52 = vpop.f32.mrf.mxu0  ;;  %v880_v60 = vpop.f32.mrf.mxu1 }
 0x1f2   :  { %v3432_v53 = vmul.f32 -1.442695, %v808_v51  ;;  %v810_v55 = vadd.f32 %v809_v52, %v6038_v49  ;;  %v881_v61 = vadd.f32 %v880_v60, %v6044_v59  ;;  %v11087_v51 = vld [vmem:[#allocation133_spill] sm:$0xff] }
 0x1f4   :  { %3548 = vpow2.f32 %v3432_v53  ;;  %v3433_v57 = vmul.f32 -1.442695, %v810_v55  ;;  %v3434_v1 = vmul.f32 -1.442695, %v881_v61 }
 0x1f6   :  { %3550 = vpow2.f32 %v3433_v57 }
 0x1f7   :  { %3552 = vpow2.f32 %v3434_v1 }
 0x201   :  { %v3549_v2 = vpop.eup %3548 }
 0x202   :  { %v886_v5 = vadd.f32 1.0, %v3549_v2 }
 0x203   :  { %v3551_v6 = vpop.eup %3550 }
 0x204   :  { %3554 = vrcp.f32 %v886_v5  ;;  %v892_v7 = vadd.f32 1.0, %v3551_v6  ;;  %v3553_v8 = vpop.eup %3552 }
 0x205   :  { %3556 = vtanh.f32 %v879_v4  ;;  %v899_v3 = vadd.f32 1.0, %v3553_v8 }
 0x206   :  { %3558 = vrcp.f32 %v892_v7 }
 0x210   :  { %v980_v12 = vpop.f32.mrf.mxu0  ;;  %v1051_v40 = vpop.f32.mrf.mxu1 }
 0x211   :  { %v3555_v13 = vpop.eup %3554  ;;  %v1056_v15 = vadd.f32 %v980_v12, %v11084_v14  ;;  %v1058_v52 = vadd.f32 %v1051_v40, %v11087_v51  ;;  %v6270_v40 = vld [vmem:[%s10242_s2 + $0x48] sm:$0xff]  ;;  %v6300_v51 = vld [vmem:[%s10242_s2 + $0x38] sm:$0xff] }
 0x212   :  { %v3557_v16 = vpop.eup %3556  ;;  %v982_v17 = vpop.f32.mrf.mxu0 }
 0x213   :  { %v3559_v18 = vpop.eup %3558  ;;  %v3435_v33 = vmul.f32 -1.442695, %v1056_v15  ;;  %v1057_v37 = vadd.f32 %v982_v17, %v11085_v35  ;;  %v903_v39 = vmul.f32 %v3557_v16, %v3555_v13  ;;  %v1053_v46 = vpop.f32.mrf.mxu1  ;;  %v6216_v16 = vld [vmem:[%s10242_s2 + $0xb0] sm:$0xff]  ;;  %v6228_v17 = vld [vmem:[%s10242_s2 + $0x98] sm:$0xff]  ;;  %v6246_v35 = vld [vmem:[%s10242_s2 + $0x68] sm:$0xff] }
 0x214   :  { %v902_v38 = vmul.f32 0.0, %v3559_v18  ;;  %v1059_v50 = vadd.f32 %v1053_v46, %v11086_v48  ;;  %v6234_v18 = vld [vmem:[%s10242_s2 + $0x80] sm:$0xff]  ;;  %v6288_v48 = vld [vmem:[%s10242_s2 + $0x50] sm:$0xff] }
 0x215   :  { %3560 = vpow2.f32 %v3435_v33  ;;  %v3436_v41 = vmul.f32 -1.442695, %v1057_v37  ;;  %v6240_v33 = vld [vmem:[%s10242_s2 + $0x90] sm:$0xff]  ;;  %v6252_v37 = vld [vmem:[%s10242_s2 + $0x78] sm:$0xff]  ;;  %v6282_v46 = vld [vmem:[%s10242_s2 + $0x40] sm:$0xff] }
 0x216   :  { %v6054_v44 = vadd.f32 %v903_v39, %v902_v38  ;;  %3562 = vrcp.f32 %v899_v3  ;;  %v3437_v53 = vmul.f32 -1.442695, %v1059_v50  ;;  %v6222_v3 = vld [vmem:[%s10242_s2 + $0x88] sm:$0xff]  ;;  %v6258_v38 = vld [vmem:[%s10242_s2 + $0x60] sm:$0xff]  ;;  %v6264_v39 = vld [vmem:[%s10242_s2 + $0x70] sm:$0xff] }
 0x217   :  { %3564 = vpow2.f32 %v3436_v41  ;;  %v6276_v41 = vld [vmem:[%s10242_s2 + $0x58] sm:$0xff]  ;;  %v6294_v50 = vld [vmem:[%s10242_s2 + $0x28] sm:$0xff] }
 0x218   :  { %3566 = vtanh.f32 %v6054_v44 }
 0x219   :  { %3568 = vtanh.f32 %v1058_v52  ;;  %v6306_v52 = vld [vmem:[%s10242_s2 + $0x20] sm:$0xff] }
 0x21a   :  { %3570 = vpow2.f32 %v3437_v53  ;;  %v6312_v53 = vld [vmem:[%s10242_s2 + $0x30] sm:$0xff] }
 0x222   :  { %v3561_v55 = vpop.eup %3560 }
 0x223   :  { %v3563_v56 = vpop.eup %3562  ;;  %v1063_v57 = vadd.f32 1.0, %v3561_v55  ;;  %v6318_v55 = vld [vmem:[%s10242_s2 + $0x8] sm:$0xff] }
 0x224   :  { %v3565_v58 = vpop.eup %3564 }
 0x225   :  { %v3567_v60 = vpop.eup %3566  ;;  %3572 = vrcp.f32 %v1063_v57  ;;  %v1069_v61 = vadd.f32 1.0, %v3565_v58  ;;  %v6330_v57 = vld [vmem:[%s10242_s2] sm:$0xff]  ;;  %v6337_v58 = vld [vmem:[%s10242_s2 + $0x10] sm:$0xff] }
 0x226   :  { %v906_v62 = vmul.f32 %v3567_v60, %v3563_v56  ;;  %v3569_v1 = vpop.eup %3568  ;;  %v6324_v56 = vld [vmem:[%s10242_s2 + $0x18] sm:$0xff]  ;;  %11088 = vst [vmem:[#allocation7_spill] sm:$0xff] %v6337_v58  ;;  %v6346_v60 = vld [vmem:[%s10243_s4 + $0x1e8] sm:$0xff] }
 0x227   :  { %3574 = vrcp.f32 %v1069_v61  ;;  %v3571_v2 = vpop.eup %3570  ;;  %11089 = vst [vmem:[#allocation8_spill] sm:$0xff] %v6346_v60  ;;  %v6352_v61 = vld [vmem:[%s10243_s4 + $0x1f8] sm:$0xff] }
 0x228   :  { %1148 = vmatprep.mubr.f32.mxu0 %v906_v62  ;;  %1219 = vmatprep.mubr.f32.mxu1 %v906_v62  ;;  %v1076_v7 = vadd.f32 1.0, %v3571_v2  ;;  %11090 = vst [vmem:[#allocation9_spill] sm:$0xff] %v6352_v61  ;;  %v6358_v62 = vld [vmem:[%s10243_s4 + $0x1e0] sm:$0xff]  ;;  %v6370_v2 = vld [vmem:[%s10243_s4 + $0x1c8] sm:$0xff] }
 0x229   :  { %11091 = vst [vmem:[#allocation10_spill] sm:$0xff] %v6358_v62  ;;  %11093 = vst [vmem:[#allocation12_spill] sm:$0xff] %v6370_v2 }
 0x22a   :  { %3576 = vrcp.f32 %v1076_v7  ;;  %v6394_v7 = vld [vmem:[%s10243_s4 + $0x1a8] sm:$0xff] }
 0x22b   :  { %11097 = vst [vmem:[#allocation16_spill] sm:$0xff] %v6394_v7 }
 0x232   :  { %v3573_v4 = vpop.eup %3572 }
 0x233   :  { %v1080_v5 = vmul.f32 %v3573_v4, %v3569_v1  ;;  %v6364_v1 = vld [vmem:[%s10243_s4 + $0x1f0] sm:$0xff]  ;;  %v6376_v4 = vld [vmem:[%s10243_s4 + $0x1d8] sm:$0xff] }
 0x234   :  { %v3575_v6 = vpop.eup %3574  ;;  %11092 = vst [vmem:[#allocation11_spill] sm:$0xff] %v6364_v1  ;;  %11094 = vst [vmem:[#allocation13_spill] sm:$0xff] %v6376_v4 }
 0x235   :  { %v1079_v8 = vmul.f32 %v3575_v6, %v5716_v11  ;;  %v6090_v11 = vld [vmem:[%s10242_s2 + $0x140] sm:$0xff]  ;;  %v6388_v6 = vld [vmem:[%s10243_s4 + $0x1d0] sm:$0xff] }
 0x236   :  { %11096 = vst [vmem:[#allocation15_spill] sm:$0xff] %v6388_v6 }
 0x237   :  { %v6060_v12 = vadd.f32 %v1080_v5, %v1079_v8  ;;  %v3577_v13 = vpop.eup %3576  ;;  %v6382_v5 = vld [vmem:[%s10243_s4 + $0x1c0] sm:$0xff]  ;;  %v6400_v8 = vld [vmem:[%s10243_s4 + $0x1b8] sm:$0xff] }
 0x238   :  { %11095 = vst [vmem:[#allocation14_spill] sm:$0xff] %v6382_v5  ;;  %11098 = vst [vmem:[#allocation17_spill] sm:$0xff] %v6400_v8 }
 0x239   :  { %3578 = vtanh.f32 %v6060_v12 }
 0x246   :  { %v3579_v14 = vpop.eup %3578 }
 0x247   :  { %v6063_v15 = vmul.f32 %v3579_v14, %v3577_v13  ;;  %v6406_v13 = vld [vmem:[%s10243_s4 + $0x1a0] sm:$0xff]  ;;  %v6412_v14 = vld [vmem:[%s10243_s4 + $0x1b0] sm:$0xff] }
 0x248   :  { %11099 = vst [vmem:[#allocation18_spill] sm:$0xff] %v6406_v13  ;;  %11100 = vst [vmem:[#allocation19_spill] sm:$0xff] %v6412_v14 }
 0x249   :  { %1149 = vmatmul.mubr.f32.vlgmr.msra.gmra.mxu0 %v6063_v15  ;;  %1220 = vmatmul.mubr.f32.vlgmr.msra.gmra.mxu1 %v6063_v15 }
 0x24a   :  { %1258 = vmatpush1.msra.mxu0 %v5726_v9  ;;  %1329 = vmatpush1.msra.mxu1 %v5732_v28  ;;  %v6096_v9 = vld [vmem:[%s10242_s2 + $0x150] sm:$0xff]  ;;  %v6102_v28 = vld [vmem:[%s10242_s2 + $0x128] sm:$0xff] }
 0x24b   :  { %1259 = vmatprep.subr.mxu0 %v5738_v21  ;;  %1330 = vmatprep.subr.mxu1 %v5744_v20  ;;  %v6108_v21 = vld [vmem:[%s10242_s2 + $0x138] sm:$0xff]  ;;  %v6114_v20 = vld [vmem:[%s10242_s2 + $0x120] sm:$0xff] }
 0x24c   :  { %1260 = vmatpush1.msra.mxu0 %v5750_v36  ;;  %1331 = vmatpush1.msra.mxu1 %v5756_v29  ;;  %v6120_v36 = vld [vmem:[%s10242_s2 + $0x130] sm:$0xff]  ;;  %v6126_v29 = vld [vmem:[%s10242_s2 + $0x108] sm:$0xff] }
 0x24d   :  { %1261 = vmatprep.subr.mxu0 %v5762_v31  ;;  %1332 = vmatprep.subr.mxu1 %v5768_v32  ;;  %v6132_v31 = vld [vmem:[%s10242_s2 + $0x118] sm:$0xff]  ;;  %v6138_v32 = vld [vmem:[%s10242_s2 + $0x100] sm:$0xff] }
 0x24e   :  { %1262 = vmatpush1.msra.mxu0 %v5774_v27  ;;  %1333 = vmatpush1.msra.mxu1 %v5780_v54  ;;  %v6144_v27 = vld [vmem:[%s10242_s2 + $0x110] sm:$0xff]  ;;  %v6150_v54 = vld [vmem:[%s10242_s2 + $0xe8] sm:$0xff] }
 0x24f   :  { %1263 = vmatprep.subr.mxu0 %v5786_v19  ;;  %1334 = vmatprep.subr.mxu1 %v5792_v25  ;;  %v6156_v19 = vld [vmem:[%s10242_s2 + $0xf8] sm:$0xff]  ;;  %v6162_v25 = vld [vmem:[%s10242_s2 + $0xe0] sm:$0xff] }
 0x250   :  { %1264 = vmatpush1.msra.mxu0 %v5798_v24  ;;  %1335 = vmatpush1.msra.mxu1 %v5804_v45  ;;  %v6168_v24 = vld [vmem:[%s10242_s2 + $0xf0] sm:$0xff]  ;;  %v6174_v45 = vld [vmem:[%s10242_s2 + $0xc8] sm:$0xff] }
 0x251   :  { %1265 = vmatprep.subr.mxu0 %v5810_v23  ;;  %1336 = vmatprep.subr.mxu1 %v5816_v63  ;;  %v6180_v23 = vld [vmem:[%s10242_s2 + $0xd8] sm:$0xff]  ;;  %v6186_v63 = vld [vmem:[%s10242_s2 + $0xc0] sm:$0xff] }
 0x252   :  { %1266 = vmatpush1.msra.mxu0 %v5822_v26  ;;  %1337 = vmatpush1.msra.mxu1 %v5828_v10  ;;  %v6192_v26 = vld [vmem:[%s10242_s2 + $0xd0] sm:$0xff]  ;;  %v6198_v10 = vld [vmem:[%s10242_s2 + $0xa8] sm:$0xff] }
 0x253   :  { %1267 = vmatprep.subr.mxu0 %v5834_v22  ;;  %1338 = vmatprep.subr.mxu1 %v5840_v30  ;;  %v6204_v22 = vld [vmem:[%s10242_s2 + $0xb8] sm:$0xff]  ;;  %v6210_v30 = vld [vmem:[%s10242_s2 + $0xa0] sm:$0xff] }
 0x254   :  { %1268 = vmatpush1.msra.mxu0 %v6090_v11  ;;  %1339 = vmatpush1.msra.mxu1 %v6096_v9 }
 0x255   :  { %1269 = vmatprep.subr.mxu0 %v6102_v28  ;;  %1340 = vmatprep.subr.mxu1 %v6108_v21 }
 0x256   :  { %1270 = vmatpush1.msra.mxu0 %v6114_v20  ;;  %1341 = vmatpush1.msra.mxu1 %v6120_v36 }
 0x257   :  { %1271 = vmatprep.subr.mxu0 %v6126_v29  ;;  %1342 = vmatprep.subr.mxu1 %v6132_v31 }
 0x258   :  { %1272 = vmatpush1.msra.mxu0 %v6138_v32  ;;  %1343 = vmatpush1.msra.mxu1 %v6144_v27 }
 0x259   :  { %1273 = vmatprep.subr.mxu0 %v6150_v54  ;;  %1344 = vmatprep.subr.mxu1 %v6156_v19 }
 0x25a   :  { %1274 = vmatpush1.msra.mxu0 %v6162_v25  ;;  %1345 = vmatpush1.msra.mxu1 %v6168_v24 }
 0x25b   :  { %1275 = vmatprep.subr.mxu0 %v6174_v45  ;;  %1346 = vmatprep.subr.mxu1 %v6180_v23 }
 0x25c   :  { %1276 = vmatpush1.msra.mxu0 %v6186_v63  ;;  %1347 = vmatpush1.msra.mxu1 %v6192_v26 }
 0x25d   :  { %1277 = vmatprep.subr.mxu0 %v6198_v10  ;;  %1348 = vmatprep.subr.mxu1 %v6204_v22 }
 0x25e   :  { %1278 = vmatpush1.msra.mxu0 %v6210_v30  ;;  %1349 = vmatpush1.msra.mxu1 %v6216_v16 }
 0x25f   :  { %1279 = vmatprep.subr.mxu0 %v6222_v3  ;;  %1350 = vmatprep.subr.mxu1 %v6228_v17 }
 0x260   :  { %1280 = vmatpush1.msra.mxu0 %v6234_v18  ;;  %1351 = vmatpush1.msra.mxu1 %v6240_v33 }
 0x261   :  { %1281 = vmatprep.subr.mxu0 %v6246_v35  ;;  %1352 = vmatprep.subr.mxu1 %v6252_v37 }
 0x262   :  { %1282 = vmatpush1.msra.mxu0 %v6258_v38  ;;  %1353 = vmatpush1.msra.mxu1 %v6264_v39 }
 0x263   :  { %1283 = vmatprep.subr.mxu0 %v6270_v40  ;;  %1354 = vmatprep.subr.mxu1 %v6276_v41 }
 0x264   :  { %1284 = vmatpush1.msra.mxu0 %v6282_v46  ;;  %1355 = vmatpush1.msra.mxu1 %v6288_v48 }
 0x265   :  { %1285 = vmatprep.subr.mxu0 %v6294_v50  ;;  %1356 = vmatprep.subr.mxu1 %v6300_v51 }
 0x266   :  { %1286 = vmatpush1.msra.mxu0 %v6306_v52  ;;  %1357 = vmatpush1.msra.mxu1 %v6312_v53 }
 0x267   :  { %1287 = vmatprep.subr.mxu0 %v6318_v55  ;;  %1358 = vmatprep.subr.mxu1 %v6324_v56 }
 0x268   :  { %1288 = vmatpush1.msra.mxu0 %v6330_v57  ;;  %1321 = vmatprep.mubr.f32.mxu0 %v10946_v34 }
 0x269   :  { %1359 = vmatpush1.msra.mxu1 %v6337_v58  ;;  %1392 = vmatprep.mubr.f32.mxu1 %v10946_v34 }
 0x26a   :  { %1322 = vmatmul.mubr.f32.vlgmr.msra.gmra.mxu0 %v6063_v15  ;;  %1393 = vmatmul.mubr.f32.vlgmr.msra.gmra.mxu1 %v6063_v15  ;;  %v6418_v15 = vld [vmem:[%s10243_s4 + $0x188] sm:$0xff] }
 0x26b   :  { %1427 = vmatprep.subr.mxu0 %v6346_v60  ;;  %1498 = vmatprep.subr.mxu1 %v6352_v61  ;;  %11101 = vst [vmem:[#allocation20_spill] sm:$0xff] %v6418_v15 }
 0x26c   :  { %1428 = vmatpush1.msra.mxu0 %v6358_v62  ;;  %1499 = vmatpush1.msra.mxu1 %v6364_v1 }
 0x26d   :  { %1429 = vmatprep.subr.mxu0 %v6370_v2  ;;  %1500 = vmatprep.subr.mxu1 %v6376_v4 }
 0x26e   :  { %1430 = vmatpush1.msra.mxu0 %v6382_v5  ;;  %1501 = vmatpush1.msra.mxu1 %v6388_v6 }
 0x26f   :  { %1431 = vmatprep.subr.mxu0 %v6394_v7  ;;  %1502 = vmatprep.subr.mxu1 %v6400_v8  ;;  %v6424_v8 = vld [vmem:[%s10243_s4 + $0x198] sm:$0xff] }
 0x270   :  { %1432 = vmatpush1.msra.mxu0 %v6406_v13  ;;  %1503 = vmatpush1.msra.mxu1 %v6412_v14  ;;  %11102 = vst [vmem:[#allocation21_spill] sm:$0xff] %v6424_v8  ;;  %v6430_v13 = vld [vmem:[%s10243_s4 + $0x180] sm:$0xff]  ;;  %v6436_v14 = vld [vmem:[%s10243_s4 + $0x190] sm:$0xff] }
 0x271   :  { %1433 = vmatprep.subr.mxu0 %v6418_v15  ;;  %1504 = vmatprep.subr.mxu1 %v6424_v8  ;;  %11103 = vst [vmem:[#allocation22_spill] sm:$0xff] %v6430_v13  ;;  %11104 = vst [vmem:[#allocation23_spill] sm:$0xff] %v6436_v14  ;;  %v6442_v15 = vld [vmem:[%s10243_s4 + $0x168] sm:$0xff]  ;;  %v6448_v8 = vld [vmem:[%s10243_s4 + $0x178] sm:$0xff] }
 0x272   :  { %1434 = vmatpush1.msra.mxu0 %v6430_v13  ;;  %1505 = vmatpush1.msra.mxu1 %v6436_v14  ;;  %11105 = vst [vmem:[#allocation24_spill] sm:$0xff] %v6442_v15  ;;  %11106 = vst [vmem:[#allocation25_spill] sm:$0xff] %v6448_v8  ;;  %v6454_v13 = vld [vmem:[%s10243_s4 + $0x160] sm:$0xff]  ;;  %v6460_v14 = vld [vmem:[%s10243_s4 + $0x170] sm:$0xff] }
 0x273   :  { %1435 = vmatprep.subr.mxu0 %v6442_v15  ;;  %1506 = vmatprep.subr.mxu1 %v6448_v8  ;;  %11107 = vst [vmem:[#allocation26_spill] sm:$0xff] %v6454_v13  ;;  %11108 = vst [vmem:[#allocation27_spill] sm:$0xff] %v6460_v14  ;;  %v6466_v15 = vld [vmem:[%s10243_s4 + $0x148] sm:$0xff]  ;;  %v6472_v8 = vld [vmem:[%s10243_s4 + $0x158] sm:$0xff] }
 0x274   :  { %1436 = vmatpush1.msra.mxu0 %v6454_v13  ;;  %1507 = vmatpush1.msra.mxu1 %v6460_v14  ;;  %11109 = vst [vmem:[#allocation28_spill] sm:$0xff] %v6466_v15  ;;  %11110 = vst [vmem:[#allocation29_spill] sm:$0xff] %v6472_v8  ;;  %v6478_v13 = vld [vmem:[%s10243_s4 + $0x140] sm:$0xff]  ;;  %v6484_v14 = vld [vmem:[%s10243_s4 + $0x150] sm:$0xff] }
 0x275   :  { %1437 = vmatprep.subr.mxu0 %v6466_v15  ;;  %1508 = vmatprep.subr.mxu1 %v6472_v8  ;;  %11111 = vst [vmem:[#allocation30_spill] sm:$0xff] %v6478_v13  ;;  %11112 = vst [vmem:[#allocation31_spill] sm:$0xff] %v6484_v14  ;;  %v6490_v15 = vld [vmem:[%s10243_s4 + $0x128] sm:$0xff]  ;;  %v6496_v8 = vld [vmem:[%s10243_s4 + $0x138] sm:$0xff] }
 0x276   :  { %1438 = vmatpush1.msra.mxu0 %v6478_v13  ;;  %1509 = vmatpush1.msra.mxu1 %v6484_v14  ;;  %11113 = vst [vmem:[#allocation32_spill] sm:$0xff] %v6490_v15  ;;  %11114 = vst [vmem:[#allocation33_spill] sm:$0xff] %v6496_v8  ;;  %v6502_v13 = vld [vmem:[%s10243_s4 + $0x120] sm:$0xff]  ;;  %v6508_v14 = vld [vmem:[%s10243_s4 + $0x130] sm:$0xff] }
 0x277   :  { %1439 = vmatprep.subr.mxu0 %v6490_v15  ;;  %1510 = vmatprep.subr.mxu1 %v6496_v8  ;;  %11115 = vst [vmem:[#allocation34_spill] sm:$0xff] %v6502_v13  ;;  %11116 = vst [vmem:[#allocation35_spill] sm:$0xff] %v6508_v14  ;;  %v6514_v15 = vld [vmem:[%s10243_s4 + $0x108] sm:$0xff]  ;;  %v6520_v8 = vld [vmem:[%s10243_s4 + $0x118] sm:$0xff] }
 0x278   :  { %1440 = vmatpush1.msra.mxu0 %v6502_v13  ;;  %1511 = vmatpush1.msra.mxu1 %v6508_v14  ;;  %11117 = vst [vmem:[#allocation36_spill] sm:$0xff] %v6514_v15  ;;  %11118 = vst [vmem:[#allocation37_spill] sm:$0xff] %v6520_v8  ;;  %v6526_v13 = vld [vmem:[%s10243_s4 + $0x100] sm:$0xff]  ;;  %v6532_v14 = vld [vmem:[%s10243_s4 + $0x110] sm:$0xff] }
 0x279   :  { %1441 = vmatprep.subr.mxu0 %v6514_v15  ;;  %1512 = vmatprep.subr.mxu1 %v6520_v8  ;;  %11119 = vst [vmem:[#allocation38_spill] sm:$0xff] %v6526_v13  ;;  %11120 = vst [vmem:[#allocation39_spill] sm:$0xff] %v6532_v14  ;;  %v6538_v15 = vld [vmem:[%s10243_s4 + $0xe8] sm:$0xff]  ;;  %v6544_v8 = vld [vmem:[%s10243_s4 + $0xf8] sm:$0xff] }
 0x27a   :  { %1442 = vmatpush1.msra.mxu0 %v6526_v13  ;;  %1513 = vmatpush1.msra.mxu1 %v6532_v14  ;;  %11121 = vst [vmem:[#allocation40_spill] sm:$0xff] %v6538_v15  ;;  %11122 = vst [vmem:[#allocation41_spill] sm:$0xff] %v6544_v8  ;;  %v6550_v13 = vld [vmem:[%s10243_s4 + $0xe0] sm:$0xff]  ;;  %v6556_v14 = vld [vmem:[%s10243_s4 + $0xf0] sm:$0xff] }
 0x27b   :  { %1443 = vmatprep.subr.mxu0 %v6538_v15  ;;  %1514 = vmatprep.subr.mxu1 %v6544_v8  ;;  %11123 = vst [vmem:[#allocation42_spill] sm:$0xff] %v6550_v13  ;;  %11124 = vst [vmem:[#allocation43_spill] sm:$0xff] %v6556_v14  ;;  %v6562_v15 = vld [vmem:[%s10243_s4 + $0xc8] sm:$0xff]  ;;  %v6568_v8 = vld [vmem:[%s10243_s4 + $0xd8] sm:$0xff] }
 0x27c   :  { %1444 = vmatpush1.msra.mxu0 %v6550_v13  ;;  %1515 = vmatpush1.msra.mxu1 %v6556_v14  ;;  %11125 = vst [vmem:[#allocation44_spill] sm:$0xff] %v6562_v15  ;;  %11126 = vst [vmem:[#allocation45_spill] sm:$0xff] %v6568_v8  ;;  %v6574_v13 = vld [vmem:[%s10243_s4 + $0xc0] sm:$0xff]  ;;  %v6580_v14 = vld [vmem:[%s10243_s4 + $0xd0] sm:$0xff] }
 0x27d   :  { %1445 = vmatprep.subr.mxu0 %v6562_v15  ;;  %1516 = vmatprep.subr.mxu1 %v6568_v8  ;;  %11127 = vst [vmem:[#allocation46_spill] sm:$0xff] %v6574_v13  ;;  %11128 = vst [vmem:[#allocation47_spill] sm:$0xff] %v6580_v14  ;;  %v6586_v15 = vld [vmem:[%s10243_s4 + $0xa8] sm:$0xff]  ;;  %v6592_v8 = vld [vmem:[%s10243_s4 + $0xb8] sm:$0xff] }
 0x27e   :  { %1446 = vmatpush1.msra.mxu0 %v6574_v13  ;;  %1517 = vmatpush1.msra.mxu1 %v6580_v14  ;;  %11129 = vst [vmem:[#allocation48_spill] sm:$0xff] %v6586_v15  ;;  %11130 = vst [vmem:[#allocation49_spill] sm:$0xff] %v6592_v8  ;;  %v6598_v13 = vld [vmem:[%s10243_s4 + $0xa0] sm:$0xff]  ;;  %v6604_v14 = vld [vmem:[%s10243_s4 + $0xb0] sm:$0xff] }
 0x27f   :  { %1447 = vmatprep.subr.mxu0 %v6586_v15  ;;  %1518 = vmatprep.subr.mxu1 %v6592_v8  ;;  %11131 = vst [vmem:[#allocation50_spill] sm:$0xff] %v6598_v13  ;;  %11132 = vst [vmem:[#allocation51_spill] sm:$0xff] %v6604_v14  ;;  %v6610_v15 = vld [vmem:[%s10243_s4 + $0x88] sm:$0xff]  ;;  %v6616_v8 = vld [vmem:[%s10243_s4 + $0x98] sm:$0xff] }
 0x280   :  { %1448 = vmatpush1.msra.mxu0 %v6598_v13  ;;  %1519 = vmatpush1.msra.mxu1 %v6604_v14  ;;  %11133 = vst [vmem:[#allocation52_spill] sm:$0xff] %v6610_v15  ;;  %11134 = vst [vmem:[#allocation53_spill] sm:$0xff] %v6616_v8  ;;  %v6622_v13 = vld [vmem:[%s10243_s4 + $0x80] sm:$0xff]  ;;  %v6628_v14 = vld [vmem:[%s10243_s4 + $0x90] sm:$0xff] }
 0x281   :  { %1449 = vmatprep.subr.mxu0 %v6610_v15  ;;  %1520 = vmatprep.subr.mxu1 %v6616_v8  ;;  %11135 = vst [vmem:[#allocation54_spill] sm:$0xff] %v6622_v13  ;;  %11136 = vst [vmem:[#allocation55_spill] sm:$0xff] %v6628_v14  ;;  %v6634_v15 = vld [vmem:[%s10243_s4 + $0x68] sm:$0xff]  ;;  %v6640_v8 = vld [vmem:[%s10243_s4 + $0x78] sm:$0xff] }
 0x282   :  { %1450 = vmatpush1.msra.mxu0 %v6622_v13  ;;  %1521 = vmatpush1.msra.mxu1 %v6628_v14  ;;  %11137 = vst [vmem:[#allocation56_spill] sm:$0xff] %v6634_v15  ;;  %11138 = vst [vmem:[#allocation57_spill] sm:$0xff] %v6640_v8  ;;  %v6646_v13 = vld [vmem:[%s10243_s4 + $0x60] sm:$0xff]  ;;  %v6652_v14 = vld [vmem:[%s10243_s4 + $0x70] sm:$0xff] }
 0x283   :  { %1451 = vmatprep.subr.mxu0 %v6634_v15  ;;  %1522 = vmatprep.subr.mxu1 %v6640_v8  ;;  %11139 = vst [vmem:[#allocation58_spill] sm:$0xff] %v6646_v13  ;;  %11140 = vst [vmem:[#allocation59_spill] sm:$0xff] %v6652_v14  ;;  %v6658_v15 = vld [vmem:[%s10243_s4 + $0x48] sm:$0xff]  ;;  %v6664_v8 = vld [vmem:[%s10243_s4 + $0x58] sm:$0xff] }
 0x284   :  { %1452 = vmatpush1.msra.mxu0 %v6646_v13  ;;  %1523 = vmatpush1.msra.mxu1 %v6652_v14  ;;  %11141 = vst [vmem:[#allocation60_spill] sm:$0xff] %v6658_v15  ;;  %11142 = vst [vmem:[#allocation61_spill] sm:$0xff] %v6664_v8  ;;  %v6670_v13 = vld [vmem:[%s10243_s4 + $0x40] sm:$0xff]  ;;  %v6676_v14 = vld [vmem:[%s10243_s4 + $0x50] sm:$0xff] }
 0x285   :  { %1453 = vmatprep.subr.mxu0 %v6658_v15  ;;  %1524 = vmatprep.subr.mxu1 %v6664_v8  ;;  %11143 = vst [vmem:[#allocation62_spill] sm:$0xff] %v6670_v13  ;;  %11144 = vst [vmem:[#allocation63_spill] sm:$0xff] %v6676_v14  ;;  %v6682_v15 = vld [vmem:[%s10243_s4 + $0x28] sm:$0xff]  ;;  %v6688_v8 = vld [vmem:[%s10243_s4 + $0x38] sm:$0xff] }
 0x286   :  { %1454 = vmatpush1.msra.mxu0 %v6670_v13  ;;  %1525 = vmatpush1.msra.mxu1 %v6676_v14  ;;  %11145 = vst [vmem:[#allocation64_spill] sm:$0xff] %v6682_v15  ;;  %11146 = vst [vmem:[#allocation65_spill] sm:$0xff] %v6688_v8  ;;  %v6694_v13 = vld [vmem:[%s10243_s4 + $0x20] sm:$0xff]  ;;  %v6700_v14 = vld [vmem:[%s10243_s4 + $0x30] sm:$0xff] }
 0x287   :  { %1455 = vmatprep.subr.mxu0 %v6682_v15  ;;  %1526 = vmatprep.subr.mxu1 %v6688_v8  ;;  %11147 = vst [vmem:[#allocation66_spill] sm:$0xff] %v6694_v13  ;;  %11148 = vst [vmem:[#allocation67_spill] sm:$0xff] %v6700_v14  ;;  %v6706_v15 = vld [vmem:[%s10243_s4 + $0x8] sm:$0xff]  ;;  %v6712_v8 = vld [vmem:[%s10243_s4 + $0x18] sm:$0xff] }
 0x288   :  { %1456 = vmatpush1.msra.mxu0 %v6694_v13  ;;  %1527 = vmatpush1.msra.mxu1 %v6700_v14  ;;  %11149 = vst [vmem:[#allocation68_spill] sm:$0xff] %v6706_v15  ;;  %11150 = vst [vmem:[#allocation69_spill] sm:$0xff] %v6712_v8  ;;  %v6718_v13 = vld [vmem:[%s10243_s4] sm:$0xff]  ;;  %v6724_v14 = vld [vmem:[%s10243_s4 + $0x10] sm:$0xff] }
 0x289   :  { %1457 = vmatprep.subr.mxu0 %v6706_v15  ;;  %1528 = vmatprep.subr.mxu1 %v6712_v8  ;;  %11151 = vst [vmem:[#allocation70_spill] sm:$0xff] %v6718_v13  ;;  %11152 = vst [vmem:[#allocation71_spill] sm:$0xff] %v6724_v14  ;;  %v6730_v15 = vld [vmem:[%s10243_s4 + $0x3e8] sm:$0xff]  ;;  %v6736_v8 = vld [vmem:[%s10243_s4 + $0x3f8] sm:$0xff] }
 0x28a   :  { %1458 = vmatpush1.msra.mxu0 %v6718_v13  ;;  %1529 = vmatpush1.msra.mxu1 %v6724_v14  ;;  %11153 = vst [vmem:[#allocation72_spill] sm:$0xff] %v6730_v15  ;;  %11154 = vst [vmem:[#allocation73_spill] sm:$0xff] %v6736_v8  ;;  %v6742_v13 = vld [vmem:[%s10243_s4 + $0x3e0] sm:$0xff]  ;;  %v6748_v14 = vld [vmem:[%s10243_s4 + $0x3f0] sm:$0xff] }
 0x28b   :  { %1459 = vmatprep.subr.mxu0 %v6730_v15  ;;  %1530 = vmatprep.subr.mxu1 %v6736_v8  ;;  %11155 = vst [vmem:[#allocation74_spill] sm:$0xff] %v6742_v13  ;;  %11156 = vst [vmem:[#allocation75_spill] sm:$0xff] %v6748_v14  ;;  %v6754_v15 = vld [vmem:[%s10243_s4 + $0x3c8] sm:$0xff]  ;;  %v6760_v8 = vld [vmem:[%s10243_s4 + $0x3d8] sm:$0xff] }
 0x28c   :  { %1460 = vmatpush2.msra.mxu0 %v6742_v13  ;;  %1531 = vmatpush2.msra.mxu1 %v6748_v14  ;;  %11157 = vst [vmem:[#allocation76_spill] sm:$0xff] %v6754_v15  ;;  %11158 = vst [vmem:[#allocation77_spill] sm:$0xff] %v6760_v8  ;;  %v6766_v13 = vld [vmem:[%s10243_s4 + $0x3c0] sm:$0xff]  ;;  %v6772_v14 = vld [vmem:[%s10243_s4 + $0x3d0] sm:$0xff] }
 0x28d   :  { %1461 = vmatprep.subr.mxu0 %v6754_v15  ;;  %1532 = vmatprep.subr.mxu1 %v6760_v8  ;;  %11159 = vst [vmem:[#allocation78_spill] sm:$0xff] %v6766_v13  ;;  %11160 = vst [vmem:[#allocation79_spill] sm:$0xff] %v6772_v14  ;;  %v6778_v15 = vld [vmem:[%s10243_s4 + $0x3a8] sm:$0xff]  ;;  %v6784_v8 = vld [vmem:[%s10243_s4 + $0x3b8] sm:$0xff] }
 0x28e   :  { %1462 = vmatpush2.msra.mxu0 %v6766_v13  ;;  %1533 = vmatpush2.msra.mxu1 %v6772_v14  ;;  %11161 = vst [vmem:[#allocation80_spill] sm:$0xff] %v6778_v15  ;;  %11162 = vst [vmem:[#allocation81_spill] sm:$0xff] %v6784_v8  ;;  %v6790_v13 = vld [vmem:[%s10243_s4 + $0x3a0] sm:$0xff]  ;;  %v6796_v14 = vld [vmem:[%s10243_s4 + $0x3b0] sm:$0xff] }
 0x28f   :  { %1463 = vmatprep.subr.mxu0 %v6778_v15  ;;  %1534 = vmatprep.subr.mxu1 %v6784_v8  ;;  %11163 = vst [vmem:[#allocation82_spill] sm:$0xff] %v6790_v13  ;;  %11164 = vst [vmem:[#allocation83_spill] sm:$0xff] %v6796_v14  ;;  %v6802_v15 = vld [vmem:[%s10243_s4 + $0x388] sm:$0xff]  ;;  %v6808_v8 = vld [vmem:[%s10243_s4 + $0x398] sm:$0xff] }
 0x290   :  { %1464 = vmatpush2.msra.mxu0 %v6790_v13  ;;  %1535 = vmatpush2.msra.mxu1 %v6796_v14  ;;  %11165 = vst [vmem:[#allocation84_spill] sm:$0xff] %v6802_v15  ;;  %11166 = vst [vmem:[#allocation85_spill] sm:$0xff] %v6808_v8  ;;  %v6814_v13 = vld [vmem:[%s10243_s4 + $0x380] sm:$0xff]  ;;  %v6820_v14 = vld [vmem:[%s10243_s4 + $0x390] sm:$0xff] }
 0x291   :  { %1465 = vmatprep.subr.mxu0 %v6802_v15  ;;  %1536 = vmatprep.subr.mxu1 %v6808_v8  ;;  %11167 = vst [vmem:[#allocation86_spill] sm:$0xff] %v6814_v13  ;;  %11168 = vst [vmem:[#allocation87_spill] sm:$0xff] %v6820_v14  ;;  %v6826_v15 = vld [vmem:[%s10243_s4 + $0x368] sm:$0xff]  ;;  %v6832_v8 = vld [vmem:[%s10243_s4 + $0x378] sm:$0xff] }
 0x292   :  { %1466 = vmatpush2.msra.mxu0 %v6814_v13  ;;  %1537 = vmatpush2.msra.mxu1 %v6820_v14  ;;  %11169 = vst [vmem:[#allocation88_spill] sm:$0xff] %v6826_v15  ;;  %11170 = vst [vmem:[#allocation89_spill] sm:$0xff] %v6832_v8  ;;  %v6838_v13 = vld [vmem:[%s10243_s4 + $0x360] sm:$0xff]  ;;  %v6844_v14 = vld [vmem:[%s10243_s4 + $0x370] sm:$0xff] }
 0x293   :  { %1467 = vmatprep.subr.mxu0 %v6826_v15  ;;  %1538 = vmatprep.subr.mxu1 %v6832_v8  ;;  %11171 = vst [vmem:[#allocation90_spill] sm:$0xff] %v6838_v13  ;;  %11172 = vst [vmem:[#allocation91_spill] sm:$0xff] %v6844_v14  ;;  %v6850_v15 = vld [vmem:[%s10243_s4 + $0x348] sm:$0xff]  ;;  %v6856_v8 = vld [vmem:[%s10243_s4 + $0x358] sm:$0xff] }
 0x294   :  { %1468 = vmatpush2.msra.mxu0 %v6838_v13  ;;  %1539 = vmatpush2.msra.mxu1 %v6844_v14  ;;  %11173 = vst [vmem:[#allocation92_spill] sm:$0xff] %v6850_v15  ;;  %11174 = vst [vmem:[#allocation93_spill] sm:$0xff] %v6856_v8  ;;  %v6862_v13 = vld [vmem:[%s10243_s4 + $0x340] sm:$0xff]  ;;  %v6868_v14 = vld [vmem:[%s10243_s4 + $0x350] sm:$0xff] }
 0x295   :  { %1469 = vmatprep.subr.mxu0 %v6850_v15  ;;  %1540 = vmatprep.subr.mxu1 %v6856_v8  ;;  %11175 = vst [vmem:[#allocation94_spill] sm:$0xff] %v6862_v13  ;;  %11176 = vst [vmem:[#allocation95_spill] sm:$0xff] %v6868_v14  ;;  %v6874_v15 = vld [vmem:[%s10243_s4 + $0x328] sm:$0xff]  ;;  %v6880_v8 = vld [vmem:[%s10243_s4 + $0x338] sm:$0xff] }
 0x296   :  { %1470 = vmatpush2.msra.mxu0 %v6862_v13  ;;  %1541 = vmatpush2.msra.mxu1 %v6868_v14  ;;  %11177 = vst [vmem:[#allocation96_spill] sm:$0xff] %v6874_v15  ;;  %11178 = vst [vmem:[#allocation97_spill] sm:$0xff] %v6880_v8  ;;  %v6886_v13 = vld [vmem:[%s10243_s4 + $0x320] sm:$0xff]  ;;  %v6892_v14 = vld [vmem:[%s10243_s4 + $0x330] sm:$0xff] }
 0x297   :  { %1471 = vmatprep.subr.mxu0 %v6874_v15  ;;  %1542 = vmatprep.subr.mxu1 %v6880_v8  ;;  %11179 = vst [vmem:[#allocation98_spill] sm:$0xff] %v6886_v13  ;;  %11180 = vst [vmem:[#allocation99_spill] sm:$0xff] %v6892_v14  ;;  %v6898_v15 = vld [vmem:[%s10243_s4 + $0x308] sm:$0xff]  ;;  %v6904_v8 = vld [vmem:[%s10243_s4 + $0x318] sm:$0xff] }
 0x298   :  { %1472 = vmatpush2.msra.mxu0 %v6886_v13  ;;  %1543 = vmatpush2.msra.mxu1 %v6892_v14  ;;  %11181 = vst [vmem:[#allocation100_spill] sm:$0xff] %v6898_v15  ;;  %11182 = vst [vmem:[#allocation101_spill] sm:$0xff] %v6904_v8  ;;  %v6910_v13 = vld [vmem:[%s10243_s4 + $0x300] sm:$0xff]  ;;  %v6916_v14 = vld [vmem:[%s10243_s4 + $0x310] sm:$0xff] }
 0x299   :  { %1473 = vmatprep.subr.mxu0 %v6898_v15  ;;  %1544 = vmatprep.subr.mxu1 %v6904_v8  ;;  %11183 = vst [vmem:[#allocation102_spill] sm:$0xff] %v6910_v13  ;;  %11184 = vst [vmem:[#allocation103_spill] sm:$0xff] %v6916_v14  ;;  %v6922_v15 = vld [vmem:[%s10243_s4 + $0x2e8] sm:$0xff]  ;;  %v6928_v8 = vld [vmem:[%s10243_s4 + $0x2f8] sm:$0xff] }
 0x29a   :  { %1474 = vmatpush2.msra.mxu0 %v6910_v13  ;;  %1545 = vmatpush2.msra.mxu1 %v6916_v14  ;;  %11185 = vst [vmem:[#allocation104_spill] sm:$0xff] %v6922_v15  ;;  %11186 = vst [vmem:[#allocation105_spill] sm:$0xff] %v6928_v8  ;;  %v6934_v13 = vld [vmem:[%s10243_s4 + $0x2e0] sm:$0xff]  ;;  %v6940_v14 = vld [vmem:[%s10243_s4 + $0x2f0] sm:$0xff] }
 0x29b   :  { %1475 = vmatprep.subr.mxu0 %v6922_v15  ;;  %1546 = vmatprep.subr.mxu1 %v6928_v8  ;;  %11187 = vst [vmem:[#allocation106_spill] sm:$0xff] %v6934_v13  ;;  %11188 = vst [vmem:[#allocation107_spill] sm:$0xff] %v6940_v14  ;;  %v6946_v15 = vld [vmem:[%s10243_s4 + $0x2c8] sm:$0xff]  ;;  %v6952_v8 = vld [vmem:[%s10243_s4 + $0x2d8] sm:$0xff] }
 0x29c   :  { %1476 = vmatpush2.msra.mxu0 %v6934_v13  ;;  %1547 = vmatpush2.msra.mxu1 %v6940_v14  ;;  %11189 = vst [vmem:[#allocation108_spill] sm:$0xff] %v6946_v15  ;;  %11190 = vst [vmem:[#allocation109_spill] sm:$0xff] %v6952_v8  ;;  %v6958_v13 = vld [vmem:[%s10243_s4 + $0x2c0] sm:$0xff]  ;;  %v6964_v14 = vld [vmem:[%s10243_s4 + $0x2d0] sm:$0xff] }
 0x29d   :  { %1477 = vmatprep.subr.mxu0 %v6946_v15  ;;  %1548 = vmatprep.subr.mxu1 %v6952_v8  ;;  %11191 = vst [vmem:[#allocation110_spill] sm:$0xff] %v6958_v13  ;;  %11192 = vst [vmem:[#allocation111_spill] sm:$0xff] %v6964_v14  ;;  %v6970_v15 = vld [vmem:[%s10243_s4 + $0x2a8] sm:$0xff]  ;;  %v6976_v8 = vld [vmem:[%s10243_s4 + $0x2b8] sm:$0xff] }
 0x29e   :  { %1478 = vmatpush2.msra.mxu0 %v6958_v13  ;;  %1549 = vmatpush2.msra.mxu1 %v6964_v14  ;;  %11193 = vst [vmem:[#allocation112_spill] sm:$0xff] %v6970_v15  ;;  %11194 = vst [vmem:[#allocation113_spill] sm:$0xff] %v6976_v8  ;;  %v6982_v13 = vld [vmem:[%s10243_s4 + $0x2a0] sm:$0xff]  ;;  %v6988_v14 = vld [vmem:[%s10243_s4 + $0x2b0] sm:$0xff] }
 0x29f   :  { %1479 = vmatprep.subr.mxu0 %v6970_v15  ;;  %1550 = vmatprep.subr.mxu1 %v6976_v8  ;;  %11195 = vst [vmem:[#allocation114_spill] sm:$0xff] %v6982_v13  ;;  %11196 = vst [vmem:[#allocation115_spill] sm:$0xff] %v6988_v14  ;;  %v6994_v15 = vld [vmem:[%s10243_s4 + $0x288] sm:$0xff]  ;;  %v7000_v8 = vld [vmem:[%s10243_s4 + $0x298] sm:$0xff] }
 0x2a0   :  { %1480 = vmatpush2.msra.mxu0 %v6982_v13  ;;  %1551 = vmatpush2.msra.mxu1 %v6988_v14  ;;  %11197 = vst [vmem:[#allocation116_spill] sm:$0xff] %v6994_v15  ;;  %11198 = vst [vmem:[#allocation117_spill] sm:$0xff] %v7000_v8  ;;  %v7006_v13 = vld [vmem:[%s10243_s4 + $0x280] sm:$0xff]  ;;  %v7012_v14 = vld [vmem:[%s10243_s4 + $0x290] sm:$0xff] }
 0x2a1   :  { %1481 = vmatprep.subr.mxu0 %v6994_v15  ;;  %1552 = vmatprep.subr.mxu1 %v7000_v8  ;;  %11199 = vst [vmem:[#allocation118_spill] sm:$0xff] %v7006_v13  ;;  %11200 = vst [vmem:[#allocation119_spill] sm:$0xff] %v7012_v14  ;;  %v7018_v15 = vld [vmem:[%s10243_s4 + $0x268] sm:$0xff]  ;;  %v7024_v8 = vld [vmem:[%s10243_s4 + $0x278] sm:$0xff] }
 0x2a2   :  { %1482 = vmatpush2.msra.mxu0 %v7006_v13  ;;  %1553 = vmatpush2.msra.mxu1 %v7012_v14  ;;  %11201 = vst [vmem:[#allocation120_spill] sm:$0xff] %v7018_v15  ;;  %11202 = vst [vmem:[#allocation121_spill] sm:$0xff] %v7024_v8  ;;  %v7030_v13 = vld [vmem:[%s10243_s4 + $0x260] sm:$0xff]  ;;  %v7036_v14 = vld [vmem:[%s10243_s4 + $0x270] sm:$0xff] }
 0x2a3   :  { %1483 = vmatprep.subr.mxu0 %v7018_v15  ;;  %1554 = vmatprep.subr.mxu1 %v7024_v8  ;;  %11203 = vst [vmem:[#allocation122_spill] sm:$0xff] %v7030_v13  ;;  %11204 = vst [vmem:[#allocation123_spill] sm:$0xff] %v7036_v14  ;;  %v7042_v15 = vld [vmem:[%s10243_s4 + $0x248] sm:$0xff]  ;;  %v7048_v8 = vld [vmem:[%s10243_s4 + $0x258] sm:$0xff] }
 0x2a4   :  { %1484 = vmatpush2.msra.mxu0 %v7030_v13  ;;  %1555 = vmatpush2.msra.mxu1 %v7036_v14  ;;  %11205 = vst [vmem:[#allocation124_spill] sm:$0xff] %v7042_v15  ;;  %11206 = vst [vmem:[#allocation125_spill] sm:$0xff] %v7048_v8  ;;  %v7054_v13 = vld [vmem:[%s10243_s4 + $0x240] sm:$0xff]  ;;  %v7060_v14 = vld [vmem:[%s10243_s4 + $0x250] sm:$0xff] }
 0x2a5   :  { %1485 = vmatprep.subr.mxu0 %v7042_v15  ;;  %1556 = vmatprep.subr.mxu1 %v7048_v8  ;;  %11207 = vst [vmem:[#allocation126_spill] sm:$0xff] %v7054_v13  ;;  %11208 = vst [vmem:[#allocation127_spill] sm:$0xff] %v7060_v14  ;;  %v7066_v15 = vld [vmem:[%s10243_s4 + $0x228] sm:$0xff]  ;;  %v7072_v8 = vld [vmem:[%s10243_s4 + $0x238] sm:$0xff] }
 0x2a6   :  { %1486 = vmatpush2.msra.mxu0 %v7054_v13  ;;  %1557 = vmatpush2.msra.mxu1 %v7060_v14  ;;  %11209 = vst [vmem:[#allocation128_spill] sm:$0xff] %v7066_v15  ;;  %11210 = vst [vmem:[#allocation129_spill] sm:$0xff] %v7072_v8  ;;  %v7078_v13 = vld [vmem:[%s10243_s4 + $0x220] sm:$0xff]  ;;  %v7084_v14 = vld [vmem:[%s10243_s4 + $0x230] sm:$0xff] }
 0x2a7   :  { %1487 = vmatprep.subr.mxu0 %v7066_v15  ;;  %1558 = vmatprep.subr.mxu1 %v7072_v8  ;;  %11211 = vst [vmem:[#allocation130_spill] sm:$0xff] %v7078_v13  ;;  %11212 = vst [vmem:[#allocation131_spill] sm:$0xff] %v7084_v14  ;;  %v7090_v15 = vld [vmem:[%s10243_s4 + $0x208] sm:$0xff]  ;;  %v7096_v8 = vld [vmem:[%s10243_s4 + $0x218] sm:$0xff] }
 0x2a8   :  { %1488 = vmatpush2.msra.mxu0 %v7078_v13  ;;  %1559 = vmatpush2.msra.mxu1 %v7084_v14  ;;  %11213 = vst [vmem:[#allocation132_spill] sm:$0xff] %v7090_v15  ;;  %11214 = vst [vmem:[#allocation134_spill] sm:$0xff] %v7096_v8  ;;  %v7102_v13 = vld [vmem:[%s10243_s4 + $0x200] sm:$0xff]  ;;  %v7108_v14 = vld [vmem:[%s10243_s4 + $0x210] sm:$0xff] }
 0x2a9   :  { %1489 = vmatprep.subr.mxu0 %v7090_v15  ;;  %1560 = vmatprep.subr.mxu1 %v7096_v8  ;;  %11215 = vst [vmem:[#allocation135_spill] sm:$0xff] %v7102_v13  ;;  %11216 = vst [vmem:[#allocation133_spill] sm:$0xff] %v7108_v14 }
 0x2aa   :  { %1490 = vmatpush2.msra.mxu0 %v7102_v13  ;;  %1561 = vmatpush2.msra.mxu1 %v7108_v14 }
 0x2ab   :  { %1600 = vmatprep.subr.mxu0 %v6020_v42  ;;  %1671 = vmatprep.subr.mxu1 %v6026_v43 }
 0x309   :  { %v1150_v15 = vpop.f32.mrf.mxu0  ;;  %v1221_v13 = vpop.f32.mrf.mxu1 }
 0x30a   :  { %v1151_v8 = vadd.f32 %v1150_v15, %v6034_v47  ;;  %v1222_v42 = vadd.f32 %v1221_v13, %v6049_v0 }
 0x30b   :  { %v1152_v7 = vpop.f32.mrf.mxu0  ;;  %v1223_v2 = vpop.f32.mrf.mxu1 }
 0x30c   :  { %v3438_v6 = vmul.f32 -1.442695, %v1151_v8  ;;  %v1153_v5 = vadd.f32 %v1152_v7, %v6038_v49  ;;  %v1224_v1 = vadd.f32 %v1223_v2, %v6044_v59  ;;  %v11217_v49 = vld [vmem:[#allocation136_spill] sm:$0xff] }
 0x30e   :  { %3580 = vpow2.f32 %v3438_v6  ;;  %v3439_v4 = vmul.f32 -1.442695, %v1153_v5  ;;  %v3440_v62 = vmul.f32 -1.442695, %v1224_v1  ;;  %v11218_v1 = vld [vmem:[#allocation138_spill] sm:$0xff] }
 0x310   :  { %3582 = vpow2.f32 %v3439_v4 }
 0x311   :  { %3584 = vpow2.f32 %v3440_v62 }
 0x31b   :  { %v3581_v14 = vpop.eup %3580 }
 0x31c   :  { %v1229_v61 = vadd.f32 1.0, %v3581_v14 }
 0x31d   :  { %v3583_v43 = vpop.eup %3582 }
 0x31e   :  { %3586 = vrcp.f32 %v1229_v61  ;;  %v1235_v15 = vadd.f32 1.0, %v3583_v43  ;;  %v3585_v8 = vpop.eup %3584 }
 0x31f   :  { %3588 = vtanh.f32 %v1222_v42  ;;  %v1242_v14 = vadd.f32 1.0, %v3585_v8 }
 0x320   :  { %3590 = vrcp.f32 %v1235_v15 }
 0x32a   :  { %v1323_v7 = vpop.f32.mrf.mxu0  ;;  %v1394_v61 = vpop.f32.mrf.mxu1 }
 0x32b   :  { %v3587_v6 = vpop.eup %3586  ;;  %v1399_v5 = vadd.f32 %v1323_v7, %v11217_v49  ;;  %v11219_v49 = vld [vmem:[#allocation139_spill] sm:$0xff]  ;;  %v11220_v7 = vld [vmem:[#allocation137_spill] sm:$0xff] }
 0x32c   :  { %v3589_v4 = vpop.eup %3588  ;;  %v1325_v47 = vpop.f32.mrf.mxu0 }
 0x32d   :  { %v3591_v60 = vpop.eup %3590  ;;  %v3441_v2 = vmul.f32 -1.442695, %v1399_v5  ;;  %v1400_v59 = vadd.f32 %v1325_v47, %v11218_v1  ;;  %v1246_v58 = vmul.f32 %v3589_v4, %v3587_v6  ;;  %v1396_v43 = vpop.f32.mrf.mxu1  ;;  %v1401_v5 = vadd.f32 %v1394_v61, %v11220_v7  ;;  %v7136_v7 = vld [vmem:[%s10242_s2 + $0x1e0] sm:$0xff] }
 0x32e   :  { %v1245_v13 = vmul.f32 %v3591_v60, %v6054_v44  ;;  %v1402_v15 = vadd.f32 %v1396_v43, %v11219_v49 }
 0x32f   :  { %3592 = vpow2.f32 %v3441_v2  ;;  %v3442_v62 = vmul.f32 -1.442695, %v1400_v59 }
 0x330   :  { %v7120_v42 = vadd.f32 %v1246_v58, %v1245_v13  ;;  %v3443_v0 = vmul.f32 -1.442695, %v1402_v15 }
 0x331   :  { %3594 = vpow2.f32 %v3442_v62 }
 0x332   :  { %3596 = vrcp.f32 %v1242_v14 }
 0x333   :  { %3598 = vtanh.f32 %v7120_v42 }
 0x334   :  { %3600 = vtanh.f32 %v1401_v5  ;;  %v7148_v5 = vld [vmem:[%s10242_s2 + $0x1c8] sm:$0xff] }
 0x335   :  { %3602 = vpow2.f32 %v3443_v0 }
 0x33c   :  { %v3593_v47 = vpop.eup %3592 }
 0x33d   :  { %v1406_v6 = vadd.f32 1.0, %v3593_v47  ;;  %v7154_v47 = vld [vmem:[%s10242_s2 + $0x1d8] sm:$0xff] }
 0x33e   :  { %v3595_v44 = vpop.eup %3594 }
 0x33f   :  { %v3597_v60 = vpop.eup %3596  ;;  %3604 = vrcp.f32 %v1406_v6  ;;  %v1412_v59 = vadd.f32 1.0, %v3595_v44  ;;  %v7160_v6 = vld [vmem:[%s10242_s2 + $0x1c0] sm:$0xff]  ;;  %v7166_v44 = vld [vmem:[%s10242_s2 + $0x1d0] sm:$0xff] }
 0x340   :  { %v3599_v58 = vpop.eup %3598 }
 0x341   :  { %3606 = vrcp.f32 %v1412_v59  ;;  %v1249_v8 = vmul.f32 %v3599_v58, %v3597_v60  ;;  %v3601_v4 = vpop.eup %3600  ;;  %v7172_v60 = vld [vmem:[%s10242_s2 + $0x1a8] sm:$0xff]  ;;  %v7178_v59 = vld [vmem:[%s10242_s2 + $0x1b8] sm:$0xff]  ;;  %v7184_v58 = vld [vmem:[%s10242_s2 + $0x1a0] sm:$0xff] }
 0x342   :  { %v3603_v2 = vpop.eup %3602 }
 0x343   :  { %1491 = vmatprep.mubr.f32.mxu0 %v1249_v8  ;;  %1562 = vmatprep.mubr.f32.mxu1 %v1249_v8  ;;  %v1419_v61 = vadd.f32 1.0, %v3603_v2  ;;  %v7190_v8 = vld [vmem:[%s10242_s2 + $0x1b0] sm:$0xff]  ;;  %v7202_v2 = vld [vmem:[%s10242_s2 + $0x198] sm:$0xff] }
 0x345   :  { %3608 = vrcp.f32 %v1419_v61  ;;  %v7226_v61 = vld [vmem:[%s10242_s2 + $0x178] sm:$0xff] }
 0x346   :  { %11221 = vst [vmem:[#allocation136_spill] sm:$0xff] %v7226_v61 }
 0x34c   :  { %v3605_v1 = vpop.eup %3604 }
 0x34d   :  { %v1423_v13 = vmul.f32 %v3605_v1, %v3601_v4  ;;  %v7196_v4 = vld [vmem:[%s10242_s2 + $0x188] sm:$0xff]  ;;  %v7208_v1 = vld [vmem:[%s10242_s2 + $0x180] sm:$0xff] }
 0x34e   :  { %v3607_v14 = vpop.eup %3606 }
 0x34f   :  { %v1422_v62 = vmul.f32 %v3607_v14, %v6060_v12  ;;  %v7142_v12 = vld [vmem:[%s10242_s2 + $0x1f0] sm:$0xff]  ;;  %v7220_v14 = vld [vmem:[%s10242_s2 + $0x168] sm:$0xff] }
 0x351   :  { %v7126_v43 = vadd.f32 %v1423_v13, %v1422_v62  ;;  %v7214_v13 = vld [vmem:[%s10242_s2 + $0x190] sm:$0xff]  ;;  %v7232_v62 = vld [vmem:[%s10242_s2 + $0x160] sm:$0xff] }
 0x352   :  { %v3609_v0 = vpop.eup %3608 }
 0x353   :  { %3610 = vtanh.f32 %v7126_v43 }
 0x360   :  { %v3611_v49 = vpop.eup %3610 }
 0x361   :  { %v7129_v15 = vmul.f32 %v3611_v49, %v3609_v0  ;;  %v7238_v0 = vld [vmem:[%s10242_s2 + $0x170] sm:$0xff]  ;;  %v7244_v49 = vld [vmem:[%s10242_s2 + $0x148] sm:$0xff] }
 0x363   :  { %1492 = vmatmul.mubr.f32.vlgmr.msra.gmra.mxu0 %v7129_v15  ;;  %1563 = vmatmul.mubr.f32.vlgmr.msra.gmra.mxu1 %v7129_v15 }
 0x364   :  { %1601 = vmatpush1.msra.mxu0 %v7136_v7  ;;  %1672 = vmatpush1.msra.mxu1 %v7142_v12 }
 0x365   :  { %1602 = vmatprep.subr.mxu0 %v7148_v5  ;;  %1673 = vmatprep.subr.mxu1 %v7154_v47 }
 0x366   :  { %1603 = vmatpush1.msra.mxu0 %v7160_v6  ;;  %1674 = vmatpush1.msra.mxu1 %v7166_v44 }
 0x367   :  { %1604 = vmatprep.subr.mxu0 %v7172_v60  ;;  %1675 = vmatprep.subr.mxu1 %v7178_v59 }
 0x368   :  { %1605 = vmatpush1.msra.mxu0 %v7184_v58  ;;  %1676 = vmatpush1.msra.mxu1 %v7190_v8 }
 0x369   :  { %1606 = vmatprep.subr.mxu0 %v7196_v4  ;;  %1677 = vmatprep.subr.mxu1 %v7202_v2 }
 0x36a   :  { %1607 = vmatpush1.msra.mxu0 %v7208_v1  ;;  %1678 = vmatpush1.msra.mxu1 %v7214_v13 }
 0x36b   :  { %1608 = vmatprep.subr.mxu0 %v7220_v14  ;;  %1679 = vmatprep.subr.mxu1 %v7226_v61  ;;  %v7250_v61 = vld [vmem:[%s10242_s2 + $0x158] sm:$0xff] }
 0x36c   :  { %1609 = vmatpush1.msra.mxu0 %v7232_v62  ;;  %1680 = vmatpush1.msra.mxu1 %v7238_v0 }
 0x36d   :  { %1610 = vmatprep.subr.mxu0 %v7244_v49  ;;  %1681 = vmatprep.subr.mxu1 %v7250_v61 }
 0x36e   :  { %1611 = vmatpush1.msra.mxu0 %v6090_v11  ;;  %1682 = vmatpush1.msra.mxu1 %v6096_v9  ;;  %v11222_v11 = vld [vmem:[#allocation7_spill] sm:$0xff]  ;;  %v11223_v9 = vld [vmem:[#allocation8_spill] sm:$0xff] }
 0x36f   :  { %1612 = vmatprep.subr.mxu0 %v6102_v28  ;;  %1683 = vmatprep.subr.mxu1 %v6108_v21  ;;  %v11224_v28 = vld [vmem:[#allocation9_spill] sm:$0xff]  ;;  %v11225_v21 = vld [vmem:[#allocation10_spill] sm:$0xff] }
 0x370   :  { %1613 = vmatpush1.msra.mxu0 %v6114_v20  ;;  %1684 = vmatpush1.msra.mxu1 %v6120_v36  ;;  %v11226_v20 = vld [vmem:[#allocation11_spill] sm:$0xff]  ;;  %v11227_v36 = vld [vmem:[#allocation12_spill] sm:$0xff] }
 0x371   :  { %1614 = vmatprep.subr.mxu0 %v6126_v29  ;;  %1685 = vmatprep.subr.mxu1 %v6132_v31  ;;  %v11228_v29 = vld [vmem:[#allocation13_spill] sm:$0xff]  ;;  %v11229_v31 = vld [vmem:[#allocation14_spill] sm:$0xff] }
 0x372   :  { %1615 = vmatpush1.msra.mxu0 %v6138_v32  ;;  %1686 = vmatpush1.msra.mxu1 %v6144_v27  ;;  %v11230_v32 = vld [vmem:[#allocation15_spill] sm:$0xff]  ;;  %v11231_v27 = vld [vmem:[#allocation16_spill] sm:$0xff] }
 0x373   :  { %1616 = vmatprep.subr.mxu0 %v6150_v54  ;;  %1687 = vmatprep.subr.mxu1 %v6156_v19  ;;  %v11232_v54 = vld [vmem:[#allocation17_spill] sm:$0xff]  ;;  %v11233_v19 = vld [vmem:[#allocation18_spill] sm:$0xff] }
 0x374   :  { %1617 = vmatpush1.msra.mxu0 %v6162_v25  ;;  %1688 = vmatpush1.msra.mxu1 %v6168_v24  ;;  %v11234_v25 = vld [vmem:[#allocation19_spill] sm:$0xff]  ;;  %v11235_v24 = vld [vmem:[#allocation20_spill] sm:$0xff] }
 0x375   :  { %1618 = vmatprep.subr.mxu0 %v6174_v45  ;;  %1689 = vmatprep.subr.mxu1 %v6180_v23  ;;  %v11236_v45 = vld [vmem:[#allocation21_spill] sm:$0xff]  ;;  %v11237_v23 = vld [vmem:[#allocation22_spill] sm:$0xff] }
 0x376   :  { %1619 = vmatpush1.msra.mxu0 %v6186_v63  ;;  %1690 = vmatpush1.msra.mxu1 %v6192_v26  ;;  %v11238_v63 = vld [vmem:[#allocation23_spill] sm:$0xff]  ;;  %v11239_v26 = vld [vmem:[#allocation24_spill] sm:$0xff] }
 0x377   :  { %1620 = vmatprep.subr.mxu0 %v6198_v10  ;;  %1691 = vmatprep.subr.mxu1 %v6204_v22  ;;  %v11240_v10 = vld [vmem:[#allocation25_spill] sm:$0xff]  ;;  %v11241_v22 = vld [vmem:[#allocation26_spill] sm:$0xff] }
 0x378   :  { %1621 = vmatpush1.msra.mxu0 %v6210_v30  ;;  %1692 = vmatpush1.msra.mxu1 %v6216_v16  ;;  %v11242_v30 = vld [vmem:[#allocation27_spill] sm:$0xff]  ;;  %v11243_v16 = vld [vmem:[#allocation28_spill] sm:$0xff] }
 0x379   :  { %1622 = vmatprep.subr.mxu0 %v6222_v3  ;;  %1693 = vmatprep.subr.mxu1 %v6228_v17  ;;  %v11244_v3 = vld [vmem:[#allocation29_spill] sm:$0xff]  ;;  %v11245_v17 = vld [vmem:[#allocation30_spill] sm:$0xff] }
 0x37a   :  { %1623 = vmatpush1.msra.mxu0 %v6234_v18  ;;  %1694 = vmatpush1.msra.mxu1 %v6240_v33  ;;  %v11246_v18 = vld [vmem:[#allocation31_spill] sm:$0xff]  ;;  %v11247_v33 = vld [vmem:[#allocation32_spill] sm:$0xff] }
 0x37b   :  { %1624 = vmatprep.subr.mxu0 %v6246_v35  ;;  %1695 = vmatprep.subr.mxu1 %v6252_v37  ;;  %v11248_v35 = vld [vmem:[#allocation33_spill] sm:$0xff]  ;;  %v11249_v37 = vld [vmem:[#allocation34_spill] sm:$0xff] }
 0x37c   :  { %1625 = vmatpush1.msra.mxu0 %v6258_v38  ;;  %1696 = vmatpush1.msra.mxu1 %v6264_v39  ;;  %v11250_v38 = vld [vmem:[#allocation35_spill] sm:$0xff]  ;;  %v11251_v39 = vld [vmem:[#allocation36_spill] sm:$0xff] }
 0x37d   :  { %1626 = vmatprep.subr.mxu0 %v6270_v40  ;;  %1697 = vmatprep.subr.mxu1 %v6276_v41  ;;  %v11252_v40 = vld [vmem:[#allocation37_spill] sm:$0xff]  ;;  %v11253_v41 = vld [vmem:[#allocation38_spill] sm:$0xff] }
 0x37e   :  { %1627 = vmatpush1.msra.mxu0 %v6282_v46  ;;  %1698 = vmatpush1.msra.mxu1 %v6288_v48  ;;  %v11254_v46 = vld [vmem:[#allocation39_spill] sm:$0xff]  ;;  %v11255_v48 = vld [vmem:[#allocation40_spill] sm:$0xff] }
 0x37f   :  { %1628 = vmatprep.subr.mxu0 %v6294_v50  ;;  %1699 = vmatprep.subr.mxu1 %v6300_v51  ;;  %v11256_v50 = vld [vmem:[#allocation41_spill] sm:$0xff]  ;;  %v11257_v51 = vld [vmem:[#allocation42_spill] sm:$0xff] }
 0x380   :  { %1629 = vmatpush1.msra.mxu0 %v6306_v52  ;;  %1700 = vmatpush1.msra.mxu1 %v6312_v53  ;;  %v11258_v52 = vld [vmem:[#allocation43_spill] sm:$0xff]  ;;  %v11259_v53 = vld [vmem:[#allocation44_spill] sm:$0xff] }
 0x381   :  { %1630 = vmatprep.subr.mxu0 %v6318_v55  ;;  %1701 = vmatprep.subr.mxu1 %v6324_v56  ;;  %v11260_v55 = vld [vmem:[#allocation45_spill] sm:$0xff]  ;;  %v11261_v56 = vld [vmem:[#allocation46_spill] sm:$0xff] }
 0x382   :  { %1631 = vmatpush1.msra.mxu0 %v6330_v57  ;;  %1664 = vmatprep.mubr.f32.mxu0 %v10946_v34  ;;  %v11262_v57 = vld [vmem:[#allocation47_spill] sm:$0xff] }
 0x383   :  { %1702 = vmatpush1.msra.mxu1 %v11222_v11  ;;  %1735 = vmatprep.mubr.f32.mxu1 %v10946_v34  ;;  %v11264_v11 = vld [vmem:[#allocation49_spill] sm:$0xff] }
 0x384   :  { %1665 = vmatmul.mubr.f32.vlgmr.msra.gmra.mxu0 %v7129_v15  ;;  %1736 = vmatmul.mubr.f32.vlgmr.msra.gmra.mxu1 %v7129_v15  ;;  %v11263_v15 = vld [vmem:[#allocation48_spill] sm:$0xff] }
 0x385   :  { %1770 = vmatprep.subr.mxu0 %v11223_v9  ;;  %1841 = vmatprep.subr.mxu1 %v11224_v28  ;;  %v11265_v9 = vld [vmem:[#allocation50_spill] sm:$0xff]  ;;  %v11266_v28 = vld [vmem:[#allocation51_spill] sm:$0xff] }
 0x386   :  { %1771 = vmatpush1.msra.mxu0 %v11225_v21  ;;  %1842 = vmatpush1.msra.mxu1 %v11226_v20  ;;  %v11267_v21 = vld [vmem:[#allocation52_spill] sm:$0xff]  ;;  %v11268_v20 = vld [vmem:[#allocation53_spill] sm:$0xff] }
 0x387   :  { %1772 = vmatprep.subr.mxu0 %v11227_v36  ;;  %1843 = vmatprep.subr.mxu1 %v11228_v29  ;;  %v11269_v36 = vld [vmem:[#allocation54_spill] sm:$0xff]  ;;  %v11270_v29 = vld [vmem:[#allocation55_spill] sm:$0xff] }
 0x388   :  { %1773 = vmatpush1.msra.mxu0 %v11229_v31  ;;  %1844 = vmatpush1.msra.mxu1 %v11230_v32  ;;  %v11271_v31 = vld [vmem:[#allocation56_spill] sm:$0xff]  ;;  %v11272_v32 = vld [vmem:[#allocation57_spill] sm:$0xff] }
 0x389   :  { %1774 = vmatprep.subr.mxu0 %v11231_v27  ;;  %1845 = vmatprep.subr.mxu1 %v11232_v54  ;;  %v11273_v27 = vld [vmem:[#allocation58_spill] sm:$0xff]  ;;  %v11274_v54 = vld [vmem:[#allocation59_spill] sm:$0xff] }
 0x38a   :  { %1775 = vmatpush1.msra.mxu0 %v11233_v19  ;;  %1846 = vmatpush1.msra.mxu1 %v11234_v25  ;;  %v11275_v19 = vld [vmem:[#allocation60_spill] sm:$0xff]  ;;  %v11276_v25 = vld [vmem:[#allocation61_spill] sm:$0xff] }
 0x38b   :  { %1776 = vmatprep.subr.mxu0 %v11235_v24  ;;  %1847 = vmatprep.subr.mxu1 %v11236_v45  ;;  %v11277_v24 = vld [vmem:[#allocation62_spill] sm:$0xff]  ;;  %v11278_v45 = vld [vmem:[#allocation63_spill] sm:$0xff] }
 0x38c   :  { %1777 = vmatpush1.msra.mxu0 %v11237_v23  ;;  %1848 = vmatpush1.msra.mxu1 %v11238_v63  ;;  %v11279_v23 = vld [vmem:[#allocation64_spill] sm:$0xff]  ;;  %v11280_v63 = vld [vmem:[#allocation65_spill] sm:$0xff] }
 0x38d   :  { %1778 = vmatprep.subr.mxu0 %v11239_v26  ;;  %1849 = vmatprep.subr.mxu1 %v11240_v10  ;;  %v11281_v26 = vld [vmem:[#allocation66_spill] sm:$0xff]  ;;  %v11282_v10 = vld [vmem:[#allocation67_spill] sm:$0xff] }
 0x38e   :  { %1779 = vmatpush1.msra.mxu0 %v11241_v22  ;;  %1850 = vmatpush1.msra.mxu1 %v11242_v30  ;;  %v11283_v22 = vld [vmem:[#allocation68_spill] sm:$0xff]  ;;  %v11284_v30 = vld [vmem:[#allocation69_spill] sm:$0xff] }
 0x38f   :  { %1780 = vmatprep.subr.mxu0 %v11243_v16  ;;  %1851 = vmatprep.subr.mxu1 %v11244_v3  ;;  %v11285_v16 = vld [vmem:[#allocation70_spill] sm:$0xff]  ;;  %v11286_v3 = vld [vmem:[#allocation71_spill] sm:$0xff] }
 0x390   :  { %1781 = vmatpush1.msra.mxu0 %v11245_v17  ;;  %1852 = vmatpush1.msra.mxu1 %v11246_v18  ;;  %v11287_v17 = vld [vmem:[#allocation72_spill] sm:$0xff]  ;;  %v11288_v18 = vld [vmem:[#allocation73_spill] sm:$0xff] }
 0x391   :  { %1782 = vmatprep.subr.mxu0 %v11247_v33  ;;  %1853 = vmatprep.subr.mxu1 %v11248_v35  ;;  %v11289_v33 = vld [vmem:[#allocation74_spill] sm:$0xff]  ;;  %v11290_v35 = vld [vmem:[#allocation75_spill] sm:$0xff] }
 0x392   :  { %1783 = vmatpush1.msra.mxu0 %v11249_v37  ;;  %1854 = vmatpush1.msra.mxu1 %v11250_v38  ;;  %v11291_v37 = vld [vmem:[#allocation76_spill] sm:$0xff]  ;;  %v11292_v38 = vld [vmem:[#allocation77_spill] sm:$0xff] }
 0x393   :  { %1784 = vmatprep.subr.mxu0 %v11251_v39  ;;  %1855 = vmatprep.subr.mxu1 %v11252_v40  ;;  %v11293_v39 = vld [vmem:[#allocation78_spill] sm:$0xff]  ;;  %v11294_v40 = vld [vmem:[#allocation79_spill] sm:$0xff] }
 0x394   :  { %1785 = vmatpush1.msra.mxu0 %v11253_v41  ;;  %1856 = vmatpush1.msra.mxu1 %v11254_v46  ;;  %v11295_v41 = vld [vmem:[#allocation80_spill] sm:$0xff]  ;;  %v11296_v46 = vld [vmem:[#allocation81_spill] sm:$0xff] }
 0x395   :  { %1786 = vmatprep.subr.mxu0 %v11255_v48  ;;  %1857 = vmatprep.subr.mxu1 %v11256_v50  ;;  %v11297_v48 = vld [vmem:[#allocation82_spill] sm:$0xff]  ;;  %v11298_v50 = vld [vmem:[#allocation83_spill] sm:$0xff] }
 0x396   :  { %1787 = vmatpush1.msra.mxu0 %v11257_v51  ;;  %1858 = vmatpush1.msra.mxu1 %v11258_v52  ;;  %v11299_v51 = vld [vmem:[#allocation84_spill] sm:$0xff]  ;;  %v11300_v52 = vld [vmem:[#allocation85_spill] sm:$0xff] }
 0x397   :  { %1788 = vmatprep.subr.mxu0 %v11259_v53  ;;  %1859 = vmatprep.subr.mxu1 %v11260_v55  ;;  %v11301_v53 = vld [vmem:[#allocation86_spill] sm:$0xff]  ;;  %v11302_v55 = vld [vmem:[#allocation87_spill] sm:$0xff] }
 0x398   :  { %1789 = vmatpush1.msra.mxu0 %v11261_v56  ;;  %1860 = vmatpush1.msra.mxu1 %v11262_v57  ;;  %v11303_v56 = vld [vmem:[#allocation88_spill] sm:$0xff]  ;;  %v11304_v57 = vld [vmem:[#allocation89_spill] sm:$0xff] }
 0x399   :  { %1790 = vmatprep.subr.mxu0 %v11263_v15  ;;  %1861 = vmatprep.subr.mxu1 %v11264_v11  ;;  %v11305_v15 = vld [vmem:[#allocation90_spill] sm:$0xff]  ;;  %v11306_v11 = vld [vmem:[#allocation91_spill] sm:$0xff] }
 0x39a   :  { %1791 = vmatpush1.msra.mxu0 %v11265_v9  ;;  %1862 = vmatpush1.msra.mxu1 %v11266_v28  ;;  %v11307_v9 = vld [vmem:[#allocation92_spill] sm:$0xff]  ;;  %v11308_v28 = vld [vmem:[#allocation93_spill] sm:$0xff] }
 0x39b   :  { %1792 = vmatprep.subr.mxu0 %v11267_v21  ;;  %1863 = vmatprep.subr.mxu1 %v11268_v20  ;;  %v11309_v21 = vld [vmem:[#allocation94_spill] sm:$0xff]  ;;  %v11310_v20 = vld [vmem:[#allocation95_spill] sm:$0xff] }
 0x39c   :  { %1793 = vmatpush1.msra.mxu0 %v11269_v36  ;;  %1864 = vmatpush1.msra.mxu1 %v11270_v29  ;;  %v11311_v36 = vld [vmem:[#allocation96_spill] sm:$0xff]  ;;  %v11312_v29 = vld [vmem:[#allocation97_spill] sm:$0xff] }
 0x39d   :  { %1794 = vmatprep.subr.mxu0 %v11271_v31  ;;  %1865 = vmatprep.subr.mxu1 %v11272_v32  ;;  %v11313_v31 = vld [vmem:[#allocation98_spill] sm:$0xff]  ;;  %v11314_v32 = vld [vmem:[#allocation99_spill] sm:$0xff] }
 0x39e   :  { %1795 = vmatpush1.msra.mxu0 %v11273_v27  ;;  %1866 = vmatpush1.msra.mxu1 %v11274_v54  ;;  %v11315_v27 = vld [vmem:[#allocation100_spill] sm:$0xff]  ;;  %v11316_v54 = vld [vmem:[#allocation101_spill] sm:$0xff] }
 0x39f   :  { %1796 = vmatprep.subr.mxu0 %v11275_v19  ;;  %1867 = vmatprep.subr.mxu1 %v11276_v25  ;;  %v11317_v19 = vld [vmem:[#allocation102_spill] sm:$0xff]  ;;  %v11318_v25 = vld [vmem:[#allocation103_spill] sm:$0xff] }
 0x3a0   :  { %1797 = vmatpush1.msra.mxu0 %v11277_v24  ;;  %1868 = vmatpush1.msra.mxu1 %v11278_v45  ;;  %v11319_v24 = vld [vmem:[#allocation104_spill] sm:$0xff]  ;;  %v11320_v45 = vld [vmem:[#allocation105_spill] sm:$0xff] }
 0x3a1   :  { %1798 = vmatprep.subr.mxu0 %v11279_v23  ;;  %1869 = vmatprep.subr.mxu1 %v11280_v63  ;;  %v11321_v23 = vld [vmem:[#allocation106_spill] sm:$0xff]  ;;  %v11322_v63 = vld [vmem:[#allocation107_spill] sm:$0xff] }
 0x3a2   :  { %1799 = vmatpush1.msra.mxu0 %v11281_v26  ;;  %1870 = vmatpush1.msra.mxu1 %v11282_v10  ;;  %v11323_v26 = vld [vmem:[#allocation108_spill] sm:$0xff]  ;;  %v11324_v10 = vld [vmem:[#allocation109_spill] sm:$0xff] }
 0x3a3   :  { %1800 = vmatprep.subr.mxu0 %v11283_v22  ;;  %1871 = vmatprep.subr.mxu1 %v11284_v30  ;;  %v11325_v22 = vld [vmem:[#allocation110_spill] sm:$0xff]  ;;  %v11326_v30 = vld [vmem:[#allocation111_spill] sm:$0xff] }
 0x3a4   :  { %1801 = vmatpush1.msra.mxu0 %v11285_v16  ;;  %1872 = vmatpush1.msra.mxu1 %v11286_v3  ;;  %v11327_v16 = vld [vmem:[#allocation112_spill] sm:$0xff]  ;;  %v11328_v3 = vld [vmem:[#allocation113_spill] sm:$0xff] }
 0x3a5   :  { %1802 = vmatprep.subr.mxu0 %v11287_v17  ;;  %1873 = vmatprep.subr.mxu1 %v11288_v18  ;;  %v11329_v17 = vld [vmem:[#allocation114_spill] sm:$0xff]  ;;  %v11330_v18 = vld [vmem:[#allocation115_spill] sm:$0xff] }
 0x3a6   :  { %1803 = vmatpush2.msra.mxu0 %v11289_v33  ;;  %1874 = vmatpush2.msra.mxu1 %v11290_v35  ;;  %v11331_v33 = vld [vmem:[#allocation116_spill] sm:$0xff]  ;;  %v11332_v35 = vld [vmem:[#allocation117_spill] sm:$0xff] }
 0x3a7   :  { %1804 = vmatprep.subr.mxu0 %v11291_v37  ;;  %1875 = vmatprep.subr.mxu1 %v11292_v38  ;;  %v11333_v37 = vld [vmem:[#allocation118_spill] sm:$0xff]  ;;  %v11334_v38 = vld [vmem:[#allocation119_spill] sm:$0xff] }
 0x3a8   :  { %1805 = vmatpush2.msra.mxu0 %v11293_v39  ;;  %1876 = vmatpush2.msra.mxu1 %v11294_v40  ;;  %v11335_v39 = vld [vmem:[#allocation120_spill] sm:$0xff]  ;;  %v11336_v40 = vld [vmem:[#allocation121_spill] sm:$0xff] }
 0x3a9   :  { %1806 = vmatprep.subr.mxu0 %v11295_v41  ;;  %1877 = vmatprep.subr.mxu1 %v11296_v46  ;;  %v11337_v41 = vld [vmem:[#allocation122_spill] sm:$0xff]  ;;  %v11338_v46 = vld [vmem:[#allocation123_spill] sm:$0xff] }
 0x3aa   :  { %1807 = vmatpush2.msra.mxu0 %v11297_v48  ;;  %1878 = vmatpush2.msra.mxu1 %v11298_v50  ;;  %v11339_v48 = vld [vmem:[#allocation124_spill] sm:$0xff]  ;;  %v11340_v50 = vld [vmem:[#allocation125_spill] sm:$0xff] }
 0x3ab   :  { %1808 = vmatprep.subr.mxu0 %v11299_v51  ;;  %1879 = vmatprep.subr.mxu1 %v11300_v52  ;;  %v11341_v51 = vld [vmem:[#allocation126_spill] sm:$0xff]  ;;  %v11342_v52 = vld [vmem:[#allocation127_spill] sm:$0xff] }
 0x3ac   :  { %1809 = vmatpush2.msra.mxu0 %v11301_v53  ;;  %1880 = vmatpush2.msra.mxu1 %v11302_v55  ;;  %v11343_v53 = vld [vmem:[#allocation128_spill] sm:$0xff]  ;;  %v11344_v55 = vld [vmem:[#allocation129_spill] sm:$0xff] }
 0x3ad   :  { %1810 = vmatprep.subr.mxu0 %v11303_v56  ;;  %1881 = vmatprep.subr.mxu1 %v11304_v57  ;;  %v11345_v56 = vld [vmem:[#allocation130_spill] sm:$0xff]  ;;  %v11346_v57 = vld [vmem:[#allocation131_spill] sm:$0xff] }
 0x3ae   :  { %1811 = vmatpush2.msra.mxu0 %v11305_v15  ;;  %1882 = vmatpush2.msra.mxu1 %v11306_v11  ;;  %v11347_v15 = vld [vmem:[#allocation132_spill] sm:$0xff]  ;;  %v11348_v11 = vld [vmem:[#allocation134_spill] sm:$0xff] }
 0x3af   :  { %1812 = vmatprep.subr.mxu0 %v11307_v9  ;;  %1883 = vmatprep.subr.mxu1 %v11308_v28  ;;  %v11349_v9 = vld [vmem:[#allocation135_spill] sm:$0xff]  ;;  %v11350_v28 = vld [vmem:[#allocation133_spill] sm:$0xff] }
 0x3b0   :  { %1813 = vmatpush2.msra.mxu0 %v11309_v21  ;;  %1884 = vmatpush2.msra.mxu1 %v11310_v20  ;;  %v7430_v21 = vld [vmem:[%s10242_s2 + $0x1e8] sm:$0xff]  ;;  %v7436_v20 = vld [vmem:[%s10242_s2 + $0x1f8] sm:$0xff] }
 0x3b1   :  { %1814 = vmatprep.subr.mxu0 %v11311_v36  ;;  %1885 = vmatprep.subr.mxu1 %v11312_v29  ;;  %v11351_v29 = vld [vmem:[#allocation3_spill] sm:$0xff] }
 0x3b2   :  { %1815 = vmatpush2.msra.mxu0 %v11313_v31  ;;  %1886 = vmatpush2.msra.mxu1 %v11314_v32 }
 0x3b3   :  { %1816 = vmatprep.subr.mxu0 %v11315_v27  ;;  %1887 = vmatprep.subr.mxu1 %v11316_v54  ;;  %v11352_v54 = vld [vmem:[#allocation4_spill] sm:$0xff] }
 0x3b4   :  { %1817 = vmatpush2.msra.mxu0 %v11317_v19  ;;  %1888 = vmatpush2.msra.mxu1 %v11318_v25 }
 0x3b5   :  { %1818 = vmatprep.subr.mxu0 %v11319_v24  ;;  %1889 = vmatprep.subr.mxu1 %v11320_v45 }
 0x3b6   :  { %1819 = vmatpush2.msra.mxu0 %v11321_v23  ;;  %1890 = vmatpush2.msra.mxu1 %v11322_v63  ;;  %v11353_v23 = vld [vmem:[#allocation5_spill] sm:$0xff] }
 0x3b7   :  { %1820 = vmatprep.subr.mxu0 %v11323_v26  ;;  %1891 = vmatprep.subr.mxu1 %v11324_v10 }
 0x3b8   :  { %1821 = vmatpush2.msra.mxu0 %v11325_v22  ;;  %1892 = vmatpush2.msra.mxu1 %v11326_v30  ;;  %v11354_v22 = vld [vmem:[#allocation6_spill] sm:$0xff] }
 0x3b9   :  { %1822 = vmatprep.subr.mxu0 %v11327_v16  ;;  %1893 = vmatprep.subr.mxu1 %v11328_v3 }
 0x3ba   :  { %1823 = vmatpush2.msra.mxu0 %v11329_v17  ;;  %1894 = vmatpush2.msra.mxu1 %v11330_v18 }
 0x3bb   :  { %1824 = vmatprep.subr.mxu0 %v11331_v33  ;;  %1895 = vmatprep.subr.mxu1 %v11332_v35 }
 0x3bc   :  { %1825 = vmatpush2.msra.mxu0 %v11333_v37  ;;  %1896 = vmatpush2.msra.mxu1 %v11334_v38  ;;  %v11355_v37 = vld [vmem:[#allocation140_spill] sm:$0xff] }
 0x3bd   :  { %1826 = vmatprep.subr.mxu0 %v11335_v39  ;;  %1897 = vmatprep.subr.mxu1 %v11336_v40 }
 0x3be   :  { %1827 = vmatpush2.msra.mxu0 %v11337_v41  ;;  %1898 = vmatpush2.msra.mxu1 %v11338_v46 }
 0x3bf   :  { %1828 = vmatprep.subr.mxu0 %v11339_v48  ;;  %1899 = vmatprep.subr.mxu1 %v11340_v50  ;;  %v11356_v48 = vld [vmem:[#allocation142_spill] sm:$0xff] }
 0x3c0   :  { %1829 = vmatpush2.msra.mxu0 %v11341_v51  ;;  %1900 = vmatpush2.msra.mxu1 %v11342_v52 }
 0x3c1   :  { %1830 = vmatprep.subr.mxu0 %v11343_v53  ;;  %1901 = vmatprep.subr.mxu1 %v11344_v55 }
 0x3c2   :  { %1831 = vmatpush2.msra.mxu0 %v11345_v56  ;;  %1902 = vmatpush2.msra.mxu1 %v11346_v57 }
 0x3c3   :  { %1832 = vmatprep.subr.mxu0 %v11347_v15  ;;  %1903 = vmatprep.subr.mxu1 %v11348_v11  ;;  %v11357_v11 = vld [vmem:[#allocation143_spill] sm:$0xff] }
 0x3c4   :  { %1833 = vmatpush2.msra.mxu0 %v11349_v9  ;;  %1904 = vmatpush2.msra.mxu1 %v11350_v28  ;;  %v11358_v28 = vld [vmem:[#allocation141_spill] sm:$0xff] }
 0x3c5   :  { %1943 = vmatprep.subr.mxu0 %v7430_v21  ;;  %2014 = vmatprep.subr.mxu1 %v7436_v20 }
 0x423   :  { %v1493_v36 = vpop.f32.mrf.mxu0  ;;  %v1564_v25 = vpop.f32.mrf.mxu1 }
 0x424   :  { %v1494_v31 = vadd.f32 %v1493_v36, %v11351_v29  ;;  %v1565_v30 = vadd.f32 %v1564_v25, %v11354_v22 }
 0x425   :  { %v1495_v32 = vpop.f32.mrf.mxu0  ;;  %v1566_v45 = vpop.f32.mrf.mxu1 }
 0x426   :  { %v3444_v27 = vmul.f32 -1.442695, %v1494_v31  ;;  %v1496_v19 = vadd.f32 %v1495_v32, %v11352_v54  ;;  %v1567_v63 = vadd.f32 %v1566_v45, %v11353_v23 }
 0x428   :  { %3612 = vpow2.f32 %v3444_v27  ;;  %v3445_v24 = vmul.f32 -1.442695, %v1496_v19  ;;  %v3446_v26 = vmul.f32 -1.442695, %v1567_v63 }
 0x42a   :  { %3614 = vpow2.f32 %v3445_v24 }
 0x42b   :  { %3616 = vpow2.f32 %v3446_v26 }
 0x435   :  { %v3613_v10 = vpop.eup %3612 }
 0x436   :  { %v1572_v16 = vadd.f32 1.0, %v3613_v10 }
 0x437   :  { %v3615_v3 = vpop.eup %3614 }
 0x438   :  { %3618 = vrcp.f32 %v1572_v16  ;;  %v1578_v17 = vadd.f32 1.0, %v3615_v3  ;;  %v3617_v18 = vpop.eup %3616 }
 0x439   :  { %3620 = vtanh.f32 %v1565_v30  ;;  %v1585_v53 = vadd.f32 1.0, %v3617_v18 }
 0x43a   :  { %3622 = vrcp.f32 %v1578_v17 }
 0x444   :  { %v1666_v33 = vpop.f32.mrf.mxu0  ;;  %v1737_v55 = vpop.f32.mrf.mxu1 }
 0x445   :  { %v3619_v35 = vpop.eup %3618  ;;  %v1742_v38 = vadd.f32 %v1666_v33, %v11355_v37  ;;  %v1744_v36 = vadd.f32 %v1737_v55, %v11358_v28  ;;  %v7656_v55 = vld [vmem:[%s10242_s2 + $0x70] sm:$0xff]  ;;  %v7686_v28 = vld [vmem:[%s10242_s2 + $0x28] sm:$0xff] }
 0x446   :  { %v3621_v39 = vpop.eup %3620  ;;  %v1668_v40 = vpop.f32.mrf.mxu0 }
 0x447   :  { %v3623_v41 = vpop.eup %3622  ;;  %v3447_v46 = vmul.f32 -1.442695, %v1742_v38  ;;  %v1743_v50 = vadd.f32 %v1668_v40, %v11356_v48  ;;  %v1589_v51 = vmul.f32 %v3621_v39, %v3619_v35  ;;  %v1739_v15 = vpop.f32.mrf.mxu1  ;;  %v7596_v38 = vld [vmem:[%s10242_s2 + $0xb8] sm:$0xff]  ;;  %v7602_v39 = vld [vmem:[%s10242_s2 + $0xa0] sm:$0xff]  ;;  %v7608_v40 = vld [vmem:[%s10242_s2 + $0xb0] sm:$0xff] }
 0x448   :  { %v1588_v52 = vmul.f32 %v3623_v41, %v7120_v42  ;;  %v1745_v9 = vadd.f32 %v1739_v15, %v11357_v11  ;;  %v7614_v41 = vld [vmem:[%s10242_s2 + $0x88] sm:$0xff]  ;;  %v7626_v48 = vld [vmem:[%s10242_s2 + $0x80] sm:$0xff]  ;;  %v7668_v15 = vld [vmem:[%s10242_s2 + $0x58] sm:$0xff] }
 0x449   :  { %3624 = vpow2.f32 %v3447_v46  ;;  %v3448_v56 = vmul.f32 -1.442695, %v1743_v50  ;;  %v7620_v46 = vld [vmem:[%s10242_s2 + $0x98] sm:$0xff]  ;;  %v7632_v50 = vld [vmem:[%s10242_s2 + $0x90] sm:$0xff]  ;;  %v7674_v11 = vld [vmem:[%s10242_s2 + $0x40] sm:$0xff] }
 0x44a   :  { %v7446_v57 = vadd.f32 %v1589_v51, %v1588_v52  ;;  %v3449_v31 = vmul.f32 -1.442695, %v1745_v9  ;;  %v7638_v51 = vld [vmem:[%s10242_s2 + $0x68] sm:$0xff]  ;;  %v7644_v52 = vld [vmem:[%s10242_s2 + $0x78] sm:$0xff]  ;;  %v7680_v9 = vld [vmem:[%s10242_s2 + $0x50] sm:$0xff] }
 0x44b   :  { %3626 = vpow2.f32 %v3448_v56  ;;  %v7662_v56 = vld [vmem:[%s10242_s2 + $0x48] sm:$0xff] }
 0x44c   :  { %3628 = vrcp.f32 %v1585_v53  ;;  %v7650_v53 = vld [vmem:[%s10242_s2 + $0x60] sm:$0xff] }
 0x44d   :  { %3630 = vtanh.f32 %v7446_v57 }
 0x44e   :  { %3632 = vtanh.f32 %v1744_v36  ;;  %v7692_v36 = vld [vmem:[%s10242_s2 + $0x38] sm:$0xff] }
 0x44f   :  { %3634 = vpow2.f32 %v3449_v31  ;;  %v7698_v31 = vld [vmem:[%s10242_s2 + $0x20] sm:$0xff] }
 0x456   :  { %v3625_v32 = vpop.eup %3624 }
 0x457   :  { %v1749_v27 = vadd.f32 1.0, %v3625_v32  ;;  %v7704_v32 = vld [vmem:[%s10242_s2 + $0x30] sm:$0xff] }
 0x458   :  { %v3627_v42 = vpop.eup %3626 }
 0x459   :  { %v3629_v19 = vpop.eup %3628  ;;  %3636 = vrcp.f32 %v1749_v27  ;;  %v1755_v25 = vadd.f32 1.0, %v3627_v42  ;;  %v7710_v27 = vld [vmem:[%s10242_s2 + $0x8] sm:$0xff]  ;;  %v7716_v42 = vld [vmem:[%s10242_s2 + $0x18] sm:$0xff] }
 0x45a   :  { %v3631_v24 = vpop.eup %3630 }
 0x45b   :  { %3638 = vrcp.f32 %v1755_v25  ;;  %v1592_v45 = vmul.f32 %v3631_v24, %v3629_v19  ;;  %v3633_v63 = vpop.eup %3632  ;;  %v7722_v19 = vld [vmem:[%s10242_s2] sm:$0xff]  ;;  %v7729_v25 = vld [vmem:[%s10242_s2 + $0x10] sm:$0xff]  ;;  %v7738_v24 = vld [vmem:[%s10243_s4 + $0x1e8] sm:$0xff] }
 0x45c   :  { %v3635_v26 = vpop.eup %3634  ;;  %11360 = vst [vmem:[#allocation138_spill] sm:$0xff] %v7729_v25  ;;  %11361 = vst [vmem:[#allocation139_spill] sm:$0xff] %v7738_v24 }
 0x45d   :  { %1834 = vmatprep.mubr.f32.mxu0 %v1592_v45  ;;  %1905 = vmatprep.mubr.f32.mxu1 %v1592_v45  ;;  %v1762_v3 = vadd.f32 1.0, %v3635_v26  ;;  %v7744_v45 = vld [vmem:[%s10243_s4 + $0x1f8] sm:$0xff]  ;;  %v7756_v26 = vld [vmem:[%s10243_s4 + $0x1f0] sm:$0xff] }
 0x45e   :  { %11362 = vst [vmem:[#allocation137_spill] sm:$0xff] %v7744_v45  ;;  %11364 = vst [vmem:[#allocation8_spill] sm:$0xff] %v7756_v26 }
 0x45f   :  { %3640 = vrcp.f32 %v1762_v3  ;;  %v7780_v3 = vld [vmem:[%s10243_s4 + $0x1d0] sm:$0xff] }
 0x460   :  { %11368 = vst [vmem:[#allocation12_spill] sm:$0xff] %v7780_v3 }
 0x466   :  { %v3637_v10 = vpop.eup %3636 }
 0x467   :  { %v1766_v30 = vmul.f32 %v3637_v10, %v3633_v63  ;;  %v7750_v63 = vld [vmem:[%s10243_s4 + $0x1e0] sm:$0xff]  ;;  %v7762_v10 = vld [vmem:[%s10243_s4 + $0x1c8] sm:$0xff] }
 0x468   :  { %v3639_v16 = vpop.eup %3638  ;;  %11363 = vst [vmem:[#allocation7_spill] sm:$0xff] %v7750_v63  ;;  %11365 = vst [vmem:[#allocation9_spill] sm:$0xff] %v7762_v10 }
 0x469   :  { %v1765_v17 = vmul.f32 %v3639_v16, %v7126_v43  ;;  %v11359_v43 = vld [vmem:[#allocation136_spill] sm:$0xff]  ;;  %v7774_v16 = vld [vmem:[%s10243_s4 + $0x1c0] sm:$0xff] }
 0x46a   :  { %11367 = vst [vmem:[#allocation11_spill] sm:$0xff] %v7774_v16 }
 0x46b   :  { %v7452_v18 = vadd.f32 %v1766_v30, %v1765_v17  ;;  %v7768_v30 = vld [vmem:[%s10243_s4 + $0x1d8] sm:$0xff]  ;;  %v7786_v17 = vld [vmem:[%s10243_s4 + $0x1a8] sm:$0xff] }
 0x46c   :  { %v3641_v33 = vpop.eup %3640  ;;  %11366 = vst [vmem:[#allocation10_spill] sm:$0xff] %v7768_v30  ;;  %11369 = vst [vmem:[#allocation13_spill] sm:$0xff] %v7786_v17 }
 0x46d   :  { %3642 = vtanh.f32 %v7452_v18 }
 0x47a   :  { %v3643_v35 = vpop.eup %3642 }
 0x47b   :  { %v7455_v37 = vmul.f32 %v3643_v35, %v3641_v33  ;;  %v7792_v33 = vld [vmem:[%s10243_s4 + $0x1b8] sm:$0xff]  ;;  %v7798_v35 = vld [vmem:[%s10243_s4 + $0x1a0] sm:$0xff] }
 0x47c   :  { %11370 = vst [vmem:[#allocation14_spill] sm:$0xff] %v7792_v33  ;;  %11371 = vst [vmem:[#allocation15_spill] sm:$0xff] %v7798_v35 }
 0x47d   :  { %1835 = vmatmul.mubr.f32.vlgmr.msra.gmra.mxu0 %v7455_v37  ;;  %1906 = vmatmul.mubr.f32.vlgmr.msra.gmra.mxu1 %v7455_v37 }
 0x47e   :  { %1944 = vmatpush1.msra.mxu0 %v7136_v7  ;;  %2015 = vmatpush1.msra.mxu1 %v7142_v12  ;;  %v7482_v7 = vld [vmem:[%s10242_s2 + $0x140] sm:$0xff]  ;;  %v7488_v12 = vld [vmem:[%s10242_s2 + $0x150] sm:$0xff] }
 0x47f   :  { %1945 = vmatprep.subr.mxu0 %v7148_v5  ;;  %2016 = vmatprep.subr.mxu1 %v7154_v47  ;;  %v7494_v5 = vld [vmem:[%s10242_s2 + $0x128] sm:$0xff]  ;;  %v7500_v47 = vld [vmem:[%s10242_s2 + $0x138] sm:$0xff] }
 0x480   :  { %1946 = vmatpush1.msra.mxu0 %v7160_v6  ;;  %2017 = vmatpush1.msra.mxu1 %v7166_v44  ;;  %v7506_v6 = vld [vmem:[%s10242_s2 + $0x120] sm:$0xff]  ;;  %v7512_v44 = vld [vmem:[%s10242_s2 + $0x130] sm:$0xff] }
 0x481   :  { %1947 = vmatprep.subr.mxu0 %v7172_v60  ;;  %2018 = vmatprep.subr.mxu1 %v7178_v59  ;;  %v7518_v60 = vld [vmem:[%s10242_s2 + $0x108] sm:$0xff]  ;;  %v7524_v59 = vld [vmem:[%s10242_s2 + $0x118] sm:$0xff] }
 0x482   :  { %1948 = vmatpush1.msra.mxu0 %v7184_v58  ;;  %2019 = vmatpush1.msra.mxu1 %v7190_v8  ;;  %v7530_v58 = vld [vmem:[%s10242_s2 + $0x100] sm:$0xff]  ;;  %v7536_v8 = vld [vmem:[%s10242_s2 + $0x110] sm:$0xff] }
 0x483   :  { %1949 = vmatprep.subr.mxu0 %v7196_v4  ;;  %2020 = vmatprep.subr.mxu1 %v7202_v2  ;;  %v7542_v4 = vld [vmem:[%s10242_s2 + $0xe8] sm:$0xff]  ;;  %v7548_v2 = vld [vmem:[%s10242_s2 + $0xf8] sm:$0xff] }
 0x484   :  { %1950 = vmatpush1.msra.mxu0 %v7208_v1  ;;  %2021 = vmatpush1.msra.mxu1 %v7214_v13  ;;  %v7554_v1 = vld [vmem:[%s10242_s2 + $0xe0] sm:$0xff]  ;;  %v7560_v13 = vld [vmem:[%s10242_s2 + $0xf0] sm:$0xff] }
 0x485   :  { %1951 = vmatprep.subr.mxu0 %v7220_v14  ;;  %2022 = vmatprep.subr.mxu1 %v11359_v43  ;;  %v7566_v14 = vld [vmem:[%s10242_s2 + $0xc8] sm:$0xff] }
 0x486   :  { %1952 = vmatpush1.msra.mxu0 %v7232_v62  ;;  %2023 = vmatpush1.msra.mxu1 %v7238_v0  ;;  %v7578_v62 = vld [vmem:[%s10242_s2 + $0xc0] sm:$0xff]  ;;  %v7584_v0 = vld [vmem:[%s10242_s2 + $0xd0] sm:$0xff]  ;;  %v7810_v43 = vld [vmem:[%s10243_s4 + $0x188] sm:$0xff] }
 0x487   :  { %1953 = vmatprep.subr.mxu0 %v7244_v49  ;;  %2024 = vmatprep.subr.mxu1 %v7250_v61  ;;  %v7572_v61 = vld [vmem:[%s10242_s2 + $0xd8] sm:$0xff]  ;;  %v7590_v49 = vld [vmem:[%s10242_s2 + $0xa8] sm:$0xff]  ;;  %11373 = vst [vmem:[#allocation17_spill] sm:$0xff] %v7810_v43 }
 0x488   :  { %1954 = vmatpush1.msra.mxu0 %v7482_v7  ;;  %2025 = vmatpush1.msra.mxu1 %v7488_v12 }
 0x489   :  { %1955 = vmatprep.subr.mxu0 %v7494_v5  ;;  %2026 = vmatprep.subr.mxu1 %v7500_v47 }
 0x48a   :  { %1956 = vmatpush1.msra.mxu0 %v7506_v6  ;;  %2027 = vmatpush1.msra.mxu1 %v7512_v44 }
 0x48b   :  { %1957 = vmatprep.subr.mxu0 %v7518_v60  ;;  %2028 = vmatprep.subr.mxu1 %v7524_v59 }
 0x48c   :  { %1958 = vmatpush1.msra.mxu0 %v7530_v58  ;;  %2029 = vmatpush1.msra.mxu1 %v7536_v8 }
 0x48d   :  { %1959 = vmatprep.subr.mxu0 %v7542_v4  ;;  %2030 = vmatprep.subr.mxu1 %v7548_v2 }
 0x48e   :  { %1960 = vmatpush1.msra.mxu0 %v7554_v1  ;;  %2031 = vmatpush1.msra.mxu1 %v7560_v13 }
 0x48f   :  { %1961 = vmatprep.subr.mxu0 %v7566_v14  ;;  %2032 = vmatprep.subr.mxu1 %v7572_v61 }
 0x490   :  { %1962 = vmatpush1.msra.mxu0 %v7578_v62  ;;  %2033 = vmatpush1.msra.mxu1 %v7584_v0 }
 0x491   :  { %1963 = vmatprep.subr.mxu0 %v7590_v49  ;;  %2034 = vmatprep.subr.mxu1 %v7596_v38 }
 0x492   :  { %1964 = vmatpush1.msra.mxu0 %v7602_v39  ;;  %2035 = vmatpush1.msra.mxu1 %v7608_v40 }
 0x493   :  { %1965 = vmatprep.subr.mxu0 %v7614_v41  ;;  %2036 = vmatprep.subr.mxu1 %v7620_v46 }
 0x494   :  { %1966 = vmatpush1.msra.mxu0 %v7626_v48  ;;  %2037 = vmatpush1.msra.mxu1 %v7632_v50 }
 0x495   :  { %1967 = vmatprep.subr.mxu0 %v7638_v51  ;;  %2038 = vmatprep.subr.mxu1 %v7644_v52 }
 0x496   :  { %1968 = vmatpush1.msra.mxu0 %v7650_v53  ;;  %2039 = vmatpush1.msra.mxu1 %v7656_v55 }
 0x497   :  { %1969 = vmatprep.subr.mxu0 %v7662_v56  ;;  %2040 = vmatprep.subr.mxu1 %v7668_v15 }
 0x498   :  { %1970 = vmatpush1.msra.mxu0 %v7674_v11  ;;  %2041 = vmatpush1.msra.mxu1 %v7680_v9 }
 0x499   :  { %1971 = vmatprep.subr.mxu0 %v7686_v28  ;;  %2042 = vmatprep.subr.mxu1 %v7692_v36 }
 0x49a   :  { %1972 = vmatpush1.msra.mxu0 %v7698_v31  ;;  %2043 = vmatpush1.msra.mxu1 %v7704_v32 }
 0x49b   :  { %1973 = vmatprep.subr.mxu0 %v7710_v27  ;;  %2044 = vmatprep.subr.mxu1 %v7716_v42 }
 0x49c   :  { %1974 = vmatpush1.msra.mxu0 %v7722_v19  ;;  %2007 = vmatprep.mubr.f32.mxu0 %v10946_v34 }
 0x49d   :  { %2045 = vmatpush1.msra.mxu1 %v7729_v25  ;;  %2078 = vmatprep.mubr.f32.mxu1 %v10946_v34 }
 0x49e   :  { %2008 = vmatmul.mubr.f32.vlgmr.msra.gmra.mxu0 %v7455_v37  ;;  %2079 = vmatmul.mubr.f32.vlgmr.msra.gmra.mxu1 %v7455_v37  ;;  %v7804_v37 = vld [vmem:[%s10243_s4 + $0x1b0] sm:$0xff] }
 0x49f   :  { %2113 = vmatprep.subr.mxu0 %v7738_v24  ;;  %2184 = vmatprep.subr.mxu1 %v7744_v45  ;;  %11372 = vst [vmem:[#allocation16_spill] sm:$0xff] %v7804_v37 }
 0x4a0   :  { %2114 = vmatpush1.msra.mxu0 %v7750_v63  ;;  %2185 = vmatpush1.msra.mxu1 %v7756_v26 }
 0x4a1   :  { %2115 = vmatprep.subr.mxu0 %v7762_v10  ;;  %2186 = vmatprep.subr.mxu1 %v7768_v30 }
 0x4a2   :  { %2116 = vmatpush1.msra.mxu0 %v7774_v16  ;;  %2187 = vmatpush1.msra.mxu1 %v7780_v3 }
 0x4a3   :  { %2117 = vmatprep.subr.mxu0 %v7786_v17  ;;  %2188 = vmatprep.subr.mxu1 %v7792_v33  ;;  %v7816_v33 = vld [vmem:[%s10243_s4 + $0x198] sm:$0xff] }
 0x4a4   :  { %2118 = vmatpush1.msra.mxu0 %v7798_v35  ;;  %2189 = vmatpush1.msra.mxu1 %v7804_v37  ;;  %11374 = vst [vmem:[#allocation18_spill] sm:$0xff] %v7816_v33  ;;  %v7822_v35 = vld [vmem:[%s10243_s4 + $0x180] sm:$0xff]  ;;  %v7828_v37 = vld [vmem:[%s10243_s4 + $0x190] sm:$0xff] }
 0x4a5   :  { %2119 = vmatprep.subr.mxu0 %v7810_v43  ;;  %2190 = vmatprep.subr.mxu1 %v7816_v33  ;;  %11375 = vst [vmem:[#allocation19_spill] sm:$0xff] %v7822_v35  ;;  %11376 = vst [vmem:[#allocation20_spill] sm:$0xff] %v7828_v37  ;;  %v7834_v43 = vld [vmem:[%s10243_s4 + $0x168] sm:$0xff]  ;;  %v7840_v33 = vld [vmem:[%s10243_s4 + $0x178] sm:$0xff] }
 0x4a6   :  { %2120 = vmatpush1.msra.mxu0 %v7822_v35  ;;  %2191 = vmatpush1.msra.mxu1 %v7828_v37  ;;  %11377 = vst [vmem:[#allocation21_spill] sm:$0xff] %v7834_v43  ;;  %11378 = vst [vmem:[#allocation22_spill] sm:$0xff] %v7840_v33  ;;  %v7846_v35 = vld [vmem:[%s10243_s4 + $0x160] sm:$0xff]  ;;  %v7852_v37 = vld [vmem:[%s10243_s4 + $0x170] sm:$0xff] }
 0x4a7   :  { %2121 = vmatprep.subr.mxu0 %v7834_v43  ;;  %2192 = vmatprep.subr.mxu1 %v7840_v33  ;;  %11379 = vst [vmem:[#allocation23_spill] sm:$0xff] %v7846_v35  ;;  %11380 = vst [vmem:[#allocation24_spill] sm:$0xff] %v7852_v37  ;;  %v7858_v43 = vld [vmem:[%s10243_s4 + $0x148] sm:$0xff]  ;;  %v7864_v33 = vld [vmem:[%s10243_s4 + $0x158] sm:$0xff] }
 0x4a8   :  { %2122 = vmatpush1.msra.mxu0 %v7846_v35  ;;  %2193 = vmatpush1.msra.mxu1 %v7852_v37  ;;  %11381 = vst [vmem:[#allocation25_spill] sm:$0xff] %v7858_v43  ;;  %11382 = vst [vmem:[#allocation26_spill] sm:$0xff] %v7864_v33  ;;  %v7870_v35 = vld [vmem:[%s10243_s4 + $0x140] sm:$0xff]  ;;  %v7876_v37 = vld [vmem:[%s10243_s4 + $0x150] sm:$0xff] }
 0x4a9   :  { %2123 = vmatprep.subr.mxu0 %v7858_v43  ;;  %2194 = vmatprep.subr.mxu1 %v7864_v33  ;;  %11383 = vst [vmem:[#allocation27_spill] sm:$0xff] %v7870_v35  ;;  %11384 = vst [vmem:[#allocation28_spill] sm:$0xff] %v7876_v37  ;;  %v7882_v43 = vld [vmem:[%s10243_s4 + $0x128] sm:$0xff]  ;;  %v7888_v33 = vld [vmem:[%s10243_s4 + $0x138] sm:$0xff] }
 0x4aa   :  { %2124 = vmatpush1.msra.mxu0 %v7870_v35  ;;  %2195 = vmatpush1.msra.mxu1 %v7876_v37  ;;  %11385 = vst [vmem:[#allocation29_spill] sm:$0xff] %v7882_v43  ;;  %11386 = vst [vmem:[#allocation30_spill] sm:$0xff] %v7888_v33  ;;  %v7894_v35 = vld [vmem:[%s10243_s4 + $0x120] sm:$0xff]  ;;  %v7900_v37 = vld [vmem:[%s10243_s4 + $0x130] sm:$0xff] }
 0x4ab   :  { %2125 = vmatprep.subr.mxu0 %v7882_v43  ;;  %2196 = vmatprep.subr.mxu1 %v7888_v33  ;;  %11387 = vst [vmem:[#allocation31_spill] sm:$0xff] %v7894_v35  ;;  %11388 = vst [vmem:[#allocation32_spill] sm:$0xff] %v7900_v37  ;;  %v7906_v43 = vld [vmem:[%s10243_s4 + $0x108] sm:$0xff]  ;;  %v7912_v33 = vld [vmem:[%s10243_s4 + $0x118] sm:$0xff] }
 0x4ac   :  { %2126 = vmatpush1.msra.mxu0 %v7894_v35  ;;  %2197 = vmatpush1.msra.mxu1 %v7900_v37  ;;  %11389 = vst [vmem:[#allocation33_spill] sm:$0xff] %v7906_v43  ;;  %11390 = vst [vmem:[#allocation34_spill] sm:$0xff] %v7912_v33  ;;  %v7918_v35 = vld [vmem:[%s10243_s4 + $0x100] sm:$0xff]  ;;  %v7924_v37 = vld [vmem:[%s10243_s4 + $0x110] sm:$0xff] }
 0x4ad   :  { %2127 = vmatprep.subr.mxu0 %v7906_v43  ;;  %2198 = vmatprep.subr.mxu1 %v7912_v33  ;;  %11391 = vst [vmem:[#allocation35_spill] sm:$0xff] %v7918_v35  ;;  %11392 = vst [vmem:[#allocation36_spill] sm:$0xff] %v7924_v37  ;;  %v7930_v43 = vld [vmem:[%s10243_s4 + $0xe8] sm:$0xff]  ;;  %v7936_v33 = vld [vmem:[%s10243_s4 + $0xf8] sm:$0xff] }
 0x4ae   :  { %2128 = vmatpush1.msra.mxu0 %v7918_v35  ;;  %2199 = vmatpush1.msra.mxu1 %v7924_v37  ;;  %11393 = vst [vmem:[#allocation37_spill] sm:$0xff] %v7930_v43  ;;  %11394 = vst [vmem:[#allocation38_spill] sm:$0xff] %v7936_v33  ;;  %v7942_v35 = vld [vmem:[%s10243_s4 + $0xe0] sm:$0xff]  ;;  %v7948_v37 = vld [vmem:[%s10243_s4 + $0xf0] sm:$0xff] }
 0x4af   :  { %2129 = vmatprep.subr.mxu0 %v7930_v43  ;;  %2200 = vmatprep.subr.mxu1 %v7936_v33  ;;  %11395 = vst [vmem:[#allocation39_spill] sm:$0xff] %v7942_v35  ;;  %11396 = vst [vmem:[#allocation40_spill] sm:$0xff] %v7948_v37  ;;  %v7954_v43 = vld [vmem:[%s10243_s4 + $0xc8] sm:$0xff]  ;;  %v7960_v33 = vld [vmem:[%s10243_s4 + $0xd8] sm:$0xff] }
 0x4b0   :  { %2130 = vmatpush1.msra.mxu0 %v7942_v35  ;;  %2201 = vmatpush1.msra.mxu1 %v7948_v37  ;;  %11397 = vst [vmem:[#allocation41_spill] sm:$0xff] %v7954_v43  ;;  %11398 = vst [vmem:[#allocation42_spill] sm:$0xff] %v7960_v33  ;;  %v7966_v35 = vld [vmem:[%s10243_s4 + $0xc0] sm:$0xff]  ;;  %v7972_v37 = vld [vmem:[%s10243_s4 + $0xd0] sm:$0xff] }
 0x4b1   :  { %2131 = vmatprep.subr.mxu0 %v7954_v43  ;;  %2202 = vmatprep.subr.mxu1 %v7960_v33  ;;  %11399 = vst [vmem:[#allocation43_spill] sm:$0xff] %v7966_v35  ;;  %11400 = vst [vmem:[#allocation44_spill] sm:$0xff] %v7972_v37  ;;  %v7978_v43 = vld [vmem:[%s10243_s4 + $0xa8] sm:$0xff]  ;;  %v7984_v33 = vld [vmem:[%s10243_s4 + $0xb8] sm:$0xff] }
 0x4b2   :  { %2132 = vmatpush1.msra.mxu0 %v7966_v35  ;;  %2203 = vmatpush1.msra.mxu1 %v7972_v37  ;;  %11401 = vst [vmem:[#allocation45_spill] sm:$0xff] %v7978_v43  ;;  %11402 = vst [vmem:[#allocation46_spill] sm:$0xff] %v7984_v33  ;;  %v7990_v35 = vld [vmem:[%s10243_s4 + $0xa0] sm:$0xff]  ;;  %v7996_v37 = vld [vmem:[%s10243_s4 + $0xb0] sm:$0xff] }
 0x4b3   :  { %2133 = vmatprep.subr.mxu0 %v7978_v43  ;;  %2204 = vmatprep.subr.mxu1 %v7984_v33  ;;  %11403 = vst [vmem:[#allocation47_spill] sm:$0xff] %v7990_v35  ;;  %11404 = vst [vmem:[#allocation48_spill] sm:$0xff] %v7996_v37  ;;  %v8002_v43 = vld [vmem:[%s10243_s4 + $0x88] sm:$0xff]  ;;  %v8008_v33 = vld [vmem:[%s10243_s4 + $0x98] sm:$0xff] }
 0x4b4   :  { %2134 = vmatpush1.msra.mxu0 %v7990_v35  ;;  %2205 = vmatpush1.msra.mxu1 %v7996_v37  ;;  %11405 = vst [vmem:[#allocation49_spill] sm:$0xff] %v8002_v43  ;;  %11406 = vst [vmem:[#allocation50_spill] sm:$0xff] %v8008_v33  ;;  %v8014_v35 = vld [vmem:[%s10243_s4 + $0x80] sm:$0xff]  ;;  %v8020_v37 = vld [vmem:[%s10243_s4 + $0x90] sm:$0xff] }
 0x4b5   :  { %2135 = vmatprep.subr.mxu0 %v8002_v43  ;;  %2206 = vmatprep.subr.mxu1 %v8008_v33  ;;  %11407 = vst [vmem:[#allocation51_spill] sm:$0xff] %v8014_v35  ;;  %11408 = vst [vmem:[#allocation52_spill] sm:$0xff] %v8020_v37  ;;  %v8026_v43 = vld [vmem:[%s10243_s4 + $0x68] sm:$0xff]  ;;  %v8032_v33 = vld [vmem:[%s10243_s4 + $0x78] sm:$0xff] }
 0x4b6   :  { %2136 = vmatpush1.msra.mxu0 %v8014_v35  ;;  %2207 = vmatpush1.msra.mxu1 %v8020_v37  ;;  %11409 = vst [vmem:[#allocation53_spill] sm:$0xff] %v8026_v43  ;;  %11410 = vst [vmem:[#allocation54_spill] sm:$0xff] %v8032_v33  ;;  %v8038_v35 = vld [vmem:[%s10243_s4 + $0x60] sm:$0xff]  ;;  %v8044_v37 = vld [vmem:[%s10243_s4 + $0x70] sm:$0xff] }
 0x4b7   :  { %2137 = vmatprep.subr.mxu0 %v8026_v43  ;;  %2208 = vmatprep.subr.mxu1 %v8032_v33  ;;  %11411 = vst [vmem:[#allocation55_spill] sm:$0xff] %v8038_v35  ;;  %11412 = vst [vmem:[#allocation56_spill] sm:$0xff] %v8044_v37  ;;  %v8050_v43 = vld [vmem:[%s10243_s4 + $0x48] sm:$0xff]  ;;  %v8056_v33 = vld [vmem:[%s10243_s4 + $0x58] sm:$0xff] }
 0x4b8   :  { %2138 = vmatpush1.msra.mxu0 %v8038_v35  ;;  %2209 = vmatpush1.msra.mxu1 %v8044_v37  ;;  %11413 = vst [vmem:[#allocation57_spill] sm:$0xff] %v8050_v43  ;;  %11414 = vst [vmem:[#allocation58_spill] sm:$0xff] %v8056_v33  ;;  %v8062_v35 = vld [vmem:[%s10243_s4 + $0x40] sm:$0xff]  ;;  %v8068_v37 = vld [vmem:[%s10243_s4 + $0x50] sm:$0xff] }
 0x4b9   :  { %2139 = vmatprep.subr.mxu0 %v8050_v43  ;;  %2210 = vmatprep.subr.mxu1 %v8056_v33  ;;  %11415 = vst [vmem:[#allocation59_spill] sm:$0xff] %v8062_v35  ;;  %11416 = vst [vmem:[#allocation60_spill] sm:$0xff] %v8068_v37  ;;  %v8074_v43 = vld [vmem:[%s10243_s4 + $0x28] sm:$0xff]  ;;  %v8080_v33 = vld [vmem:[%s10243_s4 + $0x38] sm:$0xff] }
 0x4ba   :  { %2140 = vmatpush1.msra.mxu0 %v8062_v35  ;;  %2211 = vmatpush1.msra.mxu1 %v8068_v37  ;;  %11417 = vst [vmem:[#allocation61_spill] sm:$0xff] %v8074_v43  ;;  %11418 = vst [vmem:[#allocation62_spill] sm:$0xff] %v8080_v33  ;;  %v8086_v35 = vld [vmem:[%s10243_s4 + $0x20] sm:$0xff]  ;;  %v8092_v37 = vld [vmem:[%s10243_s4 + $0x30] sm:$0xff] }
 0x4bb   :  { %2141 = vmatprep.subr.mxu0 %v8074_v43  ;;  %2212 = vmatprep.subr.mxu1 %v8080_v33  ;;  %11419 = vst [vmem:[#allocation63_spill] sm:$0xff] %v8086_v35  ;;  %11420 = vst [vmem:[#allocation64_spill] sm:$0xff] %v8092_v37  ;;  %v8098_v43 = vld [vmem:[%s10243_s4 + $0x8] sm:$0xff]  ;;  %v8104_v33 = vld [vmem:[%s10243_s4 + $0x18] sm:$0xff] }
 0x4bc   :  { %2142 = vmatpush1.msra.mxu0 %v8086_v35  ;;  %2213 = vmatpush1.msra.mxu1 %v8092_v37  ;;  %11421 = vst [vmem:[#allocation65_spill] sm:$0xff] %v8098_v43  ;;  %11422 = vst [vmem:[#allocation66_spill] sm:$0xff] %v8104_v33  ;;  %v8110_v35 = vld [vmem:[%s10243_s4] sm:$0xff]  ;;  %v8116_v37 = vld [vmem:[%s10243_s4 + $0x10] sm:$0xff] }
 0x4bd   :  { %2143 = vmatprep.subr.mxu0 %v8098_v43  ;;  %2214 = vmatprep.subr.mxu1 %v8104_v33  ;;  %11423 = vst [vmem:[#allocation67_spill] sm:$0xff] %v8110_v35  ;;  %11424 = vst [vmem:[#allocation68_spill] sm:$0xff] %v8116_v37  ;;  %v8122_v43 = vld [vmem:[%s10243_s4 + $0x3e8] sm:$0xff]  ;;  %v8128_v33 = vld [vmem:[%s10243_s4 + $0x3f8] sm:$0xff] }
 0x4be   :  { %2144 = vmatpush1.msra.mxu0 %v8110_v35  ;;  %2215 = vmatpush1.msra.mxu1 %v8116_v37  ;;  %11425 = vst [vmem:[#allocation69_spill] sm:$0xff] %v8122_v43  ;;  %11426 = vst [vmem:[#allocation70_spill] sm:$0xff] %v8128_v33  ;;  %v8134_v35 = vld [vmem:[%s10243_s4 + $0x3e0] sm:$0xff]  ;;  %v8140_v37 = vld [vmem:[%s10243_s4 + $0x3f0] sm:$0xff] }
 0x4bf   :  { %2145 = vmatprep.subr.mxu0 %v8122_v43  ;;  %2216 = vmatprep.subr.mxu1 %v8128_v33  ;;  %11427 = vst [vmem:[#allocation71_spill] sm:$0xff] %v8134_v35  ;;  %11428 = vst [vmem:[#allocation72_spill] sm:$0xff] %v8140_v37  ;;  %v8146_v43 = vld [vmem:[%s10243_s4 + $0x3c8] sm:$0xff]  ;;  %v8152_v33 = vld [vmem:[%s10243_s4 + $0x3d8] sm:$0xff] }
 0x4c0   :  { %2146 = vmatpush2.msra.mxu0 %v8134_v35  ;;  %2217 = vmatpush2.msra.mxu1 %v8140_v37  ;;  %11429 = vst [vmem:[#allocation73_spill] sm:$0xff] %v8146_v43  ;;  %11430 = vst [vmem:[#allocation74_spill] sm:$0xff] %v8152_v33  ;;  %v8158_v35 = vld [vmem:[%s10243_s4 + $0x3c0] sm:$0xff]  ;;  %v8164_v37 = vld [vmem:[%s10243_s4 + $0x3d0] sm:$0xff] }
 0x4c1   :  { %2147 = vmatprep.subr.mxu0 %v8146_v43  ;;  %2218 = vmatprep.subr.mxu1 %v8152_v33  ;;  %11431 = vst [vmem:[#allocation75_spill] sm:$0xff] %v8158_v35  ;;  %11432 = vst [vmem:[#allocation76_spill] sm:$0xff] %v8164_v37  ;;  %v8170_v43 = vld [vmem:[%s10243_s4 + $0x3a8] sm:$0xff]  ;;  %v8176_v33 = vld [vmem:[%s10243_s4 + $0x3b8] sm:$0xff] }
 0x4c2   :  { %2148 = vmatpush2.msra.mxu0 %v8158_v35  ;;  %2219 = vmatpush2.msra.mxu1 %v8164_v37  ;;  %11433 = vst [vmem:[#allocation77_spill] sm:$0xff] %v8170_v43  ;;  %11434 = vst [vmem:[#allocation78_spill] sm:$0xff] %v8176_v33  ;;  %v8182_v35 = vld [vmem:[%s10243_s4 + $0x3a0] sm:$0xff]  ;;  %v8188_v37 = vld [vmem:[%s10243_s4 + $0x3b0] sm:$0xff] }
 0x4c3   :  { %2149 = vmatprep.subr.mxu0 %v8170_v43  ;;  %2220 = vmatprep.subr.mxu1 %v8176_v33  ;;  %11435 = vst [vmem:[#allocation79_spill] sm:$0xff] %v8182_v35  ;;  %11436 = vst [vmem:[#allocation80_spill] sm:$0xff] %v8188_v37  ;;  %v8194_v43 = vld [vmem:[%s10243_s4 + $0x388] sm:$0xff]  ;;  %v8200_v33 = vld [vmem:[%s10243_s4 + $0x398] sm:$0xff] }
 0x4c4   :  { %2150 = vmatpush2.msra.mxu0 %v8182_v35  ;;  %2221 = vmatpush2.msra.mxu1 %v8188_v37  ;;  %11437 = vst [vmem:[#allocation81_spill] sm:$0xff] %v8194_v43  ;;  %11438 = vst [vmem:[#allocation82_spill] sm:$0xff] %v8200_v33  ;;  %v8206_v35 = vld [vmem:[%s10243_s4 + $0x380] sm:$0xff]  ;;  %v8212_v37 = vld [vmem:[%s10243_s4 + $0x390] sm:$0xff] }
 0x4c5   :  { %2151 = vmatprep.subr.mxu0 %v8194_v43  ;;  %2222 = vmatprep.subr.mxu1 %v8200_v33  ;;  %11439 = vst [vmem:[#allocation83_spill] sm:$0xff] %v8206_v35  ;;  %11440 = vst [vmem:[#allocation84_spill] sm:$0xff] %v8212_v37  ;;  %v8218_v43 = vld [vmem:[%s10243_s4 + $0x368] sm:$0xff]  ;;  %v8224_v33 = vld [vmem:[%s10243_s4 + $0x378] sm:$0xff] }
 0x4c6   :  { %2152 = vmatpush2.msra.mxu0 %v8206_v35  ;;  %2223 = vmatpush2.msra.mxu1 %v8212_v37  ;;  %11441 = vst [vmem:[#allocation85_spill] sm:$0xff] %v8218_v43  ;;  %11442 = vst [vmem:[#allocation86_spill] sm:$0xff] %v8224_v33  ;;  %v8230_v35 = vld [vmem:[%s10243_s4 + $0x360] sm:$0xff]  ;;  %v8236_v37 = vld [vmem:[%s10243_s4 + $0x370] sm:$0xff] }
 0x4c7   :  { %2153 = vmatprep.subr.mxu0 %v8218_v43  ;;  %2224 = vmatprep.subr.mxu1 %v8224_v33  ;;  %11443 = vst [vmem:[#allocation87_spill] sm:$0xff] %v8230_v35  ;;  %11444 = vst [vmem:[#allocation88_spill] sm:$0xff] %v8236_v37  ;;  %v8242_v43 = vld [vmem:[%s10243_s4 + $0x348] sm:$0xff]  ;;  %v8248_v33 = vld [vmem:[%s10243_s4 + $0x358] sm:$0xff] }
 0x4c8   :  { %2154 = vmatpush2.msra.mxu0 %v8230_v35  ;;  %2225 = vmatpush2.msra.mxu1 %v8236_v37  ;;  %11445 = vst [vmem:[#allocation89_spill] sm:$0xff] %v8242_v43  ;;  %11446 = vst [vmem:[#allocation90_spill] sm:$0xff] %v8248_v33  ;;  %v8254_v35 = vld [vmem:[%s10243_s4 + $0x340] sm:$0xff]  ;;  %v8260_v37 = vld [vmem:[%s10243_s4 + $0x350] sm:$0xff] }
 0x4c9   :  { %2155 = vmatprep.subr.mxu0 %v8242_v43  ;;  %2226 = vmatprep.subr.mxu1 %v8248_v33  ;;  %11447 = vst [vmem:[#allocation91_spill] sm:$0xff] %v8254_v35  ;;  %11448 = vst [vmem:[#allocation92_spill] sm:$0xff] %v8260_v37  ;;  %v8266_v43 = vld [vmem:[%s10243_s4 + $0x328] sm:$0xff]  ;;  %v8272_v33 = vld [vmem:[%s10243_s4 + $0x338] sm:$0xff] }
 0x4ca   :  { %2156 = vmatpush2.msra.mxu0 %v8254_v35  ;;  %2227 = vmatpush2.msra.mxu1 %v8260_v37  ;;  %11449 = vst [vmem:[#allocation93_spill] sm:$0xff] %v8266_v43  ;;  %11450 = vst [vmem:[#allocation94_spill] sm:$0xff] %v8272_v33  ;;  %v8278_v35 = vld [vmem:[%s10243_s4 + $0x320] sm:$0xff]  ;;  %v8284_v37 = vld [vmem:[%s10243_s4 + $0x330] sm:$0xff] }
 0x4cb   :  { %2157 = vmatprep.subr.mxu0 %v8266_v43  ;;  %2228 = vmatprep.subr.mxu1 %v8272_v33  ;;  %11451 = vst [vmem:[#allocation95_spill] sm:$0xff] %v8278_v35  ;;  %11452 = vst [vmem:[#allocation96_spill] sm:$0xff] %v8284_v37  ;;  %v8290_v43 = vld [vmem:[%s10243_s4 + $0x308] sm:$0xff]  ;;  %v8296_v33 = vld [vmem:[%s10243_s4 + $0x318] sm:$0xff] }
 0x4cc   :  { %2158 = vmatpush2.msra.mxu0 %v8278_v35  ;;  %2229 = vmatpush2.msra.mxu1 %v8284_v37  ;;  %11453 = vst [vmem:[#allocation97_spill] sm:$0xff] %v8290_v43  ;;  %11454 = vst [vmem:[#allocation98_spill] sm:$0xff] %v8296_v33  ;;  %v8302_v35 = vld [vmem:[%s10243_s4 + $0x300] sm:$0xff]  ;;  %v8308_v37 = vld [vmem:[%s10243_s4 + $0x310] sm:$0xff] }
 0x4cd   :  { %2159 = vmatprep.subr.mxu0 %v8290_v43  ;;  %2230 = vmatprep.subr.mxu1 %v8296_v33  ;;  %11455 = vst [vmem:[#allocation99_spill] sm:$0xff] %v8302_v35  ;;  %11456 = vst [vmem:[#allocation100_spill] sm:$0xff] %v8308_v37  ;;  %v8314_v43 = vld [vmem:[%s10243_s4 + $0x2e8] sm:$0xff]  ;;  %v8320_v33 = vld [vmem:[%s10243_s4 + $0x2f8] sm:$0xff] }
 0x4ce   :  { %2160 = vmatpush2.msra.mxu0 %v8302_v35  ;;  %2231 = vmatpush2.msra.mxu1 %v8308_v37  ;;  %11457 = vst [vmem:[#allocation101_spill] sm:$0xff] %v8314_v43  ;;  %11458 = vst [vmem:[#allocation102_spill] sm:$0xff] %v8320_v33  ;;  %v8326_v35 = vld [vmem:[%s10243_s4 + $0x2e0] sm:$0xff]  ;;  %v8332_v37 = vld [vmem:[%s10243_s4 + $0x2f0] sm:$0xff] }
 0x4cf   :  { %2161 = vmatprep.subr.mxu0 %v8314_v43  ;;  %2232 = vmatprep.subr.mxu1 %v8320_v33  ;;  %11459 = vst [vmem:[#allocation103_spill] sm:$0xff] %v8326_v35  ;;  %11460 = vst [vmem:[#allocation104_spill] sm:$0xff] %v8332_v37  ;;  %v8338_v43 = vld [vmem:[%s10243_s4 + $0x2c8] sm:$0xff]  ;;  %v8344_v33 = vld [vmem:[%s10243_s4 + $0x2d8] sm:$0xff] }
 0x4d0   :  { %2162 = vmatpush2.msra.mxu0 %v8326_v35  ;;  %2233 = vmatpush2.msra.mxu1 %v8332_v37  ;;  %11461 = vst [vmem:[#allocation105_spill] sm:$0xff] %v8338_v43  ;;  %11462 = vst [vmem:[#allocation106_spill] sm:$0xff] %v8344_v33  ;;  %v8350_v35 = vld [vmem:[%s10243_s4 + $0x2c0] sm:$0xff]  ;;  %v8356_v37 = vld [vmem:[%s10243_s4 + $0x2d0] sm:$0xff] }
 0x4d1   :  { %2163 = vmatprep.subr.mxu0 %v8338_v43  ;;  %2234 = vmatprep.subr.mxu1 %v8344_v33  ;;  %11463 = vst [vmem:[#allocation107_spill] sm:$0xff] %v8350_v35  ;;  %11464 = vst [vmem:[#allocation108_spill] sm:$0xff] %v8356_v37  ;;  %v8362_v43 = vld [vmem:[%s10243_s4 + $0x2a8] sm:$0xff]  ;;  %v8368_v33 = vld [vmem:[%s10243_s4 + $0x2b8] sm:$0xff] }
 0x4d2   :  { %2164 = vmatpush2.msra.mxu0 %v8350_v35  ;;  %2235 = vmatpush2.msra.mxu1 %v8356_v37  ;;  %11465 = vst [vmem:[#allocation109_spill] sm:$0xff] %v8362_v43  ;;  %11466 = vst [vmem:[#allocation110_spill] sm:$0xff] %v8368_v33  ;;  %v8374_v35 = vld [vmem:[%s10243_s4 + $0x2a0] sm:$0xff]  ;;  %v8380_v37 = vld [vmem:[%s10243_s4 + $0x2b0] sm:$0xff] }
 0x4d3   :  { %2165 = vmatprep.subr.mxu0 %v8362_v43  ;;  %2236 = vmatprep.subr.mxu1 %v8368_v33  ;;  %11467 = vst [vmem:[#allocation111_spill] sm:$0xff] %v8374_v35  ;;  %11468 = vst [vmem:[#allocation112_spill] sm:$0xff] %v8380_v37  ;;  %v8386_v43 = vld [vmem:[%s10243_s4 + $0x288] sm:$0xff]  ;;  %v8392_v33 = vld [vmem:[%s10243_s4 + $0x298] sm:$0xff] }
 0x4d4   :  { %2166 = vmatpush2.msra.mxu0 %v8374_v35  ;;  %2237 = vmatpush2.msra.mxu1 %v8380_v37  ;;  %11469 = vst [vmem:[#allocation113_spill] sm:$0xff] %v8386_v43  ;;  %11470 = vst [vmem:[#allocation114_spill] sm:$0xff] %v8392_v33  ;;  %v8398_v35 = vld [vmem:[%s10243_s4 + $0x280] sm:$0xff]  ;;  %v8404_v37 = vld [vmem:[%s10243_s4 + $0x290] sm:$0xff] }
 0x4d5   :  { %2167 = vmatprep.subr.mxu0 %v8386_v43  ;;  %2238 = vmatprep.subr.mxu1 %v8392_v33  ;;  %11471 = vst [vmem:[#allocation115_spill] sm:$0xff] %v8398_v35  ;;  %11472 = vst [vmem:[#allocation116_spill] sm:$0xff] %v8404_v37  ;;  %v8410_v43 = vld [vmem:[%s10243_s4 + $0x268] sm:$0xff]  ;;  %v8416_v33 = vld [vmem:[%s10243_s4 + $0x278] sm:$0xff] }
 0x4d6   :  { %2168 = vmatpush2.msra.mxu0 %v8398_v35  ;;  %2239 = vmatpush2.msra.mxu1 %v8404_v37  ;;  %11473 = vst [vmem:[#allocation117_spill] sm:$0xff] %v8410_v43  ;;  %11474 = vst [vmem:[#allocation118_spill] sm:$0xff] %v8416_v33  ;;  %v8422_v35 = vld [vmem:[%s10243_s4 + $0x260] sm:$0xff]  ;;  %v8428_v37 = vld [vmem:[%s10243_s4 + $0x270] sm:$0xff] }
 0x4d7   :  { %2169 = vmatprep.subr.mxu0 %v8410_v43  ;;  %2240 = vmatprep.subr.mxu1 %v8416_v33  ;;  %11475 = vst [vmem:[#allocation119_spill] sm:$0xff] %v8422_v35  ;;  %11476 = vst [vmem:[#allocation120_spill] sm:$0xff] %v8428_v37  ;;  %v8434_v43 = vld [vmem:[%s10243_s4 + $0x248] sm:$0xff]  ;;  %v8440_v33 = vld [vmem:[%s10243_s4 + $0x258] sm:$0xff] }
 0x4d8   :  { %2170 = vmatpush2.msra.mxu0 %v8422_v35  ;;  %2241 = vmatpush2.msra.mxu1 %v8428_v37  ;;  %11477 = vst [vmem:[#allocation121_spill] sm:$0xff] %v8434_v43  ;;  %11478 = vst [vmem:[#allocation122_spill] sm:$0xff] %v8440_v33  ;;  %v8446_v35 = vld [vmem:[%s10243_s4 + $0x240] sm:$0xff]  ;;  %v8452_v37 = vld [vmem:[%s10243_s4 + $0x250] sm:$0xff] }
 0x4d9   :  { %2171 = vmatprep.subr.mxu0 %v8434_v43  ;;  %2242 = vmatprep.subr.mxu1 %v8440_v33  ;;  %11479 = vst [vmem:[#allocation123_spill] sm:$0xff] %v8446_v35  ;;  %11480 = vst [vmem:[#allocation124_spill] sm:$0xff] %v8452_v37  ;;  %v8458_v43 = vld [vmem:[%s10243_s4 + $0x228] sm:$0xff]  ;;  %v8464_v33 = vld [vmem:[%s10243_s4 + $0x238] sm:$0xff] }
 0x4da   :  { %2172 = vmatpush2.msra.mxu0 %v8446_v35  ;;  %2243 = vmatpush2.msra.mxu1 %v8452_v37  ;;  %11481 = vst [vmem:[#allocation125_spill] sm:$0xff] %v8458_v43  ;;  %11482 = vst [vmem:[#allocation126_spill] sm:$0xff] %v8464_v33  ;;  %v8470_v35 = vld [vmem:[%s10243_s4 + $0x220] sm:$0xff]  ;;  %v8476_v37 = vld [vmem:[%s10243_s4 + $0x230] sm:$0xff] }
 0x4db   :  { %2173 = vmatprep.subr.mxu0 %v8458_v43  ;;  %2244 = vmatprep.subr.mxu1 %v8464_v33  ;;  %11483 = vst [vmem:[#allocation127_spill] sm:$0xff] %v8470_v35  ;;  %11484 = vst [vmem:[#allocation128_spill] sm:$0xff] %v8476_v37  ;;  %v8482_v43 = vld [vmem:[%s10243_s4 + $0x208] sm:$0xff]  ;;  %v8488_v33 = vld [vmem:[%s10243_s4 + $0x218] sm:$0xff] }
 0x4dc   :  { %2174 = vmatpush2.msra.mxu0 %v8470_v35  ;;  %2245 = vmatpush2.msra.mxu1 %v8476_v37  ;;  %11485 = vst [vmem:[#allocation129_spill] sm:$0xff] %v8482_v43  ;;  %11486 = vst [vmem:[#allocation130_spill] sm:$0xff] %v8488_v33  ;;  %v8494_v35 = vld [vmem:[%s10243_s4 + $0x200] sm:$0xff]  ;;  %v8500_v37 = vld [vmem:[%s10243_s4 + $0x210] sm:$0xff] }
 0x4dd   :  { %2175 = vmatprep.subr.mxu0 %v8482_v43  ;;  %2246 = vmatprep.subr.mxu1 %v8488_v33  ;;  %11487 = vst [vmem:[#allocation131_spill] sm:$0xff] %v8494_v35  ;;  %11488 = vst [vmem:[#allocation132_spill] sm:$0xff] %v8500_v37 }
 0x4de   :  { %2176 = vmatpush2.msra.mxu0 %v8494_v35  ;;  %2247 = vmatpush2.msra.mxu1 %v8500_v37 }
 0x4df   :  { %2286 = vmatprep.subr.mxu0 %v7430_v21  ;;  %2357 = vmatprep.subr.mxu1 %v7436_v20 }
 0x53d   :  { %v1836_v43 = vpop.f32.mrf.mxu0  ;;  %v1907_v35 = vpop.f32.mrf.mxu1 }
 0x53e   :  { %v1837_v33 = vadd.f32 %v1836_v43, %v11351_v29  ;;  %v1908_v21 = vadd.f32 %v1907_v35, %v11354_v22 }
 0x53f   :  { %v1838_v17 = vpop.f32.mrf.mxu0  ;;  %v1909_v10 = vpop.f32.mrf.mxu1 }
 0x540   :  { %v3450_v3 = vmul.f32 -1.442695, %v1837_v33  ;;  %v1839_v16 = vadd.f32 %v1838_v17, %v11352_v54  ;;  %v1910_v26 = vadd.f32 %v1909_v10, %v11353_v23  ;;  %v11489_v54 = vld [vmem:[#allocation144_spill] sm:$0xff] }
 0x542   :  { %3644 = vpow2.f32 %v3450_v3  ;;  %v3451_v30 = vmul.f32 -1.442695, %v1839_v16  ;;  %v3452_v63 = vmul.f32 -1.442695, %v1910_v26  ;;  %v11490_v26 = vld [vmem:[#allocation146_spill] sm:$0xff] }
 0x544   :  { %3646 = vpow2.f32 %v3451_v30 }
 0x545   :  { %3648 = vpow2.f32 %v3452_v63 }
 0x54f   :  { %v3645_v37 = vpop.eup %3644 }
 0x550   :  { %v1915_v45 = vadd.f32 1.0, %v3645_v37 }
 0x551   :  { %v3647_v20 = vpop.eup %3646 }
 0x552   :  { %3650 = vrcp.f32 %v1915_v45  ;;  %v1921_v43 = vadd.f32 1.0, %v3647_v20  ;;  %v3649_v33 = vpop.eup %3648 }
 0x553   :  { %3652 = vtanh.f32 %v1908_v21  ;;  %v1928_v37 = vadd.f32 1.0, %v3649_v33 }
 0x554   :  { %3654 = vrcp.f32 %v1921_v43 }
 0x55e   :  { %v2009_v17 = vpop.f32.mrf.mxu0  ;;  %v2080_v45 = vpop.f32.mrf.mxu1 }
 0x55f   :  { %v3651_v3 = vpop.eup %3650  ;;  %v2085_v16 = vadd.f32 %v2009_v17, %v11489_v54  ;;  %v11491_v54 = vld [vmem:[#allocation147_spill] sm:$0xff]  ;;  %v11492_v17 = vld [vmem:[#allocation145_spill] sm:$0xff] }
 0x560   :  { %v3653_v30 = vpop.eup %3652  ;;  %v2011_v29 = vpop.f32.mrf.mxu0 }
 0x561   :  { %v3655_v24 = vpop.eup %3654  ;;  %v3453_v10 = vmul.f32 -1.442695, %v2085_v16  ;;  %v2086_v23 = vadd.f32 %v2011_v29, %v11490_v26  ;;  %v1932_v25 = vmul.f32 %v3653_v30, %v3651_v3  ;;  %v2082_v20 = vpop.f32.mrf.mxu1  ;;  %v2087_v16 = vadd.f32 %v2080_v45, %v11492_v17  ;;  %v8528_v17 = vld [vmem:[%s10242_s2 + $0x1e0] sm:$0xff] }
 0x562   :  { %v1931_v35 = vmul.f32 %v3655_v24, %v7446_v57  ;;  %v2088_v43 = vadd.f32 %v2082_v20, %v11491_v54 }
 0x563   :  { %3656 = vpow2.f32 %v3453_v10  ;;  %v3454_v63 = vmul.f32 -1.442695, %v2086_v23 }
 0x564   :  { %v8512_v21 = vadd.f32 %v1932_v25, %v1931_v35  ;;  %v3455_v22 = vmul.f32 -1.442695, %v2088_v43 }
 0x565   :  { %3658 = vpow2.f32 %v3454_v63 }
 0x566   :  { %3660 = vrcp.f32 %v1928_v37 }
 0x567   :  { %3662 = vtanh.f32 %v8512_v21 }
 0x568   :  { %3664 = vtanh.f32 %v2087_v16  ;;  %v8540_v16 = vld [vmem:[%s10242_s2 + $0x1c8] sm:$0xff] }
 0x569   :  { %3666 = vpow2.f32 %v3455_v22 }
 0x570   :  { %v3657_v29 = vpop.eup %3656 }
 0x571   :  { %v2092_v3 = vadd.f32 1.0, %v3657_v29  ;;  %v8546_v29 = vld [vmem:[%s10242_s2 + $0x1d8] sm:$0xff] }
 0x572   :  { %v3659_v57 = vpop.eup %3658 }
 0x573   :  { %v3661_v24 = vpop.eup %3660  ;;  %3668 = vrcp.f32 %v2092_v3  ;;  %v2098_v23 = vadd.f32 1.0, %v3659_v57  ;;  %v8552_v3 = vld [vmem:[%s10242_s2 + $0x1c0] sm:$0xff]  ;;  %v8558_v57 = vld [vmem:[%s10242_s2 + $0x1d0] sm:$0xff] }
 0x574   :  { %v3663_v25 = vpop.eup %3662 }
 0x575   :  { %3670 = vrcp.f32 %v2098_v23  ;;  %v1935_v33 = vmul.f32 %v3663_v25, %v3661_v24  ;;  %v3665_v30 = vpop.eup %3664  ;;  %v8564_v24 = vld [vmem:[%s10242_s2 + $0x1a8] sm:$0xff]  ;;  %v8570_v23 = vld [vmem:[%s10242_s2 + $0x1b8] sm:$0xff]  ;;  %v8576_v25 = vld [vmem:[%s10242_s2 + $0x1a0] sm:$0xff] }
 0x576   :  { %v3667_v10 = vpop.eup %3666 }
 0x577   :  { %2177 = vmatprep.mubr.f32.mxu0 %v1935_v33  ;;  %2248 = vmatprep.mubr.f32.mxu1 %v1935_v33  ;;  %v2105_v45 = vadd.f32 1.0, %v3667_v10  ;;  %v8582_v33 = vld [vmem:[%s10242_s2 + $0x1b0] sm:$0xff]  ;;  %v8594_v10 = vld [vmem:[%s10242_s2 + $0x198] sm:$0xff] }
 0x579   :  { %3672 = vrcp.f32 %v2105_v45  ;;  %v8618_v45 = vld [vmem:[%s10242_s2 + $0x178] sm:$0xff] }
 0x57a   :  { %11493 = vst [vmem:[#allocation134_spill] sm:$0xff] %v8618_v45 }
 0x580   :  { %v3669_v26 = vpop.eup %3668 }
 0x581   :  { %v2109_v35 = vmul.f32 %v3669_v26, %v3665_v30  ;;  %v8588_v30 = vld [vmem:[%s10242_s2 + $0x188] sm:$0xff]  ;;  %v8600_v26 = vld [vmem:[%s10242_s2 + $0x180] sm:$0xff] }
 0x582   :  { %v3671_v37 = vpop.eup %3670 }
 0x583   :  { %v2108_v63 = vmul.f32 %v3671_v37, %v7452_v18  ;;  %v8534_v18 = vld [vmem:[%s10242_s2 + $0x1f0] sm:$0xff]  ;;  %v8612_v37 = vld [vmem:[%s10242_s2 + $0x168] sm:$0xff] }
 0x585   :  { %v8518_v20 = vadd.f32 %v2109_v35, %v2108_v63  ;;  %v8606_v35 = vld [vmem:[%s10242_s2 + $0x190] sm:$0xff]  ;;  %v8624_v63 = vld [vmem:[%s10242_s2 + $0x160] sm:$0xff] }
 0x586   :  { %v3673_v22 = vpop.eup %3672 }
 0x587   :  { %3674 = vtanh.f32 %v8518_v20 }
 0x594   :  { %v3675_v54 = vpop.eup %3674 }
 0x595   :  { %v8521_v43 = vmul.f32 %v3675_v54, %v3673_v22  ;;  %v8630_v22 = vld [vmem:[%s10242_s2 + $0x170] sm:$0xff]  ;;  %v8636_v54 = vld [vmem:[%s10242_s2 + $0x148] sm:$0xff] }
 0x597   :  { %2178 = vmatmul.mubr.f32.vlgmr.msra.gmra.mxu0 %v8521_v43  ;;  %2249 = vmatmul.mubr.f32.vlgmr.msra.gmra.mxu1 %v8521_v43 }
 0x598   :  { %2287 = vmatpush1.msra.mxu0 %v8528_v17  ;;  %2358 = vmatpush1.msra.mxu1 %v8534_v18 }
 0x599   :  { %2288 = vmatprep.subr.mxu0 %v8540_v16  ;;  %2359 = vmatprep.subr.mxu1 %v8546_v29 }
 0x59a   :  { %2289 = vmatpush1.msra.mxu0 %v8552_v3  ;;  %2360 = vmatpush1.msra.mxu1 %v8558_v57 }
 0x59b   :  { %2290 = vmatprep.subr.mxu0 %v8564_v24  ;;  %2361 = vmatprep.subr.mxu1 %v8570_v23 }
 0x59c   :  { %2291 = vmatpush1.msra.mxu0 %v8576_v25  ;;  %2362 = vmatpush1.msra.mxu1 %v8582_v33 }
 0x59d   :  { %2292 = vmatprep.subr.mxu0 %v8588_v30  ;;  %2363 = vmatprep.subr.mxu1 %v8594_v10 }
 0x59e   :  { %2293 = vmatpush1.msra.mxu0 %v8600_v26  ;;  %2364 = vmatpush1.msra.mxu1 %v8606_v35 }
 0x59f   :  { %2294 = vmatprep.subr.mxu0 %v8612_v37  ;;  %2365 = vmatprep.subr.mxu1 %v8618_v45  ;;  %v8642_v45 = vld [vmem:[%s10242_s2 + $0x158] sm:$0xff] }
 0x5a0   :  { %2295 = vmatpush1.msra.mxu0 %v8624_v63  ;;  %2366 = vmatpush1.msra.mxu1 %v8630_v22 }
 0x5a1   :  { %2296 = vmatprep.subr.mxu0 %v8636_v54  ;;  %2367 = vmatprep.subr.mxu1 %v8642_v45 }
 0x5a2   :  { %2297 = vmatpush1.msra.mxu0 %v7482_v7  ;;  %2368 = vmatpush1.msra.mxu1 %v7488_v12  ;;  %v11494_v7 = vld [vmem:[#allocation138_spill] sm:$0xff]  ;;  %v11495_v12 = vld [vmem:[#allocation139_spill] sm:$0xff] }
 0x5a3   :  { %2298 = vmatprep.subr.mxu0 %v7494_v5  ;;  %2369 = vmatprep.subr.mxu1 %v7500_v47  ;;  %v11496_v5 = vld [vmem:[#allocation137_spill] sm:$0xff]  ;;  %v11497_v47 = vld [vmem:[#allocation7_spill] sm:$0xff] }
 0x5a4   :  { %2299 = vmatpush1.msra.mxu0 %v7506_v6  ;;  %2370 = vmatpush1.msra.mxu1 %v7512_v44  ;;  %v11498_v6 = vld [vmem:[#allocation8_spill] sm:$0xff]  ;;  %v11499_v44 = vld [vmem:[#allocation9_spill] sm:$0xff] }
 0x5a5   :  { %2300 = vmatprep.subr.mxu0 %v7518_v60  ;;  %2371 = vmatprep.subr.mxu1 %v7524_v59  ;;  %v11500_v60 = vld [vmem:[#allocation10_spill] sm:$0xff]  ;;  %v11501_v59 = vld [vmem:[#allocation11_spill] sm:$0xff] }
 0x5a6   :  { %2301 = vmatpush1.msra.mxu0 %v7530_v58  ;;  %2372 = vmatpush1.msra.mxu1 %v7536_v8  ;;  %v11502_v58 = vld [vmem:[#allocation12_spill] sm:$0xff]  ;;  %v11503_v8 = vld [vmem:[#allocation13_spill] sm:$0xff] }
 0x5a7   :  { %2302 = vmatprep.subr.mxu0 %v7542_v4  ;;  %2373 = vmatprep.subr.mxu1 %v7548_v2  ;;  %v11504_v4 = vld [vmem:[#allocation14_spill] sm:$0xff]  ;;  %v11505_v2 = vld [vmem:[#allocation15_spill] sm:$0xff] }
 0x5a8   :  { %2303 = vmatpush1.msra.mxu0 %v7554_v1  ;;  %2374 = vmatpush1.msra.mxu1 %v7560_v13  ;;  %v11506_v1 = vld [vmem:[#allocation16_spill] sm:$0xff]  ;;  %v11507_v13 = vld [vmem:[#allocation17_spill] sm:$0xff] }
 0x5a9   :  { %2304 = vmatprep.subr.mxu0 %v7566_v14  ;;  %2375 = vmatprep.subr.mxu1 %v7572_v61  ;;  %v11508_v14 = vld [vmem:[#allocation18_spill] sm:$0xff]  ;;  %v11509_v61 = vld [vmem:[#allocation19_spill] sm:$0xff] }
 0x5aa   :  { %2305 = vmatpush1.msra.mxu0 %v7578_v62  ;;  %2376 = vmatpush1.msra.mxu1 %v7584_v0  ;;  %v11510_v62 = vld [vmem:[#allocation20_spill] sm:$0xff]  ;;  %v11511_v0 = vld [vmem:[#allocation21_spill] sm:$0xff] }
 0x5ab   :  { %2306 = vmatprep.subr.mxu0 %v7590_v49  ;;  %2377 = vmatprep.subr.mxu1 %v7596_v38  ;;  %v11512_v49 = vld [vmem:[#allocation22_spill] sm:$0xff]  ;;  %v11513_v38 = vld [vmem:[#allocation23_spill] sm:$0xff] }
 0x5ac   :  { %2307 = vmatpush1.msra.mxu0 %v7602_v39  ;;  %2378 = vmatpush1.msra.mxu1 %v7608_v40  ;;  %v11514_v39 = vld [vmem:[#allocation24_spill] sm:$0xff]  ;;  %v11515_v40 = vld [vmem:[#allocation25_spill] sm:$0xff] }
 0x5ad   :  { %2308 = vmatprep.subr.mxu0 %v7614_v41  ;;  %2379 = vmatprep.subr.mxu1 %v7620_v46  ;;  %v11516_v41 = vld [vmem:[#allocation26_spill] sm:$0xff]  ;;  %v11517_v46 = vld [vmem:[#allocation27_spill] sm:$0xff] }
 0x5ae   :  { %2309 = vmatpush1.msra.mxu0 %v7626_v48  ;;  %2380 = vmatpush1.msra.mxu1 %v7632_v50  ;;  %v11518_v48 = vld [vmem:[#allocation28_spill] sm:$0xff]  ;;  %v11519_v50 = vld [vmem:[#allocation29_spill] sm:$0xff] }
 0x5af   :  { %2310 = vmatprep.subr.mxu0 %v7638_v51  ;;  %2381 = vmatprep.subr.mxu1 %v7644_v52  ;;  %v11520_v51 = vld [vmem:[#allocation30_spill] sm:$0xff]  ;;  %v11521_v52 = vld [vmem:[#allocation31_spill] sm:$0xff] }
 0x5b0   :  { %2311 = vmatpush1.msra.mxu0 %v7650_v53  ;;  %2382 = vmatpush1.msra.mxu1 %v7656_v55  ;;  %v11522_v53 = vld [vmem:[#allocation32_spill] sm:$0xff]  ;;  %v11523_v55 = vld [vmem:[#allocation33_spill] sm:$0xff] }
 0x5b1   :  { %2312 = vmatprep.subr.mxu0 %v7662_v56  ;;  %2383 = vmatprep.subr.mxu1 %v7668_v15  ;;  %v11524_v56 = vld [vmem:[#allocation34_spill] sm:$0xff]  ;;  %v11525_v15 = vld [vmem:[#allocation35_spill] sm:$0xff] }
 0x5b2   :  { %2313 = vmatpush1.msra.mxu0 %v7674_v11  ;;  %2384 = vmatpush1.msra.mxu1 %v7680_v9  ;;  %v11526_v11 = vld [vmem:[#allocation36_spill] sm:$0xff]  ;;  %v11527_v9 = vld [vmem:[#allocation37_spill] sm:$0xff] }
 0x5b3   :  { %2314 = vmatprep.subr.mxu0 %v7686_v28  ;;  %2385 = vmatprep.subr.mxu1 %v7692_v36  ;;  %v11528_v28 = vld [vmem:[#allocation38_spill] sm:$0xff]  ;;  %v11529_v36 = vld [vmem:[#allocation39_spill] sm:$0xff] }
 0x5b4   :  { %2315 = vmatpush1.msra.mxu0 %v7698_v31  ;;  %2386 = vmatpush1.msra.mxu1 %v7704_v32  ;;  %v11530_v31 = vld [vmem:[#allocation40_spill] sm:$0xff]  ;;  %v11531_v32 = vld [vmem:[#allocation41_spill] sm:$0xff] }
 0x5b5   :  { %2316 = vmatprep.subr.mxu0 %v7710_v27  ;;  %2387 = vmatprep.subr.mxu1 %v7716_v42  ;;  %v11532_v27 = vld [vmem:[#allocation42_spill] sm:$0xff]  ;;  %v11533_v42 = vld [vmem:[#allocation43_spill] sm:$0xff] }
 0x5b6   :  { %2317 = vmatpush1.msra.mxu0 %v7722_v19  ;;  %2350 = vmatprep.mubr.f32.mxu0 %v10946_v34  ;;  %v11534_v19 = vld [vmem:[#allocation44_spill] sm:$0xff] }
 0x5b7   :  { %2388 = vmatpush1.msra.mxu1 %v11494_v7  ;;  %2421 = vmatprep.mubr.f32.mxu1 %v10946_v34  ;;  %v11536_v7 = vld [vmem:[#allocation46_spill] sm:$0xff] }
 0x5b8   :  { %2351 = vmatmul.mubr.f32.vlgmr.msra.gmra.mxu0 %v8521_v43  ;;  %2422 = vmatmul.mubr.f32.vlgmr.msra.gmra.mxu1 %v8521_v43  ;;  %v11535_v43 = vld [vmem:[#allocation45_spill] sm:$0xff] }
 0x5b9   :  { %2456 = vmatprep.subr.mxu0 %v11495_v12  ;;  %2527 = vmatprep.subr.mxu1 %v11496_v5  ;;  %v11537_v12 = vld [vmem:[#allocation47_spill] sm:$0xff]  ;;  %v11538_v5 = vld [vmem:[#allocation48_spill] sm:$0xff] }
 0x5ba   :  { %2457 = vmatpush1.msra.mxu0 %v11497_v47  ;;  %2528 = vmatpush1.msra.mxu1 %v11498_v6  ;;  %v11539_v47 = vld [vmem:[#allocation49_spill] sm:$0xff]  ;;  %v11540_v6 = vld [vmem:[#allocation50_spill] sm:$0xff] }
 0x5bb   :  { %2458 = vmatprep.subr.mxu0 %v11499_v44  ;;  %2529 = vmatprep.subr.mxu1 %v11500_v60  ;;  %v11541_v44 = vld [vmem:[#allocation51_spill] sm:$0xff]  ;;  %v11542_v60 = vld [vmem:[#allocation52_spill] sm:$0xff] }
 0x5bc   :  { %2459 = vmatpush1.msra.mxu0 %v11501_v59  ;;  %2530 = vmatpush1.msra.mxu1 %v11502_v58  ;;  %v11543_v59 = vld [vmem:[#allocation53_spill] sm:$0xff]  ;;  %v11544_v58 = vld [vmem:[#allocation54_spill] sm:$0xff] }
 0x5bd   :  { %2460 = vmatprep.subr.mxu0 %v11503_v8  ;;  %2531 = vmatprep.subr.mxu1 %v11504_v4  ;;  %v11545_v8 = vld [vmem:[#allocation55_spill] sm:$0xff]  ;;  %v11546_v4 = vld [vmem:[#allocation56_spill] sm:$0xff] }
 0x5be   :  { %2461 = vmatpush1.msra.mxu0 %v11505_v2  ;;  %2532 = vmatpush1.msra.mxu1 %v11506_v1  ;;  %v11547_v2 = vld [vmem:[#allocation57_spill] sm:$0xff]  ;;  %v11548_v1 = vld [vmem:[#allocation58_spill] sm:$0xff] }
 0x5bf   :  { %2462 = vmatprep.subr.mxu0 %v11507_v13  ;;  %2533 = vmatprep.subr.mxu1 %v11508_v14  ;;  %v11549_v13 = vld [vmem:[#allocation59_spill] sm:$0xff]  ;;  %v11550_v14 = vld [vmem:[#allocation60_spill] sm:$0xff] }
 0x5c0   :  { %2463 = vmatpush1.msra.mxu0 %v11509_v61  ;;  %2534 = vmatpush1.msra.mxu1 %v11510_v62  ;;  %v11551_v61 = vld [vmem:[#allocation61_spill] sm:$0xff]  ;;  %v11552_v62 = vld [vmem:[#allocation62_spill] sm:$0xff] }
 0x5c1   :  { %2464 = vmatprep.subr.mxu0 %v11511_v0  ;;  %2535 = vmatprep.subr.mxu1 %v11512_v49  ;;  %v11553_v0 = vld [vmem:[#allocation63_spill] sm:$0xff]  ;;  %v11554_v49 = vld [vmem:[#allocation64_spill] sm:$0xff] }
 0x5c2   :  { %2465 = vmatpush1.msra.mxu0 %v11513_v38  ;;  %2536 = vmatpush1.msra.mxu1 %v11514_v39  ;;  %v11555_v38 = vld [vmem:[#allocation65_spill] sm:$0xff]  ;;  %v11556_v39 = vld [vmem:[#allocation66_spill] sm:$0xff] }
 0x5c3   :  { %2466 = vmatprep.subr.mxu0 %v11515_v40  ;;  %2537 = vmatprep.subr.mxu1 %v11516_v41  ;;  %v11557_v40 = vld [vmem:[#allocation67_spill] sm:$0xff]  ;;  %v11558_v41 = vld [vmem:[#allocation68_spill] sm:$0xff] }
 0x5c4   :  { %2467 = vmatpush1.msra.mxu0 %v11517_v46  ;;  %2538 = vmatpush1.msra.mxu1 %v11518_v48  ;;  %v11559_v46 = vld [vmem:[#allocation69_spill] sm:$0xff]  ;;  %v11560_v48 = vld [vmem:[#allocation70_spill] sm:$0xff] }
 0x5c5   :  { %2468 = vmatprep.subr.mxu0 %v11519_v50  ;;  %2539 = vmatprep.subr.mxu1 %v11520_v51  ;;  %v11561_v50 = vld [vmem:[#allocation71_spill] sm:$0xff]  ;;  %v11562_v51 = vld [vmem:[#allocation72_spill] sm:$0xff] }
 0x5c6   :  { %2469 = vmatpush1.msra.mxu0 %v11521_v52  ;;  %2540 = vmatpush1.msra.mxu1 %v11522_v53  ;;  %v11563_v52 = vld [vmem:[#allocation73_spill] sm:$0xff]  ;;  %v11564_v53 = vld [vmem:[#allocation74_spill] sm:$0xff] }
 0x5c7   :  { %2470 = vmatprep.subr.mxu0 %v11523_v55  ;;  %2541 = vmatprep.subr.mxu1 %v11524_v56  ;;  %v11565_v55 = vld [vmem:[#allocation75_spill] sm:$0xff]  ;;  %v11566_v56 = vld [vmem:[#allocation76_spill] sm:$0xff] }
 0x5c8   :  { %2471 = vmatpush1.msra.mxu0 %v11525_v15  ;;  %2542 = vmatpush1.msra.mxu1 %v11526_v11  ;;  %v11567_v15 = vld [vmem:[#allocation77_spill] sm:$0xff]  ;;  %v11568_v11 = vld [vmem:[#allocation78_spill] sm:$0xff] }
 0x5c9   :  { %2472 = vmatprep.subr.mxu0 %v11527_v9  ;;  %2543 = vmatprep.subr.mxu1 %v11528_v28  ;;  %v11569_v9 = vld [vmem:[#allocation79_spill] sm:$0xff]  ;;  %v11570_v28 = vld [vmem:[#allocation80_spill] sm:$0xff] }
 0x5ca   :  { %2473 = vmatpush1.msra.mxu0 %v11529_v36  ;;  %2544 = vmatpush1.msra.mxu1 %v11530_v31  ;;  %v11571_v36 = vld [vmem:[#allocation81_spill] sm:$0xff]  ;;  %v11572_v31 = vld [vmem:[#allocation82_spill] sm:$0xff] }
 0x5cb   :  { %2474 = vmatprep.subr.mxu0 %v11531_v32  ;;  %2545 = vmatprep.subr.mxu1 %v11532_v27  ;;  %v11573_v32 = vld [vmem:[#allocation83_spill] sm:$0xff]  ;;  %v11574_v27 = vld [vmem:[#allocation84_spill] sm:$0xff] }
 0x5cc   :  { %2475 = vmatpush1.msra.mxu0 %v11533_v42  ;;  %2546 = vmatpush1.msra.mxu1 %v11534_v19  ;;  %v11575_v42 = vld [vmem:[#allocation85_spill] sm:$0xff]  ;;  %v11576_v19 = vld [vmem:[#allocation86_spill] sm:$0xff] }
 0x5cd   :  { %2476 = vmatprep.subr.mxu0 %v11535_v43  ;;  %2547 = vmatprep.subr.mxu1 %v11536_v7  ;;  %v11577_v43 = vld [vmem:[#allocation87_spill] sm:$0xff]  ;;  %v11578_v7 = vld [vmem:[#allocation88_spill] sm:$0xff] }
 0x5ce   :  { %2477 = vmatpush1.msra.mxu0 %v11537_v12  ;;  %2548 = vmatpush1.msra.mxu1 %v11538_v5  ;;  %v11579_v12 = vld [vmem:[#allocation89_spill] sm:$0xff]  ;;  %v11580_v5 = vld [vmem:[#allocation90_spill] sm:$0xff] }
 0x5cf   :  { %2478 = vmatprep.subr.mxu0 %v11539_v47  ;;  %2549 = vmatprep.subr.mxu1 %v11540_v6  ;;  %v11581_v47 = vld [vmem:[#allocation91_spill] sm:$0xff]  ;;  %v11582_v6 = vld [vmem:[#allocation92_spill] sm:$0xff] }
 0x5d0   :  { %2479 = vmatpush1.msra.mxu0 %v11541_v44  ;;  %2550 = vmatpush1.msra.mxu1 %v11542_v60  ;;  %v11583_v44 = vld [vmem:[#allocation93_spill] sm:$0xff]  ;;  %v11584_v60 = vld [vmem:[#allocation94_spill] sm:$0xff] }
 0x5d1   :  { %2480 = vmatprep.subr.mxu0 %v11543_v59  ;;  %2551 = vmatprep.subr.mxu1 %v11544_v58  ;;  %v11585_v59 = vld [vmem:[#allocation95_spill] sm:$0xff]  ;;  %v11586_v58 = vld [vmem:[#allocation96_spill] sm:$0xff] }
 0x5d2   :  { %2481 = vmatpush1.msra.mxu0 %v11545_v8  ;;  %2552 = vmatpush1.msra.mxu1 %v11546_v4  ;;  %v11587_v8 = vld [vmem:[#allocation97_spill] sm:$0xff]  ;;  %v11588_v4 = vld [vmem:[#allocation98_spill] sm:$0xff] }
 0x5d3   :  { %2482 = vmatprep.subr.mxu0 %v11547_v2  ;;  %2553 = vmatprep.subr.mxu1 %v11548_v1  ;;  %v11589_v2 = vld [vmem:[#allocation99_spill] sm:$0xff]  ;;  %v11590_v1 = vld [vmem:[#allocation100_spill] sm:$0xff] }
 0x5d4   :  { %2483 = vmatpush1.msra.mxu0 %v11549_v13  ;;  %2554 = vmatpush1.msra.mxu1 %v11550_v14  ;;  %v11591_v13 = vld [vmem:[#allocation101_spill] sm:$0xff]  ;;  %v11592_v14 = vld [vmem:[#allocation102_spill] sm:$0xff] }
 0x5d5   :  { %2484 = vmatprep.subr.mxu0 %v11551_v61  ;;  %2555 = vmatprep.subr.mxu1 %v11552_v62  ;;  %v11593_v61 = vld [vmem:[#allocation103_spill] sm:$0xff]  ;;  %v11594_v62 = vld [vmem:[#allocation104_spill] sm:$0xff] }
 0x5d6   :  { %2485 = vmatpush1.msra.mxu0 %v11553_v0  ;;  %2556 = vmatpush1.msra.mxu1 %v11554_v49  ;;  %v11595_v0 = vld [vmem:[#allocation105_spill] sm:$0xff]  ;;  %v11596_v49 = vld [vmem:[#allocation106_spill] sm:$0xff] }
 0x5d7   :  { %2486 = vmatprep.subr.mxu0 %v11555_v38  ;;  %2557 = vmatprep.subr.mxu1 %v11556_v39  ;;  %v11597_v38 = vld [vmem:[#allocation107_spill] sm:$0xff]  ;;  %v11598_v39 = vld [vmem:[#allocation108_spill] sm:$0xff] }
 0x5d8   :  { %2487 = vmatpush1.msra.mxu0 %v11557_v40  ;;  %2558 = vmatpush1.msra.mxu1 %v11558_v41  ;;  %v11599_v40 = vld [vmem:[#allocation109_spill] sm:$0xff]  ;;  %v11600_v41 = vld [vmem:[#allocation110_spill] sm:$0xff] }
 0x5d9   :  { %2488 = vmatprep.subr.mxu0 %v11559_v46  ;;  %2559 = vmatprep.subr.mxu1 %v11560_v48  ;;  %v11601_v46 = vld [vmem:[#allocation111_spill] sm:$0xff]  ;;  %v11602_v48 = vld [vmem:[#allocation112_spill] sm:$0xff] }
 0x5da   :  { %2489 = vmatpush2.msra.mxu0 %v11561_v50  ;;  %2560 = vmatpush2.msra.mxu1 %v11562_v51  ;;  %v11603_v50 = vld [vmem:[#allocation113_spill] sm:$0xff]  ;;  %v11604_v51 = vld [vmem:[#allocation114_spill] sm:$0xff] }
 0x5db   :  { %2490 = vmatprep.subr.mxu0 %v11563_v52  ;;  %2561 = vmatprep.subr.mxu1 %v11564_v53  ;;  %v11605_v52 = vld [vmem:[#allocation115_spill] sm:$0xff]  ;;  %v11606_v53 = vld [vmem:[#allocation116_spill] sm:$0xff] }
 0x5dc   :  { %2491 = vmatpush2.msra.mxu0 %v11565_v55  ;;  %2562 = vmatpush2.msra.mxu1 %v11566_v56  ;;  %v11607_v55 = vld [vmem:[#allocation117_spill] sm:$0xff]  ;;  %v11608_v56 = vld [vmem:[#allocation118_spill] sm:$0xff] }
 0x5dd   :  { %2492 = vmatprep.subr.mxu0 %v11567_v15  ;;  %2563 = vmatprep.subr.mxu1 %v11568_v11  ;;  %v11609_v15 = vld [vmem:[#allocation119_spill] sm:$0xff]  ;;  %v11610_v11 = vld [vmem:[#allocation120_spill] sm:$0xff] }
 0x5de   :  { %2493 = vmatpush2.msra.mxu0 %v11569_v9  ;;  %2564 = vmatpush2.msra.mxu1 %v11570_v28  ;;  %v11611_v9 = vld [vmem:[#allocation121_spill] sm:$0xff]  ;;  %v11612_v28 = vld [vmem:[#allocation122_spill] sm:$0xff] }
 0x5df   :  { %2494 = vmatprep.subr.mxu0 %v11571_v36  ;;  %2565 = vmatprep.subr.mxu1 %v11572_v31  ;;  %v11613_v36 = vld [vmem:[#allocation123_spill] sm:$0xff]  ;;  %v11614_v31 = vld [vmem:[#allocation124_spill] sm:$0xff] }
 0x5e0   :  { %2495 = vmatpush2.msra.mxu0 %v11573_v32  ;;  %2566 = vmatpush2.msra.mxu1 %v11574_v27  ;;  %v11615_v32 = vld [vmem:[#allocation125_spill] sm:$0xff]  ;;  %v11616_v27 = vld [vmem:[#allocation126_spill] sm:$0xff] }
 0x5e1   :  { %2496 = vmatprep.subr.mxu0 %v11575_v42  ;;  %2567 = vmatprep.subr.mxu1 %v11576_v19  ;;  %v11617_v42 = vld [vmem:[#allocation127_spill] sm:$0xff]  ;;  %v11618_v19 = vld [vmem:[#allocation128_spill] sm:$0xff] }
 0x5e2   :  { %2497 = vmatpush2.msra.mxu0 %v11577_v43  ;;  %2568 = vmatpush2.msra.mxu1 %v11578_v7  ;;  %v11619_v43 = vld [vmem:[#allocation129_spill] sm:$0xff]  ;;  %v11620_v7 = vld [vmem:[#allocation130_spill] sm:$0xff] }
 0x5e3   :  { %2498 = vmatprep.subr.mxu0 %v11579_v12  ;;  %2569 = vmatprep.subr.mxu1 %v11580_v5  ;;  %v11621_v12 = vld [vmem:[#allocation131_spill] sm:$0xff]  ;;  %v11622_v5 = vld [vmem:[#allocation132_spill] sm:$0xff] }
 0x5e4   :  { %2499 = vmatpush2.msra.mxu0 %v11581_v47  ;;  %2570 = vmatpush2.msra.mxu1 %v11582_v6  ;;  %v8822_v47 = vld [vmem:[%s10242_s2 + $0x1e8] sm:$0xff]  ;;  %v8828_v6 = vld [vmem:[%s10242_s2 + $0x1f8] sm:$0xff] }
 0x5e5   :  { %2500 = vmatprep.subr.mxu0 %v11583_v44  ;;  %2571 = vmatprep.subr.mxu1 %v11584_v60  ;;  %v11623_v60 = vld [vmem:[#allocation3_spill] sm:$0xff] }
 0x5e6   :  { %2501 = vmatpush2.msra.mxu0 %v11585_v59  ;;  %2572 = vmatpush2.msra.mxu1 %v11586_v58 }
 0x5e7   :  { %2502 = vmatprep.subr.mxu0 %v11587_v8  ;;  %2573 = vmatprep.subr.mxu1 %v11588_v4  ;;  %v11624_v4 = vld [vmem:[#allocation4_spill] sm:$0xff] }
 0x5e8   :  { %2503 = vmatpush2.msra.mxu0 %v11589_v2  ;;  %2574 = vmatpush2.msra.mxu1 %v11590_v1 }
 0x5e9   :  { %2504 = vmatprep.subr.mxu0 %v11591_v13  ;;  %2575 = vmatprep.subr.mxu1 %v11592_v14 }
 0x5ea   :  { %2505 = vmatpush2.msra.mxu0 %v11593_v61  ;;  %2576 = vmatpush2.msra.mxu1 %v11594_v62  ;;  %v11625_v61 = vld [vmem:[#allocation5_spill] sm:$0xff] }
 0x5eb   :  { %2506 = vmatprep.subr.mxu0 %v11595_v0  ;;  %2577 = vmatprep.subr.mxu1 %v11596_v49 }
 0x5ec   :  { %2507 = vmatpush2.msra.mxu0 %v11597_v38  ;;  %2578 = vmatpush2.msra.mxu1 %v11598_v39  ;;  %v11626_v38 = vld [vmem:[#allocation6_spill] sm:$0xff] }
 0x5ed   :  { %2508 = vmatprep.subr.mxu0 %v11599_v40  ;;  %2579 = vmatprep.subr.mxu1 %v11600_v41 }
 0x5ee   :  { %2509 = vmatpush2.msra.mxu0 %v11601_v46  ;;  %2580 = vmatpush2.msra.mxu1 %v11602_v48 }
 0x5ef   :  { %2510 = vmatprep.subr.mxu0 %v11603_v50  ;;  %2581 = vmatprep.subr.mxu1 %v11604_v51 }
 0x5f0   :  { %2511 = vmatpush2.msra.mxu0 %v11605_v52  ;;  %2582 = vmatpush2.msra.mxu1 %v11606_v53  ;;  %v11627_v52 = vld [vmem:[#allocation148_spill] sm:$0xff] }
 0x5f1   :  { %2512 = vmatprep.subr.mxu0 %v11607_v55  ;;  %2583 = vmatprep.subr.mxu1 %v11608_v56 }
 0x5f2   :  { %2513 = vmatpush2.msra.mxu0 %v11609_v15  ;;  %2584 = vmatpush2.msra.mxu1 %v11610_v11 }
 0x5f3   :  { %2514 = vmatprep.subr.mxu0 %v11611_v9  ;;  %2585 = vmatprep.subr.mxu1 %v11612_v28  ;;  %v11628_v9 = vld [vmem:[#allocation150_spill] sm:$0xff] }
 0x5f4   :  { %2515 = vmatpush2.msra.mxu0 %v11613_v36  ;;  %2586 = vmatpush2.msra.mxu1 %v11614_v31 }
 0x5f5   :  { %2516 = vmatprep.subr.mxu0 %v11615_v32  ;;  %2587 = vmatprep.subr.mxu1 %v11616_v27 }
 0x5f6   :  { %2517 = vmatpush2.msra.mxu0 %v11617_v42  ;;  %2588 = vmatpush2.msra.mxu1 %v11618_v19 }
 0x5f7   :  { %2518 = vmatprep.subr.mxu0 %v11619_v43  ;;  %2589 = vmatprep.subr.mxu1 %v11620_v7  ;;  %v11629_v7 = vld [vmem:[#allocation151_spill] sm:$0xff] }
 0x5f8   :  { %2519 = vmatpush2.msra.mxu0 %v11621_v12  ;;  %2590 = vmatpush2.msra.mxu1 %v11622_v5  ;;  %v11630_v5 = vld [vmem:[#allocation149_spill] sm:$0xff] }
 0x5f9   :  { %2629 = vmatprep.subr.mxu0 %v8822_v47  ;;  %2700 = vmatprep.subr.mxu1 %v8828_v6 }
 0x657   :  { %v2179_v44 = vpop.f32.mrf.mxu0  ;;  %v2250_v1 = vpop.f32.mrf.mxu1 }
 0x658   :  { %v2180_v59 = vadd.f32 %v2179_v44, %v11623_v60  ;;  %v2251_v39 = vadd.f32 %v2250_v1, %v11626_v38 }
 0x659   :  { %v2181_v58 = vpop.f32.mrf.mxu0  ;;  %v2252_v14 = vpop.f32.mrf.mxu1 }
 0x65a   :  { %v3456_v8 = vmul.f32 -1.442695, %v2180_v59  ;;  %v2182_v2 = vadd.f32 %v2181_v58, %v11624_v4  ;;  %v2253_v62 = vadd.f32 %v2252_v14, %v11625_v61 }
 0x65c   :  { %3676 = vpow2.f32 %v3456_v8  ;;  %v3457_v13 = vmul.f32 -1.442695, %v2182_v2  ;;  %v3458_v0 = vmul.f32 -1.442695, %v2253_v62 }
 0x65e   :  { %3678 = vpow2.f32 %v3457_v13 }
 0x65f   :  { %3680 = vpow2.f32 %v3458_v0 }
 0x669   :  { %v3677_v49 = vpop.eup %3676 }
 0x66a   :  { %v2258_v40 = vadd.f32 1.0, %v3677_v49 }
 0x66b   :  { %v3679_v41 = vpop.eup %3678 }
 0x66c   :  { %3682 = vrcp.f32 %v2258_v40  ;;  %v2264_v46 = vadd.f32 1.0, %v3679_v41  ;;  %v3681_v48 = vpop.eup %3680 }
 0x66d   :  { %3684 = vtanh.f32 %v2251_v39  ;;  %v2271_v32 = vadd.f32 1.0, %v3681_v48 }
 0x66e   :  { %3686 = vrcp.f32 %v2264_v46 }
 0x678   :  { %v2352_v50 = vpop.f32.mrf.mxu0  ;;  %v2423_v27 = vpop.f32.mrf.mxu1 }
 0x679   :  { %v3683_v51 = vpop.eup %3682  ;;  %v2428_v53 = vadd.f32 %v2352_v50, %v11627_v52  ;;  %v2430_v44 = vadd.f32 %v2423_v27, %v11630_v5  ;;  %v9048_v27 = vld [vmem:[%s10242_s2 + $0x70] sm:$0xff]  ;;  %v9078_v5 = vld [vmem:[%s10242_s2 + $0x28] sm:$0xff] }
 0x67a   :  { %v3685_v55 = vpop.eup %3684  ;;  %v2354_v56 = vpop.f32.mrf.mxu0 }
 0x67b   :  { %v3687_v15 = vpop.eup %3686  ;;  %v3459_v11 = vmul.f32 -1.442695, %v2428_v53  ;;  %v2429_v28 = vadd.f32 %v2354_v56, %v11628_v9  ;;  %v2275_v36 = vmul.f32 %v3685_v55, %v3683_v51  ;;  %v2425_v43 = vpop.f32.mrf.mxu1  ;;  %v8988_v53 = vld [vmem:[%s10242_s2 + $0xb8] sm:$0xff]  ;;  %v8994_v55 = vld [vmem:[%s10242_s2 + $0xa0] sm:$0xff]  ;;  %v9000_v56 = vld [vmem:[%s10242_s2 + $0xb0] sm:$0xff] }
 0x67c   :  { %v2274_v31 = vmul.f32 %v3687_v15, %v8512_v21  ;;  %v2431_v12 = vadd.f32 %v2425_v43, %v11629_v7  ;;  %v9006_v15 = vld [vmem:[%s10242_s2 + $0x88] sm:$0xff]  ;;  %v9018_v9 = vld [vmem:[%s10242_s2 + $0x80] sm:$0xff]  ;;  %v9060_v43 = vld [vmem:[%s10242_s2 + $0x58] sm:$0xff] }
 0x67d   :  { %3688 = vpow2.f32 %v3459_v11  ;;  %v3460_v42 = vmul.f32 -1.442695, %v2429_v28  ;;  %v9012_v11 = vld [vmem:[%s10242_s2 + $0x98] sm:$0xff]  ;;  %v9024_v28 = vld [vmem:[%s10242_s2 + $0x90] sm:$0xff]  ;;  %v9066_v7 = vld [vmem:[%s10242_s2 + $0x40] sm:$0xff] }
 0x67e   :  { %v8838_v19 = vadd.f32 %v2275_v36, %v2274_v31  ;;  %v3461_v59 = vmul.f32 -1.442695, %v2431_v12  ;;  %v9030_v36 = vld [vmem:[%s10242_s2 + $0x68] sm:$0xff]  ;;  %v9036_v31 = vld [vmem:[%s10242_s2 + $0x78] sm:$0xff]  ;;  %v9072_v12 = vld [vmem:[%s10242_s2 + $0x50] sm:$0xff] }
 0x67f   :  { %3690 = vpow2.f32 %v3460_v42  ;;  %v9054_v42 = vld [vmem:[%s10242_s2 + $0x48] sm:$0xff] }
 0x680   :  { %3692 = vrcp.f32 %v2271_v32  ;;  %v9042_v32 = vld [vmem:[%s10242_s2 + $0x60] sm:$0xff] }
 0x681   :  { %3694 = vtanh.f32 %v8838_v19 }
 0x682   :  { %3696 = vtanh.f32 %v2430_v44  ;;  %v9084_v44 = vld [vmem:[%s10242_s2 + $0x38] sm:$0xff] }
 0x683   :  { %3698 = vpow2.f32 %v3461_v59  ;;  %v9090_v59 = vld [vmem:[%s10242_s2 + $0x20] sm:$0xff] }
 0x68a   :  { %v3689_v58 = vpop.eup %3688 }
 0x68b   :  { %v2435_v8 = vadd.f32 1.0, %v3689_v58  ;;  %v9096_v58 = vld [vmem:[%s10242_s2 + $0x30] sm:$0xff] }
 0x68c   :  { %v3691_v21 = vpop.eup %3690 }
 0x68d   :  { %v3693_v2 = vpop.eup %3692  ;;  %3700 = vrcp.f32 %v2435_v8  ;;  %v2441_v1 = vadd.f32 1.0, %v3691_v21  ;;  %v9102_v8 = vld [vmem:[%s10242_s2 + $0x8] sm:$0xff]  ;;  %v9108_v21 = vld [vmem:[%s10242_s2 + $0x18] sm:$0xff] }
 0x68e   :  { %v3695_v13 = vpop.eup %3694 }
 0x68f   :  { %3702 = vrcp.f32 %v2441_v1  ;;  %v2278_v14 = vmul.f32 %v3695_v13, %v3693_v2  ;;  %v3697_v62 = vpop.eup %3696  ;;  %v9114_v2 = vld [vmem:[%s10242_s2] sm:$0xff]  ;;  %v9121_v1 = vld [vmem:[%s10242_s2 + $0x10] sm:$0xff]  ;;  %v9130_v13 = vld [vmem:[%s10243_s4 + $0x1e8] sm:$0xff] }
 0x690   :  { %v3699_v0 = vpop.eup %3698  ;;  %11632 = vst [vmem:[#allocation135_spill] sm:$0xff] %v9121_v1  ;;  %11633 = vst [vmem:[#allocation133_spill] sm:$0xff] %v9130_v13 }
 0x691   :  { %2520 = vmatprep.mubr.f32.mxu0 %v2278_v14  ;;  %2591 = vmatprep.mubr.f32.mxu1 %v2278_v14  ;;  %v2448_v41 = vadd.f32 1.0, %v3699_v0  ;;  %v9136_v14 = vld [vmem:[%s10243_s4 + $0x1f8] sm:$0xff]  ;;  %v9148_v0 = vld [vmem:[%s10243_s4 + $0x1f0] sm:$0xff] }
 0x692   :  { %11634 = vst [vmem:[#allocation140_spill] sm:$0xff] %v9136_v14  ;;  %11636 = vst [vmem:[#allocation143_spill] sm:$0xff] %v9148_v0 }
 0x693   :  { %3704 = vrcp.f32 %v2448_v41  ;;  %v9172_v41 = vld [vmem:[%s10243_s4 + $0x1d0] sm:$0xff] }
 0x694   :  { %11640 = vst [vmem:[#allocation146_spill] sm:$0xff] %v9172_v41 }
 0x69a   :  { %v3701_v49 = vpop.eup %3700 }
 0x69b   :  { %v2452_v39 = vmul.f32 %v3701_v49, %v3697_v62  ;;  %v9142_v62 = vld [vmem:[%s10243_s4 + $0x1e0] sm:$0xff]  ;;  %v9154_v49 = vld [vmem:[%s10243_s4 + $0x1c8] sm:$0xff] }
 0x69c   :  { %v3703_v40 = vpop.eup %3702  ;;  %11635 = vst [vmem:[#allocation142_spill] sm:$0xff] %v9142_v62  ;;  %11637 = vst [vmem:[#allocation141_spill] sm:$0xff] %v9154_v49 }
 0x69d   :  { %v2451_v46 = vmul.f32 %v3703_v40, %v8518_v20  ;;  %v11631_v20 = vld [vmem:[#allocation134_spill] sm:$0xff]  ;;  %v9166_v40 = vld [vmem:[%s10243_s4 + $0x1c0] sm:$0xff] }
 0x69e   :  { %11639 = vst [vmem:[#allocation144_spill] sm:$0xff] %v9166_v40 }
 0x69f   :  { %v8844_v48 = vadd.f32 %v2452_v39, %v2451_v46  ;;  %v9160_v39 = vld [vmem:[%s10243_s4 + $0x1d8] sm:$0xff]  ;;  %v9178_v46 = vld [vmem:[%s10243_s4 + $0x1a8] sm:$0xff] }
 0x6a0   :  { %v3705_v50 = vpop.eup %3704  ;;  %11638 = vst [vmem:[#allocation136_spill] sm:$0xff] %v9160_v39  ;;  %11641 = vst [vmem:[#allocation147_spill] sm:$0xff] %v9178_v46 }
 0x6a1   :  { %3706 = vtanh.f32 %v8844_v48 }
 0x6ae   :  { %v3707_v51 = vpop.eup %3706 }
 0x6af   :  { %v8847_v52 = vmul.f32 %v3707_v51, %v3705_v50  ;;  %v9184_v50 = vld [vmem:[%s10243_s4 + $0x1b8] sm:$0xff]  ;;  %v9190_v51 = vld [vmem:[%s10243_s4 + $0x1a0] sm:$0xff] }
 0x6b0   :  { %11642 = vst [vmem:[#allocation145_spill] sm:$0xff] %v9184_v50  ;;  %11643 = vst [vmem:[#allocation138_spill] sm:$0xff] %v9190_v51 }
 0x6b1   :  { %2521 = vmatmul.mubr.f32.vlgmr.msra.gmra.mxu0 %v8847_v52  ;;  %2592 = vmatmul.mubr.f32.vlgmr.msra.gmra.mxu1 %v8847_v52 }
 0x6b2   :  { %2630 = vmatpush1.msra.mxu0 %v8528_v17  ;;  %2701 = vmatpush1.msra.mxu1 %v8534_v18  ;;  %v8874_v17 = vld [vmem:[%s10242_s2 + $0x140] sm:$0xff]  ;;  %v8880_v18 = vld [vmem:[%s10242_s2 + $0x150] sm:$0xff] }
 0x6b3   :  { %2631 = vmatprep.subr.mxu0 %v8540_v16  ;;  %2702 = vmatprep.subr.mxu1 %v8546_v29  ;;  %v8886_v16 = vld [vmem:[%s10242_s2 + $0x128] sm:$0xff]  ;;  %v8892_v29 = vld [vmem:[%s10242_s2 + $0x138] sm:$0xff] }
 0x6b4   :  { %2632 = vmatpush1.msra.mxu0 %v8552_v3  ;;  %2703 = vmatpush1.msra.mxu1 %v8558_v57  ;;  %v8898_v3 = vld [vmem:[%s10242_s2 + $0x120] sm:$0xff]  ;;  %v8904_v57 = vld [vmem:[%s10242_s2 + $0x130] sm:$0xff] }
 0x6b5   :  { %2633 = vmatprep.subr.mxu0 %v8564_v24  ;;  %2704 = vmatprep.subr.mxu1 %v8570_v23  ;;  %v8910_v24 = vld [vmem:[%s10242_s2 + $0x108] sm:$0xff]  ;;  %v8916_v23 = vld [vmem:[%s10242_s2 + $0x118] sm:$0xff] }
 0x6b6   :  { %2634 = vmatpush1.msra.mxu0 %v8576_v25  ;;  %2705 = vmatpush1.msra.mxu1 %v8582_v33  ;;  %v8922_v25 = vld [vmem:[%s10242_s2 + $0x100] sm:$0xff]  ;;  %v8928_v33 = vld [vmem:[%s10242_s2 + $0x110] sm:$0xff] }
 0x6b7   :  { %2635 = vmatprep.subr.mxu0 %v8588_v30  ;;  %2706 = vmatprep.subr.mxu1 %v8594_v10  ;;  %v8934_v30 = vld [vmem:[%s10242_s2 + $0xe8] sm:$0xff]  ;;  %v8940_v10 = vld [vmem:[%s10242_s2 + $0xf8] sm:$0xff] }
 0x6b8   :  { %2636 = vmatpush1.msra.mxu0 %v8600_v26  ;;  %2707 = vmatpush1.msra.mxu1 %v8606_v35  ;;  %v8946_v26 = vld [vmem:[%s10242_s2 + $0xe0] sm:$0xff]  ;;  %v8952_v35 = vld [vmem:[%s10242_s2 + $0xf0] sm:$0xff] }
 0x6b9   :  { %2637 = vmatprep.subr.mxu0 %v8612_v37  ;;  %2708 = vmatprep.subr.mxu1 %v11631_v20  ;;  %v8958_v37 = vld [vmem:[%s10242_s2 + $0xc8] sm:$0xff] }
 0x6ba   :  { %2638 = vmatpush1.msra.mxu0 %v8624_v63  ;;  %2709 = vmatpush1.msra.mxu1 %v8630_v22  ;;  %v8970_v63 = vld [vmem:[%s10242_s2 + $0xc0] sm:$0xff]  ;;  %v8976_v22 = vld [vmem:[%s10242_s2 + $0xd0] sm:$0xff]  ;;  %v9202_v20 = vld [vmem:[%s10243_s4 + $0x188] sm:$0xff] }
 0x6bb   :  { %2639 = vmatprep.subr.mxu0 %v8636_v54  ;;  %2710 = vmatprep.subr.mxu1 %v8642_v45  ;;  %v8964_v45 = vld [vmem:[%s10242_s2 + $0xd8] sm:$0xff]  ;;  %v8982_v54 = vld [vmem:[%s10242_s2 + $0xa8] sm:$0xff]  ;;  %11645 = vst [vmem:[#allocation137_spill] sm:$0xff] %v9202_v20 }
 0x6bc   :  { %2640 = vmatpush1.msra.mxu0 %v8874_v17  ;;  %2711 = vmatpush1.msra.mxu1 %v8880_v18 }
 0x6bd   :  { %2641 = vmatprep.subr.mxu0 %v8886_v16  ;;  %2712 = vmatprep.subr.mxu1 %v8892_v29 }
 0x6be   :  { %2642 = vmatpush1.msra.mxu0 %v8898_v3  ;;  %2713 = vmatpush1.msra.mxu1 %v8904_v57 }
 0x6bf   :  { %2643 = vmatprep.subr.mxu0 %v8910_v24  ;;  %2714 = vmatprep.subr.mxu1 %v8916_v23 }
 0x6c0   :  { %2644 = vmatpush1.msra.mxu0 %v8922_v25  ;;  %2715 = vmatpush1.msra.mxu1 %v8928_v33 }
 0x6c1   :  { %2645 = vmatprep.subr.mxu0 %v8934_v30  ;;  %2716 = vmatprep.subr.mxu1 %v8940_v10 }
 0x6c2   :  { %2646 = vmatpush1.msra.mxu0 %v8946_v26  ;;  %2717 = vmatpush1.msra.mxu1 %v8952_v35 }
 0x6c3   :  { %2647 = vmatprep.subr.mxu0 %v8958_v37  ;;  %2718 = vmatprep.subr.mxu1 %v8964_v45 }
 0x6c4   :  { %2648 = vmatpush1.msra.mxu0 %v8970_v63  ;;  %2719 = vmatpush1.msra.mxu1 %v8976_v22 }
 0x6c5   :  { %2649 = vmatprep.subr.mxu0 %v8982_v54  ;;  %2720 = vmatprep.subr.mxu1 %v8988_v53 }
 0x6c6   :  { %2650 = vmatpush1.msra.mxu0 %v8994_v55  ;;  %2721 = vmatpush1.msra.mxu1 %v9000_v56 }
 0x6c7   :  { %2651 = vmatprep.subr.mxu0 %v9006_v15  ;;  %2722 = vmatprep.subr.mxu1 %v9012_v11 }
 0x6c8   :  { %2652 = vmatpush1.msra.mxu0 %v9018_v9  ;;  %2723 = vmatpush1.msra.mxu1 %v9024_v28 }
 0x6c9   :  { %2653 = vmatprep.subr.mxu0 %v9030_v36  ;;  %2724 = vmatprep.subr.mxu1 %v9036_v31 }
 0x6ca   :  { %2654 = vmatpush1.msra.mxu0 %v9042_v32  ;;  %2725 = vmatpush1.msra.mxu1 %v9048_v27 }
 0x6cb   :  { %2655 = vmatprep.subr.mxu0 %v9054_v42  ;;  %2726 = vmatprep.subr.mxu1 %v9060_v43 }
 0x6cc   :  { %2656 = vmatpush1.msra.mxu0 %v9066_v7  ;;  %2727 = vmatpush1.msra.mxu1 %v9072_v12 }
 0x6cd   :  { %2657 = vmatprep.subr.mxu0 %v9078_v5  ;;  %2728 = vmatprep.subr.mxu1 %v9084_v44 }
 0x6ce   :  { %2658 = vmatpush1.msra.mxu0 %v9090_v59  ;;  %2729 = vmatpush1.msra.mxu1 %v9096_v58 }
 0x6cf   :  { %2659 = vmatprep.subr.mxu0 %v9102_v8  ;;  %2730 = vmatprep.subr.mxu1 %v9108_v21 }
 0x6d0   :  { %2660 = vmatpush1.msra.mxu0 %v9114_v2  ;;  %2693 = vmatprep.mubr.f32.mxu0 %v10946_v34 }
 0x6d1   :  { %2731 = vmatpush1.msra.mxu1 %v9121_v1  ;;  %2764 = vmatprep.mubr.f32.mxu1 %v10946_v34 }
 0x6d2   :  { %2694 = vmatmul.mubr.f32.vlgmr.msra.gmra.mxu0 %v8847_v52  ;;  %2765 = vmatmul.mubr.f32.vlgmr.msra.gmra.mxu1 %v8847_v52  ;;  %v9196_v52 = vld [vmem:[%s10243_s4 + $0x1b0] sm:$0xff] }
 0x6d3   :  { %2799 = vmatprep.subr.mxu0 %v9130_v13  ;;  %2870 = vmatprep.subr.mxu1 %v9136_v14  ;;  %11644 = vst [vmem:[#allocation139_spill] sm:$0xff] %v9196_v52 }
 0x6d4   :  { %2800 = vmatpush1.msra.mxu0 %v9142_v62  ;;  %2871 = vmatpush1.msra.mxu1 %v9148_v0 }
 0x6d5   :  { %2801 = vmatprep.subr.mxu0 %v9154_v49  ;;  %2872 = vmatprep.subr.mxu1 %v9160_v39 }
 0x6d6   :  { %2802 = vmatpush1.msra.mxu0 %v9166_v40  ;;  %2873 = vmatpush1.msra.mxu1 %v9172_v41 }
 0x6d7   :  { %2803 = vmatprep.subr.mxu0 %v9178_v46  ;;  %2874 = vmatprep.subr.mxu1 %v9184_v50  ;;  %v9208_v50 = vld [vmem:[%s10243_s4 + $0x198] sm:$0xff] }
 0x6d8   :  { %2804 = vmatpush1.msra.mxu0 %v9190_v51  ;;  %2875 = vmatpush1.msra.mxu1 %v9196_v52  ;;  %11646 = vst [vmem:[#allocation7_spill] sm:$0xff] %v9208_v50  ;;  %v9214_v51 = vld [vmem:[%s10243_s4 + $0x180] sm:$0xff]  ;;  %v9220_v52 = vld [vmem:[%s10243_s4 + $0x190] sm:$0xff] }
 0x6d9   :  { %2805 = vmatprep.subr.mxu0 %v9202_v20  ;;  %2876 = vmatprep.subr.mxu1 %v9208_v50  ;;  %11647 = vst [vmem:[#allocation8_spill] sm:$0xff] %v9214_v51  ;;  %11648 = vst [vmem:[#allocation9_spill] sm:$0xff] %v9220_v52  ;;  %v9226_v20 = vld [vmem:[%s10243_s4 + $0x168] sm:$0xff]  ;;  %v9232_v50 = vld [vmem:[%s10243_s4 + $0x178] sm:$0xff] }
 0x6da   :  { %2806 = vmatpush1.msra.mxu0 %v9214_v51  ;;  %2877 = vmatpush1.msra.mxu1 %v9220_v52  ;;  %11649 = vst [vmem:[#allocation10_spill] sm:$0xff] %v9226_v20  ;;  %11650 = vst [vmem:[#allocation11_spill] sm:$0xff] %v9232_v50  ;;  %v9238_v51 = vld [vmem:[%s10243_s4 + $0x160] sm:$0xff]  ;;  %v9244_v52 = vld [vmem:[%s10243_s4 + $0x170] sm:$0xff] }
 0x6db   :  { %2807 = vmatprep.subr.mxu0 %v9226_v20  ;;  %2878 = vmatprep.subr.mxu1 %v9232_v50  ;;  %11651 = vst [vmem:[#allocation12_spill] sm:$0xff] %v9238_v51  ;;  %11652 = vst [vmem:[#allocation13_spill] sm:$0xff] %v9244_v52  ;;  %v9250_v20 = vld [vmem:[%s10243_s4 + $0x148] sm:$0xff]  ;;  %v9256_v50 = vld [vmem:[%s10243_s4 + $0x158] sm:$0xff] }
 0x6dc   :  { %2808 = vmatpush1.msra.mxu0 %v9238_v51  ;;  %2879 = vmatpush1.msra.mxu1 %v9244_v52  ;;  %11653 = vst [vmem:[#allocation14_spill] sm:$0xff] %v9250_v20  ;;  %11654 = vst [vmem:[#allocation15_spill] sm:$0xff] %v9256_v50  ;;  %v9262_v51 = vld [vmem:[%s10243_s4 + $0x140] sm:$0xff]  ;;  %v9268_v52 = vld [vmem:[%s10243_s4 + $0x150] sm:$0xff] }
 0x6dd   :  { %2809 = vmatprep.subr.mxu0 %v9250_v20  ;;  %2880 = vmatprep.subr.mxu1 %v9256_v50  ;;  %11655 = vst [vmem:[#allocation16_spill] sm:$0xff] %v9262_v51  ;;  %11656 = vst [vmem:[#allocation17_spill] sm:$0xff] %v9268_v52  ;;  %v9274_v20 = vld [vmem:[%s10243_s4 + $0x128] sm:$0xff]  ;;  %v9280_v50 = vld [vmem:[%s10243_s4 + $0x138] sm:$0xff] }
 0x6de   :  { %2810 = vmatpush1.msra.mxu0 %v9262_v51  ;;  %2881 = vmatpush1.msra.mxu1 %v9268_v52  ;;  %11657 = vst [vmem:[#allocation18_spill] sm:$0xff] %v9274_v20  ;;  %11658 = vst [vmem:[#allocation19_spill] sm:$0xff] %v9280_v50  ;;  %v9286_v51 = vld [vmem:[%s10243_s4 + $0x120] sm:$0xff]  ;;  %v9292_v52 = vld [vmem:[%s10243_s4 + $0x130] sm:$0xff] }
 0x6df   :  { %2811 = vmatprep.subr.mxu0 %v9274_v20  ;;  %2882 = vmatprep.subr.mxu1 %v9280_v50  ;;  %11659 = vst [vmem:[#allocation20_spill] sm:$0xff] %v9286_v51  ;;  %11660 = vst [vmem:[#allocation21_spill] sm:$0xff] %v9292_v52  ;;  %v9298_v20 = vld [vmem:[%s10243_s4 + $0x108] sm:$0xff]  ;;  %v9304_v50 = vld [vmem:[%s10243_s4 + $0x118] sm:$0xff] }
 0x6e0   :  { %2812 = vmatpush1.msra.mxu0 %v9286_v51  ;;  %2883 = vmatpush1.msra.mxu1 %v9292_v52  ;;  %11661 = vst [vmem:[#allocation22_spill] sm:$0xff] %v9298_v20  ;;  %11662 = vst [vmem:[#allocation23_spill] sm:$0xff] %v9304_v50  ;;  %v9310_v51 = vld [vmem:[%s10243_s4 + $0x100] sm:$0xff]  ;;  %v9316_v52 = vld [vmem:[%s10243_s4 + $0x110] sm:$0xff] }
 0x6e1   :  { %2813 = vmatprep.subr.mxu0 %v9298_v20  ;;  %2884 = vmatprep.subr.mxu1 %v9304_v50  ;;  %11663 = vst [vmem:[#allocation24_spill] sm:$0xff] %v9310_v51  ;;  %11664 = vst [vmem:[#allocation25_spill] sm:$0xff] %v9316_v52  ;;  %v9322_v20 = vld [vmem:[%s10243_s4 + $0xe8] sm:$0xff]  ;;  %v9328_v50 = vld [vmem:[%s10243_s4 + $0xf8] sm:$0xff] }
 0x6e2   :  { %2814 = vmatpush1.msra.mxu0 %v9310_v51  ;;  %2885 = vmatpush1.msra.mxu1 %v9316_v52  ;;  %11665 = vst [vmem:[#allocation26_spill] sm:$0xff] %v9322_v20  ;;  %11666 = vst [vmem:[#allocation27_spill] sm:$0xff] %v9328_v50  ;;  %v9334_v51 = vld [vmem:[%s10243_s4 + $0xe0] sm:$0xff]  ;;  %v9340_v52 = vld [vmem:[%s10243_s4 + $0xf0] sm:$0xff] }
 0x6e3   :  { %2815 = vmatprep.subr.mxu0 %v9322_v20  ;;  %2886 = vmatprep.subr.mxu1 %v9328_v50  ;;  %11667 = vst [vmem:[#allocation28_spill] sm:$0xff] %v9334_v51  ;;  %11668 = vst [vmem:[#allocation29_spill] sm:$0xff] %v9340_v52  ;;  %v9346_v20 = vld [vmem:[%s10243_s4 + $0xc8] sm:$0xff]  ;;  %v9352_v50 = vld [vmem:[%s10243_s4 + $0xd8] sm:$0xff] }
 0x6e4   :  { %2816 = vmatpush1.msra.mxu0 %v9334_v51  ;;  %2887 = vmatpush1.msra.mxu1 %v9340_v52  ;;  %11669 = vst [vmem:[#allocation30_spill] sm:$0xff] %v9346_v20  ;;  %11670 = vst [vmem:[#allocation31_spill] sm:$0xff] %v9352_v50  ;;  %v9358_v51 = vld [vmem:[%s10243_s4 + $0xc0] sm:$0xff]  ;;  %v9364_v52 = vld [vmem:[%s10243_s4 + $0xd0] sm:$0xff] }
 0x6e5   :  { %2817 = vmatprep.subr.mxu0 %v9346_v20  ;;  %2888 = vmatprep.subr.mxu1 %v9352_v50  ;;  %11671 = vst [vmem:[#allocation32_spill] sm:$0xff] %v9358_v51  ;;  %11672 = vst [vmem:[#allocation33_spill] sm:$0xff] %v9364_v52  ;;  %v9370_v20 = vld [vmem:[%s10243_s4 + $0xa8] sm:$0xff]  ;;  %v9376_v50 = vld [vmem:[%s10243_s4 + $0xb8] sm:$0xff] }
 0x6e6   :  { %2818 = vmatpush1.msra.mxu0 %v9358_v51  ;;  %2889 = vmatpush1.msra.mxu1 %v9364_v52  ;;  %11673 = vst [vmem:[#allocation34_spill] sm:$0xff] %v9370_v20  ;;  %11674 = vst [vmem:[#allocation35_spill] sm:$0xff] %v9376_v50  ;;  %v9382_v51 = vld [vmem:[%s10243_s4 + $0xa0] sm:$0xff]  ;;  %v9388_v52 = vld [vmem:[%s10243_s4 + $0xb0] sm:$0xff] }
 0x6e7   :  { %2819 = vmatprep.subr.mxu0 %v9370_v20  ;;  %2890 = vmatprep.subr.mxu1 %v9376_v50  ;;  %11675 = vst [vmem:[#allocation36_spill] sm:$0xff] %v9382_v51  ;;  %11676 = vst [vmem:[#allocation37_spill] sm:$0xff] %v9388_v52  ;;  %v9394_v20 = vld [vmem:[%s10243_s4 + $0x88] sm:$0xff]  ;;  %v9400_v50 = vld [vmem:[%s10243_s4 + $0x98] sm:$0xff] }
 0x6e8   :  { %2820 = vmatpush1.msra.mxu0 %v9382_v51  ;;  %2891 = vmatpush1.msra.mxu1 %v9388_v52  ;;  %11677 = vst [vmem:[#allocation38_spill] sm:$0xff] %v9394_v20  ;;  %11678 = vst [vmem:[#allocation39_spill] sm:$0xff] %v9400_v50  ;;  %v9406_v51 = vld [vmem:[%s10243_s4 + $0x80] sm:$0xff]  ;;  %v9412_v52 = vld [vmem:[%s10243_s4 + $0x90] sm:$0xff] }
 0x6e9   :  { %2821 = vmatprep.subr.mxu0 %v9394_v20  ;;  %2892 = vmatprep.subr.mxu1 %v9400_v50  ;;  %11679 = vst [vmem:[#allocation40_spill] sm:$0xff] %v9406_v51  ;;  %11680 = vst [vmem:[#allocation41_spill] sm:$0xff] %v9412_v52  ;;  %v9418_v20 = vld [vmem:[%s10243_s4 + $0x68] sm:$0xff]  ;;  %v9424_v50 = vld [vmem:[%s10243_s4 + $0x78] sm:$0xff] }
 0x6ea   :  { %2822 = vmatpush1.msra.mxu0 %v9406_v51  ;;  %2893 = vmatpush1.msra.mxu1 %v9412_v52  ;;  %11681 = vst [vmem:[#allocation42_spill] sm:$0xff] %v9418_v20  ;;  %11682 = vst [vmem:[#allocation43_spill] sm:$0xff] %v9424_v50  ;;  %v9430_v51 = vld [vmem:[%s10243_s4 + $0x60] sm:$0xff]  ;;  %v9436_v52 = vld [vmem:[%s10243_s4 + $0x70] sm:$0xff] }
 0x6eb   :  { %2823 = vmatprep.subr.mxu0 %v9418_v20  ;;  %2894 = vmatprep.subr.mxu1 %v9424_v50  ;;  %11683 = vst [vmem:[#allocation44_spill] sm:$0xff] %v9430_v51  ;;  %11684 = vst [vmem:[#allocation45_spill] sm:$0xff] %v9436_v52  ;;  %v9442_v20 = vld [vmem:[%s10243_s4 + $0x48] sm:$0xff]  ;;  %v9448_v50 = vld [vmem:[%s10243_s4 + $0x58] sm:$0xff] }
 0x6ec   :  { %2824 = vmatpush1.msra.mxu0 %v9430_v51  ;;  %2895 = vmatpush1.msra.mxu1 %v9436_v52  ;;  %11685 = vst [vmem:[#allocation46_spill] sm:$0xff] %v9442_v20  ;;  %11686 = vst [vmem:[#allocation47_spill] sm:$0xff] %v9448_v50  ;;  %v9454_v51 = vld [vmem:[%s10243_s4 + $0x40] sm:$0xff]  ;;  %v9460_v52 = vld [vmem:[%s10243_s4 + $0x50] sm:$0xff] }
 0x6ed   :  { %2825 = vmatprep.subr.mxu0 %v9442_v20  ;;  %2896 = vmatprep.subr.mxu1 %v9448_v50  ;;  %11687 = vst [vmem:[#allocation48_spill] sm:$0xff] %v9454_v51  ;;  %11688 = vst [vmem:[#allocation49_spill] sm:$0xff] %v9460_v52  ;;  %v9466_v20 = vld [vmem:[%s10243_s4 + $0x28] sm:$0xff]  ;;  %v9472_v50 = vld [vmem:[%s10243_s4 + $0x38] sm:$0xff] }
 0x6ee   :  { %2826 = vmatpush1.msra.mxu0 %v9454_v51  ;;  %2897 = vmatpush1.msra.mxu1 %v9460_v52  ;;  %11689 = vst [vmem:[#allocation50_spill] sm:$0xff] %v9466_v20  ;;  %11690 = vst [vmem:[#allocation51_spill] sm:$0xff] %v9472_v50  ;;  %v9478_v51 = vld [vmem:[%s10243_s4 + $0x20] sm:$0xff]  ;;  %v9484_v52 = vld [vmem:[%s10243_s4 + $0x30] sm:$0xff] }
 0x6ef   :  { %2827 = vmatprep.subr.mxu0 %v9466_v20  ;;  %2898 = vmatprep.subr.mxu1 %v9472_v50  ;;  %11691 = vst [vmem:[#allocation52_spill] sm:$0xff] %v9478_v51  ;;  %11692 = vst [vmem:[#allocation53_spill] sm:$0xff] %v9484_v52  ;;  %v9490_v20 = vld [vmem:[%s10243_s4 + $0x8] sm:$0xff]  ;;  %v9496_v50 = vld [vmem:[%s10243_s4 + $0x18] sm:$0xff] }
 0x6f0   :  { %2828 = vmatpush1.msra.mxu0 %v9478_v51  ;;  %2899 = vmatpush1.msra.mxu1 %v9484_v52  ;;  %11693 = vst [vmem:[#allocation54_spill] sm:$0xff] %v9490_v20  ;;  %11694 = vst [vmem:[#allocation55_spill] sm:$0xff] %v9496_v50  ;;  %v9502_v51 = vld [vmem:[%s10243_s4] sm:$0xff]  ;;  %v9508_v52 = vld [vmem:[%s10243_s4 + $0x10] sm:$0xff] }
 0x6f1   :  { %2829 = vmatprep.subr.mxu0 %v9490_v20  ;;  %2900 = vmatprep.subr.mxu1 %v9496_v50  ;;  %11695 = vst [vmem:[#allocation56_spill] sm:$0xff] %v9502_v51  ;;  %11696 = vst [vmem:[#allocation57_spill] sm:$0xff] %v9508_v52  ;;  %v9514_v20 = vld [vmem:[%s10243_s4 + $0x3e8] sm:$0xff]  ;;  %v9520_v50 = vld [vmem:[%s10243_s4 + $0x3f8] sm:$0xff] }
 0x6f2   :  { %2830 = vmatpush1.msra.mxu0 %v9502_v51  ;;  %2901 = vmatpush1.msra.mxu1 %v9508_v52  ;;  %11697 = vst [vmem:[#allocation58_spill] sm:$0xff] %v9514_v20  ;;  %11698 = vst [vmem:[#allocation59_spill] sm:$0xff] %v9520_v50  ;;  %v9526_v51 = vld [vmem:[%s10243_s4 + $0x3e0] sm:$0xff]  ;;  %v9532_v52 = vld [vmem:[%s10243_s4 + $0x3f0] sm:$0xff] }
 0x6f3   :  { %2831 = vmatprep.subr.mxu0 %v9514_v20  ;;  %2902 = vmatprep.subr.mxu1 %v9520_v50  ;;  %11699 = vst [vmem:[#allocation60_spill] sm:$0xff] %v9526_v51  ;;  %11700 = vst [vmem:[#allocation61_spill] sm:$0xff] %v9532_v52  ;;  %v9538_v20 = vld [vmem:[%s10243_s4 + $0x3c8] sm:$0xff]  ;;  %v9544_v50 = vld [vmem:[%s10243_s4 + $0x3d8] sm:$0xff] }
 0x6f4   :  { %2832 = vmatpush2.msra.mxu0 %v9526_v51  ;;  %2903 = vmatpush2.msra.mxu1 %v9532_v52  ;;  %11701 = vst [vmem:[#allocation62_spill] sm:$0xff] %v9538_v20  ;;  %11702 = vst [vmem:[#allocation63_spill] sm:$0xff] %v9544_v50  ;;  %v9550_v51 = vld [vmem:[%s10243_s4 + $0x3c0] sm:$0xff]  ;;  %v9556_v52 = vld [vmem:[%s10243_s4 + $0x3d0] sm:$0xff] }
 0x6f5   :  { %2833 = vmatprep.subr.mxu0 %v9538_v20  ;;  %2904 = vmatprep.subr.mxu1 %v9544_v50  ;;  %11703 = vst [vmem:[#allocation64_spill] sm:$0xff] %v9550_v51  ;;  %11704 = vst [vmem:[#allocation65_spill] sm:$0xff] %v9556_v52  ;;  %v9562_v20 = vld [vmem:[%s10243_s4 + $0x3a8] sm:$0xff]  ;;  %v9568_v50 = vld [vmem:[%s10243_s4 + $0x3b8] sm:$0xff] }
 0x6f6   :  { %2834 = vmatpush2.msra.mxu0 %v9550_v51  ;;  %2905 = vmatpush2.msra.mxu1 %v9556_v52  ;;  %11705 = vst [vmem:[#allocation66_spill] sm:$0xff] %v9562_v20  ;;  %11706 = vst [vmem:[#allocation67_spill] sm:$0xff] %v9568_v50  ;;  %v9574_v51 = vld [vmem:[%s10243_s4 + $0x3a0] sm:$0xff]  ;;  %v9580_v52 = vld [vmem:[%s10243_s4 + $0x3b0] sm:$0xff] }
 0x6f7   :  { %2835 = vmatprep.subr.mxu0 %v9562_v20  ;;  %2906 = vmatprep.subr.mxu1 %v9568_v50  ;;  %11707 = vst [vmem:[#allocation68_spill] sm:$0xff] %v9574_v51  ;;  %11708 = vst [vmem:[#allocation69_spill] sm:$0xff] %v9580_v52  ;;  %v9586_v20 = vld [vmem:[%s10243_s4 + $0x388] sm:$0xff]  ;;  %v9592_v50 = vld [vmem:[%s10243_s4 + $0x398] sm:$0xff] }
 0x6f8   :  { %2836 = vmatpush2.msra.mxu0 %v9574_v51  ;;  %2907 = vmatpush2.msra.mxu1 %v9580_v52  ;;  %11709 = vst [vmem:[#allocation70_spill] sm:$0xff] %v9586_v20  ;;  %11710 = vst [vmem:[#allocation71_spill] sm:$0xff] %v9592_v50  ;;  %v9598_v51 = vld [vmem:[%s10243_s4 + $0x380] sm:$0xff]  ;;  %v9604_v52 = vld [vmem:[%s10243_s4 + $0x390] sm:$0xff] }
 0x6f9   :  { %2837 = vmatprep.subr.mxu0 %v9586_v20  ;;  %2908 = vmatprep.subr.mxu1 %v9592_v50  ;;  %11711 = vst [vmem:[#allocation72_spill] sm:$0xff] %v9598_v51  ;;  %11712 = vst [vmem:[#allocation73_spill] sm:$0xff] %v9604_v52  ;;  %v9610_v20 = vld [vmem:[%s10243_s4 + $0x368] sm:$0xff]  ;;  %v9616_v50 = vld [vmem:[%s10243_s4 + $0x378] sm:$0xff] }
 0x6fa   :  { %2838 = vmatpush2.msra.mxu0 %v9598_v51  ;;  %2909 = vmatpush2.msra.mxu1 %v9604_v52  ;;  %11713 = vst [vmem:[#allocation74_spill] sm:$0xff] %v9610_v20  ;;  %11714 = vst [vmem:[#allocation75_spill] sm:$0xff] %v9616_v50  ;;  %v9622_v51 = vld [vmem:[%s10243_s4 + $0x360] sm:$0xff]  ;;  %v9628_v52 = vld [vmem:[%s10243_s4 + $0x370] sm:$0xff] }
 0x6fb   :  { %2839 = vmatprep.subr.mxu0 %v9610_v20  ;;  %2910 = vmatprep.subr.mxu1 %v9616_v50  ;;  %11715 = vst [vmem:[#allocation76_spill] sm:$0xff] %v9622_v51  ;;  %11716 = vst [vmem:[#allocation77_spill] sm:$0xff] %v9628_v52  ;;  %v9634_v20 = vld [vmem:[%s10243_s4 + $0x348] sm:$0xff]  ;;  %v9640_v50 = vld [vmem:[%s10243_s4 + $0x358] sm:$0xff] }
 0x6fc   :  { %2840 = vmatpush2.msra.mxu0 %v9622_v51  ;;  %2911 = vmatpush2.msra.mxu1 %v9628_v52  ;;  %11717 = vst [vmem:[#allocation78_spill] sm:$0xff] %v9634_v20  ;;  %11718 = vst [vmem:[#allocation79_spill] sm:$0xff] %v9640_v50  ;;  %v9646_v51 = vld [vmem:[%s10243_s4 + $0x340] sm:$0xff]  ;;  %v9652_v52 = vld [vmem:[%s10243_s4 + $0x350] sm:$0xff] }
 0x6fd   :  { %2841 = vmatprep.subr.mxu0 %v9634_v20  ;;  %2912 = vmatprep.subr.mxu1 %v9640_v50  ;;  %11719 = vst [vmem:[#allocation80_spill] sm:$0xff] %v9646_v51  ;;  %11720 = vst [vmem:[#allocation81_spill] sm:$0xff] %v9652_v52  ;;  %v9658_v20 = vld [vmem:[%s10243_s4 + $0x328] sm:$0xff]  ;;  %v9664_v50 = vld [vmem:[%s10243_s4 + $0x338] sm:$0xff] }
 0x6fe   :  { %2842 = vmatpush2.msra.mxu0 %v9646_v51  ;;  %2913 = vmatpush2.msra.mxu1 %v9652_v52  ;;  %11721 = vst [vmem:[#allocation82_spill] sm:$0xff] %v9658_v20  ;;  %11722 = vst [vmem:[#allocation83_spill] sm:$0xff] %v9664_v50  ;;  %v9670_v51 = vld [vmem:[%s10243_s4 + $0x320] sm:$0xff]  ;;  %v9676_v52 = vld [vmem:[%s10243_s4 + $0x330] sm:$0xff] }
 0x6ff   :  { %2843 = vmatprep.subr.mxu0 %v9658_v20  ;;  %2914 = vmatprep.subr.mxu1 %v9664_v50  ;;  %11723 = vst [vmem:[#allocation84_spill] sm:$0xff] %v9670_v51  ;;  %11724 = vst [vmem:[#allocation85_spill] sm:$0xff] %v9676_v52  ;;  %v9682_v20 = vld [vmem:[%s10243_s4 + $0x308] sm:$0xff]  ;;  %v9688_v50 = vld [vmem:[%s10243_s4 + $0x318] sm:$0xff] }
 0x700   :  { %2844 = vmatpush2.msra.mxu0 %v9670_v51  ;;  %2915 = vmatpush2.msra.mxu1 %v9676_v52  ;;  %11725 = vst [vmem:[#allocation86_spill] sm:$0xff] %v9682_v20  ;;  %11726 = vst [vmem:[#allocation87_spill] sm:$0xff] %v9688_v50  ;;  %v9694_v51 = vld [vmem:[%s10243_s4 + $0x300] sm:$0xff]  ;;  %v9700_v52 = vld [vmem:[%s10243_s4 + $0x310] sm:$0xff] }
 0x701   :  { %2845 = vmatprep.subr.mxu0 %v9682_v20  ;;  %2916 = vmatprep.subr.mxu1 %v9688_v50  ;;  %11727 = vst [vmem:[#allocation88_spill] sm:$0xff] %v9694_v51  ;;  %11728 = vst [vmem:[#allocation89_spill] sm:$0xff] %v9700_v52  ;;  %v9706_v20 = vld [vmem:[%s10243_s4 + $0x2e8] sm:$0xff]  ;;  %v9712_v50 = vld [vmem:[%s10243_s4 + $0x2f8] sm:$0xff] }
 0x702   :  { %2846 = vmatpush2.msra.mxu0 %v9694_v51  ;;  %2917 = vmatpush2.msra.mxu1 %v9700_v52  ;;  %11729 = vst [vmem:[#allocation90_spill] sm:$0xff] %v9706_v20  ;;  %11730 = vst [vmem:[#allocation91_spill] sm:$0xff] %v9712_v50  ;;  %v9718_v51 = vld [vmem:[%s10243_s4 + $0x2e0] sm:$0xff]  ;;  %v9724_v52 = vld [vmem:[%s10243_s4 + $0x2f0] sm:$0xff] }
 0x703   :  { %2847 = vmatprep.subr.mxu0 %v9706_v20  ;;  %2918 = vmatprep.subr.mxu1 %v9712_v50  ;;  %11731 = vst [vmem:[#allocation92_spill] sm:$0xff] %v9718_v51  ;;  %11732 = vst [vmem:[#allocation93_spill] sm:$0xff] %v9724_v52  ;;  %v9730_v20 = vld [vmem:[%s10243_s4 + $0x2c8] sm:$0xff]  ;;  %v9736_v50 = vld [vmem:[%s10243_s4 + $0x2d8] sm:$0xff] }
 0x704   :  { %2848 = vmatpush2.msra.mxu0 %v9718_v51  ;;  %2919 = vmatpush2.msra.mxu1 %v9724_v52  ;;  %11733 = vst [vmem:[#allocation94_spill] sm:$0xff] %v9730_v20  ;;  %11734 = vst [vmem:[#allocation95_spill] sm:$0xff] %v9736_v50  ;;  %v9742_v51 = vld [vmem:[%s10243_s4 + $0x2c0] sm:$0xff]  ;;  %v9748_v52 = vld [vmem:[%s10243_s4 + $0x2d0] sm:$0xff] }
 0x705   :  { %2849 = vmatprep.subr.mxu0 %v9730_v20  ;;  %2920 = vmatprep.subr.mxu1 %v9736_v50  ;;  %11735 = vst [vmem:[#allocation96_spill] sm:$0xff] %v9742_v51  ;;  %11736 = vst [vmem:[#allocation97_spill] sm:$0xff] %v9748_v52  ;;  %v9754_v20 = vld [vmem:[%s10243_s4 + $0x2a8] sm:$0xff]  ;;  %v9760_v50 = vld [vmem:[%s10243_s4 + $0x2b8] sm:$0xff] }
 0x706   :  { %2850 = vmatpush2.msra.mxu0 %v9742_v51  ;;  %2921 = vmatpush2.msra.mxu1 %v9748_v52  ;;  %11737 = vst [vmem:[#allocation98_spill] sm:$0xff] %v9754_v20  ;;  %11738 = vst [vmem:[#allocation99_spill] sm:$0xff] %v9760_v50  ;;  %v9766_v51 = vld [vmem:[%s10243_s4 + $0x2a0] sm:$0xff]  ;;  %v9772_v52 = vld [vmem:[%s10243_s4 + $0x2b0] sm:$0xff] }
 0x707   :  { %2851 = vmatprep.subr.mxu0 %v9754_v20  ;;  %2922 = vmatprep.subr.mxu1 %v9760_v50  ;;  %11739 = vst [vmem:[#allocation100_spill] sm:$0xff] %v9766_v51  ;;  %11740 = vst [vmem:[#allocation101_spill] sm:$0xff] %v9772_v52  ;;  %v9778_v20 = vld [vmem:[%s10243_s4 + $0x288] sm:$0xff]  ;;  %v9784_v50 = vld [vmem:[%s10243_s4 + $0x298] sm:$0xff] }
 0x708   :  { %2852 = vmatpush2.msra.mxu0 %v9766_v51  ;;  %2923 = vmatpush2.msra.mxu1 %v9772_v52  ;;  %11741 = vst [vmem:[#allocation102_spill] sm:$0xff] %v9778_v20  ;;  %11742 = vst [vmem:[#allocation103_spill] sm:$0xff] %v9784_v50  ;;  %v9790_v51 = vld [vmem:[%s10243_s4 + $0x280] sm:$0xff]  ;;  %v9796_v52 = vld [vmem:[%s10243_s4 + $0x290] sm:$0xff] }
 0x709   :  { %2853 = vmatprep.subr.mxu0 %v9778_v20  ;;  %2924 = vmatprep.subr.mxu1 %v9784_v50  ;;  %11743 = vst [vmem:[#allocation104_spill] sm:$0xff] %v9790_v51  ;;  %11744 = vst [vmem:[#allocation105_spill] sm:$0xff] %v9796_v52  ;;  %v9802_v20 = vld [vmem:[%s10243_s4 + $0x268] sm:$0xff]  ;;  %v9808_v50 = vld [vmem:[%s10243_s4 + $0x278] sm:$0xff] }
 0x70a   :  { %2854 = vmatpush2.msra.mxu0 %v9790_v51  ;;  %2925 = vmatpush2.msra.mxu1 %v9796_v52  ;;  %11745 = vst [vmem:[#allocation106_spill] sm:$0xff] %v9802_v20  ;;  %11746 = vst [vmem:[#allocation107_spill] sm:$0xff] %v9808_v50  ;;  %v9814_v51 = vld [vmem:[%s10243_s4 + $0x260] sm:$0xff]  ;;  %v9820_v52 = vld [vmem:[%s10243_s4 + $0x270] sm:$0xff] }
 0x70b   :  { %2855 = vmatprep.subr.mxu0 %v9802_v20  ;;  %2926 = vmatprep.subr.mxu1 %v9808_v50  ;;  %11747 = vst [vmem:[#allocation108_spill] sm:$0xff] %v9814_v51  ;;  %11748 = vst [vmem:[#allocation109_spill] sm:$0xff] %v9820_v52  ;;  %v9826_v20 = vld [vmem:[%s10243_s4 + $0x248] sm:$0xff]  ;;  %v9832_v50 = vld [vmem:[%s10243_s4 + $0x258] sm:$0xff] }
 0x70c   :  { %2856 = vmatpush2.msra.mxu0 %v9814_v51  ;;  %2927 = vmatpush2.msra.mxu1 %v9820_v52  ;;  %11749 = vst [vmem:[#allocation110_spill] sm:$0xff] %v9826_v20  ;;  %11750 = vst [vmem:[#allocation111_spill] sm:$0xff] %v9832_v50  ;;  %v9838_v51 = vld [vmem:[%s10243_s4 + $0x240] sm:$0xff]  ;;  %v9844_v52 = vld [vmem:[%s10243_s4 + $0x250] sm:$0xff] }
 0x70d   :  { %2857 = vmatprep.subr.mxu0 %v9826_v20  ;;  %2928 = vmatprep.subr.mxu1 %v9832_v50  ;;  %11751 = vst [vmem:[#allocation112_spill] sm:$0xff] %v9838_v51  ;;  %11752 = vst [vmem:[#allocation113_spill] sm:$0xff] %v9844_v52  ;;  %v9850_v20 = vld [vmem:[%s10243_s4 + $0x228] sm:$0xff]  ;;  %v9856_v50 = vld [vmem:[%s10243_s4 + $0x238] sm:$0xff] }
 0x70e   :  { %2858 = vmatpush2.msra.mxu0 %v9838_v51  ;;  %2929 = vmatpush2.msra.mxu1 %v9844_v52  ;;  %11753 = vst [vmem:[#allocation114_spill] sm:$0xff] %v9850_v20  ;;  %11754 = vst [vmem:[#allocation115_spill] sm:$0xff] %v9856_v50  ;;  %v9862_v51 = vld [vmem:[%s10243_s4 + $0x220] sm:$0xff]  ;;  %v9868_v52 = vld [vmem:[%s10243_s4 + $0x230] sm:$0xff] }
 0x70f   :  { %2859 = vmatprep.subr.mxu0 %v9850_v20  ;;  %2930 = vmatprep.subr.mxu1 %v9856_v50  ;;  %11755 = vst [vmem:[#allocation116_spill] sm:$0xff] %v9862_v51  ;;  %11756 = vst [vmem:[#allocation117_spill] sm:$0xff] %v9868_v52  ;;  %v9874_v20 = vld [vmem:[%s10243_s4 + $0x208] sm:$0xff]  ;;  %v9880_v50 = vld [vmem:[%s10243_s4 + $0x218] sm:$0xff] }
 0x710   :  { %2860 = vmatpush2.msra.mxu0 %v9862_v51  ;;  %2931 = vmatpush2.msra.mxu1 %v9868_v52  ;;  %11757 = vst [vmem:[#allocation118_spill] sm:$0xff] %v9874_v20  ;;  %11758 = vst [vmem:[#allocation119_spill] sm:$0xff] %v9880_v50  ;;  %v9886_v51 = vld [vmem:[%s10243_s4 + $0x200] sm:$0xff]  ;;  %v9892_v52 = vld [vmem:[%s10243_s4 + $0x210] sm:$0xff] }
 0x711   :  { %2861 = vmatprep.subr.mxu0 %v9874_v20  ;;  %2932 = vmatprep.subr.mxu1 %v9880_v50  ;;  %11759 = vst [vmem:[#allocation120_spill] sm:$0xff] %v9886_v51  ;;  %11760 = vst [vmem:[#allocation121_spill] sm:$0xff] %v9892_v52 }
 0x712   :  { %2862 = vmatpush2.msra.mxu0 %v9886_v51  ;;  %2933 = vmatpush2.msra.mxu1 %v9892_v52 }
 0x713   :  { %2972 = vmatprep.subr.mxu0 %v8822_v47  ;;  %3043 = vmatprep.subr.mxu1 %v8828_v6 }
 0x771   :  { %v2522_v20 = vpop.f32.mrf.mxu0  ;;  %v2593_v51 = vpop.f32.mrf.mxu1 }
 0x772   :  { %v2523_v50 = vadd.f32 %v2522_v20, %v11623_v60  ;;  %v2594_v47 = vadd.f32 %v2593_v51, %v11626_v38 }
 0x773   :  { %v2524_v46 = vpop.f32.mrf.mxu0  ;;  %v2595_v49 = vpop.f32.mrf.mxu1 }
 0x774   :  { %v3462_v41 = vmul.f32 -1.442695, %v2523_v50  ;;  %v2525_v40 = vadd.f32 %v2524_v46, %v11624_v4  ;;  %v2596_v0 = vadd.f32 %v2595_v49, %v11625_v61  ;;  %v11761_v4 = vld [vmem:[#allocation152_spill] sm:$0xff] }
 0x776   :  { %3708 = vpow2.f32 %v3462_v41  ;;  %v3463_v39 = vmul.f32 -1.442695, %v2525_v40  ;;  %v3464_v62 = vmul.f32 -1.442695, %v2596_v0  ;;  %v11762_v0 = vld [vmem:[#allocation154_spill] sm:$0xff] }
 0x778   :  { %3710 = vpow2.f32 %v3463_v39 }
 0x779   :  { %3712 = vpow2.f32 %v3464_v62 }
 0x783   :  { %v3709_v52 = vpop.eup %3708 }
 0x784   :  { %v2601_v14 = vadd.f32 1.0, %v3709_v52 }
 0x785   :  { %v3711_v6 = vpop.eup %3710 }
 0x786   :  { %3714 = vrcp.f32 %v2601_v14  ;;  %v2607_v20 = vadd.f32 1.0, %v3711_v6  ;;  %v3713_v50 = vpop.eup %3712 }
 0x787   :  { %3716 = vtanh.f32 %v2594_v47  ;;  %v2614_v52 = vadd.f32 1.0, %v3713_v50 }
 0x788   :  { %3718 = vrcp.f32 %v2607_v20 }
 0x792   :  { %v2695_v46 = vpop.f32.mrf.mxu0  ;;  %v2766_v14 = vpop.f32.mrf.mxu1 }
 0x793   :  { %v3715_v41 = vpop.eup %3714  ;;  %v2771_v40 = vadd.f32 %v2695_v46, %v11761_v4  ;;  %v11763_v4 = vld [vmem:[#allocation155_spill] sm:$0xff]  ;;  %v11764_v46 = vld [vmem:[#allocation153_spill] sm:$0xff] }
 0x794   :  { %v3717_v39 = vpop.eup %3716  ;;  %v2697_v60 = vpop.f32.mrf.mxu0 }
 0x795   :  { %v3719_v13 = vpop.eup %3718  ;;  %v3465_v49 = vmul.f32 -1.442695, %v2771_v40  ;;  %v2772_v61 = vadd.f32 %v2697_v60, %v11762_v0  ;;  %v2618_v1 = vmul.f32 %v3717_v39, %v3715_v41  ;;  %v2768_v6 = vpop.f32.mrf.mxu1  ;;  %v2773_v40 = vadd.f32 %v2766_v14, %v11764_v46  ;;  %v4364_v46 = vld [vmem:[%s10242_s2 + $0x1e0] sm:$0xff] }
 0x796   :  { %v2617_v51 = vmul.f32 %v3719_v13, %v8838_v19  ;;  %v2774_v20 = vadd.f32 %v2768_v6, %v11763_v4 }
 0x797   :  { %3720 = vpow2.f32 %v3465_v49  ;;  %v3466_v62 = vmul.f32 -1.442695, %v2772_v61 }
 0x798   :  { %v9904_v47 = vadd.f32 %v2618_v1, %v2617_v51  ;;  %v3467_v38 = vmul.f32 -1.442695, %v2774_v20 }
 0x799   :  { %3722 = vpow2.f32 %v3466_v62 }
 0x79a   :  { %3724 = vrcp.f32 %v2614_v52 }
 0x79b   :  { %3726 = vtanh.f32 %v9904_v47 }
 0x79c   :  { %3728 = vtanh.f32 %v2773_v40  ;;  %v4366_v40 = vld [vmem:[%s10242_s2 + $0x1c8] sm:$0xff] }
 0x79d   :  { %3730 = vpow2.f32 %v3467_v38 }
 0x7a4   :  { %v3721_v60 = vpop.eup %3720 }
 0x7a5   :  { %v2778_v41 = vadd.f32 1.0, %v3721_v60  ;;  %v4367_v60 = vld [vmem:[%s10242_s2 + $0x1d8] sm:$0xff] }
 0x7a6   :  { %v3723_v19 = vpop.eup %3722 }
 0x7a7   :  { %v3725_v13 = vpop.eup %3724  ;;  %3732 = vrcp.f32 %v2778_v41  ;;  %v2784_v61 = vadd.f32 1.0, %v3723_v19  ;;  %v4368_v41 = vld [vmem:[%s10242_s2 + $0x1c0] sm:$0xff]  ;;  %v4369_v19 = vld [vmem:[%s10242_s2 + $0x1d0] sm:$0xff] }
 0x7a8   :  { %v3727_v1 = vpop.eup %3726 }
 0x7a9   :  { %3734 = vrcp.f32 %v2784_v61  ;;  %v2621_v50 = vmul.f32 %v3727_v1, %v3725_v13  ;;  %v3729_v39 = vpop.eup %3728  ;;  %v4370_v13 = vld [vmem:[%s10242_s2 + $0x1a8] sm:$0xff]  ;;  %v4371_v61 = vld [vmem:[%s10242_s2 + $0x1b8] sm:$0xff]  ;;  %v4372_v1 = vld [vmem:[%s10242_s2 + $0x1a0] sm:$0xff] }
 0x7aa   :  { %v3731_v49 = vpop.eup %3730 }
 0x7ab   :  { %2863 = vmatprep.mubr.f32.mxu0 %v2621_v50  ;;  %2934 = vmatprep.mubr.f32.mxu1 %v2621_v50  ;;  %v2791_v14 = vadd.f32 1.0, %v3731_v49  ;;  %v4373_v50 = vld [vmem:[%s10242_s2 + $0x1b0] sm:$0xff]  ;;  %v4375_v49 = vld [vmem:[%s10242_s2 + $0x198] sm:$0xff] }
 0x7ad   :  { %3736 = vrcp.f32 %v2791_v14  ;;  %v4379_v14 = vld [vmem:[%s10242_s2 + $0x178] sm:$0xff] }
 0x7b4   :  { %v3733_v0 = vpop.eup %3732 }
 0x7b5   :  { %v2795_v51 = vmul.f32 %v3733_v0, %v3729_v39  ;;  %v4374_v39 = vld [vmem:[%s10242_s2 + $0x188] sm:$0xff]  ;;  %v4376_v0 = vld [vmem:[%s10242_s2 + $0x180] sm:$0xff] }
 0x7b6   :  { %v3735_v52 = vpop.eup %3734 }
 0x7b7   :  { %v2794_v62 = vmul.f32 %v3735_v52, %v8844_v48  ;;  %v4365_v48 = vld [vmem:[%s10242_s2 + $0x1f0] sm:$0xff]  ;;  %v4378_v52 = vld [vmem:[%s10242_s2 + $0x168] sm:$0xff] }
 0x7b9   :  { %v9910_v6 = vadd.f32 %v2795_v51, %v2794_v62  ;;  %v4377_v51 = vld [vmem:[%s10242_s2 + $0x190] sm:$0xff]  ;;  %v4380_v62 = vld [vmem:[%s10242_s2 + $0x160] sm:$0xff] }
 0x7ba   :  { %v3737_v38 = vpop.eup %3736 }
 0x7bb   :  { %3738 = vtanh.f32 %v9910_v6 }
 0x7c8   :  { %v3739_v4 = vpop.eup %3738 }
 0x7c9   :  { %v9913_v20 = vmul.f32 %v3739_v4, %v3737_v38  ;;  %v4381_v38 = vld [vmem:[%s10242_s2 + $0x170] sm:$0xff]  ;;  %v4382_v4 = vld [vmem:[%s10242_s2 + $0x148] sm:$0xff] }
 0x7cb   :  { %2864 = vmatmul.mubr.f32.vlgmr.msra.gmra.mxu0 %v9913_v20  ;;  %2935 = vmatmul.mubr.f32.vlgmr.msra.gmra.mxu1 %v9913_v20 }
 0x7cc   :  { %2973 = vmatpush1.msra.mxu0 %v4364_v46  ;;  %3044 = vmatpush1.msra.mxu1 %v4365_v48  ;;  %v4383_v46 = vld [vmem:[%s10242_s2 + $0x158] sm:$0xff]  ;;  %v11807_v48 = vld [vmem:[#allocation35_spill] sm:$0xff] }
 0x7cd   :  { %2974 = vmatprep.subr.mxu0 %v4366_v40  ;;  %3045 = vmatprep.subr.mxu1 %v4367_v60  ;;  %v11808_v40 = vld [vmem:[#allocation36_spill] sm:$0xff]  ;;  %v11809_v60 = vld [vmem:[#allocation37_spill] sm:$0xff] }
 0x7ce   :  { %2975 = vmatpush1.msra.mxu0 %v4368_v41  ;;  %3046 = vmatpush1.msra.mxu1 %v4369_v19  ;;  %v11810_v41 = vld [vmem:[#allocation38_spill] sm:$0xff]  ;;  %v11811_v19 = vld [vmem:[#allocation39_spill] sm:$0xff] }
 0x7cf   :  { %2976 = vmatprep.subr.mxu0 %v4370_v13  ;;  %3047 = vmatprep.subr.mxu1 %v4371_v61  ;;  %v11812_v13 = vld [vmem:[#allocation40_spill] sm:$0xff]  ;;  %v11813_v61 = vld [vmem:[#allocation41_spill] sm:$0xff] }
 0x7d0   :  { %2977 = vmatpush1.msra.mxu0 %v4372_v1  ;;  %3048 = vmatpush1.msra.mxu1 %v4373_v50  ;;  %v11814_v1 = vld [vmem:[#allocation42_spill] sm:$0xff]  ;;  %v11815_v50 = vld [vmem:[#allocation43_spill] sm:$0xff] }
 0x7d1   :  { %2978 = vmatprep.subr.mxu0 %v4374_v39  ;;  %3049 = vmatprep.subr.mxu1 %v4375_v49  ;;  %v11816_v39 = vld [vmem:[#allocation44_spill] sm:$0xff]  ;;  %v11817_v49 = vld [vmem:[#allocation45_spill] sm:$0xff] }
 0x7d2   :  { %2979 = vmatpush1.msra.mxu0 %v4376_v0  ;;  %3050 = vmatpush1.msra.mxu1 %v4377_v51  ;;  %v11818_v0 = vld [vmem:[#allocation46_spill] sm:$0xff]  ;;  %v11819_v51 = vld [vmem:[#allocation47_spill] sm:$0xff] }
 0x7d3   :  { %2980 = vmatprep.subr.mxu0 %v4378_v52  ;;  %3051 = vmatprep.subr.mxu1 %v4379_v14  ;;  %v11820_v52 = vld [vmem:[#allocation48_spill] sm:$0xff]  ;;  %v11821_v14 = vld [vmem:[#allocation49_spill] sm:$0xff] }
 0x7d4   :  { %2981 = vmatpush1.msra.mxu0 %v4380_v62  ;;  %3052 = vmatpush1.msra.mxu1 %v4381_v38  ;;  %v11822_v62 = vld [vmem:[#allocation50_spill] sm:$0xff]  ;;  %v11823_v38 = vld [vmem:[#allocation51_spill] sm:$0xff] }
 0x7d5   :  { %2982 = vmatprep.subr.mxu0 %v4382_v4  ;;  %3053 = vmatprep.subr.mxu1 %v4383_v46  ;;  %v11824_v4 = vld [vmem:[#allocation52_spill] sm:$0xff]  ;;  %v11825_v46 = vld [vmem:[#allocation53_spill] sm:$0xff] }
 0x7d6   :  { %2983 = vmatpush1.msra.mxu0 %v8874_v17  ;;  %3054 = vmatpush1.msra.mxu1 %v8880_v18  ;;  %v11765_v17 = vld [vmem:[#allocation135_spill] sm:$0xff]  ;;  %v11766_v18 = vld [vmem:[#allocation133_spill] sm:$0xff] }
 0x7d7   :  { %2984 = vmatprep.subr.mxu0 %v8886_v16  ;;  %3055 = vmatprep.subr.mxu1 %v8892_v29  ;;  %v11767_v16 = vld [vmem:[#allocation140_spill] sm:$0xff]  ;;  %v11768_v29 = vld [vmem:[#allocation142_spill] sm:$0xff] }
 0x7d8   :  { %2985 = vmatpush1.msra.mxu0 %v8898_v3  ;;  %3056 = vmatpush1.msra.mxu1 %v8904_v57  ;;  %v11769_v3 = vld [vmem:[#allocation143_spill] sm:$0xff]  ;;  %v11770_v57 = vld [vmem:[#allocation141_spill] sm:$0xff] }
 0x7d9   :  { %2986 = vmatprep.subr.mxu0 %v8910_v24  ;;  %3057 = vmatprep.subr.mxu1 %v8916_v23  ;;  %v11771_v24 = vld [vmem:[#allocation136_spill] sm:$0xff] }
 0x7da   :  { %2987 = vmatpush1.msra.mxu0 %v8922_v25  ;;  %3058 = vmatpush1.msra.mxu1 %v8928_v33  ;;  %v11772_v23 = vld [vmem:[#allocation144_spill] sm:$0xff]  ;;  %v11773_v25 = vld [vmem:[#allocation146_spill] sm:$0xff]  ;;  %v11774_v33 = vld [vmem:[#allocation147_spill] sm:$0xff] }
 0x7db   :  { %2988 = vmatprep.subr.mxu0 %v8934_v30  ;;  %3059 = vmatprep.subr.mxu1 %v8940_v10  ;;  %v11775_v30 = vld [vmem:[#allocation145_spill] sm:$0xff]  ;;  %v11776_v10 = vld [vmem:[#allocation138_spill] sm:$0xff] }
 0x7dc   :  { %2989 = vmatpush1.msra.mxu0 %v8946_v26  ;;  %3060 = vmatpush1.msra.mxu1 %v8952_v35  ;;  %v11777_v26 = vld [vmem:[#allocation139_spill] sm:$0xff]  ;;  %v11778_v35 = vld [vmem:[#allocation137_spill] sm:$0xff] }
 0x7dd   :  { %2990 = vmatprep.subr.mxu0 %v8958_v37  ;;  %3061 = vmatprep.subr.mxu1 %v8964_v45  ;;  %v11779_v37 = vld [vmem:[#allocation7_spill] sm:$0xff]  ;;  %v11780_v45 = vld [vmem:[#allocation8_spill] sm:$0xff] }
 0x7de   :  { %2991 = vmatpush1.msra.mxu0 %v8970_v63  ;;  %3062 = vmatpush1.msra.mxu1 %v8976_v22  ;;  %v11781_v63 = vld [vmem:[#allocation9_spill] sm:$0xff]  ;;  %v11782_v22 = vld [vmem:[#allocation10_spill] sm:$0xff] }
 0x7df   :  { %2992 = vmatprep.subr.mxu0 %v8982_v54  ;;  %3063 = vmatprep.subr.mxu1 %v8988_v53  ;;  %v11783_v54 = vld [vmem:[#allocation11_spill] sm:$0xff]  ;;  %v11784_v53 = vld [vmem:[#allocation12_spill] sm:$0xff] }
 0x7e0   :  { %2993 = vmatpush1.msra.mxu0 %v8994_v55  ;;  %3064 = vmatpush1.msra.mxu1 %v9000_v56  ;;  %v11785_v55 = vld [vmem:[#allocation13_spill] sm:$0xff]  ;;  %v11786_v56 = vld [vmem:[#allocation14_spill] sm:$0xff] }
 0x7e1   :  { %2994 = vmatprep.subr.mxu0 %v9006_v15  ;;  %3065 = vmatprep.subr.mxu1 %v9012_v11  ;;  %v11787_v15 = vld [vmem:[#allocation15_spill] sm:$0xff]  ;;  %v11788_v11 = vld [vmem:[#allocation16_spill] sm:$0xff] }
 0x7e2   :  { %2995 = vmatpush1.msra.mxu0 %v9018_v9  ;;  %3066 = vmatpush1.msra.mxu1 %v9024_v28  ;;  %v11789_v9 = vld [vmem:[#allocation17_spill] sm:$0xff]  ;;  %v11790_v28 = vld [vmem:[#allocation18_spill] sm:$0xff] }
 0x7e3   :  { %2996 = vmatprep.subr.mxu0 %v9030_v36  ;;  %3067 = vmatprep.subr.mxu1 %v9036_v31  ;;  %v11791_v36 = vld [vmem:[#allocation19_spill] sm:$0xff]  ;;  %v11792_v31 = vld [vmem:[#allocation20_spill] sm:$0xff] }
 0x7e4   :  { %2997 = vmatpush1.msra.mxu0 %v9042_v32  ;;  %3068 = vmatpush1.msra.mxu1 %v9048_v27  ;;  %v11793_v32 = vld [vmem:[#allocation21_spill] sm:$0xff]  ;;  %v11794_v27 = vld [vmem:[#allocation22_spill] sm:$0xff] }
 0x7e5   :  { %2998 = vmatprep.subr.mxu0 %v9054_v42  ;;  %3069 = vmatprep.subr.mxu1 %v9060_v43  ;;  %v11795_v42 = vld [vmem:[#allocation23_spill] sm:$0xff]  ;;  %v11796_v43 = vld [vmem:[#allocation24_spill] sm:$0xff] }
 0x7e6   :  { %2999 = vmatpush1.msra.mxu0 %v9066_v7  ;;  %3070 = vmatpush1.msra.mxu1 %v9072_v12  ;;  %v11797_v7 = vld [vmem:[#allocation25_spill] sm:$0xff]  ;;  %v11798_v12 = vld [vmem:[#allocation26_spill] sm:$0xff] }
 0x7e7   :  { %3000 = vmatprep.subr.mxu0 %v9078_v5  ;;  %3071 = vmatprep.subr.mxu1 %v9084_v44  ;;  %v11799_v5 = vld [vmem:[#allocation27_spill] sm:$0xff]  ;;  %v11800_v44 = vld [vmem:[#allocation28_spill] sm:$0xff] }
 0x7e8   :  { %3001 = vmatpush1.msra.mxu0 %v9090_v59  ;;  %3072 = vmatpush1.msra.mxu1 %v9096_v58  ;;  %v11801_v59 = vld [vmem:[#allocation29_spill] sm:$0xff]  ;;  %v11802_v58 = vld [vmem:[#allocation30_spill] sm:$0xff] }
 0x7e9   :  { %3002 = vmatprep.subr.mxu0 %v9102_v8  ;;  %3073 = vmatprep.subr.mxu1 %v9108_v21  ;;  %v11803_v8 = vld [vmem:[#allocation31_spill] sm:$0xff]  ;;  %v11804_v21 = vld [vmem:[#allocation32_spill] sm:$0xff] }
 0x7ea   :  { %3003 = vmatpush1.msra.mxu0 %v9114_v2  ;;  %3036 = vmatprep.mubr.f32.mxu0 %v10946_v34  ;;  %v11805_v2 = vld [vmem:[#allocation33_spill] sm:$0xff] }
 0x7eb   :  { %3074 = vmatpush1.msra.mxu1 %v11765_v17  ;;  %3107 = vmatprep.mubr.f32.mxu1 %v10946_v34  ;;  %v11826_v17 = vld [vmem:[#allocation54_spill] sm:$0xff] }
 0x7ec   :  { %3037 = vmatmul.mubr.f32.vlgmr.msra.gmra.mxu0 %v9913_v20  ;;  %3108 = vmatmul.mubr.f32.vlgmr.msra.gmra.mxu1 %v9913_v20  ;;  %v11806_v20 = vld [vmem:[#allocation34_spill] sm:$0xff] }
 0x7ed   :  { %3142 = vmatprep.subr.mxu0 %v11766_v18  ;;  %3213 = vmatprep.subr.mxu1 %v11767_v16  ;;  %v11827_v18 = vld [vmem:[#allocation55_spill] sm:$0xff]  ;;  %v11828_v16 = vld [vmem:[#allocation56_spill] sm:$0xff] }
 0x7ee   :  { %3143 = vmatpush1.msra.mxu0 %v11768_v29  ;;  %3214 = vmatpush1.msra.mxu1 %v11769_v3  ;;  %v11829_v29 = vld [vmem:[#allocation57_spill] sm:$0xff]  ;;  %v11830_v3 = vld [vmem:[#allocation58_spill] sm:$0xff] }
 0x7ef   :  { %3144 = vmatprep.subr.mxu0 %v11770_v57  ;;  %3215 = vmatprep.subr.mxu1 %v11771_v24  ;;  %v11831_v57 = vld [vmem:[#allocation59_spill] sm:$0xff]  ;;  %v11832_v24 = vld [vmem:[#allocation60_spill] sm:$0xff] }
 0x7f0   :  { %3145 = vmatpush1.msra.mxu0 %v11772_v23  ;;  %3216 = vmatpush1.msra.mxu1 %v11773_v25  ;;  %v11833_v23 = vld [vmem:[#allocation61_spill] sm:$0xff]  ;;  %v11834_v25 = vld [vmem:[#allocation62_spill] sm:$0xff] }
 0x7f1   :  { %3146 = vmatprep.subr.mxu0 %v11774_v33  ;;  %3217 = vmatprep.subr.mxu1 %v11775_v30  ;;  %v11835_v33 = vld [vmem:[#allocation63_spill] sm:$0xff]  ;;  %v11836_v30 = vld [vmem:[#allocation64_spill] sm:$0xff] }
 0x7f2   :  { %3147 = vmatpush1.msra.mxu0 %v11776_v10  ;;  %3218 = vmatpush1.msra.mxu1 %v11777_v26  ;;  %v11837_v10 = vld [vmem:[#allocation65_spill] sm:$0xff]  ;;  %v11838_v26 = vld [vmem:[#allocation66_spill] sm:$0xff] }
 0x7f3   :  { %3148 = vmatprep.subr.mxu0 %v11778_v35  ;;  %3219 = vmatprep.subr.mxu1 %v11779_v37  ;;  %v11839_v35 = vld [vmem:[#allocation67_spill] sm:$0xff]  ;;  %v11840_v37 = vld [vmem:[#allocation68_spill] sm:$0xff] }
 0x7f4   :  { %3149 = vmatpush1.msra.mxu0 %v11780_v45  ;;  %3220 = vmatpush1.msra.mxu1 %v11781_v63  ;;  %v11841_v45 = vld [vmem:[#allocation69_spill] sm:$0xff]  ;;  %v11842_v63 = vld [vmem:[#allocation70_spill] sm:$0xff] }
 0x7f5   :  { %3150 = vmatprep.subr.mxu0 %v11782_v22  ;;  %3221 = vmatprep.subr.mxu1 %v11783_v54  ;;  %v11843_v22 = vld [vmem:[#allocation71_spill] sm:$0xff]  ;;  %v11844_v54 = vld [vmem:[#allocation72_spill] sm:$0xff] }
 0x7f6   :  { %3151 = vmatpush1.msra.mxu0 %v11784_v53  ;;  %3222 = vmatpush1.msra.mxu1 %v11785_v55  ;;  %v11845_v53 = vld [vmem:[#allocation73_spill] sm:$0xff]  ;;  %v11846_v55 = vld [vmem:[#allocation74_spill] sm:$0xff] }
 0x7f7   :  { %3152 = vmatprep.subr.mxu0 %v11786_v56  ;;  %3223 = vmatprep.subr.mxu1 %v11787_v15  ;;  %v11847_v56 = vld [vmem:[#allocation75_spill] sm:$0xff]  ;;  %v11848_v15 = vld [vmem:[#allocation76_spill] sm:$0xff] }
 0x7f8   :  { %3153 = vmatpush1.msra.mxu0 %v11788_v11  ;;  %3224 = vmatpush1.msra.mxu1 %v11789_v9  ;;  %v11849_v11 = vld [vmem:[#allocation77_spill] sm:$0xff]  ;;  %v11850_v9 = vld [vmem:[#allocation78_spill] sm:$0xff] }
 0x7f9   :  { %3154 = vmatprep.subr.mxu0 %v11790_v28  ;;  %3225 = vmatprep.subr.mxu1 %v11791_v36  ;;  %v11851_v28 = vld [vmem:[#allocation79_spill] sm:$0xff]  ;;  %v11852_v36 = vld [vmem:[#allocation80_spill] sm:$0xff] }
 0x7fa   :  { %3155 = vmatpush1.msra.mxu0 %v11792_v31  ;;  %3226 = vmatpush1.msra.mxu1 %v11793_v32  ;;  %v11853_v31 = vld [vmem:[#allocation81_spill] sm:$0xff]  ;;  %v11854_v32 = vld [vmem:[#allocation82_spill] sm:$0xff] }
 0x7fb   :  { %3156 = vmatprep.subr.mxu0 %v11794_v27  ;;  %3227 = vmatprep.subr.mxu1 %v11795_v42  ;;  %v11855_v27 = vld [vmem:[#allocation83_spill] sm:$0xff]  ;;  %v11856_v42 = vld [vmem:[#allocation84_spill] sm:$0xff] }
 0x7fc   :  { %3157 = vmatpush1.msra.mxu0 %v11796_v43  ;;  %3228 = vmatpush1.msra.mxu1 %v11797_v7  ;;  %v11857_v43 = vld [vmem:[#allocation85_spill] sm:$0xff]  ;;  %v11858_v7 = vld [vmem:[#allocation86_spill] sm:$0xff] }
 0x7fd   :  { %3158 = vmatprep.subr.mxu0 %v11798_v12  ;;  %3229 = vmatprep.subr.mxu1 %v11799_v5  ;;  %v11859_v12 = vld [vmem:[#allocation87_spill] sm:$0xff]  ;;  %v11860_v5 = vld [vmem:[#allocation88_spill] sm:$0xff] }
 0x7fe   :  { %3159 = vmatpush1.msra.mxu0 %v11800_v44  ;;  %3230 = vmatpush1.msra.mxu1 %v11801_v59  ;;  %v11861_v44 = vld [vmem:[#allocation89_spill] sm:$0xff]  ;;  %v11862_v59 = vld [vmem:[#allocation90_spill] sm:$0xff] }
 0x7ff   :  { %3160 = vmatprep.subr.mxu0 %v11802_v58  ;;  %3231 = vmatprep.subr.mxu1 %v11803_v8  ;;  %v11863_v58 = vld [vmem:[#allocation91_spill] sm:$0xff]  ;;  %v11864_v8 = vld [vmem:[#allocation92_spill] sm:$0xff] }
 0x800   :  { %3161 = vmatpush1.msra.mxu0 %v11804_v21  ;;  %3232 = vmatpush1.msra.mxu1 %v11805_v2  ;;  %v11865_v21 = vld [vmem:[#allocation93_spill] sm:$0xff]  ;;  %v11866_v2 = vld [vmem:[#allocation94_spill] sm:$0xff] }
 0x801   :  { %3162 = vmatprep.subr.mxu0 %v11806_v20  ;;  %3233 = vmatprep.subr.mxu1 %v11807_v48  ;;  %v11867_v20 = vld [vmem:[#allocation95_spill] sm:$0xff]  ;;  %v11868_v48 = vld [vmem:[#allocation96_spill] sm:$0xff] }
 0x802   :  { %3163 = vmatpush1.msra.mxu0 %v11808_v40  ;;  %3234 = vmatpush1.msra.mxu1 %v11809_v60  ;;  %v11869_v40 = vld [vmem:[#allocation97_spill] sm:$0xff]  ;;  %v11870_v60 = vld [vmem:[#allocation98_spill] sm:$0xff] }
 0x803   :  { %3164 = vmatprep.subr.mxu0 %v11810_v41  ;;  %3235 = vmatprep.subr.mxu1 %v11811_v19  ;;  %v11871_v41 = vld [vmem:[#allocation99_spill] sm:$0xff]  ;;  %v11872_v19 = vld [vmem:[#allocation100_spill] sm:$0xff] }
 0x804   :  { %3165 = vmatpush1.msra.mxu0 %v11812_v13  ;;  %3236 = vmatpush1.msra.mxu1 %v11813_v61  ;;  %v11873_v13 = vld [vmem:[#allocation101_spill] sm:$0xff]  ;;  %v11874_v61 = vld [vmem:[#allocation102_spill] sm:$0xff] }
 0x805   :  { %3166 = vmatprep.subr.mxu0 %v11814_v1  ;;  %3237 = vmatprep.subr.mxu1 %v11815_v50  ;;  %v11875_v1 = vld [vmem:[#allocation103_spill] sm:$0xff]  ;;  %v11876_v50 = vld [vmem:[#allocation104_spill] sm:$0xff] }
 0x806   :  { %3167 = vmatpush1.msra.mxu0 %v11816_v39  ;;  %3238 = vmatpush1.msra.mxu1 %v11817_v49  ;;  %v11877_v39 = vld [vmem:[#allocation105_spill] sm:$0xff]  ;;  %v11878_v49 = vld [vmem:[#allocation106_spill] sm:$0xff] }
 0x807   :  { %3168 = vmatprep.subr.mxu0 %v11818_v0  ;;  %3239 = vmatprep.subr.mxu1 %v11819_v51  ;;  %v11879_v0 = vld [vmem:[#allocation107_spill] sm:$0xff]  ;;  %v11880_v51 = vld [vmem:[#allocation108_spill] sm:$0xff] }
 0x808   :  { %3169 = vmatpush1.msra.mxu0 %v11820_v52  ;;  %3240 = vmatpush1.msra.mxu1 %v11821_v14  ;;  %v11881_v52 = vld [vmem:[#allocation109_spill] sm:$0xff]  ;;  %v11882_v14 = vld [vmem:[#allocation110_spill] sm:$0xff] }
 0x809   :  { %3170 = vmatprep.subr.mxu0 %v11822_v62  ;;  %3241 = vmatprep.subr.mxu1 %v11823_v38  ;;  %v11883_v62 = vld [vmem:[#allocation111_spill] sm:$0xff]  ;;  %v11884_v38 = vld [vmem:[#allocation112_spill] sm:$0xff] }
 0x80a   :  { %3171 = vmatpush1.msra.mxu0 %v11824_v4  ;;  %3242 = vmatpush1.msra.mxu1 %v11825_v46  ;;  %v11885_v4 = vld [vmem:[#allocation113_spill] sm:$0xff]  ;;  %v11886_v46 = vld [vmem:[#allocation114_spill] sm:$0xff] }
 0x80b   :  { %3172 = vmatprep.subr.mxu0 %v11826_v17  ;;  %3243 = vmatprep.subr.mxu1 %v11827_v18  ;;  %v11887_v17 = vld [vmem:[#allocation115_spill] sm:$0xff]  ;;  %v11888_v18 = vld [vmem:[#allocation116_spill] sm:$0xff] }
 0x80c   :  { %3173 = vmatpush1.msra.mxu0 %v11828_v16  ;;  %3244 = vmatpush1.msra.mxu1 %v11829_v29  ;;  %v11889_v16 = vld [vmem:[#allocation117_spill] sm:$0xff]  ;;  %v11890_v29 = vld [vmem:[#allocation118_spill] sm:$0xff] }
 0x80d   :  { %3174 = vmatprep.subr.mxu0 %v11830_v3  ;;  %3245 = vmatprep.subr.mxu1 %v11831_v57  ;;  %v11891_v3 = vld [vmem:[#allocation119_spill] sm:$0xff]  ;;  %v11892_v57 = vld [vmem:[#allocation120_spill] sm:$0xff] }
 0x80e   :  { %3175 = vmatpush2.msra.mxu0 %v11832_v24  ;;  %3246 = vmatpush2.msra.mxu1 %v11833_v23  ;;  %v11893_v24 = vld [vmem:[#allocation121_spill] sm:$0xff] }
 0x80f   :  { %3176 = vmatprep.subr.mxu0 %v11834_v25  ;;  %3247 = vmatprep.subr.mxu1 %v11835_v33  ;;  %v11894_v25 = vld [vmem:[#allocation3_spill] sm:$0xff] }
 0x810   :  { %3177 = vmatpush2.msra.mxu0 %v11836_v30  ;;  %3248 = vmatpush2.msra.mxu1 %v11837_v10 }
 0x811   :  { %3178 = vmatprep.subr.mxu0 %v11838_v26  ;;  %3249 = vmatprep.subr.mxu1 %v11839_v35  ;;  %v11895_v26 = vld [vmem:[#allocation4_spill] sm:$0xff] }
 0x812   :  { %3179 = vmatpush2.msra.mxu0 %v11840_v37  ;;  %3250 = vmatpush2.msra.mxu1 %v11841_v45 }
 0x813   :  { %3180 = vmatprep.subr.mxu0 %v11842_v63  ;;  %3251 = vmatprep.subr.mxu1 %v11843_v22  ;;  %v11896_v22 = vld [vmem:[#allocation5_spill] sm:$0xff] }
 0x814   :  { %3181 = vmatpush2.msra.mxu0 %v11844_v54  ;;  %3252 = vmatpush2.msra.mxu1 %v11845_v53 }
 0x815   :  { %3182 = vmatprep.subr.mxu0 %v11846_v55  ;;  %3253 = vmatprep.subr.mxu1 %v11847_v56  ;;  %v11897_v56 = vld [vmem:[#allocation6_spill] sm:$0xff] }
 0x816   :  { %3183 = vmatpush2.msra.mxu0 %v11848_v15  ;;  %3254 = vmatpush2.msra.mxu1 %v11849_v11 }
 0x817   :  { %3184 = vmatprep.subr.mxu0 %v11850_v9  ;;  %3255 = vmatprep.subr.mxu1 %v11851_v28 }
 0x818   :  { %3185 = vmatpush2.msra.mxu0 %v11852_v36  ;;  %3256 = vmatpush2.msra.mxu1 %v11853_v31 }
 0x819   :  { %3186 = vmatprep.subr.mxu0 %v11854_v32  ;;  %3257 = vmatprep.subr.mxu1 %v11855_v27  ;;  %v11898_v27 = vld [vmem:[#allocation156_spill] sm:$0xff] }
 0x81a   :  { %3187 = vmatpush2.msra.mxu0 %v11856_v42  ;;  %3258 = vmatpush2.msra.mxu1 %v11857_v43 }
 0x81b   :  { %3188 = vmatprep.subr.mxu0 %v11858_v7  ;;  %3259 = vmatprep.subr.mxu1 %v11859_v12 }
 0x81c   :  { %3189 = vmatpush2.msra.mxu0 %v11860_v5  ;;  %3260 = vmatpush2.msra.mxu1 %v11861_v44  ;;  %v11899_v44 = vld [vmem:[#allocation158_spill] sm:$0xff] }
 0x81d   :  { %3190 = vmatprep.subr.mxu0 %v11862_v59  ;;  %3261 = vmatprep.subr.mxu1 %v11863_v58 }
 0x81e   :  { %3191 = vmatpush2.msra.mxu0 %v11864_v8  ;;  %3262 = vmatpush2.msra.mxu1 %v11865_v21 }
 0x81f   :  { %3192 = vmatprep.subr.mxu0 %v11866_v2  ;;  %3263 = vmatprep.subr.mxu1 %v11867_v20 }
 0x820   :  { %3193 = vmatpush2.msra.mxu0 %v11868_v48  ;;  %3264 = vmatpush2.msra.mxu1 %v11869_v40 }
 0x821   :  { %3194 = vmatprep.subr.mxu0 %v11870_v60  ;;  %3265 = vmatprep.subr.mxu1 %v11871_v41  ;;  %v11900_v60 = vld [vmem:[#allocation159_spill] sm:$0xff] }
 0x822   :  { %3195 = vmatpush2.msra.mxu0 %v11872_v19  ;;  %3266 = vmatpush2.msra.mxu1 %v11873_v13  ;;  %v11901_v19 = vld [vmem:[#allocation157_spill] sm:$0xff] }
 0x823   :  { %3196 = vmatprep.subr.mxu0 %v11874_v61  ;;  %3267 = vmatprep.subr.mxu1 %v11875_v1 }
 0x824   :  { %3197 = vmatpush2.msra.mxu0 %v11876_v50  ;;  %3268 = vmatpush2.msra.mxu1 %v11877_v39 }
 0x825   :  { %3198 = vmatprep.subr.mxu0 %v11878_v49  ;;  %3269 = vmatprep.subr.mxu1 %v11879_v0 }
 0x826   :  { %3199 = vmatpush2.msra.mxu0 %v11880_v51  ;;  %3270 = vmatpush2.msra.mxu1 %v11881_v52 }
 0x827   :  { %3200 = vmatprep.subr.mxu0 %v11882_v14  ;;  %3271 = vmatprep.subr.mxu1 %v11883_v62 }
 0x828   :  { %3201 = vmatpush2.msra.mxu0 %v11884_v38  ;;  %3272 = vmatpush2.msra.mxu1 %v11885_v4 }
 0x829   :  { %3202 = vmatprep.subr.mxu0 %v11886_v46  ;;  %3273 = vmatprep.subr.mxu1 %v11887_v17 }
 0x82a   :  { %3203 = vmatpush2.msra.mxu0 %v11888_v18  ;;  %3274 = vmatpush2.msra.mxu1 %v11889_v16 }
 0x82b   :  { %3204 = vmatprep.subr.mxu0 %v11890_v29  ;;  %3275 = vmatprep.subr.mxu1 %v11891_v3 }
 0x82c   :  { %3205 = vmatpush2.msra.mxu0 %v11892_v57  ;;  %3276 = vmatpush2.msra.mxu1 %v11893_v24  ;;  %v3323_v57 = vld [vmem:[%s10246_s6 + $0x78] sm:$0xff]  ;;  %v3322_v24 = vld [vmem:[%s10246_s6 + $0x70] sm:$0xff] }
 0x82d   :  { %3495 = vmatprep.subr.mxu0 %v10946_v34 }
 0x88b   :  { %v2865_v23 = vpop.f32.mrf.mxu0  ;;  %v2936_v37 = vpop.f32.mrf.mxu1 }
 0x88c   :  { %v2866_v33 = vadd.f32 %v2865_v23, %v11894_v25  ;;  %v2937_v15 = vadd.f32 %v2936_v37, %v11897_v56  ;;  %v3320_v23 = vld [vmem:[%s10246_s6 + $0x60] sm:$0xff]  ;;  %v3315_v37 = vld [vmem:[%s10246_s6 + $0x38] sm:$0xff] }
 0x88d   :  { %v2867_v30 = vpop.f32.mrf.mxu0  ;;  %v2938_v63 = vpop.f32.mrf.mxu1 }
 0x88e   :  { %v3468_v10 = vmul.f32 -1.442695, %v2866_v33  ;;  %v2868_v35 = vadd.f32 %v2867_v30, %v11895_v26  ;;  %v2939_v54 = vadd.f32 %v2938_v63, %v11896_v22  ;;  %v3319_v33 = vld [vmem:[%s10246_s6 + $0x58] sm:$0xff]  ;;  %v3318_v30 = vld [vmem:[%s10246_s6 + $0x50] sm:$0xff]  ;;  %v3313_v63 = vld [vmem:[%s10246_s6 + $0x28] sm:$0xff] }
 0x890   :  { %3740 = vpow2.f32 %v3468_v10  ;;  %v3469_v45 = vmul.f32 -1.442695, %v2868_v35  ;;  %v3470_v53 = vmul.f32 -1.442695, %v2939_v54  ;;  %v3317_v10 = vld [vmem:[%s10246_s6 + $0x48] sm:$0xff]  ;;  %v3316_v35 = vld [vmem:[%s10246_s6 + $0x40] sm:$0xff] }
 0x891   :  { %v3312_v54 = vld [vmem:[%s10246_s6 + $0x20] sm:$0xff] }
 0x892   :  { %3742 = vpow2.f32 %v3469_v45  ;;  %v3314_v45 = vld [vmem:[%s10246_s6 + $0x30] sm:$0xff] }
 0x893   :  { %3744 = vpow2.f32 %v3470_v53  ;;  %v3311_v53 = vld [vmem:[%s10246_s6 + $0x18] sm:$0xff] }
 0x89d   :  { %v3741_v55 = vpop.eup %3740 }
 0x89e   :  { %v2944_v11 = vadd.f32 1.0, %v3741_v55  ;;  %v3310_v55 = vld [vmem:[%s10246_s6 + $0x10] sm:$0xff] }
 0x89f   :  { %v3743_v9 = vpop.eup %3742 }
 0x8a0   :  { %3746 = vrcp.f32 %v2944_v11  ;;  %v2950_v28 = vadd.f32 1.0, %v3743_v9  ;;  %v3745_v36 = vpop.eup %3744  ;;  %v3308_v11 = vld [vmem:[%s10246_s6] sm:$0xff] }
 0x8a1   :  { %3748 = vtanh.f32 %v2937_v15  ;;  %v2957_v21 = vadd.f32 1.0, %v3745_v36  ;;  %v3309_v15 = vld [vmem:[%s10246_s6 + $0x8] sm:$0xff] }
 0x8a2   :  { %3750 = vrcp.f32 %v2950_v28 }
 0x8ac   :  { %v3038_v31 = vpop.f32.mrf.mxu0  ;;  %v3109_v2 = vpop.f32.mrf.mxu1 }
 0x8ad   :  { %v3747_v32 = vpop.eup %3746  ;;  %v3114_v42 = vadd.f32 %v3038_v31, %v11898_v27  ;;  %v3116_v13 = vadd.f32 %v3109_v2, %v11901_v19  ;;  %v3477_v19 = vld [vmem:[%s10247_s7] ss:$0 sm:$0xff] }
 0x8ae   :  { %v3749_v43 = vpop.eup %3748  ;;  %v3040_v7 = vpop.f32.mrf.mxu0 }
 0x8af   :  { %v3751_v12 = vpop.eup %3750  ;;  %v3471_v5 = vmul.f32 -1.442695, %v3114_v42  ;;  %v3115_v59 = vadd.f32 %v3040_v7, %v11899_v44  ;;  %v2961_v58 = vmul.f32 %v3749_v43, %v3747_v32  ;;  %v3111_v40 = vpop.f32.mrf.mxu1 }
 0x8b0   :  { %v2960_v8 = vmul.f32 %v3751_v12, %v9904_v47  ;;  %v3117_v41 = vadd.f32 %v3111_v40, %v11900_v60 }
 0x8b1   :  { %3752 = vpow2.f32 %v3471_v5  ;;  %v3472_v20 = vmul.f32 -1.442695, %v3115_v59 }
 0x8b2   :  { %v10159_v48 = vadd.f32 %v2961_v58, %v2960_v8  ;;  %v3473_v61 = vmul.f32 -1.442695, %v3117_v41 }
 0x8b3   :  { %3754 = vpow2.f32 %v3472_v20 }
 0x8b4   :  { %3756 = vrcp.f32 %v2957_v21 }
 0x8b5   :  { %3758 = vtanh.f32 %v10159_v48 }
 0x8b6   :  { %3760 = vtanh.f32 %v3116_v13 }
 0x8b7   :  { %3762 = vpow2.f32 %v3473_v61 }
 0x8be   :  { %v3753_v1 = vpop.eup %3752 }
 0x8bf   :  { %v3121_v50 = vadd.f32 1.0, %v3753_v1 }
 0x8c0   :  { %v3755_v47 = vpop.eup %3754 }
 0x8c1   :  { %v3757_v39 = vpop.eup %3756  ;;  %3764 = vrcp.f32 %v3121_v50  ;;  %v3127_v49 = vadd.f32 1.0, %v3755_v47 }
 0x8c2   :  { %v3759_v0 = vpop.eup %3758 }
 0x8c3   :  { %3766 = vrcp.f32 %v3127_v49  ;;  %v2964_v51 = vmul.f32 %v3759_v0, %v3757_v39  ;;  %v3761_v52 = vpop.eup %3760 }
 0x8c4   :  { %v3763_v14 = vpop.eup %3762 }
 0x8c5   :  { %3206 = vmatprep.mubr.f32.mxu0 %v2964_v51  ;;  %3277 = vmatprep.mubr.f32.mxu1 %v2964_v51  ;;  %v3134_v46 = vadd.f32 1.0, %v3763_v14 }
 0x8c7   :  { %3768 = vrcp.f32 %v3134_v46 }
 0x8ce   :  { %v3765_v62 = vpop.eup %3764 }
 0x8cf   :  { %v3138_v38 = vmul.f32 %v3765_v62, %v3761_v52 }
 0x8d0   :  { %v3767_v4 = vpop.eup %3766 }
 0x8d1   :  { %v3137_v17 = vmul.f32 %v3767_v4, %v9910_v6  ;;  %v3321_v6 = vld [vmem:[%s10246_s6 + $0x68] sm:$0xff] }
 0x8d3   :  { %v3139_v18 = vadd.f32 %v3138_v38, %v3137_v17 }
 0x8d4   :  { %v3769_v16 = vpop.eup %3768 }
 0x8d5   :  { %3770 = vtanh.f32 %v3139_v18 }
 0x8e2   :  { %v3771_v29 = vpop.eup %3770 }
 0x8e3   :  { %v3141_v3 = vmul.f32 %v3771_v29, %v3769_v16 }
 0x8e5   :  { %3207 = vmatmul.mubr.f32.vlgmr.msra.gmra.mxu0 %v3141_v3  ;;  %3278 = vmatmul.mubr.f32.vlgmr.msra.gmra.mxu1 %v3141_v3 }
 0x8e6   :  { %3496 = vmatpush3.msra.mxu0 %v3323_v57  ;;  %3527 = vmatprep.mubr.msk.f32.mxu0 %vm4385_vm1, %v10946_v34 }
 0x8e7   :  { %3497 = vmatprep.subr.mxu0 %v10946_v34 }
 0x8e8   :  { %3498 = vmatpush3.msra.mxu0 %v3322_v24 }
 0x8e9   :  { %3499 = vmatprep.subr.mxu0 %v10946_v34 }
 0x8ea   :  { %3500 = vmatpush3.msra.mxu0 %v3321_v6 }
 0x8eb   :  { %3501 = vmatprep.subr.mxu0 %v10946_v34 }
 0x8ec   :  { %3502 = vmatpush3.msra.mxu0 %v3320_v23 }
 0x8ed   :  { %3503 = vmatprep.subr.mxu0 %v10946_v34 }
 0x8ee   :  { %3504 = vmatpush3.msra.mxu0 %v3319_v33 }
 0x8ef   :  { %3505 = vmatprep.subr.mxu0 %v10946_v34 }
 0x8f0   :  { %3506 = vmatpush3.msra.mxu0 %v3318_v30 }
 0x8f1   :  { %3507 = vmatprep.subr.mxu0 %v10946_v34 }
 0x8f2   :  { %3508 = vmatpush3.msra.mxu0 %v3317_v10 }
 0x8f3   :  { %3509 = vmatprep.subr.mxu0 %v10946_v34 }
 0x8f4   :  { %3510 = vmatpush3.msra.mxu0 %v3316_v35 }
 0x8f5   :  { %3511 = vmatprep.subr.mxu0 %v10946_v34 }
 0x8f6   :  { %3512 = vmatpush3.msra.mxu0 %v3315_v37 }
 0x8f7   :  { %3513 = vmatprep.subr.mxu0 %v10946_v34 }
 0x8f8   :  { %3514 = vmatpush3.msra.mxu0 %v3314_v45 }
 0x8f9   :  { %3515 = vmatprep.subr.mxu0 %v10946_v34 }
 0x8fa   :  { %3516 = vmatpush3.msra.mxu0 %v3313_v63 }
 0x8fb   :  { %3517 = vmatprep.subr.mxu0 %v10946_v34 }
 0x8fc   :  { %3518 = vmatpush3.msra.mxu0 %v3312_v54 }
 0x8fd   :  { %3519 = vmatprep.subr.mxu0 %v10946_v34 }
 0x8fe   :  { %3520 = vmatpush3.msra.mxu0 %v3311_v53 }
 0x8ff   :  { %3521 = vmatprep.subr.mxu0 %v10946_v34 }
 0x900   :  { %3522 = vmatpush3.msra.mxu0 %v3310_v55 }
 0x901   :  { %3523 = vmatprep.subr.mxu0 %v10946_v34 }
 0x902   :  { %3524 = vmatpush3.msra.mxu0 %v3309_v15 }
 0x903   :  { %3525 = vmatprep.subr.mxu0 %v10946_v34 }
 0x904   :  { %3526 = vmatpush3.msra.mxu0 %v3308_v11 }
 0x9a5   :  { %v3208_v9 = vpop.f32.mrf.mxu0  ;;  %v3279_v27 = vpop.f32.mrf.mxu1 }
 0x9a6   :  { %v3209_v28 = vadd.f32 %v3208_v9, %v11894_v25  ;;  %v3280_v44 = vadd.f32 %v3279_v27, %v11897_v56 }
 0x9a7   :  { %v3210_v36 = vpop.f32.mrf.mxu0  ;;  %v3281_v43 = vpop.f32.mrf.mxu1 }
 0x9a8   :  { %v3474_v31 = vmul.f32 -1.442695, %v3209_v28  ;;  %v3211_v32 = vadd.f32 %v3210_v36, %v11895_v26  ;;  %v3282_v7 = vadd.f32 %v3281_v43, %v11896_v22 }
 0x9aa   :  { %3772 = vpow2.f32 %v3474_v31  ;;  %v3475_v42 = vmul.f32 -1.442695, %v3211_v32  ;;  %v3476_v12 = vmul.f32 -1.442695, %v3282_v7 }
 0x9ac   :  { %3774 = vpow2.f32 %v3475_v42 }
 0x9ad   :  { %3776 = vpow2.f32 %v3476_v12 }
 0x9b7   :  { %v3773_v5 = vpop.eup %3772 }
 0x9b8   :  { %v3287_v34 = vadd.f32 1.0, %v3773_v5 }
 0x9b9   :  { %v3775_v59 = vpop.eup %3774 }
 0x9ba   :  { %3778 = vrcp.f32 %v3287_v34  ;;  %v3293_v25 = vadd.f32 1.0, %v3775_v59  ;;  %v3777_v58 = vpop.eup %3776 }
 0x9bb   :  { %3780 = vtanh.f32 %v3280_v44  ;;  %v3300_v2 = vadd.f32 1.0, %v3777_v58 }
 0x9bc   :  { %3782 = vrcp.f32 %v3293_v25 }
 0x9bd   :  { %3784 = vrcp.f32 %v3300_v2 }
 0x9c7   :  { %v3779_v26 = vpop.eup %3778 }
 0x9c8   :  { %v3781_v8 = vpop.eup %3780 }
 0x9c9   :  { %v3783_v21 = vpop.eup %3782  ;;  %v3304_v20 = vmul.f32 %v3781_v8, %v3779_v26 }
 0x9ca   :  { %v3303_v40 = vmul.f32 %v3783_v21, %v10159_v48  ;;  %v3785_v60 = vpop.eup %3784 }
 0x9cc   :  { %v3305_v22 = vadd.f32 %v3304_v20, %v3303_v40 }
 0x9ce   :  { %3786 = vtanh.f32 %v3305_v22 }
 0x9db   :  { %v3787_v56 = vpop.eup %3786 }
 0x9dc   :  { %v3307_v41 = vmul.f32 %v3787_v56, %v3785_v60 }
 0x9de   :  { %3528 = vmatmul.mubr.f32.vlgmr.msra.gmra.mxu0 %v3307_v41 }
 0xa9e   :  { %v3397_v13 = vpop.f32.mrf.mxu0 }
 0xa9f   :  { %v3398_v61 = vadd.f32 %v3477_v19, %v3397_v13 }
 0xaa0   :  { %v3529_v1 = vpop.f32.mrf.mxu0 }
 0xaa1   :  { %3401 = vst [vmem:[%s10248_s8] sm:$0xff] %v3398_v61 }

</bundles_post_ra>
